<compile_context>
chip_gen: v7x
topology: tpu7x:2x2x1
jax: 0.10.0
libtpu: 0.0.40
codegen_flags: <defaults>
</compile_context>

<pallas_src>
import jax
import jax.numpy as jnp
from jax.experimental import pallas as pl
from jax.experimental.pallas import tpu as pltpu


IN_H = IN_W = 51
OUT_H = OUT_W = 110
K_IN = IN_H * IN_W          # 2601
N_OUT = OUT_H * OUT_W       # 12100

TN = 1024                   # output/weight column tile (multiple of 128)


def _round_up(x, m):
    return (x + m - 1) // m * m


K_PAD = _round_up(K_IN, 128)    # 2688
N_PAD = _round_up(N_OUT, TN)    # 12288


def _linear_kernel(x_ref, w_ref, b_ref, o_ref):
    # x_ref: (Mp, K_PAD) resident activations
    # w_ref: (K_PAD, TN) weight column tile (streamed, the DMA bottleneck)
    # b_ref: (1, TN)     bias tile
    # o_ref: (Mp, TN)    output tile
    acc = jnp.dot(x_ref[...], w_ref[...], preferred_element_type=jnp.float32)
    o_ref[...] = acc + b_ref[...]


def prepare_generator_params(weight, bias):
    """One-time (init) weight prep: torch (N_OUT, K_IN) -> padded (K_PAD, N_PAD).

    Call once when the model is created; do NOT call per forward step.
    """
    w_p = (
        jnp.zeros((K_PAD, N_PAD), jnp.float32)
        .at[:K_IN, :N_OUT]
        .set(weight.T.astype(jnp.float32))
    )
    b_p = (
        jnp.zeros((1, N_PAD), jnp.float32)
        .at[0, :N_OUT]
        .set(bias.astype(jnp.float32))
    )
    return w_p, b_p


@jax.jit
def generator_forward(x, w_p, b_p):
    """x: (B, 1, 51, 51) f32; w_p: (K_PAD, N_PAD); b_p: (1, N_PAD)."""
    B = x.shape[0]
    x_flat = x.reshape(B, K_IN).astype(jnp.float32)     # nn.Flatten() on NCHW

    # Pad only the (tiny) activation in the per-call path.
    Mp = _round_up(max(B, 8), 8)
    x_p = jnp.zeros((Mp, K_PAD), jnp.float32).at[:B, :K_IN].set(x_flat)
    # TODO(synk): for large B, add an M grid axis instead of one resident
    # (Mp, K_PAD) activation block.

    grid = (N_PAD // TN,)                                # 12 steps

    cost = pl.CostEstimate(
        flops=2 * Mp * K_PAD * N_PAD,
        transcendentals=0,
        bytes_accessed=4 * (K_PAD * N_PAD + Mp * K_PAD + N_PAD + Mp * N_PAD),
    )

    out_p = pl.pallas_call(
        _linear_kernel,
        out_shape=jax.ShapeDtypeStruct((Mp, N_PAD), jnp.float32),
        grid_spec=pltpu.PrefetchScalarGridSpec(
            num_scalar_prefetch=0,
            grid=grid,
            in_specs=[
                pl.BlockSpec((Mp, K_PAD), lambda j: (0, 0)),   # activations, resident
                pl.BlockSpec((K_PAD, TN), lambda j: (0, j)),   # weight column tile
                pl.BlockSpec((1, TN), lambda j: (0, j)),       # bias tile
            ],
            out_specs=pl.BlockSpec((Mp, TN), lambda j: (0, j)),
        ),
        compiler_params=pltpu.CompilerParams(
            dimension_semantics=("parallel",),
            # ~22 MB of double-buffered weight tiles; raise above v5e's 16 MiB
            # default, matches the v6e/v7x default.
            vmem_limit_bytes=32 << 20,
        ),
        cost_estimate=cost,
    )(x_p, w_p, b_p)

    out = out_p[:B, :N_OUT]
    return out.reshape(B, 1, OUT_H, OUT_W)               # NCHW output


if __name__ == "__main__":
    key = jax.random.PRNGKey(0)
    kx, kw, kb = jax.random.split(key, 3)

    B = 2
    x = jax.random.normal(kx, (B, 1, IN_H, IN_W), dtype=jnp.float32)

    # Deterministic parameter init (same shapes as nn.Linear(2601, 12100)):
    bound = 1.0 / float(K_IN) ** 0.5
    weight = jax.random.uniform(kw, (N_OUT, K_IN), jnp.float32, -bound, bound)
    bias = jax.random.uniform(kb, (N_OUT,), jnp.float32, -bound, bound)

    # One-time parameter preparation (outside the per-call forward path).
    w_p, b_p = jax.block_until_ready(prepare_generator_params(weight, bias))

    out = generator_forward(x, w_p, b_p)
    out = jax.block_until_ready(out)

    # Reference check against plain JAX.
    ref = (x.reshape(B, K_IN) @ weight.T + bias).reshape(B, 1, OUT_H, OUT_W)
    assert out.shape == (B, 1, OUT_H, OUT_W), out.shape
    assert jnp.allclose(out, ref, atol=1e-4, rtol=1e-4)

    print("KERNEL_OK")
</pallas_src>

<mosaic_0001>
module attributes {stable_mosaic.version = 11 : i64} {
  func.func @_linear_kernel(%arg0: i32, %arg1: memref<8x2688xf32, #tpu.memory_space<vmem>>, %arg2: memref<2688x1024xf32, #tpu.memory_space<vmem>>, %arg3: memref<1x1024xf32, #tpu.memory_space<vmem>>, %arg4: memref<8x1024xf32, #tpu.memory_space<vmem>>) attributes {dimension_semantics = [#tpu.dimension_semantics<parallel>], iteration_bounds = array<i64: 12>, scalar_prefetch = 0 : i64, scratch_operands = 0 : i64, tpu.core_type = #tpu.core_type<tc>, window_params = [{pipeline_mode = #tpu.pipeline_mode<synchronous>, transform_indices = @transform_0, window_bounds = array<i64: 8, 2688>}, {transform_indices = @transform_1, window_bounds = array<i64: 2688, 1024>}, {transform_indices = @transform_2, window_bounds = array<i64: 1, 1024>}, {transform_indices = @transform_3, window_bounds = array<i64: 8, 1024>}]} {
    %c0 = arith.constant 0 : index
    %c0_0 = arith.constant 0 : index
    %0 = vector.load %arg1[%c0, %c0_0] : memref<8x2688xf32, #tpu.memory_space<vmem>>, vector<8x2688xf32>
    %c0_1 = arith.constant 0 : index
    %c0_2 = arith.constant 0 : index
    %1 = vector.load %arg2[%c0_1, %c0_2] : memref<2688x1024xf32, #tpu.memory_space<vmem>>, vector<2688x1024xf32>
    %cst = arith.constant dense<0.000000e+00> : vector<8x1024xf32>
    %2 = tpu.matmul %0, %1, %cst {dimension_numbers = #tpu.dot_dimension_numbers<[1], [0], [0], [1], [0, 0, 1, 1], [], []>} : vector<8x2688xf32>, vector<2688x1024xf32>, vector<8x1024xf32> -> vector<8x1024xf32>
    %c0_3 = arith.constant 0 : index
    %c0_4 = arith.constant 0 : index
    %3 = vector.load %arg3[%c0_3, %c0_4] : memref<1x1024xf32, #tpu.memory_space<vmem>>, vector<1x1024xf32>
    %4 = vector.broadcast %3 : vector<1x1024xf32> to vector<8x1024xf32>
    %5 = arith.addf %2, %4 : vector<8x1024xf32>
    %c0_5 = arith.constant 0 : index
    %c0_6 = arith.constant 0 : index
    %6 = vector.load %arg4[%c0_5, %c0_6] : memref<8x1024xf32, #tpu.memory_space<vmem>>, vector<8x1024xf32>
    tpu.vector_store %arg4[%c0_5, %c0_6], %5 {strides = array<i32>} : memref<8x1024xf32, #tpu.memory_space<vmem>>, vector<8x1024xf32>,
    return
  }
  func.func @transform_0(%arg0: i32) -> (i32, i32) {
    %c0_i32 = arith.constant 0 : i32
    %c0_i32_0 = arith.constant 0 : i32
    %c0_i32_1 = arith.constant 0 : i32
    return %c0_i32, %c0_i32_0 : i32, i32
  }
  func.func @transform_1(%arg0: i32) -> (i32, i32) {
    %c0_i32 = arith.constant 0 : i32
    %c0_i32_0 = arith.constant 0 : i32
    return %c0_i32, %arg0 : i32, i32
  }
  func.func @transform_2(%arg0: i32) -> (i32, i32) {
    %c0_i32 = arith.constant 0 : i32
    %c0_i32_0 = arith.constant 0 : i32
    return %c0_i32, %arg0 : i32, i32
  }
  func.func @transform_3(%arg0: i32) -> (i32, i32) {
    %c0_i32 = arith.constant 0 : i32
    %c0_i32_0 = arith.constant 0 : i32
    return %c0_i32, %arg0 : i32, i32
  }
}

</mosaic_0001>

<bundles_post_ra>
// kernel: generator_forward.1
= control target key start
LH: loop header
LB: loop body
LE: loop exit
PB: predicated region body
PF: predicated region fallthrough
CT: control target
= control target key end

     0   :  { %8 = vsyncpa [#allocation3], 0  ;;  %s12194_s0 = inlined_call_operand.vmem [shape: f32[8,2688], index: 0, kind: input, shape index: {}]   ;;  %s12195_s1 = inlined_call_operand.hbm [shape: f32[2688,12288], index: 1, kind: input, shape index: {}]   ;;  %s12196_s2 = inlined_call_operand.hbm [shape: f32[1,12288], index: 2, kind: input, shape index: {}]   ;;  %s12197_s3 = inlined_call_operand.vmem [shape: f32[8,12288], index: 3, kind: output, shape index: {}]  }
   0x1   :  { %10 = vsyncpa [#allocation3 + $0x1], 0 }
   0x2   :  { %11 = vsyncpa [#allocation5], 0 }
   0x3   :  { %13 = vsyncpa [#allocation5 + $0x1], 0  ;;  %s9196_s12 = smov 0   ;;  %s9198_s13 = smov 0  }
   0x4   :  { %s9200_s14 = smov 0   ;;  %s9202_s15 = smov 0  }
   0x5 LB: > { %s6205_s16 = sadd.s32 4294967295, %s9168_s15   ;;  %s9216_s17 = sadd.s32 1, %s9168_s15   ;;  %s9168_s15 = sphi %s9202_s15, %s12207_s15   ;;  %s9164_s14 = sphi %s9200_s14, %s12206_s14   ;;  %s9160_s13 = sphi %s9198_s13, %s12205_s13   ;;  %s9156_s12 = sphi %s9196_s12, %s12204_s12  }
   0x6   : > { %s44_s18 = ssub.s32 %s9168_s15, %s9216_s17  ;;  %s47_s19 = sadd.s32 1, %s9164_s14 }
   0x7   : > { %p45_p0 = scmp.eq.s32.totalorder %s44_s18, 0  ;;  %p54_p1 = scmp.ne.s32.totalorder %s9164_s14, %s9160_s13 }
   0x8   : > { %p55_p2 = scmp.eq.s32.totalorder %s9168_s15, 0  ;;  %p60_p3 = scmp.ne.s32.totalorder %s9160_s13, %s9156_s12 }
   0x9   : > { %s9226_s20 = scalar_select %p45_p0, %s9164_s14, %s47_s19  }
   0xa   : > { %p56_p4 = por %p55_p2, %p54_p1  ;;  %p61_p5 = scmp.eq.s32.totalorder %s6205_s16, 0 }
   0xb   : > { %p9011_p6 = scmp.lt.s32.totalorder %s9168_s15, 12  ;;  %s9236_s22 = sand.u32 1, %s9164_s14  }
   0xc   : > { %p9231_p7 = por %p61_p5, %p60_p3  ;;  %s8998_s23 = smul.u32 21504, %s9236_s22 }
   0xd   : > { %s6220_s24 = sshll.u32 %s9168_s15, 10  ;;  %p9240_p8 = pnand %p9011_p6, %p56_p4 }
   0xe   : > { %s12199_s21 = scalar_select %p9231_p7, 1, 0 }
   0xf   : > { %s9247_s28 = scalar_lea.hbm %s12195_s1, %s6220_s24  ;;  %s143_s29 = scalar_lea.vmem [#allocation2], %s8998_s23 }
  0x10   : > { %s150_s30 = sshll.u32 %s143_s29, 4  ;;  %s140_s4 = scalar_lea.sflag [#allocation3], %s9236_s22  ;;  %s9249_s30 = int_to_ptr.vmem [resolvable:$true] %s150_s30 }
  0x11   : > { %s9070_s5 = scalar_lea.hbm %s9247_s28, 344064  ;;  %p9072_p10 = pneg %p9240_p8 }
  0x12   : > { %p9071_p9 = scmp.ne.s32.totalorder %s9247_s28, %s9070_s5  ;;  %s9075_s8 = scalar_lea.hbm %s12195_s1, 4128768 }
  0x13   : > { %p9076_p13 = scmp.lt.u32.totalorder %s9247_s28, %s12195_s1  ;;  %p9077_p0 = scmp.lt.u32.totalorder %s9075_s8, %s9070_s5 }
  0x14   : > { %p9073_p11 = pnand %p9072_p10, %p9071_p9  ;;  %p9079_p2 = scmp.lt.u32.totalorder %s9070_s5, %s9247_s28 }
  0x15   : > { %p9078_p1 = por %p9077_p0, %p9076_p13 }
  0x16   : > { %p9074_p12 = pneg %p9073_p11 }
  0x17   : > { %p9080_p3 = por %p9079_p2, %p9078_p1 }
  0x19   : > { %p9081_p4 = pnand %p9080_p3, %p9074_p12 }
  0x1b   : > { %9084 = shalt.err (!%p9081_p4)
}
  0x1c   : > { %s9085_s11 = scalar_lea.vmem %s9249_s30, 344064  ;;  %s9170_s12 = smov [#allocation2]  }
  0x1d   : > { %p9086_p5 = scmp.ne.s32.totalorder %s9249_s30, %s9085_s11  ;;  %s9090_s18 = sshll.u32 %s9170_s12, 4  ;;  %s9091_s18 = int_to_ptr.vmem [resolvable:$false] %s9090_s18 }
  0x1e   : > { %s9092_s19 = scalar_lea.vmem %s9091_s18, 688128  ;;  %p9093_p11 = scmp.lt.s32.totalorder %s9249_s30, %s9091_s18 }
  0x1f   : > { %p9088_p6 = pnand %p9086_p5, %p9072_p10  ;;  %p9094_p13 = scmp.lt.s32.totalorder %s9092_s19, %s9085_s11 }
  0x21   : > { %p9089_p9 = pneg %p9088_p6  ;;  %p9095_p0 = por %p9094_p13, %p9093_p11 }
  0x23   : > { %p9096_p1 = pnand %p9095_p0, %p9089_p9 }
  0x25   : > { %9099 = shalt.err (!%p9096_p1)
}
  0x26   : > { %s9171_s23 = smov 12288   ;;  %s9172_s24 = smov 1024  }
  0x27   : > { %s9173_s26 = smov 64   ;;  %p6214_p12 = scmp.ge.s32.totalorder %s9168_s15, 1 }
  0x28   : > { %9007 = dma.hbm_to_vmem [thread:$0]  (!%p9240_p8), %s9247_s28, 344064, %s9249_s30, %s140_s4, %s9171_s23, %s9172_s24, %s9173_s26  }
  0x29   : > { %p177_p2 = scmp.lt.s32.totalorder %s9168_s15, 13  ;;  %s6211_s27 = sshll.u32 %s9236_s22, 3 }
  0x2a   : > { %s6221_s5 = sshll.u32 %s9168_s15, 7  ;;  %s164_s6 = scalar_lea.vmem [#allocation4], %s6211_s27 }
  0x2b   : > { %p9282_p3 = pnand %p6214_p12, %p177_p2  ;;  %s172_s7 = sshll.u32 %s164_s6, 4  ;;  %s173_s7 = int_to_ptr.vmem [resolvable:$true] %s172_s7 }
  0x2c   : > { %s9290_s10 = scalar_lea.hbm %s12196_s2, %s6221_s5  ;;  %s161_s28 = scalar_lea.sflag [#allocation5], %s9236_s22 }
  0x2d   : > { %s12201_s29 = scalar_select %p9282_p3, 1, 0 }
  0x2e   : > { %s9100_s30 = scalar_lea.hbm %s9290_s10, 128  ;;  %s9105_s12 = scalar_lea.hbm %s12196_s2, 1536 }
  0x2f   : > { %p9101_p4 = scmp.ne.s32.totalorder %s9290_s10, %s9100_s30  ;;  %p9106_p9 = scmp.lt.u32.totalorder %s9290_s10, %s12196_s2 }
  0x30   : > { %p9107_p11 = scmp.lt.u32.totalorder %s9105_s12, %s9100_s30  ;;  %p9109_p0 = scmp.lt.u32.totalorder %s9100_s30, %s9290_s10 }
  0x31   : > { %p9103_p5 = pnand %p9101_p4, %p9072_p10 }
  0x32   : > { %p9108_p13 = por %p9107_p11, %p9106_p9 }
  0x33   : > { %p9104_p6 = pneg %p9103_p5 }
  0x34   : > { %p9110_p1 = por %p9109_p0, %p9108_p13 }
  0x36   : > { %p9111_p12 = pnand %p9110_p1, %p9104_p6 }
  0x38   : > { %9114 = shalt.err (!%p9111_p12)
}
  0x39   : > { %s9115_s22 = scalar_lea.vmem %s173_s7, 128  ;;  %s9174_s23 = smov [#allocation4]  }
  0x3a   : > { %p9116_p2 = scmp.ne.s32.totalorder %s173_s7, %s9115_s22  ;;  %s9120_s24 = sshll.u32 %s9174_s23, 4  ;;  %s9121_s24 = int_to_ptr.vmem [resolvable:$false] %s9120_s24 }
  0x3b   : > { %s9122_s26 = scalar_lea.vmem %s9121_s24, 256  ;;  %p9123_p7 = scmp.lt.s32.totalorder %s173_s7, %s9121_s24 }
  0x3c   : > { %p9118_p4 = pnand %p9116_p2, %p9072_p10  ;;  %p9124_p3 = scmp.lt.s32.totalorder %s9122_s26, %s9115_s22 }
  0x3e   : > { %p9119_p5 = pneg %p9118_p4  ;;  %p9125_p9 = por %p9124_p3, %p9123_p7 }
  0x40   : > { %p9126_p11 = pnand %p9125_p9, %p9119_p5 }
  0x42   : > { %9129 = shalt.err (!%p9126_p11)
}
  0x43   : > { %9010 = dma.hbm_to_vmem [thread:$0]  (!%p9240_p8), %s9290_s10, 128, %s173_s7, %s161_s28  }
  0x44   : > { %p12202_p6 = scmp.ne.s32.totalorder %s12201_s29, 0 }
  0x45   : > { %s183_s27 = sand.u32 (!%p12202_p6), 1, %s9160_s13   ;;  %p12203_p10 = scmp.ne.s32.totalorder (!%p12202_p6), %s12199_s21, 0 }
  0x46   : > { %181 = sbr.rel (%p12202_p6) target bundleno = 1646 (0x66e), region = 32  ;;  %s184_s6 = scalar_lea.sflag (!%p12202_p6), [#allocation3], %s183_s27 }
  0x47   : > { %s8999_s5 = smul.u32 (!%p12202_p6), 21504, %s183_s27 }
  0x49   : > { %s9315_s8 = scalar_lea.vmem (!%p12202_p6), [#allocation2], %s8999_s5 }
  0x4d   : > { %9147 = dma.done.wait (%p12203_p10), %s184_s6, 344064  }
  0x4e   : > { %9149 = vsyncadd (%p12203_p10), %s184_s6, 4294623232  ;;  %s6215_s9 = sshll.u32 %s183_s27, 3  ;;  %s193_s25 = scalar_lea.sflag [#allocation5], %s183_s27 }
  0x4f   : > { %s9321_s30 = scalar_lea.vmem [#allocation4], %s6215_s9 }
  0x50   : > { %9151 = dma.done.wait (%p12203_p10), %s193_s25, 128  }
  0x51   : > { %9153 = vsyncadd (%p12203_p10), %s193_s25, 4294967168  ;;  %v254_v0 = vld [vmem:[%s9315_s8 + $0x8] sm:$0xff]  ;;  %v256_v2 = vld [vmem:[%s9315_s8 + $0x18] sm:$0xff]  ;;  %s11171_s25 = sshll.u32 %s6205_s16, 3 }
  0x52   : > { %v262_v1 = vld [vmem:[%s9315_s8 + $0x48] sm:$0xff]  ;;  %v264_v4 = vld [vmem:[%s9315_s8 + $0x58] sm:$0xff]  ;;  %v253_v5 = vld [vmem:[%s9315_s8] sm:$0xff]  ;;  %p227_p7 = scmp.lt.s32.totalorder %s11171_s25, 95 }
  0x53   : > { %v6222_v3 = vpack.c.bf16 %v262_v1, %v254_v0  ;;  %v261_v6 = vld [vmem:[%s9315_s8 + $0x40] sm:$0xff]  ;;  %v6894_v7 = vpack.c.bf16 %v264_v4, %v256_v2  ;;  %v255_v9 = vld [vmem:[%s9315_s8 + $0x10] sm:$0xff]  ;;  %v270_v11 = vld [vmem:[%s9315_s8 + $0x88] sm:$0xff] }
  0x54   : > { %v6224_v8 = vpack.c.bf16 %v261_v6, %v253_v5  ;;  %v263_v10 = vld [vmem:[%s9315_s8 + $0x50] sm:$0xff]  ;;  %v278_v13 = vld [vmem:[%s9315_s8 + $0xc8] sm:$0xff]  ;;  %v272_v14 = vld [vmem:[%s9315_s8 + $0x98] sm:$0xff]  ;;  %s12209_s25 = smov (!%p227_p7, %s11171_s25), 95 }
  0x55   : > { %6223 = vmatprep.subr.bf16.mxu0 %v6222_v3  ;;  %v6896_v12 = vpack.c.bf16 %v263_v10, %v255_v9  ;;  %v280_v15 = vld [vmem:[%s9315_s8 + $0xd8] sm:$0xff]  ;;  %6895 = vmatprep.subr.bf16.mxu1 %v6894_v7  ;;  %v6226_v16 = vpack.c.bf16 %v278_v13, %v270_v11  ;;  %v269_v18 = vld [vmem:[%s9315_s8 + $0x80] sm:$0xff]  ;;  %v271_v20 = vld [vmem:[%s9315_s8 + $0x90] sm:$0xff]  ;;  %s6217_s15 = sshll.u32 %s12209_s25, 3 }
  0x56   : > { %6225 = vmatpush1.bf16.msra.mxu0 %v6224_v8  ;;  %v6898_v17 = vpack.c.bf16 %v280_v15, %v272_v14  ;;  %v277_v19 = vld [vmem:[%s9315_s8 + $0xc0] sm:$0xff]  ;;  %v279_v22 = vld [vmem:[%s9315_s8 + $0xd0] sm:$0xff]  ;;  %v286_v23 = vld [vmem:[%s9315_s8 + $0x108] sm:$0xff]  ;;  %s11217_s29 = scalar_lea.vmem %s12197_s3, %s6217_s15 }
  0x57   : > { %6897 = vmatpush1.bf16.msra.mxu1 %v6896_v12  ;;  %v6228_v21 = vpack.c.bf16 %v277_v19, %v269_v18  ;;  %v294_v24 = vld [vmem:[%s9315_s8 + $0x148] sm:$0xff]  ;;  %6227 = vmatprep.subr.bf16.mxu0 %v6226_v16  ;;  %v6900_v25 = vpack.c.bf16 %v279_v22, %v271_v20  ;;  %v288_v27 = vld [vmem:[%s9315_s8 + $0x118] sm:$0xff]  ;;  %v285_v29 = vld [vmem:[%s9315_s8 + $0x100] sm:$0xff] }
  0x58   : > { %6899 = vmatprep.subr.bf16.mxu1 %v6898_v17  ;;  %v6230_v26 = vpack.c.bf16 %v294_v24, %v286_v23  ;;  %v296_v28 = vld [vmem:[%s9315_s8 + $0x158] sm:$0xff]  ;;  %v293_v31 = vld [vmem:[%s9315_s8 + $0x140] sm:$0xff]  ;;  %v287_v32 = vld [vmem:[%s9315_s8 + $0x110] sm:$0xff] }
  0x59   : > { %v6902_v30 = vpack.c.bf16 %v296_v28, %v288_v27  ;;  %v295_v33 = vld [vmem:[%s9315_s8 + $0x150] sm:$0xff]  ;;  %v6232_v34 = vpack.c.bf16 %v293_v31, %v285_v29  ;;  %v302_v35 = vld [vmem:[%s9315_s8 + $0x188] sm:$0xff]  ;;  %v304_v37 = vld [vmem:[%s9315_s8 + $0x198] sm:$0xff] }
  0x5a   : > { %6229 = vmatpush1.bf16.msra.mxu0 %v6228_v21  ;;  %v310_v36 = vld [vmem:[%s9315_s8 + $0x1c8] sm:$0xff]  ;;  %v6904_v38 = vpack.c.bf16 %v295_v33, %v287_v32  ;;  %v312_v40 = vld [vmem:[%s9315_s8 + $0x1d8] sm:$0xff]  ;;  %v301_v41 = vld [vmem:[%s9315_s8 + $0x180] sm:$0xff] }
  0x5b   : > { %6901 = vmatpush1.bf16.msra.mxu1 %v6900_v25  ;;  %6231 = vmatprep.subr.bf16.mxu0 %v6230_v26  ;;  %v6234_v39 = vpack.c.bf16 %v310_v36, %v302_v35  ;;  %v309_v42 = vld [vmem:[%s9315_s8 + $0x1c0] sm:$0xff]  ;;  %v6906_v43 = vpack.c.bf16 %v312_v40, %v304_v37  ;;  %v303_v44 = vld [vmem:[%s9315_s8 + $0x190] sm:$0xff]  ;;  %v318_v46 = vld [vmem:[%s9315_s8 + $0x208] sm:$0xff] }
  0x5c   : > { %6903 = vmatprep.subr.bf16.mxu1 %v6902_v30  ;;  %v311_v45 = vld [vmem:[%s9315_s8 + $0x1d0] sm:$0xff]  ;;  %v326_v47 = vld [vmem:[%s9315_s8 + $0x248] sm:$0xff]  ;;  %v320_v48 = vld [vmem:[%s9315_s8 + $0x218] sm:$0xff]  ;;  %v6236_v50 = vpack.c.bf16 %v309_v42, %v301_v41 }
  0x5d   : > { %v328_v49 = vld [vmem:[%s9315_s8 + $0x258] sm:$0xff]  ;;  %v6908_v51 = vpack.c.bf16 %v311_v45, %v303_v44  ;;  %v6238_v52 = vpack.c.bf16 %v326_v47, %v318_v46  ;;  %v317_v53 = vld [vmem:[%s9315_s8 + $0x200] sm:$0xff]  ;;  %v319_v55 = vld [vmem:[%s9315_s8 + $0x210] sm:$0xff] }
  0x5e   : > { %6233 = vmatpush1.bf16.msra.mxu0 %v6232_v34  ;;  %v325_v54 = vld [vmem:[%s9315_s8 + $0x240] sm:$0xff]  ;;  %v6910_v56 = vpack.c.bf16 %v328_v49, %v320_v48  ;;  %v327_v57 = vld [vmem:[%s9315_s8 + $0x250] sm:$0xff]  ;;  %v334_v58 = vld [vmem:[%s9315_s8 + $0x288] sm:$0xff] }
  0x5f   : > { %6905 = vmatpush1.bf16.msra.mxu1 %v6904_v38  ;;  %6235 = vmatprep.subr.bf16.mxu0 %v6234_v39  ;;  %v342_v59 = vld [vmem:[%s9315_s8 + $0x2c8] sm:$0xff]  ;;  %v336_v60 = vld [vmem:[%s9315_s8 + $0x298] sm:$0xff]  ;;  %v6240_v62 = vpack.c.bf16 %v325_v54, %v317_v53  ;;  %v6912_v63 = vpack.c.bf16 %v327_v57, %v319_v55  ;;  %v333_v1 = vld [vmem:[%s9315_s8 + $0x280] sm:$0xff] }
  0x60   : > { %6907 = vmatprep.subr.bf16.mxu1 %v6906_v43  ;;  %v344_v61 = vld [vmem:[%s9315_s8 + $0x2d8] sm:$0xff]  ;;  %v6242_v0 = vpack.c.bf16 %v342_v59, %v334_v58  ;;  %v341_v2 = vld [vmem:[%s9315_s8 + $0x2c0] sm:$0xff]  ;;  %v335_v3 = vld [vmem:[%s9315_s8 + $0x290] sm:$0xff] }
  0x61   : > { %v6914_v4 = vpack.c.bf16 %v344_v61, %v336_v60  ;;  %v343_v5 = vld [vmem:[%s9315_s8 + $0x2d0] sm:$0xff]  ;;  %v350_v6 = vld [vmem:[%s9315_s8 + $0x308] sm:$0xff]  ;;  %v352_v8 = vld [vmem:[%s9315_s8 + $0x318] sm:$0xff]  ;;  %v6244_v10 = vpack.c.bf16 %v341_v2, %v333_v1 }
  0x62   : > { %6237 = vmatpush1.bf16.msra.mxu0 %v6236_v50  ;;  %v358_v7 = vld [vmem:[%s9315_s8 + $0x348] sm:$0xff]  ;;  %v360_v9 = vld [vmem:[%s9315_s8 + $0x358] sm:$0xff]  ;;  %v6916_v11 = vpack.c.bf16 %v343_v5, %v335_v3  ;;  %v349_v13 = vld [vmem:[%s9315_s8 + $0x300] sm:$0xff] }
  0x63   : > { %6909 = vmatpush1.bf16.msra.mxu1 %v6908_v51  ;;  %6239 = vmatprep.subr.bf16.mxu0 %v6238_v52  ;;  %v6246_v12 = vpack.c.bf16 %v358_v7, %v350_v6  ;;  %v357_v14 = vld [vmem:[%s9315_s8 + $0x340] sm:$0xff]  ;;  %v351_v15 = vld [vmem:[%s9315_s8 + $0x310] sm:$0xff]  ;;  %v6918_v16 = vpack.c.bf16 %v360_v9, %v352_v8  ;;  %v366_v18 = vld [vmem:[%s9315_s8 + $0x388] sm:$0xff] }
  0x64   : > { %6911 = vmatprep.subr.bf16.mxu1 %v6910_v56  ;;  %v359_v17 = vld [vmem:[%s9315_s8 + $0x350] sm:$0xff]  ;;  %v374_v19 = vld [vmem:[%s9315_s8 + $0x3c8] sm:$0xff]  ;;  %v368_v20 = vld [vmem:[%s9315_s8 + $0x398] sm:$0xff]  ;;  %v6248_v22 = vpack.c.bf16 %v357_v14, %v349_v13 }
  0x65   : > { %v376_v21 = vld [vmem:[%s9315_s8 + $0x3d8] sm:$0xff]  ;;  %v6920_v23 = vpack.c.bf16 %v359_v17, %v351_v15  ;;  %v6250_v24 = vpack.c.bf16 %v374_v19, %v366_v18  ;;  %v365_v25 = vld [vmem:[%s9315_s8 + $0x380] sm:$0xff]  ;;  %v367_v27 = vld [vmem:[%s9315_s8 + $0x390] sm:$0xff] }
  0x66   : > { %6241 = vmatpush1.bf16.msra.mxu0 %v6240_v62  ;;  %v373_v26 = vld [vmem:[%s9315_s8 + $0x3c0] sm:$0xff]  ;;  %v6922_v28 = vpack.c.bf16 %v376_v21, %v368_v20  ;;  %v375_v29 = vld [vmem:[%s9315_s8 + $0x3d0] sm:$0xff]  ;;  %v382_v30 = vld [vmem:[%s9315_s8 + $0x408] sm:$0xff] }
  0x67   : > { %6913 = vmatpush1.bf16.msra.mxu1 %v6912_v63  ;;  %6243 = vmatprep.subr.bf16.mxu0 %v6242_v0  ;;  %v390_v31 = vld [vmem:[%s9315_s8 + $0x448] sm:$0xff]  ;;  %v384_v32 = vld [vmem:[%s9315_s8 + $0x418] sm:$0xff]  ;;  %v6252_v34 = vpack.c.bf16 %v373_v26, %v365_v25  ;;  %v6924_v35 = vpack.c.bf16 %v375_v29, %v367_v27  ;;  %v381_v37 = vld [vmem:[%s9315_s8 + $0x400] sm:$0xff] }
  0x68   : > { %6915 = vmatprep.subr.bf16.mxu1 %v6914_v4  ;;  %v392_v33 = vld [vmem:[%s9315_s8 + $0x458] sm:$0xff]  ;;  %v6254_v36 = vpack.c.bf16 %v390_v31, %v382_v30  ;;  %v389_v38 = vld [vmem:[%s9315_s8 + $0x440] sm:$0xff]  ;;  %v383_v39 = vld [vmem:[%s9315_s8 + $0x410] sm:$0xff] }
  0x69   : > { %v6926_v40 = vpack.c.bf16 %v392_v33, %v384_v32  ;;  %v391_v41 = vld [vmem:[%s9315_s8 + $0x450] sm:$0xff]  ;;  %v398_v42 = vld [vmem:[%s9315_s8 + $0x488] sm:$0xff]  ;;  %v400_v44 = vld [vmem:[%s9315_s8 + $0x498] sm:$0xff]  ;;  %v6256_v46 = vpack.c.bf16 %v389_v38, %v381_v37 }
  0x6a   : > { %6245 = vmatpush1.bf16.msra.mxu0 %v6244_v10  ;;  %v406_v43 = vld [vmem:[%s9315_s8 + $0x4c8] sm:$0xff]  ;;  %v408_v45 = vld [vmem:[%s9315_s8 + $0x4d8] sm:$0xff]  ;;  %v6928_v47 = vpack.c.bf16 %v391_v41, %v383_v39  ;;  %v397_v49 = vld [vmem:[%s9315_s8 + $0x480] sm:$0xff] }
  0x6b   : > { %6917 = vmatpush1.bf16.msra.mxu1 %v6916_v11  ;;  %6247 = vmatprep.subr.bf16.mxu0 %v6246_v12  ;;  %v6258_v48 = vpack.c.bf16 %v406_v43, %v398_v42  ;;  %v405_v50 = vld [vmem:[%s9315_s8 + $0x4c0] sm:$0xff]  ;;  %v399_v51 = vld [vmem:[%s9315_s8 + $0x490] sm:$0xff]  ;;  %v6930_v52 = vpack.c.bf16 %v408_v45, %v400_v44  ;;  %v414_v54 = vld [vmem:[%s9315_s8 + $0x508] sm:$0xff] }
  0x6c   : > { %6919 = vmatprep.subr.bf16.mxu1 %v6918_v16  ;;  %v407_v53 = vld [vmem:[%s9315_s8 + $0x4d0] sm:$0xff]  ;;  %v422_v55 = vld [vmem:[%s9315_s8 + $0x548] sm:$0xff]  ;;  %v416_v56 = vld [vmem:[%s9315_s8 + $0x518] sm:$0xff]  ;;  %v6260_v58 = vpack.c.bf16 %v405_v50, %v397_v49 }
  0x6d   : > { %v424_v57 = vld [vmem:[%s9315_s8 + $0x558] sm:$0xff]  ;;  %v6932_v59 = vpack.c.bf16 %v407_v53, %v399_v51  ;;  %v6262_v60 = vpack.c.bf16 %v422_v55, %v414_v54  ;;  %v413_v61 = vld [vmem:[%s9315_s8 + $0x500] sm:$0xff]  ;;  %v415_v63 = vld [vmem:[%s9315_s8 + $0x510] sm:$0xff] }
  0x6e   : > { %6249 = vmatpush1.bf16.msra.mxu0 %v6248_v22  ;;  %v421_v62 = vld [vmem:[%s9315_s8 + $0x540] sm:$0xff]  ;;  %v6934_v0 = vpack.c.bf16 %v424_v57, %v416_v56  ;;  %v423_v1 = vld [vmem:[%s9315_s8 + $0x550] sm:$0xff]  ;;  %v430_v2 = vld [vmem:[%s9315_s8 + $0x588] sm:$0xff] }
  0x6f   : > { %6921 = vmatpush1.bf16.msra.mxu1 %v6920_v23  ;;  %6251 = vmatprep.subr.bf16.mxu0 %v6250_v24  ;;  %v438_v3 = vld [vmem:[%s9315_s8 + $0x5c8] sm:$0xff]  ;;  %v432_v4 = vld [vmem:[%s9315_s8 + $0x598] sm:$0xff]  ;;  %v6264_v6 = vpack.c.bf16 %v421_v62, %v413_v61  ;;  %v429_v7 = vld [vmem:[%s9315_s8 + $0x580] sm:$0xff]  ;;  %v6936_v8 = vpack.c.bf16 %v423_v1, %v415_v63 }
  0x70   : > { %6923 = vmatprep.subr.bf16.mxu1 %v6922_v28  ;;  %v440_v5 = vld [vmem:[%s9315_s8 + $0x5d8] sm:$0xff]  ;;  %v6266_v9 = vpack.c.bf16 %v438_v3, %v430_v2  ;;  %v437_v10 = vld [vmem:[%s9315_s8 + $0x5c0] sm:$0xff]  ;;  %v431_v11 = vld [vmem:[%s9315_s8 + $0x590] sm:$0xff] }
  0x71   : > { %v439_v12 = vld [vmem:[%s9315_s8 + $0x5d0] sm:$0xff]  ;;  %v6938_v13 = vpack.c.bf16 %v440_v5, %v432_v4  ;;  %v446_v14 = vld [vmem:[%s9315_s8 + $0x608] sm:$0xff]  ;;  %v448_v17 = vld [vmem:[%s9315_s8 + $0x618] sm:$0xff]  ;;  %v6268_v19 = vpack.c.bf16 %v437_v10, %v429_v7 }
  0x72   : > { %6253 = vmatpush1.bf16.msra.mxu0 %v6252_v34  ;;  %v454_v15 = vld [vmem:[%s9315_s8 + $0x648] sm:$0xff]  ;;  %v456_v18 = vld [vmem:[%s9315_s8 + $0x658] sm:$0xff]  ;;  %v6940_v20 = vpack.c.bf16 %v439_v12, %v431_v11  ;;  %v445_v22 = vld [vmem:[%s9315_s8 + $0x600] sm:$0xff] }
  0x73   : > { %6925 = vmatpush1.bf16.msra.mxu1 %v6924_v35  ;;  %6255 = vmatprep.subr.bf16.mxu0 %v6254_v36  ;;  %v233_v16 = vld [vmem:[%s12194_s0 + $0x8] sm:$0xff]  ;;  %v6270_v21 = vpack.c.bf16 %v454_v15, %v446_v14  ;;  %v453_v23 = vld [vmem:[%s9315_s8 + $0x640] sm:$0xff]  ;;  %v447_v24 = vld [vmem:[%s9315_s8 + $0x610] sm:$0xff]  ;;  %v6942_v25 = vpack.c.bf16 %v456_v18, %v448_v17 }
  0x74   : > { %6927 = vmatprep.subr.bf16.mxu1 %v6926_v40  ;;  %3047 = vmatprep.mubr.f32.mxu0 %v233_v16  ;;  %v455_v26 = vld [vmem:[%s9315_s8 + $0x650] sm:$0xff]  ;;  %v462_v27 = vld [vmem:[%s9315_s8 + $0x688] sm:$0xff]  ;;  %v464_v29 = vld [vmem:[%s9315_s8 + $0x698] sm:$0xff]  ;;  %v6272_v31 = vpack.c.bf16 %v453_v23, %v445_v22 }
  0x75   : > { %3828 = vmatprep.mubr.f32.mxu1 %v233_v16  ;;  %v470_v28 = vld [vmem:[%s9315_s8 + $0x6c8] sm:$0xff]  ;;  %v472_v30 = vld [vmem:[%s9315_s8 + $0x6d8] sm:$0xff]  ;;  %v6944_v32 = vpack.c.bf16 %v455_v26, %v447_v24  ;;  %v461_v34 = vld [vmem:[%s9315_s8 + $0x680] sm:$0xff] }
  0x76   : > { %6257 = vmatpush1.bf16.msra.mxu0 %v6256_v46  ;;  %v6274_v33 = vpack.c.bf16 %v470_v28, %v462_v27  ;;  %v469_v35 = vld [vmem:[%s9315_s8 + $0x6c0] sm:$0xff]  ;;  %v463_v36 = vld [vmem:[%s9315_s8 + $0x690] sm:$0xff]  ;;  %v6946_v37 = vpack.c.bf16 %v472_v30, %v464_v29  ;;  %v478_v39 = vld [vmem:[%s9315_s8 + $0x708] sm:$0xff] }
  0x77   : > { %6929 = vmatpush1.bf16.msra.mxu1 %v6928_v47  ;;  %6259 = vmatprep.subr.bf16.mxu0 %v6258_v48  ;;  %v471_v38 = vld [vmem:[%s9315_s8 + $0x6d0] sm:$0xff]  ;;  %v486_v40 = vld [vmem:[%s9315_s8 + $0x748] sm:$0xff]  ;;  %v480_v41 = vld [vmem:[%s9315_s8 + $0x718] sm:$0xff]  ;;  %v6276_v43 = vpack.c.bf16 %v469_v35, %v461_v34 }
  0x78   : > { %6931 = vmatprep.subr.bf16.mxu1 %v6930_v52  ;;  %v488_v42 = vld [vmem:[%s9315_s8 + $0x758] sm:$0xff]  ;;  %v6948_v44 = vpack.c.bf16 %v471_v38, %v463_v36  ;;  %v6278_v45 = vpack.c.bf16 %v486_v40, %v478_v39  ;;  %v477_v46 = vld [vmem:[%s9315_s8 + $0x700] sm:$0xff]  ;;  %v479_v48 = vld [vmem:[%s9315_s8 + $0x710] sm:$0xff] }
  0x79   : > { %v485_v47 = vld [vmem:[%s9315_s8 + $0x740] sm:$0xff]  ;;  %v6950_v49 = vpack.c.bf16 %v488_v42, %v480_v41  ;;  %v487_v50 = vld [vmem:[%s9315_s8 + $0x750] sm:$0xff]  ;;  %v494_v51 = vld [vmem:[%s9315_s8 + $0x788] sm:$0xff] }
  0x7a   : > { %6261 = vmatpush1.bf16.msra.mxu0 %v6260_v58  ;;  %v502_v52 = vld [vmem:[%s9315_s8 + $0x7c8] sm:$0xff]  ;;  %v496_v53 = vld [vmem:[%s9315_s8 + $0x798] sm:$0xff]  ;;  %v6280_v55 = vpack.c.bf16 %v485_v47, %v477_v46  ;;  %v6952_v56 = vpack.c.bf16 %v487_v50, %v479_v48  ;;  %v493_v58 = vld [vmem:[%s9315_s8 + $0x780] sm:$0xff] }
  0x7b   : > { %6933 = vmatpush1.bf16.msra.mxu1 %v6932_v59  ;;  %6263 = vmatprep.subr.bf16.mxu0 %v6262_v60  ;;  %v504_v54 = vld [vmem:[%s9315_s8 + $0x7d8] sm:$0xff]  ;;  %v6282_v57 = vpack.c.bf16 %v502_v52, %v494_v51  ;;  %v501_v59 = vld [vmem:[%s9315_s8 + $0x7c0] sm:$0xff]  ;;  %v495_v60 = vld [vmem:[%s9315_s8 + $0x790] sm:$0xff] }
  0x7c   : > { %6935 = vmatprep.subr.bf16.mxu1 %v6934_v0  ;;  %v6954_v61 = vpack.c.bf16 %v504_v54, %v496_v53  ;;  %v503_v62 = vld [vmem:[%s9315_s8 + $0x7d0] sm:$0xff]  ;;  %v510_v63 = vld [vmem:[%s9315_s8 + $0x808] sm:$0xff]  ;;  %v512_v1 = vld [vmem:[%s9315_s8 + $0x818] sm:$0xff]  ;;  %v6284_v3 = vpack.c.bf16 %v501_v59, %v493_v58 }
  0x7d   : > { %v518_v0 = vld [vmem:[%s9315_s8 + $0x848] sm:$0xff]  ;;  %v520_v2 = vld [vmem:[%s9315_s8 + $0x858] sm:$0xff]  ;;  %v6956_v4 = vpack.c.bf16 %v503_v62, %v495_v60  ;;  %v517_v7 = vld [vmem:[%s9315_s8 + $0x840] sm:$0xff] }
  0x7e   : > { %6265 = vmatpush1.bf16.msra.mxu0 %v6264_v6  ;;  %v6286_v5 = vpack.c.bf16 %v518_v0, %v510_v63  ;;  %v509_v6 = vld [vmem:[%s9315_s8 + $0x800] sm:$0xff]  ;;  %v519_v10 = vld [vmem:[%s9315_s8 + $0x850] sm:$0xff]  ;;  %v526_v11 = vld [vmem:[%s9315_s8 + $0x888] sm:$0xff] }
  0x7f   : > { %6937 = vmatpush1.bf16.msra.mxu1 %v6936_v8  ;;  %6267 = vmatprep.subr.bf16.mxu0 %v6266_v9  ;;  %v511_v8 = vld [vmem:[%s9315_s8 + $0x810] sm:$0xff]  ;;  %v6958_v9 = vpack.c.bf16 %v520_v2, %v512_v1  ;;  %v534_v12 = vld [vmem:[%s9315_s8 + $0x8c8] sm:$0xff]  ;;  %v536_v14 = vld [vmem:[%s9315_s8 + $0x8d8] sm:$0xff]  ;;  %v6288_v16 = vpack.c.bf16 %v517_v7, %v509_v6 }
  0x80   : > { %6939 = vmatprep.subr.bf16.mxu1 %v6938_v13  ;;  %v528_v13 = vld [vmem:[%s9315_s8 + $0x898] sm:$0xff]  ;;  %v232_v15 = vld [vmem:[%s12194_s0] sm:$0xff]  ;;  %v6960_v17 = vpack.c.bf16 %v519_v10, %v511_v8  ;;  %v6290_v18 = vpack.c.bf16 %v534_v12, %v526_v11  ;;  %v535_v23 = vld [vmem:[%s9315_s8 + $0x8d0] sm:$0xff] }
  0x81   : > { %v6962_v22 = vpack.c.bf16 %v536_v14, %v528_v13  ;;  %v542_v24 = vld [vmem:[%s9315_s8 + $0x908] sm:$0xff]  ;;  %v544_v26 = vld [vmem:[%s9315_s8 + $0x918] sm:$0xff]  ;;  %v551_v35 = vld [vmem:[%s9315_s8 + $0x950] sm:$0xff] }
  0x82   : > { %6269 = vmatpush1.bf16.msra.mxu0 %v6268_v19  ;;  %v525_v19 = vld [vmem:[%s9315_s8 + $0x880] sm:$0xff]  ;;  %v552_v27 = vld [vmem:[%s9315_s8 + $0x958] sm:$0xff]  ;;  %v558_v36 = vld [vmem:[%s9315_s8 + $0x988] sm:$0xff] }
  0x83   : > { %6941 = vmatpush1.bf16.msra.mxu1 %v6940_v20  ;;  %6271 = vmatprep.subr.bf16.mxu0 %v6270_v21  ;;  %v533_v20 = vld [vmem:[%s9315_s8 + $0x8c0] sm:$0xff]  ;;  %v527_v21 = vld [vmem:[%s9315_s8 + $0x890] sm:$0xff]  ;;  %v6966_v34 = vpack.c.bf16 %v552_v27, %v544_v26  ;;  %v560_v38 = vld [vmem:[%s9315_s8 + $0x998] sm:$0xff] }
  0x84   : > { %6943 = vmatprep.subr.bf16.mxu1 %v6942_v25  ;;  %v550_v25 = vld [vmem:[%s9315_s8 + $0x948] sm:$0xff]  ;;  %v6292_v28 = vpack.c.bf16 %v533_v20, %v525_v19  ;;  %v6964_v29 = vpack.c.bf16 %v535_v23, %v527_v21  ;;  %v568_v39 = vld [vmem:[%s9315_s8 + $0x9d8] sm:$0xff]  ;;  %v567_v47 = vld [vmem:[%s9315_s8 + $0x9d0] sm:$0xff] }
  0x85   : > { %v6294_v30 = vpack.c.bf16 %v550_v25, %v542_v24  ;;  %v6970_v46 = vpack.c.bf16 %v568_v39, %v560_v38  ;;  %v574_v48 = vld [vmem:[%s9315_s8 + $0xa08] sm:$0xff]  ;;  %v576_v50 = vld [vmem:[%s9315_s8 + $0xa18] sm:$0xff]  ;;  %v583_v59 = vld [vmem:[%s9315_s8 + $0xa50] sm:$0xff] }
  0x86   : > { %6273 = vmatpush1.bf16.msra.mxu0 %v6272_v31  ;;  %v541_v31 = vld [vmem:[%s9315_s8 + $0x900] sm:$0xff]  ;;  %v584_v51 = vld [vmem:[%s9315_s8 + $0xa58] sm:$0xff]  ;;  %v590_v60 = vld [vmem:[%s9315_s8 + $0xa88] sm:$0xff] }
  0x87   : > { %6945 = vmatpush1.bf16.msra.mxu1 %v6944_v32  ;;  %6275 = vmatprep.subr.bf16.mxu0 %v6274_v33  ;;  %v549_v32 = vld [vmem:[%s9315_s8 + $0x940] sm:$0xff]  ;;  %v543_v33 = vld [vmem:[%s9315_s8 + $0x910] sm:$0xff]  ;;  %v6974_v58 = vpack.c.bf16 %v584_v51, %v576_v50  ;;  %v592_v62 = vld [vmem:[%s9315_s8 + $0xa98] sm:$0xff] }
  0x88   : > { %6947 = vmatprep.subr.bf16.mxu1 %v6946_v37  ;;  %v566_v37 = vld [vmem:[%s9315_s8 + $0x9c8] sm:$0xff]  ;;  %v6296_v40 = vpack.c.bf16 %v549_v32, %v541_v31  ;;  %v6968_v41 = vpack.c.bf16 %v551_v35, %v543_v33  ;;  %v600_v63 = vld [vmem:[%s9315_s8 + $0xad8] sm:$0xff]  ;;  %v599_v7 = vld [vmem:[%s9315_s8 + $0xad0] sm:$0xff] }
  0x89   : > { %v6298_v42 = vpack.c.bf16 %v566_v37, %v558_v36  ;;  %v6978_v6 = vpack.c.bf16 %v600_v63, %v592_v62  ;;  %v606_v8 = vld [vmem:[%s9315_s8 + $0xb08] sm:$0xff]  ;;  %v608_v10 = vld [vmem:[%s9315_s8 + $0xb18] sm:$0xff]  ;;  %v605_v13 = vld [vmem:[%s9315_s8 + $0xb00] sm:$0xff] }
  0x8a   : > { %6277 = vmatpush1.bf16.msra.mxu0 %v6276_v43  ;;  %v557_v43 = vld [vmem:[%s9315_s8 + $0x980] sm:$0xff]  ;;  %v616_v11 = vld [vmem:[%s9315_s8 + $0xb58] sm:$0xff]  ;;  %v622_v20 = vld [vmem:[%s9315_s8 + $0xb88] sm:$0xff] }
  0x8b   : > { %6949 = vmatpush1.bf16.msra.mxu1 %v6948_v44  ;;  %6279 = vmatprep.subr.bf16.mxu0 %v6278_v45  ;;  %v565_v44 = vld [vmem:[%s9315_s8 + $0x9c0] sm:$0xff]  ;;  %v559_v45 = vld [vmem:[%s9315_s8 + $0x990] sm:$0xff]  ;;  %v6982_v19 = vpack.c.bf16 %v616_v11, %v608_v10  ;;  %v630_v21 = vld [vmem:[%s9315_s8 + $0xbc8] sm:$0xff] }
  0x8c   : > { %6951 = vmatprep.subr.bf16.mxu1 %v6950_v49  ;;  %v582_v49 = vld [vmem:[%s9315_s8 + $0xa48] sm:$0xff]  ;;  %v6300_v52 = vpack.c.bf16 %v565_v44, %v557_v43  ;;  %v6972_v53 = vpack.c.bf16 %v567_v47, %v559_v45  ;;  %v624_v23 = vld [vmem:[%s9315_s8 + $0xb98] sm:$0xff]  ;;  %v6314_v27 = vpack.c.bf16 %v630_v21, %v622_v20  ;;  %v631_v32 = vld [vmem:[%s9315_s8 + $0xbd0] sm:$0xff] }
  0x8d   : > { %v6302_v54 = vpack.c.bf16 %v582_v49, %v574_v48  ;;  %v632_v24 = vld [vmem:[%s9315_s8 + $0xbd8] sm:$0xff]  ;;  %v638_v33 = vld [vmem:[%s9315_s8 + $0xc08] sm:$0xff]  ;;  %v647_v44 = vld [vmem:[%s9315_s8 + $0xc50] sm:$0xff] }
  0x8e   : > { %6281 = vmatpush1.bf16.msra.mxu0 %v6280_v55  ;;  %v573_v55 = vld [vmem:[%s9315_s8 + $0xa00] sm:$0xff]  ;;  %v6986_v31 = vpack.c.bf16 %v632_v24, %v624_v23  ;;  %v640_v35 = vld [vmem:[%s9315_s8 + $0xc18] sm:$0xff]  ;;  %v654_v45 = vld [vmem:[%s9315_s8 + $0xc88] sm:$0xff] }
  0x8f   : > { %6953 = vmatpush1.bf16.msra.mxu1 %v6952_v56  ;;  %6283 = vmatprep.subr.bf16.mxu0 %v6282_v57  ;;  %v581_v56 = vld [vmem:[%s9315_s8 + $0xa40] sm:$0xff]  ;;  %v575_v57 = vld [vmem:[%s9315_s8 + $0xa10] sm:$0xff]  ;;  %v648_v36 = vld [vmem:[%s9315_s8 + $0xc58] sm:$0xff] }
  0x90   : > { %6955 = vmatprep.subr.bf16.mxu1 %v6954_v61  ;;  %v598_v61 = vld [vmem:[%s9315_s8 + $0xac8] sm:$0xff]  ;;  %v6304_v0 = vpack.c.bf16 %v581_v56, %v573_v55  ;;  %v6976_v1 = vpack.c.bf16 %v583_v59, %v575_v57  ;;  %v6990_v43 = vpack.c.bf16 %v648_v36, %v640_v35  ;;  %v656_v47 = vld [vmem:[%s9315_s8 + $0xc98] sm:$0xff]  ;;  %v663_v56 = vld [vmem:[%s9315_s8 + $0xcd0] sm:$0xff] }
  0x91   : > { %v6306_v2 = vpack.c.bf16 %v598_v61, %v590_v60  ;;  %v664_v48 = vld [vmem:[%s9315_s8 + $0xcd8] sm:$0xff]  ;;  %v670_v57 = vld [vmem:[%s9315_s8 + $0xd08] sm:$0xff]  ;;  %v701_v24 = vld [vmem:[%s9315_s8 + $0xe00] sm:$0xff] }
  0x92   : > { %6285 = vmatpush1.bf16.msra.mxu0 %v6284_v3  ;;  %v589_v3 = vld [vmem:[%s9315_s8 + $0xa80] sm:$0xff]  ;;  %v6994_v55 = vpack.c.bf16 %v664_v48, %v656_v47  ;;  %v672_v59 = vld [vmem:[%s9315_s8 + $0xd18] sm:$0xff] }
  0x93   : > { %6957 = vmatpush1.bf16.msra.mxu1 %v6956_v4  ;;  %6287 = vmatprep.subr.bf16.mxu0 %v6286_v5  ;;  %v597_v4 = vld [vmem:[%s9315_s8 + $0xac0] sm:$0xff]  ;;  %v591_v5 = vld [vmem:[%s9315_s8 + $0xa90] sm:$0xff]  ;;  %v680_v60 = vld [vmem:[%s9315_s8 + $0xd58] sm:$0xff] }
  0x94   : > { %6959 = vmatprep.subr.bf16.mxu1 %v6958_v9  ;;  %v614_v9 = vld [vmem:[%s9315_s8 + $0xb48] sm:$0xff]  ;;  %v6308_v12 = vpack.c.bf16 %v597_v4, %v589_v3  ;;  %v6980_v14 = vpack.c.bf16 %v599_v7, %v591_v5  ;;  %v6998_v3 = vpack.c.bf16 %v680_v60, %v672_v59  ;;  %v679_v4 = vld [vmem:[%s9315_s8 + $0xd50] sm:$0xff]  ;;  %v688_v7 = vld [vmem:[%s9315_s8 + $0xd98] sm:$0xff] }
  0x95   : > { %3048 = vmatmul.mubr.f32.vlgmr.msra.gmra.mrb[0].mxu0 %v232_v15  ;;  %v686_v5 = vld [vmem:[%s9315_s8 + $0xd88] sm:$0xff]  ;;  %v712_v20 = vld [vmem:[%s9315_s8 + $0xe58] sm:$0xff]  ;;  %v717_v36 = vld [vmem:[%s9315_s8 + $0xe80] sm:$0xff] }
  0x96   : > { %6289 = vmatpush1.bf16.msra.mxu0 %v6288_v16  ;;  %3829 = vmatmul.mubr.f32.vlgmr.msra.gmra.mrb[0].mxu1 %v232_v15  ;;  %v6310_v15 = vpack.c.bf16 %v614_v9, %v606_v8  ;;  %v613_v16 = vld [vmem:[%s9315_s8 + $0xb40] sm:$0xff]  ;;  %v696_v8 = vld [vmem:[%s9315_s8 + $0xdd8] sm:$0xff] }
  0x97   : > { %6961 = vmatpush1.bf16.msra.mxu1 %v6960_v17  ;;  %6291 = vmatprep.subr.bf16.mxu0 %v6290_v18  ;;  %v607_v17 = vld [vmem:[%s9315_s8 + $0xb10] sm:$0xff]  ;;  %v6312_v25 = vpack.c.bf16 %v613_v16, %v605_v13  ;;  %v693_v13 = vld [vmem:[%s9315_s8 + $0xdc0] sm:$0xff] }
  0x98   : > { %6963 = vmatprep.subr.bf16.mxu1 %v6962_v22  ;;  %v615_v18 = vld [vmem:[%s9315_s8 + $0xb50] sm:$0xff]  ;;  %v235_v22 = vld [vmem:[%s12194_s0 + $0x18] sm:$0xff]  ;;  %v733_v48 = vld [vmem:[%s9315_s8 + $0xf00] sm:$0xff] }
  0x99   : > { %3118 = vmatprep.mubr.f32.mxu0 %v235_v22  ;;  %3899 = vmatprep.mubr.f32.mxu1 %v235_v22  ;;  %v6984_v26 = vpack.c.bf16 %v615_v18, %v607_v17  ;;  %v695_v16 = vld [vmem:[%s9315_s8 + $0xdd0] sm:$0xff]  ;;  %v702_v17 = vld [vmem:[%s9315_s8 + $0xe08] sm:$0xff]  ;;  %v749_v60 = vld [vmem:[%s9315_s8 + $0xf80] sm:$0xff] }
  0x9a   : > { %6293 = vmatpush1.bf16.msra.mxu0 %v6292_v28  ;;  %v621_v28 = vld [vmem:[%s9315_s8 + $0xb80] sm:$0xff]  ;;  %v710_v18 = vld [vmem:[%s9315_s8 + $0xe48] sm:$0xff] }
  0x9b   : > { %6965 = vmatpush1.bf16.msra.mxu1 %v6964_v29  ;;  %6295 = vmatprep.subr.bf16.mxu0 %v6294_v30  ;;  %v629_v29 = vld [vmem:[%s9315_s8 + $0xbc0] sm:$0xff]  ;;  %v623_v30 = vld [vmem:[%s9315_s8 + $0xb90] sm:$0xff]  ;;  %v6334_v23 = vpack.c.bf16 %v710_v18, %v702_v17 }
  0x9c   : > { %6967 = vmatprep.subr.bf16.mxu1 %v6966_v34  ;;  %v646_v34 = vld [vmem:[%s9315_s8 + $0xc48] sm:$0xff]  ;;  %v6316_v37 = vpack.c.bf16 %v629_v29, %v621_v28  ;;  %v6988_v38 = vpack.c.bf16 %v631_v32, %v623_v30  ;;  %v711_v28 = vld [vmem:[%s9315_s8 + $0xe50] sm:$0xff]  ;;  %v728_v32 = vld [vmem:[%s9315_s8 + $0xed8] sm:$0xff] }
  0x9d   : > { %v6318_v39 = vpack.c.bf16 %v646_v34, %v638_v33  ;;  %v718_v29 = vld [vmem:[%s9315_s8 + $0xe88] sm:$0xff]  ;;  %v234_v17 = vld [vmem:[%s12194_s0 + $0x10] sm:$0xff] }
  0x9e   : > { %6297 = vmatpush1.bf16.msra.mxu0 %v6296_v40  ;;  %v637_v40 = vld [vmem:[%s9315_s8 + $0xc00] sm:$0xff]  ;;  %v726_v30 = vld [vmem:[%s9315_s8 + $0xec8] sm:$0xff] }
  0x9f   : > { %6969 = vmatpush1.bf16.msra.mxu1 %v6968_v41  ;;  %6299 = vmatprep.subr.bf16.mxu0 %v6298_v42  ;;  %v645_v41 = vld [vmem:[%s9315_s8 + $0xc40] sm:$0xff]  ;;  %v639_v42 = vld [vmem:[%s9315_s8 + $0xc10] sm:$0xff]  ;;  %v6338_v35 = vpack.c.bf16 %v726_v30, %v718_v29  ;;  %v808_v29 = vld [vmem:[%s9315_s8 + $0x1158] sm:$0xff] }
  0xa0   : > { %6971 = vmatprep.subr.bf16.mxu1 %v6970_v46  ;;  %v662_v46 = vld [vmem:[%s9315_s8 + $0xcc8] sm:$0xff]  ;;  %v6320_v49 = vpack.c.bf16 %v645_v41, %v637_v40  ;;  %v6992_v50 = vpack.c.bf16 %v647_v44, %v639_v42  ;;  %v727_v40 = vld [vmem:[%s9315_s8 + $0xed0] sm:$0xff]  ;;  %v744_v44 = vld [vmem:[%s9315_s8 + $0xf58] sm:$0xff] }
  0xa1   : > { %v6322_v51 = vpack.c.bf16 %v662_v46, %v654_v45  ;;  %v734_v41 = vld [vmem:[%s9315_s8 + $0xf08] sm:$0xff] }
  0xa2   : > { %6301 = vmatpush1.bf16.msra.mxu0 %v6300_v52  ;;  %v653_v52 = vld [vmem:[%s9315_s8 + $0xc80] sm:$0xff]  ;;  %v742_v42 = vld [vmem:[%s9315_s8 + $0xf48] sm:$0xff] }
  0xa3   : > { %6973 = vmatpush1.bf16.msra.mxu1 %v6972_v53  ;;  %6303 = vmatprep.subr.bf16.mxu0 %v6302_v54  ;;  %v661_v53 = vld [vmem:[%s9315_s8 + $0xcc0] sm:$0xff]  ;;  %v655_v54 = vld [vmem:[%s9315_s8 + $0xc90] sm:$0xff]  ;;  %v6342_v47 = vpack.c.bf16 %v742_v42, %v734_v41  ;;  %v237_v30 = vld [vmem:[%s12194_s0 + $0x28] sm:$0xff] }
  0xa4   : > { %6975 = vmatprep.subr.bf16.mxu1 %v6974_v58  ;;  %v678_v58 = vld [vmem:[%s9315_s8 + $0xd48] sm:$0xff]  ;;  %v6324_v61 = vpack.c.bf16 %v661_v53, %v653_v52  ;;  %v6996_v62 = vpack.c.bf16 %v663_v56, %v655_v54  ;;  %v743_v52 = vld [vmem:[%s9315_s8 + $0xf50] sm:$0xff]  ;;  %v760_v56 = vld [vmem:[%s9315_s8 + $0xfd8] sm:$0xff] }
  0xa5   : > { %v6326_v63 = vpack.c.bf16 %v678_v58, %v670_v57  ;;  %v750_v53 = vld [vmem:[%s9315_s8 + $0xf88] sm:$0xff]  ;;  %v816_v41 = vld [vmem:[%s9315_s8 + $0x1198] sm:$0xff] }
  0xa6   : > { %6305 = vmatpush1.bf16.msra.mxu0 %v6304_v0  ;;  %v669_v0 = vld [vmem:[%s9315_s8 + $0xd00] sm:$0xff]  ;;  %v758_v54 = vld [vmem:[%s9315_s8 + $0xfc8] sm:$0xff]  ;;  %v824_v42 = vld [vmem:[%s9315_s8 + $0x11d8] sm:$0xff] }
  0xa7   : > { %6977 = vmatpush1.bf16.msra.mxu1 %v6976_v1  ;;  %6307 = vmatprep.subr.bf16.mxu0 %v6306_v2  ;;  %v677_v1 = vld [vmem:[%s9315_s8 + $0xd40] sm:$0xff]  ;;  %v671_v2 = vld [vmem:[%s9315_s8 + $0xd10] sm:$0xff]  ;;  %v6346_v59 = vpack.c.bf16 %v758_v54, %v750_v53  ;;  %v832_v53 = vld [vmem:[%s9315_s8 + $0x1218] sm:$0xff] }
  0xa8   : > { %6979 = vmatprep.subr.bf16.mxu1 %v6978_v6  ;;  %v694_v6 = vld [vmem:[%s9315_s8 + $0xdc8] sm:$0xff]  ;;  %v6328_v9 = vpack.c.bf16 %v677_v1, %v669_v0  ;;  %v7000_v10 = vpack.c.bf16 %v679_v4, %v671_v2  ;;  %v759_v0 = vld [vmem:[%s9315_s8 + $0xfd0] sm:$0xff]  ;;  %v776_v4 = vld [vmem:[%s9315_s8 + $0x1058] sm:$0xff] }
  0xa9   : > { %v6330_v11 = vpack.c.bf16 %v694_v6, %v686_v5  ;;  %v766_v1 = vld [vmem:[%s9315_s8 + $0x1008] sm:$0xff]  ;;  %v840_v54 = vld [vmem:[%s9315_s8 + $0x1258] sm:$0xff] }
  0xaa   : > { %6309 = vmatpush1.bf16.msra.mxu0 %v6308_v12  ;;  %v685_v12 = vld [vmem:[%s9315_s8 + $0xd80] sm:$0xff]  ;;  %v774_v2 = vld [vmem:[%s9315_s8 + $0x1048] sm:$0xff] }
  0xab   : > { %6981 = vmatpush1.bf16.msra.mxu1 %v6980_v14  ;;  %6311 = vmatprep.subr.bf16.mxu0 %v6310_v15  ;;  %v687_v14 = vld [vmem:[%s9315_s8 + $0xd90] sm:$0xff]  ;;  %v7002_v15 = vpack.c.bf16 %v696_v8, %v688_v7  ;;  %v6332_v21 = vpack.c.bf16 %v693_v13, %v685_v12  ;;  %v6350_v7 = vpack.c.bf16 %v774_v2, %v766_v1  ;;  %v765_v8 = vld [vmem:[%s9315_s8 + $0x1000] sm:$0xff]  ;;  %v782_v13 = vld [vmem:[%s9315_s8 + $0x1088] sm:$0xff] }
  0xac   : > { %6983 = vmatprep.subr.bf16.mxu1 %v6982_v19  ;;  %v704_v19 = vld [vmem:[%s9315_s8 + $0xe18] sm:$0xff]  ;;  %v7004_v22 = vpack.c.bf16 %v695_v16, %v687_v14  ;;  %v775_v12 = vld [vmem:[%s9315_s8 + $0x1050] sm:$0xff]  ;;  %v790_v14 = vld [vmem:[%s9315_s8 + $0x10c8] sm:$0xff] }
  0xad   : > { %v792_v16 = vld [vmem:[%s9315_s8 + $0x10d8] sm:$0xff] }
  0xae   : > { %6313 = vmatpush1.bf16.msra.mxu0 %v6312_v25  ;;  %v709_v25 = vld [vmem:[%s9315_s8 + $0xe40] sm:$0xff]  ;;  %v848_v1 = vld [vmem:[%s9315_s8 + $0x1298] sm:$0xff] }
  0xaf   : > { %6985 = vmatpush1.bf16.msra.mxu1 %v6984_v26  ;;  %6315 = vmatprep.subr.bf16.mxu0 %v6314_v27  ;;  %v703_v26 = vld [vmem:[%s9315_s8 + $0xe10] sm:$0xff]  ;;  %v7006_v27 = vpack.c.bf16 %v712_v20, %v704_v19  ;;  %v6336_v33 = vpack.c.bf16 %v709_v25, %v701_v24  ;;  %v6354_v20 = vpack.c.bf16 %v790_v14, %v782_v13  ;;  %v856_v2 = vld [vmem:[%s9315_s8 + $0x12d8] sm:$0xff] }
  0xb0   : > { %6987 = vmatprep.subr.bf16.mxu1 %v6986_v31  ;;  %v720_v31 = vld [vmem:[%s9315_s8 + $0xe98] sm:$0xff]  ;;  %v7008_v34 = vpack.c.bf16 %v711_v28, %v703_v26  ;;  %v791_v25 = vld [vmem:[%s9315_s8 + $0x10d0] sm:$0xff]  ;;  %v798_v26 = vld [vmem:[%s9315_s8 + $0x1108] sm:$0xff] }
  0xb1   : > { %v800_v28 = vld [vmem:[%s9315_s8 + $0x1118] sm:$0xff] }
  0xb2   : > { %6317 = vmatpush1.bf16.msra.mxu0 %v6316_v37  ;;  %v725_v37 = vld [vmem:[%s9315_s8 + $0xec0] sm:$0xff]  ;;  %v864_v13 = vld [vmem:[%s9315_s8 + $0x1318] sm:$0xff] }
  0xb3   : > { %6989 = vmatpush1.bf16.msra.mxu1 %v6988_v38  ;;  %6319 = vmatprep.subr.bf16.mxu0 %v6318_v39  ;;  %v719_v38 = vld [vmem:[%s9315_s8 + $0xe90] sm:$0xff]  ;;  %v7010_v39 = vpack.c.bf16 %v728_v32, %v720_v31  ;;  %v6340_v45 = vpack.c.bf16 %v725_v37, %v717_v36  ;;  %v7030_v37 = vpack.c.bf16 %v808_v29, %v800_v28  ;;  %v872_v14 = vld [vmem:[%s9315_s8 + $0x1358] sm:$0xff] }
  0xb4   : > { %6991 = vmatprep.subr.bf16.mxu1 %v6990_v43  ;;  %v736_v43 = vld [vmem:[%s9315_s8 + $0xf18] sm:$0xff]  ;;  %v7012_v46 = vpack.c.bf16 %v727_v40, %v719_v38  ;;  %v799_v36 = vld [vmem:[%s9315_s8 + $0x1110] sm:$0xff]  ;;  %v822_v40 = vld [vmem:[%s9315_s8 + $0x11c8] sm:$0xff] }
  0xb5   : > { %v807_v38 = vld [vmem:[%s9315_s8 + $0x1150] sm:$0xff] }
  0xb6   : > { %6321 = vmatpush1.bf16.msra.mxu0 %v6320_v49  ;;  %v741_v49 = vld [vmem:[%s9315_s8 + $0xf40] sm:$0xff] }
  0xb7   : > { %6993 = vmatpush1.bf16.msra.mxu1 %v6992_v50  ;;  %6323 = vmatprep.subr.bf16.mxu0 %v6322_v51  ;;  %v735_v50 = vld [vmem:[%s9315_s8 + $0xf10] sm:$0xff]  ;;  %v7014_v51 = vpack.c.bf16 %v744_v44, %v736_v43  ;;  %v6344_v57 = vpack.c.bf16 %v741_v49, %v733_v48  ;;  %v7032_v44 = vpack.c.bf16 %v807_v38, %v799_v36  ;;  %v902_v36 = vld [vmem:[%s9315_s8 + $0x1448] sm:$0xff]  ;;  %v904_v38 = vld [vmem:[%s9315_s8 + $0x1458] sm:$0xff] }
  0xb8   : > { %6995 = vmatprep.subr.bf16.mxu1 %v6994_v55  ;;  %v752_v55 = vld [vmem:[%s9315_s8 + $0xf98] sm:$0xff]  ;;  %v7016_v58 = vpack.c.bf16 %v743_v52, %v735_v50  ;;  %v815_v48 = vld [vmem:[%s9315_s8 + $0x1190] sm:$0xff]  ;;  %v7034_v49 = vpack.c.bf16 %v824_v42, %v816_v41  ;;  %v838_v52 = vld [vmem:[%s9315_s8 + $0x1248] sm:$0xff] }
  0xb9   : > { %v823_v50 = vld [vmem:[%s9315_s8 + $0x11d0] sm:$0xff]  ;;  %v893_v42 = vld [vmem:[%s9315_s8 + $0x1400] sm:$0xff] }
  0xba   : > { %6325 = vmatpush1.bf16.msra.mxu0 %v6324_v61  ;;  %v757_v61 = vld [vmem:[%s9315_s8 + $0xfc0] sm:$0xff] }
  0xbb   : > { %6997 = vmatpush1.bf16.msra.mxu1 %v6996_v62  ;;  %6327 = vmatprep.subr.bf16.mxu0 %v6326_v63  ;;  %v751_v62 = vld [vmem:[%s9315_s8 + $0xf90] sm:$0xff]  ;;  %v7018_v63 = vpack.c.bf16 %v760_v56, %v752_v55  ;;  %v6348_v5 = vpack.c.bf16 %v757_v61, %v749_v60  ;;  %v7036_v56 = vpack.c.bf16 %v823_v50, %v815_v48  ;;  %v918_v48 = vld [vmem:[%s9315_s8 + $0x14c8] sm:$0xff]  ;;  %v920_v50 = vld [vmem:[%s9315_s8 + $0x14d8] sm:$0xff] }
  0xbc   : > { %6999 = vmatprep.subr.bf16.mxu1 %v6998_v3  ;;  %v768_v3 = vld [vmem:[%s9315_s8 + $0x1018] sm:$0xff]  ;;  %v7020_v6 = vpack.c.bf16 %v759_v0, %v751_v62  ;;  %v831_v60 = vld [vmem:[%s9315_s8 + $0x1210] sm:$0xff]  ;;  %v7038_v61 = vpack.c.bf16 %v840_v54, %v832_v53  ;;  %v854_v0 = vld [vmem:[%s9315_s8 + $0x12c8] sm:$0xff] }
  0xbd   : > { %v839_v62 = vld [vmem:[%s9315_s8 + $0x1250] sm:$0xff]  ;;  %v909_v54 = vld [vmem:[%s9315_s8 + $0x1480] sm:$0xff] }
  0xbe   : > { %6329 = vmatpush1.bf16.msra.mxu0 %v6328_v9  ;;  %v773_v9 = vld [vmem:[%s9315_s8 + $0x1040] sm:$0xff] }
  0xbf   : > { %7001 = vmatpush1.bf16.msra.mxu1 %v7000_v10  ;;  %6331 = vmatprep.subr.bf16.mxu0 %v6330_v11  ;;  %v767_v10 = vld [vmem:[%s9315_s8 + $0x1010] sm:$0xff]  ;;  %v7022_v11 = vpack.c.bf16 %v776_v4, %v768_v3  ;;  %v6352_v18 = vpack.c.bf16 %v773_v9, %v765_v8  ;;  %v7040_v4 = vpack.c.bf16 %v839_v62, %v831_v60  ;;  %v934_v60 = vld [vmem:[%s9315_s8 + $0x1548] sm:$0xff]  ;;  %v936_v62 = vld [vmem:[%s9315_s8 + $0x1558] sm:$0xff] }
  0xc0   : > { %7003 = vmatprep.subr.bf16.mxu1 %v7002_v15  ;;  %v784_v15 = vld [vmem:[%s9315_s8 + $0x1098] sm:$0xff]  ;;  %v7024_v19 = vpack.c.bf16 %v775_v12, %v767_v10  ;;  %v847_v8 = vld [vmem:[%s9315_s8 + $0x1290] sm:$0xff]  ;;  %v7042_v9 = vpack.c.bf16 %v856_v2, %v848_v1  ;;  %v870_v12 = vld [vmem:[%s9315_s8 + $0x1348] sm:$0xff] }
  0xc1   : > { %v7026_v24 = vpack.c.bf16 %v792_v16, %v784_v15  ;;  %v855_v10 = vld [vmem:[%s9315_s8 + $0x12d0] sm:$0xff]  ;;  %v925_v2 = vld [vmem:[%s9315_s8 + $0x1500] sm:$0xff] }
  0xc2   : > { %6333 = vmatpush1.bf16.msra.mxu0 %v6332_v21  ;;  %v781_v21 = vld [vmem:[%s9315_s8 + $0x1080] sm:$0xff]  ;;  %v7044_v16 = vpack.c.bf16 %v855_v10, %v847_v8  ;;  %v950_v8 = vld [vmem:[%s9315_s8 + $0x15c8] sm:$0xff]  ;;  %v952_v10 = vld [vmem:[%s9315_s8 + $0x15d8] sm:$0xff] }
  0xc3   : > { %7005 = vmatpush1.bf16.msra.mxu1 %v7004_v22  ;;  %6335 = vmatprep.subr.bf16.mxu0 %v6334_v23  ;;  %v789_v22 = vld [vmem:[%s9315_s8 + $0x10c0] sm:$0xff]  ;;  %v783_v23 = vld [vmem:[%s9315_s8 + $0x1090] sm:$0xff] }
  0xc4   : > { %7007 = vmatprep.subr.bf16.mxu1 %v7006_v27  ;;  %v806_v27 = vld [vmem:[%s9315_s8 + $0x1148] sm:$0xff]  ;;  %v6356_v31 = vpack.c.bf16 %v789_v22, %v781_v21  ;;  %v7028_v32 = vpack.c.bf16 %v791_v25, %v783_v23  ;;  %v7046_v21 = vpack.c.bf16 %v872_v14, %v864_v13  ;;  %v871_v22 = vld [vmem:[%s9315_s8 + $0x1350] sm:$0xff]  ;;  %v880_v25 = vld [vmem:[%s9315_s8 + $0x1398] sm:$0xff] }
  0xc5   : > { %v878_v23 = vld [vmem:[%s9315_s8 + $0x1388] sm:$0xff]  ;;  %v941_v14 = vld [vmem:[%s9315_s8 + $0x1580] sm:$0xff] }
  0xc6   : > { %6337 = vmatpush1.bf16.msra.mxu0 %v6336_v33  ;;  %v6358_v33 = vpack.c.bf16 %v806_v27, %v798_v26  ;;  %v888_v26 = vld [vmem:[%s9315_s8 + $0x13d8] sm:$0xff] }
  0xc7   : > { %7009 = vmatpush1.bf16.msra.mxu1 %v7008_v34  ;;  %6339 = vmatprep.subr.bf16.mxu0 %v6338_v35  ;;  %v797_v34 = vld [vmem:[%s9315_s8 + $0x1100] sm:$0xff] }
  0xc8   : > { %7011 = vmatprep.subr.bf16.mxu1 %v7010_v39  ;;  %v805_v35 = vld [vmem:[%s9315_s8 + $0x1140] sm:$0xff]  ;;  %v814_v39 = vld [vmem:[%s9315_s8 + $0x1188] sm:$0xff] }
  0xc9   : > { %v6360_v43 = vpack.c.bf16 %v805_v35, %v797_v34  ;;  %v887_v34 = vld [vmem:[%s9315_s8 + $0x13d0] sm:$0xff]  ;;  %v894_v35 = vld [vmem:[%s9315_s8 + $0x1408] sm:$0xff] }
  0xca   : > { %6341 = vmatpush1.bf16.msra.mxu0 %v6340_v45  ;;  %v6362_v45 = vpack.c.bf16 %v822_v40, %v814_v39  ;;  %v6382_v41 = vpack.c.bf16 %v902_v36, %v894_v35 }
  0xcb   : > { %7013 = vmatpush1.bf16.msra.mxu1 %v7012_v46  ;;  %6343 = vmatprep.subr.bf16.mxu0 %v6342_v47  ;;  %v813_v46 = vld [vmem:[%s9315_s8 + $0x1180] sm:$0xff] }
  0xcc   : > { %7015 = vmatprep.subr.bf16.mxu1 %v7014_v51  ;;  %v821_v47 = vld [vmem:[%s9315_s8 + $0x11c0] sm:$0xff]  ;;  %v830_v51 = vld [vmem:[%s9315_s8 + $0x1208] sm:$0xff] }
  0xcd   : > { %v6364_v55 = vpack.c.bf16 %v821_v47, %v813_v46  ;;  %v903_v46 = vld [vmem:[%s9315_s8 + $0x1450] sm:$0xff]  ;;  %v910_v47 = vld [vmem:[%s9315_s8 + $0x1488] sm:$0xff] }
  0xce   : > { %6345 = vmatpush1.bf16.msra.mxu0 %v6344_v57  ;;  %v6366_v57 = vpack.c.bf16 %v838_v52, %v830_v51  ;;  %v6386_v53 = vpack.c.bf16 %v918_v48, %v910_v47 }
  0xcf   : > { %7017 = vmatpush1.bf16.msra.mxu1 %v7016_v58  ;;  %6347 = vmatprep.subr.bf16.mxu0 %v6346_v59  ;;  %v829_v58 = vld [vmem:[%s9315_s8 + $0x1200] sm:$0xff] }
  0xd0   : > { %7019 = vmatprep.subr.bf16.mxu1 %v7018_v63  ;;  %v837_v59 = vld [vmem:[%s9315_s8 + $0x1240] sm:$0xff]  ;;  %v846_v63 = vld [vmem:[%s9315_s8 + $0x1288] sm:$0xff] }
  0xd1   : > { %v6368_v3 = vpack.c.bf16 %v837_v59, %v829_v58  ;;  %v919_v58 = vld [vmem:[%s9315_s8 + $0x14d0] sm:$0xff]  ;;  %v926_v59 = vld [vmem:[%s9315_s8 + $0x1508] sm:$0xff] }
  0xd2   : > { %6349 = vmatpush1.bf16.msra.mxu0 %v6348_v5  ;;  %v6370_v5 = vpack.c.bf16 %v854_v0, %v846_v63  ;;  %v6390_v1 = vpack.c.bf16 %v934_v60, %v926_v59 }
  0xd3   : > { %7021 = vmatpush1.bf16.msra.mxu1 %v7020_v6  ;;  %6351 = vmatprep.subr.bf16.mxu0 %v6350_v7  ;;  %v845_v6 = vld [vmem:[%s9315_s8 + $0x1280] sm:$0xff] }
  0xd4   : > { %7023 = vmatprep.subr.bf16.mxu1 %v7022_v11  ;;  %v853_v7 = vld [vmem:[%s9315_s8 + $0x12c0] sm:$0xff]  ;;  %v862_v11 = vld [vmem:[%s9315_s8 + $0x1308] sm:$0xff] }
  0xd5   : > { %3119 = vmatmul.mubr.f32.vlgmr.msra.gmra.mrb[0].mxu0 %v234_v17  ;;  %v6372_v15 = vpack.c.bf16 %v853_v7, %v845_v6  ;;  %v935_v6 = vld [vmem:[%s9315_s8 + $0x1550] sm:$0xff]  ;;  %v942_v7 = vld [vmem:[%s9315_s8 + $0x1588] sm:$0xff] }
  0xd6   : > { %6353 = vmatpush1.bf16.msra.mxu0 %v6352_v18  ;;  %3900 = vmatmul.mubr.f32.vlgmr.msra.gmra.mrb[0].mxu1 %v234_v17  ;;  %v6374_v17 = vpack.c.bf16 %v870_v12, %v862_v11  ;;  %v861_v18 = vld [vmem:[%s9315_s8 + $0x1300] sm:$0xff]  ;;  %v6394_v13 = vpack.c.bf16 %v950_v8, %v942_v7 }
  0xd7   : > { %7025 = vmatpush1.bf16.msra.mxu1 %v7024_v19  ;;  %6355 = vmatprep.subr.bf16.mxu0 %v6354_v20  ;;  %v869_v19 = vld [vmem:[%s9315_s8 + $0x1340] sm:$0xff]  ;;  %v863_v20 = vld [vmem:[%s9315_s8 + $0x1310] sm:$0xff] }
  0xd8   : > { %7027 = vmatprep.subr.bf16.mxu1 %v7026_v24  ;;  %3189 = vmatprep.mubr.f32.mxu0 %v237_v30  ;;  %v886_v24 = vld [vmem:[%s9315_s8 + $0x13c8] sm:$0xff]  ;;  %v6376_v27 = vpack.c.bf16 %v869_v19, %v861_v18  ;;  %v7048_v28 = vpack.c.bf16 %v871_v22, %v863_v20  ;;  %v951_v18 = vld [vmem:[%s9315_s8 + $0x15d0] sm:$0xff]  ;;  %v968_v22 = vld [vmem:[%s9315_s8 + $0x1658] sm:$0xff] }
  0xd9   : > { %3970 = vmatprep.mubr.f32.mxu1 %v237_v30  ;;  %v6378_v29 = vpack.c.bf16 %v886_v24, %v878_v23  ;;  %v877_v30 = vld [vmem:[%s9315_s8 + $0x1380] sm:$0xff]  ;;  %v958_v19 = vld [vmem:[%s9315_s8 + $0x1608] sm:$0xff] }
  0xda   : > { %6357 = vmatpush1.bf16.msra.mxu0 %v6356_v31  ;;  %v885_v31 = vld [vmem:[%s9315_s8 + $0x13c0] sm:$0xff]  ;;  %v966_v20 = vld [vmem:[%s9315_s8 + $0x1648] sm:$0xff] }
  0xdb   : > { %7029 = vmatpush1.bf16.msra.mxu1 %v7028_v32  ;;  %6359 = vmatprep.subr.bf16.mxu0 %v6358_v33  ;;  %v879_v32 = vld [vmem:[%s9315_s8 + $0x1390] sm:$0xff]  ;;  %v7050_v33 = vpack.c.bf16 %v888_v26, %v880_v25  ;;  %v6380_v39 = vpack.c.bf16 %v885_v31, %v877_v30  ;;  %v6398_v25 = vpack.c.bf16 %v966_v20, %v958_v19  ;;  %v957_v26 = vld [vmem:[%s9315_s8 + $0x1600] sm:$0xff]  ;;  %v974_v31 = vld [vmem:[%s9315_s8 + $0x1688] sm:$0xff] }
  0xdc   : > { %7031 = vmatprep.subr.bf16.mxu1 %v7030_v37  ;;  %v896_v37 = vld [vmem:[%s9315_s8 + $0x1418] sm:$0xff]  ;;  %v7052_v40 = vpack.c.bf16 %v887_v34, %v879_v32  ;;  %v967_v30 = vld [vmem:[%s9315_s8 + $0x1650] sm:$0xff]  ;;  %v982_v32 = vld [vmem:[%s9315_s8 + $0x16c8] sm:$0xff] }
  0xdd   : > { %v984_v34 = vld [vmem:[%s9315_s8 + $0x16d8] sm:$0xff]  ;;  %v236_v19 = vld [vmem:[%s12194_s0 + $0x20] sm:$0xff] }
  0xde   : > { %6361 = vmatpush1.bf16.msra.mxu0 %v6360_v43  ;;  %v901_v43 = vld [vmem:[%s9315_s8 + $0x1440] sm:$0xff] }
  0xdf   : > { %7033 = vmatpush1.bf16.msra.mxu1 %v7032_v44  ;;  %6363 = vmatprep.subr.bf16.mxu0 %v6362_v45  ;;  %v895_v44 = vld [vmem:[%s9315_s8 + $0x1410] sm:$0xff]  ;;  %v7054_v45 = vpack.c.bf16 %v904_v38, %v896_v37  ;;  %v6384_v51 = vpack.c.bf16 %v901_v43, %v893_v42  ;;  %v6402_v37 = vpack.c.bf16 %v982_v32, %v974_v31  ;;  %v973_v38 = vld [vmem:[%s9315_s8 + $0x1680] sm:$0xff]  ;;  %v990_v43 = vld [vmem:[%s9315_s8 + $0x1708] sm:$0xff] }
  0xe0   : > { %7035 = vmatprep.subr.bf16.mxu1 %v7034_v49  ;;  %v912_v49 = vld [vmem:[%s9315_s8 + $0x1498] sm:$0xff]  ;;  %v7056_v52 = vpack.c.bf16 %v903_v46, %v895_v44  ;;  %v983_v42 = vld [vmem:[%s9315_s8 + $0x16d0] sm:$0xff]  ;;  %v998_v44 = vld [vmem:[%s9315_s8 + $0x1748] sm:$0xff] }
  0xe1   : > { %v1000_v46 = vld [vmem:[%s9315_s8 + $0x1758] sm:$0xff] }
  0xe2   : > { %6365 = vmatpush1.bf16.msra.mxu0 %v6364_v55  ;;  %v917_v55 = vld [vmem:[%s9315_s8 + $0x14c0] sm:$0xff]  ;;  %v1064_v31 = vld [vmem:[%s9315_s8 + $0x1958] sm:$0xff] }
  0xe3   : > { %7037 = vmatpush1.bf16.msra.mxu1 %v7036_v56  ;;  %6367 = vmatprep.subr.bf16.mxu0 %v6366_v57  ;;  %v911_v56 = vld [vmem:[%s9315_s8 + $0x1490] sm:$0xff]  ;;  %v7058_v57 = vpack.c.bf16 %v920_v50, %v912_v49  ;;  %v6388_v63 = vpack.c.bf16 %v917_v55, %v909_v54  ;;  %v6406_v49 = vpack.c.bf16 %v998_v44, %v990_v43  ;;  %v989_v50 = vld [vmem:[%s9315_s8 + $0x1700] sm:$0xff]  ;;  %v1006_v55 = vld [vmem:[%s9315_s8 + $0x1788] sm:$0xff] }
  0xe4   : > { %7039 = vmatprep.subr.bf16.mxu1 %v7038_v61  ;;  %v928_v61 = vld [vmem:[%s9315_s8 + $0x1518] sm:$0xff]  ;;  %v7060_v0 = vpack.c.bf16 %v919_v58, %v911_v56  ;;  %v999_v54 = vld [vmem:[%s9315_s8 + $0x1750] sm:$0xff]  ;;  %v1014_v56 = vld [vmem:[%s9315_s8 + $0x17c8] sm:$0xff] }
  0xe5   : > { %v1016_v58 = vld [vmem:[%s9315_s8 + $0x17d8] sm:$0xff] }
  0xe6   : > { %6369 = vmatpush1.bf16.msra.mxu0 %v6368_v3  ;;  %v933_v3 = vld [vmem:[%s9315_s8 + $0x1540] sm:$0xff]  ;;  %v239_v32 = vld [vmem:[%s12194_s0 + $0x38] sm:$0xff] }
  0xe7   : > { %7041 = vmatpush1.bf16.msra.mxu1 %v7040_v4  ;;  %6371 = vmatprep.subr.bf16.mxu0 %v6370_v5  ;;  %v927_v4 = vld [vmem:[%s9315_s8 + $0x1510] sm:$0xff]  ;;  %v7062_v5 = vpack.c.bf16 %v936_v62, %v928_v61  ;;  %v6392_v11 = vpack.c.bf16 %v933_v3, %v925_v2  ;;  %v6410_v61 = vpack.c.bf16 %v1014_v56, %v1006_v55  ;;  %v1005_v62 = vld [vmem:[%s9315_s8 + $0x1780] sm:$0xff]  ;;  %v1022_v3 = vld [vmem:[%s9315_s8 + $0x1808] sm:$0xff] }
  0xe8   : > { %7043 = vmatprep.subr.bf16.mxu1 %v7042_v9  ;;  %v944_v9 = vld [vmem:[%s9315_s8 + $0x1598] sm:$0xff]  ;;  %v7064_v12 = vpack.c.bf16 %v935_v6, %v927_v4  ;;  %v1015_v2 = vld [vmem:[%s9315_s8 + $0x17d0] sm:$0xff]  ;;  %v1030_v4 = vld [vmem:[%s9315_s8 + $0x1848] sm:$0xff] }
  0xe9   : > { %v1032_v6 = vld [vmem:[%s9315_s8 + $0x1858] sm:$0xff] }
  0xea   : > { %6373 = vmatpush1.bf16.msra.mxu0 %v6372_v15  ;;  %v949_v15 = vld [vmem:[%s9315_s8 + $0x15c0] sm:$0xff]  ;;  %v1072_v43 = vld [vmem:[%s9315_s8 + $0x1998] sm:$0xff] }
  0xeb   : > { %7045 = vmatpush1.bf16.msra.mxu1 %v7044_v16  ;;  %6375 = vmatprep.subr.bf16.mxu0 %v6374_v17  ;;  %v943_v16 = vld [vmem:[%s9315_s8 + $0x1590] sm:$0xff]  ;;  %v7066_v17 = vpack.c.bf16 %v952_v10, %v944_v9  ;;  %v6396_v23 = vpack.c.bf16 %v949_v15, %v941_v14  ;;  %v6414_v9 = vpack.c.bf16 %v1030_v4, %v1022_v3  ;;  %v1021_v10 = vld [vmem:[%s9315_s8 + $0x1800] sm:$0xff]  ;;  %v1038_v15 = vld [vmem:[%s9315_s8 + $0x1888] sm:$0xff] }
  0xec   : > { %7047 = vmatprep.subr.bf16.mxu1 %v7046_v21  ;;  %v960_v21 = vld [vmem:[%s9315_s8 + $0x1618] sm:$0xff]  ;;  %v7068_v24 = vpack.c.bf16 %v951_v18, %v943_v16  ;;  %v1031_v14 = vld [vmem:[%s9315_s8 + $0x1850] sm:$0xff]  ;;  %v1046_v16 = vld [vmem:[%s9315_s8 + $0x18c8] sm:$0xff] }
  0xed   : > { %v1048_v18 = vld [vmem:[%s9315_s8 + $0x18d8] sm:$0xff] }
  0xee   : > { %6377 = vmatpush1.bf16.msra.mxu0 %v6376_v27  ;;  %v965_v27 = vld [vmem:[%s9315_s8 + $0x1640] sm:$0xff]  ;;  %v1080_v44 = vld [vmem:[%s9315_s8 + $0x19d8] sm:$0xff] }
  0xef   : > { %7049 = vmatpush1.bf16.msra.mxu1 %v7048_v28  ;;  %6379 = vmatprep.subr.bf16.mxu0 %v6378_v29  ;;  %v959_v28 = vld [vmem:[%s9315_s8 + $0x1610] sm:$0xff]  ;;  %v7070_v29 = vpack.c.bf16 %v968_v22, %v960_v21  ;;  %v6400_v35 = vpack.c.bf16 %v965_v27, %v957_v26  ;;  %v6418_v22 = vpack.c.bf16 %v1046_v16, %v1038_v15  ;;  %v1088_v55 = vld [vmem:[%s9315_s8 + $0x1a18] sm:$0xff] }
  0xf0   : > { %7051 = vmatprep.subr.bf16.mxu1 %v7050_v33  ;;  %v976_v33 = vld [vmem:[%s9315_s8 + $0x1698] sm:$0xff]  ;;  %v7072_v36 = vpack.c.bf16 %v967_v30, %v959_v28  ;;  %v1047_v27 = vld [vmem:[%s9315_s8 + $0x18d0] sm:$0xff]  ;;  %v1054_v28 = vld [vmem:[%s9315_s8 + $0x1908] sm:$0xff] }
  0xf1   : > { %v1056_v30 = vld [vmem:[%s9315_s8 + $0x1918] sm:$0xff] }
  0xf2   : > { %6381 = vmatpush1.bf16.msra.mxu0 %v6380_v39  ;;  %v981_v39 = vld [vmem:[%s9315_s8 + $0x16c0] sm:$0xff]  ;;  %v1096_v56 = vld [vmem:[%s9315_s8 + $0x1a58] sm:$0xff] }
  0xf3   : > { %7053 = vmatpush1.bf16.msra.mxu1 %v7052_v40  ;;  %6383 = vmatprep.subr.bf16.mxu0 %v6382_v41  ;;  %v975_v40 = vld [vmem:[%s9315_s8 + $0x1690] sm:$0xff]  ;;  %v7074_v41 = vpack.c.bf16 %v984_v34, %v976_v33  ;;  %v6404_v47 = vpack.c.bf16 %v981_v39, %v973_v38  ;;  %v7094_v39 = vpack.c.bf16 %v1064_v31, %v1056_v30  ;;  %v1104_v3 = vld [vmem:[%s9315_s8 + $0x1a98] sm:$0xff] }
  0xf4   : > { %7055 = vmatprep.subr.bf16.mxu1 %v7054_v45  ;;  %v992_v45 = vld [vmem:[%s9315_s8 + $0x1718] sm:$0xff]  ;;  %v7076_v48 = vpack.c.bf16 %v983_v42, %v975_v40  ;;  %v1055_v38 = vld [vmem:[%s9315_s8 + $0x1910] sm:$0xff]  ;;  %v1078_v42 = vld [vmem:[%s9315_s8 + $0x19c8] sm:$0xff] }
  0xf5   : > { %v1063_v40 = vld [vmem:[%s9315_s8 + $0x1950] sm:$0xff]  ;;  %v1112_v4 = vld [vmem:[%s9315_s8 + $0x1ad8] sm:$0xff] }
  0xf6   : > { %6385 = vmatpush1.bf16.msra.mxu0 %v6384_v51  ;;  %v997_v51 = vld [vmem:[%s9315_s8 + $0x1740] sm:$0xff]  ;;  %v1120_v15 = vld [vmem:[%s9315_s8 + $0x1b18] sm:$0xff] }
  0xf7   : > { %7057 = vmatpush1.bf16.msra.mxu1 %v7056_v52  ;;  %6387 = vmatprep.subr.bf16.mxu0 %v6386_v53  ;;  %v991_v52 = vld [vmem:[%s9315_s8 + $0x1710] sm:$0xff]  ;;  %v7078_v53 = vpack.c.bf16 %v1000_v46, %v992_v45  ;;  %v6408_v59 = vpack.c.bf16 %v997_v51, %v989_v50  ;;  %v7096_v46 = vpack.c.bf16 %v1063_v40, %v1055_v38  ;;  %v1128_v16 = vld [vmem:[%s9315_s8 + $0x1b58] sm:$0xff]  ;;  %v1158_v38 = vld [vmem:[%s9315_s8 + $0x1c48] sm:$0xff] }
  0xf8   : > { %7059 = vmatprep.subr.bf16.mxu1 %v7058_v57  ;;  %v1008_v57 = vld [vmem:[%s9315_s8 + $0x1798] sm:$0xff]  ;;  %v7080_v60 = vpack.c.bf16 %v999_v54, %v991_v52  ;;  %v1071_v50 = vld [vmem:[%s9315_s8 + $0x1990] sm:$0xff]  ;;  %v7098_v51 = vpack.c.bf16 %v1080_v44, %v1072_v43  ;;  %v1094_v54 = vld [vmem:[%s9315_s8 + $0x1a48] sm:$0xff] }
  0xf9   : > { %v1079_v52 = vld [vmem:[%s9315_s8 + $0x19d0] sm:$0xff]  ;;  %v1160_v40 = vld [vmem:[%s9315_s8 + $0x1c58] sm:$0xff]  ;;  %v1149_v44 = vld [vmem:[%s9315_s8 + $0x1c00] sm:$0xff] }
  0xfa   : > { %6389 = vmatpush1.bf16.msra.mxu0 %v6388_v63  ;;  %v1013_v63 = vld [vmem:[%s9315_s8 + $0x17c0] sm:$0xff] }
  0xfb   : > { %7061 = vmatpush1.bf16.msra.mxu1 %v7060_v0  ;;  %6391 = vmatprep.subr.bf16.mxu0 %v6390_v1  ;;  %v1007_v0 = vld [vmem:[%s9315_s8 + $0x1790] sm:$0xff]  ;;  %v7082_v1 = vpack.c.bf16 %v1016_v58, %v1008_v57  ;;  %v6412_v7 = vpack.c.bf16 %v1013_v63, %v1005_v62  ;;  %v7100_v58 = vpack.c.bf16 %v1079_v52, %v1071_v50  ;;  %v1174_v50 = vld [vmem:[%s9315_s8 + $0x1cc8] sm:$0xff]  ;;  %v1176_v52 = vld [vmem:[%s9315_s8 + $0x1cd8] sm:$0xff] }
  0xfc   : > { %7063 = vmatprep.subr.bf16.mxu1 %v7062_v5  ;;  %v1024_v5 = vld [vmem:[%s9315_s8 + $0x1818] sm:$0xff]  ;;  %v7084_v8 = vpack.c.bf16 %v1015_v2, %v1007_v0  ;;  %v1087_v62 = vld [vmem:[%s9315_s8 + $0x1a10] sm:$0xff]  ;;  %v7102_v63 = vpack.c.bf16 %v1096_v56, %v1088_v55  ;;  %v1110_v2 = vld [vmem:[%s9315_s8 + $0x1ac8] sm:$0xff] }
  0xfd   : > { %v1095_v0 = vld [vmem:[%s9315_s8 + $0x1a50] sm:$0xff]  ;;  %v1165_v56 = vld [vmem:[%s9315_s8 + $0x1c80] sm:$0xff] }
  0xfe   : > { %6393 = vmatpush1.bf16.msra.mxu0 %v6392_v11  ;;  %v1029_v11 = vld [vmem:[%s9315_s8 + $0x1840] sm:$0xff] }
  0xff   : > { %7065 = vmatpush1.bf16.msra.mxu1 %v7064_v12  ;;  %6395 = vmatprep.subr.bf16.mxu0 %v6394_v13  ;;  %v1023_v12 = vld [vmem:[%s9315_s8 + $0x1810] sm:$0xff]  ;;  %v7086_v13 = vpack.c.bf16 %v1032_v6, %v1024_v5  ;;  %v6416_v20 = vpack.c.bf16 %v1029_v11, %v1021_v10  ;;  %v7104_v6 = vpack.c.bf16 %v1095_v0, %v1087_v62  ;;  %v1190_v62 = vld [vmem:[%s9315_s8 + $0x1d48] sm:$0xff]  ;;  %v1192_v0 = vld [vmem:[%s9315_s8 + $0x1d58] sm:$0xff] }
 0x100   : > { %7067 = vmatprep.subr.bf16.mxu1 %v7066_v17  ;;  %v1040_v17 = vld [vmem:[%s9315_s8 + $0x1898] sm:$0xff]  ;;  %v7088_v21 = vpack.c.bf16 %v1031_v14, %v1023_v12  ;;  %v1103_v10 = vld [vmem:[%s9315_s8 + $0x1a90] sm:$0xff]  ;;  %v7106_v11 = vpack.c.bf16 %v1112_v4, %v1104_v3  ;;  %v1126_v14 = vld [vmem:[%s9315_s8 + $0x1b48] sm:$0xff] }
 0x101   : > { %v7090_v26 = vpack.c.bf16 %v1048_v18, %v1040_v17  ;;  %v1111_v12 = vld [vmem:[%s9315_s8 + $0x1ad0] sm:$0xff]  ;;  %v1181_v4 = vld [vmem:[%s9315_s8 + $0x1d00] sm:$0xff] }
 0x102   : > { %6397 = vmatpush1.bf16.msra.mxu0 %v6396_v23  ;;  %v1037_v23 = vld [vmem:[%s9315_s8 + $0x1880] sm:$0xff]  ;;  %v7108_v18 = vpack.c.bf16 %v1111_v12, %v1103_v10  ;;  %v1206_v10 = vld [vmem:[%s9315_s8 + $0x1dc8] sm:$0xff]  ;;  %v1208_v12 = vld [vmem:[%s9315_s8 + $0x1dd8] sm:$0xff] }
 0x103   : > { %7069 = vmatpush1.bf16.msra.mxu1 %v7068_v24  ;;  %6399 = vmatprep.subr.bf16.mxu0 %v6398_v25  ;;  %v1045_v24 = vld [vmem:[%s9315_s8 + $0x18c0] sm:$0xff]  ;;  %v1039_v25 = vld [vmem:[%s9315_s8 + $0x1890] sm:$0xff] }
 0x104   : > { %7071 = vmatprep.subr.bf16.mxu1 %v7070_v29  ;;  %v1062_v29 = vld [vmem:[%s9315_s8 + $0x1948] sm:$0xff]  ;;  %v6420_v33 = vpack.c.bf16 %v1045_v24, %v1037_v23  ;;  %v7092_v34 = vpack.c.bf16 %v1047_v27, %v1039_v25  ;;  %v7110_v23 = vpack.c.bf16 %v1128_v16, %v1120_v15  ;;  %v1127_v24 = vld [vmem:[%s9315_s8 + $0x1b50] sm:$0xff]  ;;  %v1136_v27 = vld [vmem:[%s9315_s8 + $0x1b98] sm:$0xff] }
 0x105   : > { %v1134_v25 = vld [vmem:[%s9315_s8 + $0x1b88] sm:$0xff]  ;;  %v1197_v16 = vld [vmem:[%s9315_s8 + $0x1d80] sm:$0xff] }
 0x106   : > { %6401 = vmatpush1.bf16.msra.mxu0 %v6400_v35  ;;  %v6422_v35 = vpack.c.bf16 %v1062_v29, %v1054_v28  ;;  %v1144_v28 = vld [vmem:[%s9315_s8 + $0x1bd8] sm:$0xff] }
 0x107   : > { %7073 = vmatpush1.bf16.msra.mxu1 %v7072_v36  ;;  %6403 = vmatprep.subr.bf16.mxu0 %v6402_v37  ;;  %v1053_v36 = vld [vmem:[%s9315_s8 + $0x1900] sm:$0xff] }
 0x108   : > { %7075 = vmatprep.subr.bf16.mxu1 %v7074_v41  ;;  %v1061_v37 = vld [vmem:[%s9315_s8 + $0x1940] sm:$0xff]  ;;  %v1070_v41 = vld [vmem:[%s9315_s8 + $0x1988] sm:$0xff] }
 0x109   : > { %v6424_v45 = vpack.c.bf16 %v1061_v37, %v1053_v36  ;;  %v1143_v36 = vld [vmem:[%s9315_s8 + $0x1bd0] sm:$0xff]  ;;  %v1150_v37 = vld [vmem:[%s9315_s8 + $0x1c08] sm:$0xff] }
 0x10a   : > { %6405 = vmatpush1.bf16.msra.mxu0 %v6404_v47  ;;  %v6426_v47 = vpack.c.bf16 %v1078_v42, %v1070_v41  ;;  %v6446_v43 = vpack.c.bf16 %v1158_v38, %v1150_v37 }
 0x10b   : > { %7077 = vmatpush1.bf16.msra.mxu1 %v7076_v48  ;;  %6407 = vmatprep.subr.bf16.mxu0 %v6406_v49  ;;  %v1069_v48 = vld [vmem:[%s9315_s8 + $0x1980] sm:$0xff] }
 0x10c   : > { %7079 = vmatprep.subr.bf16.mxu1 %v7078_v53  ;;  %v1077_v49 = vld [vmem:[%s9315_s8 + $0x19c0] sm:$0xff]  ;;  %v1086_v53 = vld [vmem:[%s9315_s8 + $0x1a08] sm:$0xff] }
 0x10d   : > { %v6428_v57 = vpack.c.bf16 %v1077_v49, %v1069_v48  ;;  %v1159_v48 = vld [vmem:[%s9315_s8 + $0x1c50] sm:$0xff]  ;;  %v1166_v49 = vld [vmem:[%s9315_s8 + $0x1c88] sm:$0xff] }
 0x10e   : > { %6409 = vmatpush1.bf16.msra.mxu0 %v6408_v59  ;;  %v6430_v59 = vpack.c.bf16 %v1094_v54, %v1086_v53  ;;  %v6450_v55 = vpack.c.bf16 %v1174_v50, %v1166_v49 }
 0x10f   : > { %7081 = vmatpush1.bf16.msra.mxu1 %v7080_v60  ;;  %6411 = vmatprep.subr.bf16.mxu0 %v6410_v61  ;;  %v1085_v60 = vld [vmem:[%s9315_s8 + $0x1a00] sm:$0xff] }
 0x110   : > { %7083 = vmatprep.subr.bf16.mxu1 %v7082_v1  ;;  %v1093_v61 = vld [vmem:[%s9315_s8 + $0x1a40] sm:$0xff]  ;;  %v1102_v1 = vld [vmem:[%s9315_s8 + $0x1a88] sm:$0xff] }
 0x111   : > { %v6432_v5 = vpack.c.bf16 %v1093_v61, %v1085_v60  ;;  %v1175_v60 = vld [vmem:[%s9315_s8 + $0x1cd0] sm:$0xff]  ;;  %v1182_v61 = vld [vmem:[%s9315_s8 + $0x1d08] sm:$0xff] }
 0x112   : > { %6413 = vmatpush1.bf16.msra.mxu0 %v6412_v7  ;;  %v6434_v7 = vpack.c.bf16 %v1110_v2, %v1102_v1  ;;  %v6454_v3 = vpack.c.bf16 %v1190_v62, %v1182_v61 }
 0x113   : > { %7085 = vmatpush1.bf16.msra.mxu1 %v7084_v8  ;;  %6415 = vmatprep.subr.bf16.mxu0 %v6414_v9  ;;  %v1101_v8 = vld [vmem:[%s9315_s8 + $0x1a80] sm:$0xff] }
 0x114   : > { %7087 = vmatprep.subr.bf16.mxu1 %v7086_v13  ;;  %v1109_v9 = vld [vmem:[%s9315_s8 + $0x1ac0] sm:$0xff]  ;;  %v1118_v13 = vld [vmem:[%s9315_s8 + $0x1b08] sm:$0xff] }
 0x115   : > { %3190 = vmatmul.mubr.f32.vlgmr.msra.gmra.mrb[0].mxu0 %v236_v19  ;;  %v6436_v17 = vpack.c.bf16 %v1109_v9, %v1101_v8  ;;  %v1191_v8 = vld [vmem:[%s9315_s8 + $0x1d50] sm:$0xff]  ;;  %v1198_v9 = vld [vmem:[%s9315_s8 + $0x1d88] sm:$0xff] }
 0x116   : > { %6417 = vmatpush1.bf16.msra.mxu0 %v6416_v20  ;;  %3971 = vmatmul.mubr.f32.vlgmr.msra.gmra.mrb[0].mxu1 %v236_v19  ;;  %v6438_v19 = vpack.c.bf16 %v1126_v14, %v1118_v13  ;;  %v1117_v20 = vld [vmem:[%s9315_s8 + $0x1b00] sm:$0xff]  ;;  %v6458_v15 = vpack.c.bf16 %v1206_v10, %v1198_v9 }
 0x117   : > { %7089 = vmatpush1.bf16.msra.mxu1 %v7088_v21  ;;  %6419 = vmatprep.subr.bf16.mxu0 %v6418_v22  ;;  %v1125_v21 = vld [vmem:[%s9315_s8 + $0x1b40] sm:$0xff]  ;;  %v1119_v22 = vld [vmem:[%s9315_s8 + $0x1b10] sm:$0xff] }
 0x118   : > { %7091 = vmatprep.subr.bf16.mxu1 %v7090_v26  ;;  %3260 = vmatprep.mubr.f32.mxu0 %v239_v32  ;;  %v1142_v26 = vld [vmem:[%s9315_s8 + $0x1bc8] sm:$0xff]  ;;  %v6440_v29 = vpack.c.bf16 %v1125_v21, %v1117_v20  ;;  %v7112_v30 = vpack.c.bf16 %v1127_v24, %v1119_v22  ;;  %v1207_v20 = vld [vmem:[%s9315_s8 + $0x1dd0] sm:$0xff]  ;;  %v1224_v24 = vld [vmem:[%s9315_s8 + $0x1e58] sm:$0xff] }
 0x119   : > { %4041 = vmatprep.mubr.f32.mxu1 %v239_v32  ;;  %v6442_v31 = vpack.c.bf16 %v1142_v26, %v1134_v25  ;;  %v1133_v32 = vld [vmem:[%s9315_s8 + $0x1b80] sm:$0xff]  ;;  %v1214_v21 = vld [vmem:[%s9315_s8 + $0x1e08] sm:$0xff] }
 0x11a   : > { %6421 = vmatpush1.bf16.msra.mxu0 %v6420_v33  ;;  %v1141_v33 = vld [vmem:[%s9315_s8 + $0x1bc0] sm:$0xff]  ;;  %v1222_v22 = vld [vmem:[%s9315_s8 + $0x1e48] sm:$0xff] }
 0x11b   : > { %7093 = vmatpush1.bf16.msra.mxu1 %v7092_v34  ;;  %6423 = vmatprep.subr.bf16.mxu0 %v6422_v35  ;;  %v1135_v34 = vld [vmem:[%s9315_s8 + $0x1b90] sm:$0xff]  ;;  %v7114_v35 = vpack.c.bf16 %v1144_v28, %v1136_v27  ;;  %v6444_v41 = vpack.c.bf16 %v1141_v33, %v1133_v32  ;;  %v6462_v27 = vpack.c.bf16 %v1222_v22, %v1214_v21  ;;  %v1213_v28 = vld [vmem:[%s9315_s8 + $0x1e00] sm:$0xff]  ;;  %v1230_v33 = vld [vmem:[%s9315_s8 + $0x1e88] sm:$0xff] }
 0x11c   : > { %7095 = vmatprep.subr.bf16.mxu1 %v7094_v39  ;;  %v1152_v39 = vld [vmem:[%s9315_s8 + $0x1c18] sm:$0xff]  ;;  %v7116_v42 = vpack.c.bf16 %v1143_v36, %v1135_v34  ;;  %v1223_v32 = vld [vmem:[%s9315_s8 + $0x1e50] sm:$0xff]  ;;  %v1238_v34 = vld [vmem:[%s9315_s8 + $0x1ec8] sm:$0xff] }
 0x11d   : > { %v1240_v36 = vld [vmem:[%s9315_s8 + $0x1ed8] sm:$0xff]  ;;  %v238_v21 = vld [vmem:[%s12194_s0 + $0x30] sm:$0xff] }
 0x11e   : > { %6425 = vmatpush1.bf16.msra.mxu0 %v6424_v45  ;;  %v1157_v45 = vld [vmem:[%s9315_s8 + $0x1c40] sm:$0xff] }
 0x11f   : > { %7097 = vmatpush1.bf16.msra.mxu1 %v7096_v46  ;;  %6427 = vmatprep.subr.bf16.mxu0 %v6426_v47  ;;  %v1151_v46 = vld [vmem:[%s9315_s8 + $0x1c10] sm:$0xff]  ;;  %v7118_v47 = vpack.c.bf16 %v1160_v40, %v1152_v39  ;;  %v6448_v53 = vpack.c.bf16 %v1157_v45, %v1149_v44  ;;  %v6466_v39 = vpack.c.bf16 %v1238_v34, %v1230_v33  ;;  %v1229_v40 = vld [vmem:[%s9315_s8 + $0x1e80] sm:$0xff]  ;;  %v1246_v45 = vld [vmem:[%s9315_s8 + $0x1f08] sm:$0xff] }
 0x120   : > { %7099 = vmatprep.subr.bf16.mxu1 %v7098_v51  ;;  %v1168_v51 = vld [vmem:[%s9315_s8 + $0x1c98] sm:$0xff]  ;;  %v7120_v54 = vpack.c.bf16 %v1159_v48, %v1151_v46  ;;  %v1239_v44 = vld [vmem:[%s9315_s8 + $0x1ed0] sm:$0xff]  ;;  %v1254_v46 = vld [vmem:[%s9315_s8 + $0x1f48] sm:$0xff] }
 0x121   : > { %v1256_v48 = vld [vmem:[%s9315_s8 + $0x1f58] sm:$0xff]  ;;  %v241_v34 = vld [vmem:[%s12194_s0 + $0x48] sm:$0xff] }
 0x122   : > { %6429 = vmatpush1.bf16.msra.mxu0 %v6428_v57  ;;  %v1173_v57 = vld [vmem:[%s9315_s8 + $0x1cc0] sm:$0xff]  ;;  %v1320_v33 = vld [vmem:[%s9315_s8 + $0x2158] sm:$0xff] }
 0x123   : > { %7101 = vmatpush1.bf16.msra.mxu1 %v7100_v58  ;;  %6431 = vmatprep.subr.bf16.mxu0 %v6430_v59  ;;  %v1167_v58 = vld [vmem:[%s9315_s8 + $0x1c90] sm:$0xff]  ;;  %v7122_v59 = vpack.c.bf16 %v1176_v52, %v1168_v51  ;;  %v6452_v1 = vpack.c.bf16 %v1173_v57, %v1165_v56  ;;  %v6470_v51 = vpack.c.bf16 %v1254_v46, %v1246_v45  ;;  %v1245_v52 = vld [vmem:[%s9315_s8 + $0x1f00] sm:$0xff]  ;;  %v1262_v57 = vld [vmem:[%s9315_s8 + $0x1f88] sm:$0xff] }
 0x124   : > { %7103 = vmatprep.subr.bf16.mxu1 %v7102_v63  ;;  %v1184_v63 = vld [vmem:[%s9315_s8 + $0x1d18] sm:$0xff]  ;;  %v7124_v2 = vpack.c.bf16 %v1175_v60, %v1167_v58  ;;  %v1255_v56 = vld [vmem:[%s9315_s8 + $0x1f50] sm:$0xff]  ;;  %v1270_v58 = vld [vmem:[%s9315_s8 + $0x1fc8] sm:$0xff] }
 0x125   : > { %v1272_v60 = vld [vmem:[%s9315_s8 + $0x1fd8] sm:$0xff] }
 0x126   : > { %6433 = vmatpush1.bf16.msra.mxu0 %v6432_v5  ;;  %v1189_v5 = vld [vmem:[%s9315_s8 + $0x1d40] sm:$0xff]  ;;  %v1328_v45 = vld [vmem:[%s9315_s8 + $0x2198] sm:$0xff] }
 0x127   : > { %7105 = vmatpush1.bf16.msra.mxu1 %v7104_v6  ;;  %6435 = vmatprep.subr.bf16.mxu0 %v6434_v7  ;;  %v1183_v6 = vld [vmem:[%s9315_s8 + $0x1d10] sm:$0xff]  ;;  %v7126_v7 = vpack.c.bf16 %v1192_v0, %v1184_v63  ;;  %v6456_v13 = vpack.c.bf16 %v1189_v5, %v1181_v4  ;;  %v6474_v63 = vpack.c.bf16 %v1270_v58, %v1262_v57  ;;  %v1261_v0 = vld [vmem:[%s9315_s8 + $0x1f80] sm:$0xff]  ;;  %v1278_v5 = vld [vmem:[%s9315_s8 + $0x2008] sm:$0xff] }
 0x128   : > { %7107 = vmatprep.subr.bf16.mxu1 %v7106_v11  ;;  %v1200_v11 = vld [vmem:[%s9315_s8 + $0x1d98] sm:$0xff]  ;;  %v7128_v14 = vpack.c.bf16 %v1191_v8, %v1183_v6  ;;  %v1271_v4 = vld [vmem:[%s9315_s8 + $0x1fd0] sm:$0xff]  ;;  %v1286_v6 = vld [vmem:[%s9315_s8 + $0x2048] sm:$0xff] }
 0x129   : > { %v1288_v8 = vld [vmem:[%s9315_s8 + $0x2058] sm:$0xff] }
 0x12a   : > { %6437 = vmatpush1.bf16.msra.mxu0 %v6436_v17  ;;  %v1205_v17 = vld [vmem:[%s9315_s8 + $0x1dc0] sm:$0xff]  ;;  %v1336_v46 = vld [vmem:[%s9315_s8 + $0x21d8] sm:$0xff] }
 0x12b   : > { %7109 = vmatpush1.bf16.msra.mxu1 %v7108_v18  ;;  %6439 = vmatprep.subr.bf16.mxu0 %v6438_v19  ;;  %v1199_v18 = vld [vmem:[%s9315_s8 + $0x1d90] sm:$0xff]  ;;  %v7130_v19 = vpack.c.bf16 %v1208_v12, %v1200_v11  ;;  %v6460_v25 = vpack.c.bf16 %v1205_v17, %v1197_v16  ;;  %v6478_v11 = vpack.c.bf16 %v1286_v6, %v1278_v5  ;;  %v1277_v12 = vld [vmem:[%s9315_s8 + $0x2000] sm:$0xff]  ;;  %v1294_v17 = vld [vmem:[%s9315_s8 + $0x2088] sm:$0xff] }
 0x12c   : > { %7111 = vmatprep.subr.bf16.mxu1 %v7110_v23  ;;  %v1216_v23 = vld [vmem:[%s9315_s8 + $0x1e18] sm:$0xff]  ;;  %v7132_v26 = vpack.c.bf16 %v1207_v20, %v1199_v18  ;;  %v1287_v16 = vld [vmem:[%s9315_s8 + $0x2050] sm:$0xff]  ;;  %v1302_v18 = vld [vmem:[%s9315_s8 + $0x20c8] sm:$0xff] }
 0x12d   : > { %v1304_v20 = vld [vmem:[%s9315_s8 + $0x20d8] sm:$0xff] }
 0x12e   : > { %6441 = vmatpush1.bf16.msra.mxu0 %v6440_v29  ;;  %v1221_v29 = vld [vmem:[%s9315_s8 + $0x1e40] sm:$0xff]  ;;  %v1344_v57 = vld [vmem:[%s9315_s8 + $0x2218] sm:$0xff] }
 0x12f   : > { %7113 = vmatpush1.bf16.msra.mxu1 %v7112_v30  ;;  %6443 = vmatprep.subr.bf16.mxu0 %v6442_v31  ;;  %v1215_v30 = vld [vmem:[%s9315_s8 + $0x1e10] sm:$0xff]  ;;  %v7134_v31 = vpack.c.bf16 %v1224_v24, %v1216_v23  ;;  %v6464_v37 = vpack.c.bf16 %v1221_v29, %v1213_v28  ;;  %v6482_v24 = vpack.c.bf16 %v1302_v18, %v1294_v17  ;;  %v1352_v58 = vld [vmem:[%s9315_s8 + $0x2258] sm:$0xff] }
 0x130   : > { %7115 = vmatprep.subr.bf16.mxu1 %v7114_v35  ;;  %v1232_v35 = vld [vmem:[%s9315_s8 + $0x1e98] sm:$0xff]  ;;  %v7136_v38 = vpack.c.bf16 %v1223_v32, %v1215_v30  ;;  %v1303_v29 = vld [vmem:[%s9315_s8 + $0x20d0] sm:$0xff]  ;;  %v1310_v30 = vld [vmem:[%s9315_s8 + $0x2108] sm:$0xff] }
 0x131   : > { %v1312_v32 = vld [vmem:[%s9315_s8 + $0x2118] sm:$0xff] }
 0x132   : > { %6445 = vmatpush1.bf16.msra.mxu0 %v6444_v41  ;;  %v1237_v41 = vld [vmem:[%s9315_s8 + $0x1ec0] sm:$0xff]  ;;  %v1360_v5 = vld [vmem:[%s9315_s8 + $0x2298] sm:$0xff] }
 0x133   : > { %7117 = vmatpush1.bf16.msra.mxu1 %v7116_v42  ;;  %6447 = vmatprep.subr.bf16.mxu0 %v6446_v43  ;;  %v1231_v42 = vld [vmem:[%s9315_s8 + $0x1e90] sm:$0xff]  ;;  %v7138_v43 = vpack.c.bf16 %v1240_v36, %v1232_v35  ;;  %v6468_v49 = vpack.c.bf16 %v1237_v41, %v1229_v40  ;;  %v7158_v41 = vpack.c.bf16 %v1320_v33, %v1312_v32  ;;  %v1368_v6 = vld [vmem:[%s9315_s8 + $0x22d8] sm:$0xff] }
 0x134   : > { %7119 = vmatprep.subr.bf16.mxu1 %v7118_v47  ;;  %v1248_v47 = vld [vmem:[%s9315_s8 + $0x1f18] sm:$0xff]  ;;  %v7140_v50 = vpack.c.bf16 %v1239_v44, %v1231_v42  ;;  %v1311_v40 = vld [vmem:[%s9315_s8 + $0x2110] sm:$0xff]  ;;  %v1334_v44 = vld [vmem:[%s9315_s8 + $0x21c8] sm:$0xff] }
 0x135   : > { %v1319_v42 = vld [vmem:[%s9315_s8 + $0x2150] sm:$0xff]  ;;  %v1376_v17 = vld [vmem:[%s9315_s8 + $0x2318] sm:$0xff] }
 0x136   : > { %6449 = vmatpush1.bf16.msra.mxu0 %v6448_v53  ;;  %v1253_v53 = vld [vmem:[%s9315_s8 + $0x1f40] sm:$0xff]  ;;  %v1384_v18 = vld [vmem:[%s9315_s8 + $0x2358] sm:$0xff] }
 0x137   : > { %7121 = vmatpush1.bf16.msra.mxu1 %v7120_v54  ;;  %6451 = vmatprep.subr.bf16.mxu0 %v6450_v55  ;;  %v1247_v54 = vld [vmem:[%s9315_s8 + $0x1f10] sm:$0xff]  ;;  %v7142_v55 = vpack.c.bf16 %v1256_v48, %v1248_v47  ;;  %v6472_v61 = vpack.c.bf16 %v1253_v53, %v1245_v52  ;;  %v7160_v48 = vpack.c.bf16 %v1319_v42, %v1311_v40  ;;  %v1414_v40 = vld [vmem:[%s9315_s8 + $0x2448] sm:$0xff]  ;;  %v1416_v42 = vld [vmem:[%s9315_s8 + $0x2458] sm:$0xff] }
 0x138   : > { %7123 = vmatprep.subr.bf16.mxu1 %v7122_v59  ;;  %v1264_v59 = vld [vmem:[%s9315_s8 + $0x1f98] sm:$0xff]  ;;  %v7144_v62 = vpack.c.bf16 %v1255_v56, %v1247_v54  ;;  %v1327_v52 = vld [vmem:[%s9315_s8 + $0x2190] sm:$0xff]  ;;  %v7162_v53 = vpack.c.bf16 %v1336_v46, %v1328_v45  ;;  %v1350_v56 = vld [vmem:[%s9315_s8 + $0x2248] sm:$0xff] }
 0x139   : > { %v1335_v54 = vld [vmem:[%s9315_s8 + $0x21d0] sm:$0xff]  ;;  %v1405_v46 = vld [vmem:[%s9315_s8 + $0x2400] sm:$0xff] }
 0x13a   : > { %6453 = vmatpush1.bf16.msra.mxu0 %v6452_v1  ;;  %v1269_v1 = vld [vmem:[%s9315_s8 + $0x1fc0] sm:$0xff] }
 0x13b   : > { %7125 = vmatpush1.bf16.msra.mxu1 %v7124_v2  ;;  %6455 = vmatprep.subr.bf16.mxu0 %v6454_v3  ;;  %v1263_v2 = vld [vmem:[%s9315_s8 + $0x1f90] sm:$0xff]  ;;  %v7146_v3 = vpack.c.bf16 %v1272_v60, %v1264_v59  ;;  %v6476_v9 = vpack.c.bf16 %v1269_v1, %v1261_v0  ;;  %v7164_v60 = vpack.c.bf16 %v1335_v54, %v1327_v52  ;;  %v1430_v52 = vld [vmem:[%s9315_s8 + $0x24c8] sm:$0xff]  ;;  %v1432_v54 = vld [vmem:[%s9315_s8 + $0x24d8] sm:$0xff] }
 0x13c   : > { %7127 = vmatprep.subr.bf16.mxu1 %v7126_v7  ;;  %v1280_v7 = vld [vmem:[%s9315_s8 + $0x2018] sm:$0xff]  ;;  %v7148_v10 = vpack.c.bf16 %v1271_v4, %v1263_v2  ;;  %v1343_v0 = vld [vmem:[%s9315_s8 + $0x2210] sm:$0xff]  ;;  %v7166_v1 = vpack.c.bf16 %v1352_v58, %v1344_v57  ;;  %v1366_v4 = vld [vmem:[%s9315_s8 + $0x22c8] sm:$0xff] }
 0x13d   : > { %v1351_v2 = vld [vmem:[%s9315_s8 + $0x2250] sm:$0xff]  ;;  %v1421_v58 = vld [vmem:[%s9315_s8 + $0x2480] sm:$0xff] }
 0x13e   : > { %6457 = vmatpush1.bf16.msra.mxu0 %v6456_v13  ;;  %v1285_v13 = vld [vmem:[%s9315_s8 + $0x2040] sm:$0xff] }
 0x13f   : > { %7129 = vmatpush1.bf16.msra.mxu1 %v7128_v14  ;;  %6459 = vmatprep.subr.bf16.mxu0 %v6458_v15  ;;  %v1279_v14 = vld [vmem:[%s9315_s8 + $0x2010] sm:$0xff]  ;;  %v7150_v15 = vpack.c.bf16 %v1288_v8, %v1280_v7  ;;  %v6480_v22 = vpack.c.bf16 %v1285_v13, %v1277_v12  ;;  %v7168_v8 = vpack.c.bf16 %v1351_v2, %v1343_v0  ;;  %v1446_v0 = vld [vmem:[%s9315_s8 + $0x2548] sm:$0xff]  ;;  %v1448_v2 = vld [vmem:[%s9315_s8 + $0x2558] sm:$0xff] }
 0x140   : > { %7131 = vmatprep.subr.bf16.mxu1 %v7130_v19  ;;  %v1296_v19 = vld [vmem:[%s9315_s8 + $0x2098] sm:$0xff]  ;;  %v7152_v23 = vpack.c.bf16 %v1287_v16, %v1279_v14  ;;  %v1359_v12 = vld [vmem:[%s9315_s8 + $0x2290] sm:$0xff]  ;;  %v7170_v13 = vpack.c.bf16 %v1368_v6, %v1360_v5  ;;  %v1382_v16 = vld [vmem:[%s9315_s8 + $0x2348] sm:$0xff] }
 0x141   : > { %v7154_v28 = vpack.c.bf16 %v1304_v20, %v1296_v19  ;;  %v1367_v14 = vld [vmem:[%s9315_s8 + $0x22d0] sm:$0xff]  ;;  %v1437_v6 = vld [vmem:[%s9315_s8 + $0x2500] sm:$0xff] }
 0x142   : > { %6461 = vmatpush1.bf16.msra.mxu0 %v6460_v25  ;;  %v1293_v25 = vld [vmem:[%s9315_s8 + $0x2080] sm:$0xff]  ;;  %v7172_v20 = vpack.c.bf16 %v1367_v14, %v1359_v12  ;;  %v1462_v12 = vld [vmem:[%s9315_s8 + $0x25c8] sm:$0xff]  ;;  %v1464_v14 = vld [vmem:[%s9315_s8 + $0x25d8] sm:$0xff] }
 0x143   : > { %7133 = vmatpush1.bf16.msra.mxu1 %v7132_v26  ;;  %6463 = vmatprep.subr.bf16.mxu0 %v6462_v27  ;;  %v1301_v26 = vld [vmem:[%s9315_s8 + $0x20c0] sm:$0xff]  ;;  %v1295_v27 = vld [vmem:[%s9315_s8 + $0x2090] sm:$0xff] }
 0x144   : > { %7135 = vmatprep.subr.bf16.mxu1 %v7134_v31  ;;  %v1318_v31 = vld [vmem:[%s9315_s8 + $0x2148] sm:$0xff]  ;;  %v6484_v35 = vpack.c.bf16 %v1301_v26, %v1293_v25  ;;  %v7156_v36 = vpack.c.bf16 %v1303_v29, %v1295_v27  ;;  %v7174_v25 = vpack.c.bf16 %v1384_v18, %v1376_v17  ;;  %v1383_v26 = vld [vmem:[%s9315_s8 + $0x2350] sm:$0xff]  ;;  %v1392_v29 = vld [vmem:[%s9315_s8 + $0x2398] sm:$0xff] }
 0x145   : > { %v1390_v27 = vld [vmem:[%s9315_s8 + $0x2388] sm:$0xff]  ;;  %v1453_v18 = vld [vmem:[%s9315_s8 + $0x2580] sm:$0xff] }
 0x146   : > { %6465 = vmatpush1.bf16.msra.mxu0 %v6464_v37  ;;  %v6486_v37 = vpack.c.bf16 %v1318_v31, %v1310_v30  ;;  %v1400_v30 = vld [vmem:[%s9315_s8 + $0x23d8] sm:$0xff] }
 0x147   : > { %7137 = vmatpush1.bf16.msra.mxu1 %v7136_v38  ;;  %6467 = vmatprep.subr.bf16.mxu0 %v6466_v39  ;;  %v1309_v38 = vld [vmem:[%s9315_s8 + $0x2100] sm:$0xff] }
 0x148   : > { %7139 = vmatprep.subr.bf16.mxu1 %v7138_v43  ;;  %v1317_v39 = vld [vmem:[%s9315_s8 + $0x2140] sm:$0xff]  ;;  %v1326_v43 = vld [vmem:[%s9315_s8 + $0x2188] sm:$0xff] }
 0x149   : > { %v6488_v47 = vpack.c.bf16 %v1317_v39, %v1309_v38  ;;  %v1399_v38 = vld [vmem:[%s9315_s8 + $0x23d0] sm:$0xff]  ;;  %v1406_v39 = vld [vmem:[%s9315_s8 + $0x2408] sm:$0xff] }
 0x14a   : > { %6469 = vmatpush1.bf16.msra.mxu0 %v6468_v49  ;;  %v6490_v49 = vpack.c.bf16 %v1334_v44, %v1326_v43  ;;  %v6510_v45 = vpack.c.bf16 %v1414_v40, %v1406_v39 }
 0x14b   : > { %7141 = vmatpush1.bf16.msra.mxu1 %v7140_v50  ;;  %6471 = vmatprep.subr.bf16.mxu0 %v6470_v51  ;;  %v1325_v50 = vld [vmem:[%s9315_s8 + $0x2180] sm:$0xff] }
 0x14c   : > { %7143 = vmatprep.subr.bf16.mxu1 %v7142_v55  ;;  %v1333_v51 = vld [vmem:[%s9315_s8 + $0x21c0] sm:$0xff]  ;;  %v1342_v55 = vld [vmem:[%s9315_s8 + $0x2208] sm:$0xff] }
 0x14d   : > { %v6492_v59 = vpack.c.bf16 %v1333_v51, %v1325_v50  ;;  %v1415_v50 = vld [vmem:[%s9315_s8 + $0x2450] sm:$0xff]  ;;  %v1422_v51 = vld [vmem:[%s9315_s8 + $0x2488] sm:$0xff] }
 0x14e   : > { %6473 = vmatpush1.bf16.msra.mxu0 %v6472_v61  ;;  %v6494_v61 = vpack.c.bf16 %v1350_v56, %v1342_v55  ;;  %v6514_v57 = vpack.c.bf16 %v1430_v52, %v1422_v51 }
 0x14f   : > { %7145 = vmatpush1.bf16.msra.mxu1 %v7144_v62  ;;  %6475 = vmatprep.subr.bf16.mxu0 %v6474_v63  ;;  %v1341_v62 = vld [vmem:[%s9315_s8 + $0x2200] sm:$0xff] }
 0x150   : > { %7147 = vmatprep.subr.bf16.mxu1 %v7146_v3  ;;  %v1349_v63 = vld [vmem:[%s9315_s8 + $0x2240] sm:$0xff]  ;;  %v1358_v3 = vld [vmem:[%s9315_s8 + $0x2288] sm:$0xff] }
 0x151   : > { %v6496_v7 = vpack.c.bf16 %v1349_v63, %v1341_v62  ;;  %v1431_v62 = vld [vmem:[%s9315_s8 + $0x24d0] sm:$0xff]  ;;  %v1438_v63 = vld [vmem:[%s9315_s8 + $0x2508] sm:$0xff] }
 0x152   : > { %6477 = vmatpush1.bf16.msra.mxu0 %v6476_v9  ;;  %v6498_v9 = vpack.c.bf16 %v1366_v4, %v1358_v3  ;;  %v6518_v5 = vpack.c.bf16 %v1446_v0, %v1438_v63 }
 0x153   : > { %7149 = vmatpush1.bf16.msra.mxu1 %v7148_v10  ;;  %6479 = vmatprep.subr.bf16.mxu0 %v6478_v11  ;;  %v1357_v10 = vld [vmem:[%s9315_s8 + $0x2280] sm:$0xff] }
 0x154   : > { %7151 = vmatprep.subr.bf16.mxu1 %v7150_v15  ;;  %v1365_v11 = vld [vmem:[%s9315_s8 + $0x22c0] sm:$0xff]  ;;  %v1374_v15 = vld [vmem:[%s9315_s8 + $0x2308] sm:$0xff] }
 0x155   : > { %3261 = vmatmul.mubr.f32.vlgmr.msra.gmra.mrb[0].mxu0 %v238_v21  ;;  %v6500_v19 = vpack.c.bf16 %v1365_v11, %v1357_v10  ;;  %v1447_v10 = vld [vmem:[%s9315_s8 + $0x2550] sm:$0xff]  ;;  %v1454_v11 = vld [vmem:[%s9315_s8 + $0x2588] sm:$0xff] }
 0x156   : > { %6481 = vmatpush1.bf16.msra.mxu0 %v6480_v22  ;;  %4042 = vmatmul.mubr.f32.vlgmr.msra.gmra.mrb[0].mxu1 %v238_v21  ;;  %v6502_v21 = vpack.c.bf16 %v1382_v16, %v1374_v15  ;;  %v1373_v22 = vld [vmem:[%s9315_s8 + $0x2300] sm:$0xff]  ;;  %v6522_v17 = vpack.c.bf16 %v1462_v12, %v1454_v11 }
 0x157   : > { %7153 = vmatpush1.bf16.msra.mxu1 %v7152_v23  ;;  %6483 = vmatprep.subr.bf16.mxu0 %v6482_v24  ;;  %v1381_v23 = vld [vmem:[%s9315_s8 + $0x2340] sm:$0xff]  ;;  %v1375_v24 = vld [vmem:[%s9315_s8 + $0x2310] sm:$0xff] }
 0x158   : > { %7155 = vmatprep.subr.bf16.mxu1 %v7154_v28  ;;  %3331 = vmatprep.mubr.f32.mxu0 %v241_v34  ;;  %v1398_v28 = vld [vmem:[%s9315_s8 + $0x23c8] sm:$0xff]  ;;  %v6504_v31 = vpack.c.bf16 %v1381_v23, %v1373_v22  ;;  %v7176_v32 = vpack.c.bf16 %v1383_v26, %v1375_v24  ;;  %v1463_v22 = vld [vmem:[%s9315_s8 + $0x25d0] sm:$0xff]  ;;  %v1480_v26 = vld [vmem:[%s9315_s8 + $0x2658] sm:$0xff] }
 0x159   : > { %4112 = vmatprep.mubr.f32.mxu1 %v241_v34  ;;  %v6506_v33 = vpack.c.bf16 %v1398_v28, %v1390_v27  ;;  %v1389_v34 = vld [vmem:[%s9315_s8 + $0x2380] sm:$0xff]  ;;  %v1470_v23 = vld [vmem:[%s9315_s8 + $0x2608] sm:$0xff] }
 0x15a   : > { %6485 = vmatpush1.bf16.msra.mxu0 %v6484_v35  ;;  %v1397_v35 = vld [vmem:[%s9315_s8 + $0x23c0] sm:$0xff]  ;;  %v1478_v24 = vld [vmem:[%s9315_s8 + $0x2648] sm:$0xff] }
 0x15b   : > { %7157 = vmatpush1.bf16.msra.mxu1 %v7156_v36  ;;  %6487 = vmatprep.subr.bf16.mxu0 %v6486_v37  ;;  %v1391_v36 = vld [vmem:[%s9315_s8 + $0x2390] sm:$0xff]  ;;  %v7178_v37 = vpack.c.bf16 %v1400_v30, %v1392_v29  ;;  %v6508_v43 = vpack.c.bf16 %v1397_v35, %v1389_v34  ;;  %v6526_v29 = vpack.c.bf16 %v1478_v24, %v1470_v23  ;;  %v1469_v30 = vld [vmem:[%s9315_s8 + $0x2600] sm:$0xff]  ;;  %v1486_v35 = vld [vmem:[%s9315_s8 + $0x2688] sm:$0xff] }
 0x15c   : > { %7159 = vmatprep.subr.bf16.mxu1 %v7158_v41  ;;  %v1408_v41 = vld [vmem:[%s9315_s8 + $0x2418] sm:$0xff]  ;;  %v7180_v44 = vpack.c.bf16 %v1399_v38, %v1391_v36  ;;  %v1479_v34 = vld [vmem:[%s9315_s8 + $0x2650] sm:$0xff]  ;;  %v1494_v36 = vld [vmem:[%s9315_s8 + $0x26c8] sm:$0xff] }
 0x15d   : > { %v1496_v38 = vld [vmem:[%s9315_s8 + $0x26d8] sm:$0xff]  ;;  %v240_v23 = vld [vmem:[%s12194_s0 + $0x40] sm:$0xff] }
 0x15e   : > { %6489 = vmatpush1.bf16.msra.mxu0 %v6488_v47  ;;  %v1413_v47 = vld [vmem:[%s9315_s8 + $0x2440] sm:$0xff] }
 0x15f   : > { %7161 = vmatpush1.bf16.msra.mxu1 %v7160_v48  ;;  %6491 = vmatprep.subr.bf16.mxu0 %v6490_v49  ;;  %v1407_v48 = vld [vmem:[%s9315_s8 + $0x2410] sm:$0xff]  ;;  %v7182_v49 = vpack.c.bf16 %v1416_v42, %v1408_v41  ;;  %v6512_v55 = vpack.c.bf16 %v1413_v47, %v1405_v46  ;;  %v6530_v41 = vpack.c.bf16 %v1494_v36, %v1486_v35  ;;  %v1485_v42 = vld [vmem:[%s9315_s8 + $0x2680] sm:$0xff]  ;;  %v1502_v47 = vld [vmem:[%s9315_s8 + $0x2708] sm:$0xff] }
 0x160   : > { %7163 = vmatprep.subr.bf16.mxu1 %v7162_v53  ;;  %v1424_v53 = vld [vmem:[%s9315_s8 + $0x2498] sm:$0xff]  ;;  %v7184_v56 = vpack.c.bf16 %v1415_v50, %v1407_v48  ;;  %v1495_v46 = vld [vmem:[%s9315_s8 + $0x26d0] sm:$0xff]  ;;  %v1510_v48 = vld [vmem:[%s9315_s8 + $0x2748] sm:$0xff] }
 0x161   : > { %v1512_v50 = vld [vmem:[%s9315_s8 + $0x2758] sm:$0xff] }
 0x162   : > { %6493 = vmatpush1.bf16.msra.mxu0 %v6492_v59  ;;  %v1429_v59 = vld [vmem:[%s9315_s8 + $0x24c0] sm:$0xff]  ;;  %v1576_v35 = vld [vmem:[%s9315_s8 + $0x2958] sm:$0xff] }
 0x163   : > { %7165 = vmatpush1.bf16.msra.mxu1 %v7164_v60  ;;  %6495 = vmatprep.subr.bf16.mxu0 %v6494_v61  ;;  %v1423_v60 = vld [vmem:[%s9315_s8 + $0x2490] sm:$0xff]  ;;  %v7186_v61 = vpack.c.bf16 %v1432_v54, %v1424_v53  ;;  %v6516_v3 = vpack.c.bf16 %v1429_v59, %v1421_v58  ;;  %v6534_v53 = vpack.c.bf16 %v1510_v48, %v1502_v47  ;;  %v1501_v54 = vld [vmem:[%s9315_s8 + $0x2700] sm:$0xff]  ;;  %v1518_v59 = vld [vmem:[%s9315_s8 + $0x2788] sm:$0xff] }
 0x164   : > { %7167 = vmatprep.subr.bf16.mxu1 %v7166_v1  ;;  %v1440_v1 = vld [vmem:[%s9315_s8 + $0x2518] sm:$0xff]  ;;  %v7188_v4 = vpack.c.bf16 %v1431_v62, %v1423_v60  ;;  %v1511_v58 = vld [vmem:[%s9315_s8 + $0x2750] sm:$0xff]  ;;  %v1526_v60 = vld [vmem:[%s9315_s8 + $0x27c8] sm:$0xff] }
 0x165   : > { %v1528_v62 = vld [vmem:[%s9315_s8 + $0x27d8] sm:$0xff] }
 0x166   : > { %6497 = vmatpush1.bf16.msra.mxu0 %v6496_v7  ;;  %v1445_v7 = vld [vmem:[%s9315_s8 + $0x2540] sm:$0xff]  ;;  %v243_v36 = vld [vmem:[%s12194_s0 + $0x58] sm:$0xff] }
 0x167   : > { %7169 = vmatpush1.bf16.msra.mxu1 %v7168_v8  ;;  %6499 = vmatprep.subr.bf16.mxu0 %v6498_v9  ;;  %v1439_v8 = vld [vmem:[%s9315_s8 + $0x2510] sm:$0xff]  ;;  %v7190_v9 = vpack.c.bf16 %v1448_v2, %v1440_v1  ;;  %v6520_v15 = vpack.c.bf16 %v1445_v7, %v1437_v6  ;;  %v6538_v1 = vpack.c.bf16 %v1526_v60, %v1518_v59  ;;  %v1517_v2 = vld [vmem:[%s9315_s8 + $0x2780] sm:$0xff]  ;;  %v1534_v7 = vld [vmem:[%s9315_s8 + $0x2808] sm:$0xff] }
 0x168   : > { %7171 = vmatprep.subr.bf16.mxu1 %v7170_v13  ;;  %v1456_v13 = vld [vmem:[%s9315_s8 + $0x2598] sm:$0xff]  ;;  %v7192_v16 = vpack.c.bf16 %v1447_v10, %v1439_v8  ;;  %v1527_v6 = vld [vmem:[%s9315_s8 + $0x27d0] sm:$0xff]  ;;  %v1542_v8 = vld [vmem:[%s9315_s8 + $0x2848] sm:$0xff] }
 0x169   : > { %v1544_v10 = vld [vmem:[%s9315_s8 + $0x2858] sm:$0xff] }
 0x16a   : > { %6501 = vmatpush1.bf16.msra.mxu0 %v6500_v19  ;;  %v1461_v19 = vld [vmem:[%s9315_s8 + $0x25c0] sm:$0xff]  ;;  %v1584_v47 = vld [vmem:[%s9315_s8 + $0x2998] sm:$0xff] }
 0x16b   : > { %7173 = vmatpush1.bf16.msra.mxu1 %v7172_v20  ;;  %6503 = vmatprep.subr.bf16.mxu0 %v6502_v21  ;;  %v1455_v20 = vld [vmem:[%s9315_s8 + $0x2590] sm:$0xff]  ;;  %v7194_v21 = vpack.c.bf16 %v1464_v14, %v1456_v13  ;;  %v6524_v27 = vpack.c.bf16 %v1461_v19, %v1453_v18  ;;  %v6542_v13 = vpack.c.bf16 %v1542_v8, %v1534_v7  ;;  %v1533_v14 = vld [vmem:[%s9315_s8 + $0x2800] sm:$0xff]  ;;  %v1550_v19 = vld [vmem:[%s9315_s8 + $0x2888] sm:$0xff] }
 0x16c   : > { %7175 = vmatprep.subr.bf16.mxu1 %v7174_v25  ;;  %v1472_v25 = vld [vmem:[%s9315_s8 + $0x2618] sm:$0xff]  ;;  %v7196_v28 = vpack.c.bf16 %v1463_v22, %v1455_v20  ;;  %v1543_v18 = vld [vmem:[%s9315_s8 + $0x2850] sm:$0xff]  ;;  %v1558_v20 = vld [vmem:[%s9315_s8 + $0x28c8] sm:$0xff] }
 0x16d   : > { %v1560_v22 = vld [vmem:[%s9315_s8 + $0x28d8] sm:$0xff] }
 0x16e   : > { %6505 = vmatpush1.bf16.msra.mxu0 %v6504_v31  ;;  %v1477_v31 = vld [vmem:[%s9315_s8 + $0x2640] sm:$0xff]  ;;  %v1592_v48 = vld [vmem:[%s9315_s8 + $0x29d8] sm:$0xff] }
 0x16f   : > { %7177 = vmatpush1.bf16.msra.mxu1 %v7176_v32  ;;  %6507 = vmatprep.subr.bf16.mxu0 %v6506_v33  ;;  %v1471_v32 = vld [vmem:[%s9315_s8 + $0x2610] sm:$0xff]  ;;  %v7198_v33 = vpack.c.bf16 %v1480_v26, %v1472_v25  ;;  %v6528_v39 = vpack.c.bf16 %v1477_v31, %v1469_v30  ;;  %v6546_v26 = vpack.c.bf16 %v1558_v20, %v1550_v19  ;;  %v1600_v59 = vld [vmem:[%s9315_s8 + $0x2a18] sm:$0xff] }
 0x170   : > { %7179 = vmatprep.subr.bf16.mxu1 %v7178_v37  ;;  %v1488_v37 = vld [vmem:[%s9315_s8 + $0x2698] sm:$0xff]  ;;  %v7200_v40 = vpack.c.bf16 %v1479_v34, %v1471_v32  ;;  %v1559_v31 = vld [vmem:[%s9315_s8 + $0x28d0] sm:$0xff]  ;;  %v1566_v32 = vld [vmem:[%s9315_s8 + $0x2908] sm:$0xff] }
 0x171   : > { %v1568_v34 = vld [vmem:[%s9315_s8 + $0x2918] sm:$0xff] }
 0x172   : > { %6509 = vmatpush1.bf16.msra.mxu0 %v6508_v43  ;;  %v1493_v43 = vld [vmem:[%s9315_s8 + $0x26c0] sm:$0xff]  ;;  %v1608_v60 = vld [vmem:[%s9315_s8 + $0x2a58] sm:$0xff] }
 0x173   : > { %7181 = vmatpush1.bf16.msra.mxu1 %v7180_v44  ;;  %6511 = vmatprep.subr.bf16.mxu0 %v6510_v45  ;;  %v1487_v44 = vld [vmem:[%s9315_s8 + $0x2690] sm:$0xff]  ;;  %v7202_v45 = vpack.c.bf16 %v1496_v38, %v1488_v37  ;;  %v6532_v51 = vpack.c.bf16 %v1493_v43, %v1485_v42  ;;  %v7222_v43 = vpack.c.bf16 %v1576_v35, %v1568_v34  ;;  %v1616_v7 = vld [vmem:[%s9315_s8 + $0x2a98] sm:$0xff] }
 0x174   : > { %7183 = vmatprep.subr.bf16.mxu1 %v7182_v49  ;;  %v1504_v49 = vld [vmem:[%s9315_s8 + $0x2718] sm:$0xff]  ;;  %v7204_v52 = vpack.c.bf16 %v1495_v46, %v1487_v44  ;;  %v1567_v42 = vld [vmem:[%s9315_s8 + $0x2910] sm:$0xff]  ;;  %v1590_v46 = vld [vmem:[%s9315_s8 + $0x29c8] sm:$0xff] }
 0x175   : > { %v1575_v44 = vld [vmem:[%s9315_s8 + $0x2950] sm:$0xff]  ;;  %v1624_v8 = vld [vmem:[%s9315_s8 + $0x2ad8] sm:$0xff] }
 0x176   : > { %6513 = vmatpush1.bf16.msra.mxu0 %v6512_v55  ;;  %v1509_v55 = vld [vmem:[%s9315_s8 + $0x2740] sm:$0xff]  ;;  %v1632_v19 = vld [vmem:[%s9315_s8 + $0x2b18] sm:$0xff] }
 0x177   : > { %7185 = vmatpush1.bf16.msra.mxu1 %v7184_v56  ;;  %6515 = vmatprep.subr.bf16.mxu0 %v6514_v57  ;;  %v1503_v56 = vld [vmem:[%s9315_s8 + $0x2710] sm:$0xff]  ;;  %v7206_v57 = vpack.c.bf16 %v1512_v50, %v1504_v49  ;;  %v6536_v63 = vpack.c.bf16 %v1509_v55, %v1501_v54  ;;  %v7224_v50 = vpack.c.bf16 %v1575_v44, %v1567_v42  ;;  %v1640_v20 = vld [vmem:[%s9315_s8 + $0x2b58] sm:$0xff]  ;;  %v1670_v42 = vld [vmem:[%s9315_s8 + $0x2c48] sm:$0xff] }
 0x178   : > { %7187 = vmatprep.subr.bf16.mxu1 %v7186_v61  ;;  %v1520_v61 = vld [vmem:[%s9315_s8 + $0x2798] sm:$0xff]  ;;  %v7208_v0 = vpack.c.bf16 %v1511_v58, %v1503_v56  ;;  %v1583_v54 = vld [vmem:[%s9315_s8 + $0x2990] sm:$0xff]  ;;  %v7226_v55 = vpack.c.bf16 %v1592_v48, %v1584_v47  ;;  %v1606_v58 = vld [vmem:[%s9315_s8 + $0x2a48] sm:$0xff] }
 0x179   : > { %v1591_v56 = vld [vmem:[%s9315_s8 + $0x29d0] sm:$0xff]  ;;  %v1672_v44 = vld [vmem:[%s9315_s8 + $0x2c58] sm:$0xff]  ;;  %v1661_v48 = vld [vmem:[%s9315_s8 + $0x2c00] sm:$0xff] }
 0x17a   : > { %6517 = vmatpush1.bf16.msra.mxu0 %v6516_v3  ;;  %v1525_v3 = vld [vmem:[%s9315_s8 + $0x27c0] sm:$0xff] }
 0x17b   : > { %7189 = vmatpush1.bf16.msra.mxu1 %v7188_v4  ;;  %6519 = vmatprep.subr.bf16.mxu0 %v6518_v5  ;;  %v1519_v4 = vld [vmem:[%s9315_s8 + $0x2790] sm:$0xff]  ;;  %v7210_v5 = vpack.c.bf16 %v1528_v62, %v1520_v61  ;;  %v6540_v11 = vpack.c.bf16 %v1525_v3, %v1517_v2  ;;  %v7228_v62 = vpack.c.bf16 %v1591_v56, %v1583_v54  ;;  %v1686_v54 = vld [vmem:[%s9315_s8 + $0x2cc8] sm:$0xff]  ;;  %v1688_v56 = vld [vmem:[%s9315_s8 + $0x2cd8] sm:$0xff] }
 0x17c   : > { %7191 = vmatprep.subr.bf16.mxu1 %v7190_v9  ;;  %v1536_v9 = vld [vmem:[%s9315_s8 + $0x2818] sm:$0xff]  ;;  %v7212_v12 = vpack.c.bf16 %v1527_v6, %v1519_v4  ;;  %v1599_v2 = vld [vmem:[%s9315_s8 + $0x2a10] sm:$0xff]  ;;  %v7230_v3 = vpack.c.bf16 %v1608_v60, %v1600_v59  ;;  %v1622_v6 = vld [vmem:[%s9315_s8 + $0x2ac8] sm:$0xff] }
 0x17d   : > { %v1607_v4 = vld [vmem:[%s9315_s8 + $0x2a50] sm:$0xff]  ;;  %v1677_v60 = vld [vmem:[%s9315_s8 + $0x2c80] sm:$0xff] }
 0x17e   : > { %6521 = vmatpush1.bf16.msra.mxu0 %v6520_v15  ;;  %v1541_v15 = vld [vmem:[%s9315_s8 + $0x2840] sm:$0xff] }
 0x17f   : > { %7193 = vmatpush1.bf16.msra.mxu1 %v7192_v16  ;;  %6523 = vmatprep.subr.bf16.mxu0 %v6522_v17  ;;  %v1535_v16 = vld [vmem:[%s9315_s8 + $0x2810] sm:$0xff]  ;;  %v7214_v17 = vpack.c.bf16 %v1544_v10, %v1536_v9  ;;  %v6544_v24 = vpack.c.bf16 %v1541_v15, %v1533_v14  ;;  %v7232_v10 = vpack.c.bf16 %v1607_v4, %v1599_v2  ;;  %v1702_v2 = vld [vmem:[%s9315_s8 + $0x2d48] sm:$0xff]  ;;  %v1704_v4 = vld [vmem:[%s9315_s8 + $0x2d58] sm:$0xff] }
 0x180   : > { %7195 = vmatprep.subr.bf16.mxu1 %v7194_v21  ;;  %v1552_v21 = vld [vmem:[%s9315_s8 + $0x2898] sm:$0xff]  ;;  %v7216_v25 = vpack.c.bf16 %v1543_v18, %v1535_v16  ;;  %v1615_v14 = vld [vmem:[%s9315_s8 + $0x2a90] sm:$0xff]  ;;  %v7234_v15 = vpack.c.bf16 %v1624_v8, %v1616_v7  ;;  %v1638_v18 = vld [vmem:[%s9315_s8 + $0x2b48] sm:$0xff] }
 0x181   : > { %v7218_v30 = vpack.c.bf16 %v1560_v22, %v1552_v21  ;;  %v1623_v16 = vld [vmem:[%s9315_s8 + $0x2ad0] sm:$0xff]  ;;  %v1693_v8 = vld [vmem:[%s9315_s8 + $0x2d00] sm:$0xff] }
 0x182   : > { %6525 = vmatpush1.bf16.msra.mxu0 %v6524_v27  ;;  %v1549_v27 = vld [vmem:[%s9315_s8 + $0x2880] sm:$0xff]  ;;  %v7236_v22 = vpack.c.bf16 %v1623_v16, %v1615_v14  ;;  %v1718_v14 = vld [vmem:[%s9315_s8 + $0x2dc8] sm:$0xff]  ;;  %v1720_v16 = vld [vmem:[%s9315_s8 + $0x2dd8] sm:$0xff] }
 0x183   : > { %7197 = vmatpush1.bf16.msra.mxu1 %v7196_v28  ;;  %6527 = vmatprep.subr.bf16.mxu0 %v6526_v29  ;;  %v1557_v28 = vld [vmem:[%s9315_s8 + $0x28c0] sm:$0xff]  ;;  %v1551_v29 = vld [vmem:[%s9315_s8 + $0x2890] sm:$0xff] }
 0x184   : > { %7199 = vmatprep.subr.bf16.mxu1 %v7198_v33  ;;  %v1574_v33 = vld [vmem:[%s9315_s8 + $0x2948] sm:$0xff]  ;;  %v6548_v37 = vpack.c.bf16 %v1557_v28, %v1549_v27  ;;  %v7220_v38 = vpack.c.bf16 %v1559_v31, %v1551_v29  ;;  %v7238_v27 = vpack.c.bf16 %v1640_v20, %v1632_v19  ;;  %v1639_v28 = vld [vmem:[%s9315_s8 + $0x2b50] sm:$0xff]  ;;  %v1648_v31 = vld [vmem:[%s9315_s8 + $0x2b98] sm:$0xff] }
 0x185   : > { %v1646_v29 = vld [vmem:[%s9315_s8 + $0x2b88] sm:$0xff]  ;;  %v1709_v20 = vld [vmem:[%s9315_s8 + $0x2d80] sm:$0xff] }
 0x186   : > { %6529 = vmatpush1.bf16.msra.mxu0 %v6528_v39  ;;  %v6550_v39 = vpack.c.bf16 %v1574_v33, %v1566_v32  ;;  %v1656_v32 = vld [vmem:[%s9315_s8 + $0x2bd8] sm:$0xff] }
 0x187   : > { %7201 = vmatpush1.bf16.msra.mxu1 %v7200_v40  ;;  %6531 = vmatprep.subr.bf16.mxu0 %v6530_v41  ;;  %v1565_v40 = vld [vmem:[%s9315_s8 + $0x2900] sm:$0xff] }
 0x188   : > { %7203 = vmatprep.subr.bf16.mxu1 %v7202_v45  ;;  %v1573_v41 = vld [vmem:[%s9315_s8 + $0x2940] sm:$0xff]  ;;  %v1582_v45 = vld [vmem:[%s9315_s8 + $0x2988] sm:$0xff] }
 0x189   : > { %v6552_v49 = vpack.c.bf16 %v1573_v41, %v1565_v40  ;;  %v1655_v40 = vld [vmem:[%s9315_s8 + $0x2bd0] sm:$0xff]  ;;  %v1662_v41 = vld [vmem:[%s9315_s8 + $0x2c08] sm:$0xff] }
 0x18a   : > { %6533 = vmatpush1.bf16.msra.mxu0 %v6532_v51  ;;  %v6554_v51 = vpack.c.bf16 %v1590_v46, %v1582_v45  ;;  %v6574_v47 = vpack.c.bf16 %v1670_v42, %v1662_v41 }
 0x18b   : > { %7205 = vmatpush1.bf16.msra.mxu1 %v7204_v52  ;;  %6535 = vmatprep.subr.bf16.mxu0 %v6534_v53  ;;  %v1581_v52 = vld [vmem:[%s9315_s8 + $0x2980] sm:$0xff] }
 0x18c   : > { %7207 = vmatprep.subr.bf16.mxu1 %v7206_v57  ;;  %v1589_v53 = vld [vmem:[%s9315_s8 + $0x29c0] sm:$0xff]  ;;  %v1598_v57 = vld [vmem:[%s9315_s8 + $0x2a08] sm:$0xff] }
 0x18d   : > { %v6556_v61 = vpack.c.bf16 %v1589_v53, %v1581_v52  ;;  %v1671_v52 = vld [vmem:[%s9315_s8 + $0x2c50] sm:$0xff]  ;;  %v1678_v53 = vld [vmem:[%s9315_s8 + $0x2c88] sm:$0xff] }
 0x18e   : > { %6537 = vmatpush1.bf16.msra.mxu0 %v6536_v63  ;;  %v6558_v63 = vpack.c.bf16 %v1606_v58, %v1598_v57  ;;  %v6578_v59 = vpack.c.bf16 %v1686_v54, %v1678_v53 }
 0x18f   : > { %7209 = vmatpush1.bf16.msra.mxu1 %v7208_v0  ;;  %6539 = vmatprep.subr.bf16.mxu0 %v6538_v1  ;;  %v1597_v0 = vld [vmem:[%s9315_s8 + $0x2a00] sm:$0xff] }
 0x190   : > { %7211 = vmatprep.subr.bf16.mxu1 %v7210_v5  ;;  %v1605_v1 = vld [vmem:[%s9315_s8 + $0x2a40] sm:$0xff]  ;;  %v1614_v5 = vld [vmem:[%s9315_s8 + $0x2a88] sm:$0xff] }
 0x191   : > { %v6560_v9 = vpack.c.bf16 %v1605_v1, %v1597_v0  ;;  %v1687_v0 = vld [vmem:[%s9315_s8 + $0x2cd0] sm:$0xff]  ;;  %v1694_v1 = vld [vmem:[%s9315_s8 + $0x2d08] sm:$0xff] }
 0x192   : > { %6541 = vmatpush1.bf16.msra.mxu0 %v6540_v11  ;;  %v6562_v11 = vpack.c.bf16 %v1622_v6, %v1614_v5  ;;  %v6582_v7 = vpack.c.bf16 %v1702_v2, %v1694_v1 }
 0x193   : > { %7213 = vmatpush1.bf16.msra.mxu1 %v7212_v12  ;;  %6543 = vmatprep.subr.bf16.mxu0 %v6542_v13  ;;  %v1613_v12 = vld [vmem:[%s9315_s8 + $0x2a80] sm:$0xff] }
 0x194   : > { %7215 = vmatprep.subr.bf16.mxu1 %v7214_v17  ;;  %v1621_v13 = vld [vmem:[%s9315_s8 + $0x2ac0] sm:$0xff]  ;;  %v1630_v17 = vld [vmem:[%s9315_s8 + $0x2b08] sm:$0xff] }
 0x195   : > { %3332 = vmatmul.mubr.f32.vlgmr.msra.gmra.mrb[0].mxu0 %v240_v23  ;;  %v6564_v21 = vpack.c.bf16 %v1621_v13, %v1613_v12  ;;  %v1703_v12 = vld [vmem:[%s9315_s8 + $0x2d50] sm:$0xff]  ;;  %v1710_v13 = vld [vmem:[%s9315_s8 + $0x2d88] sm:$0xff] }
 0x196   : > { %6545 = vmatpush1.bf16.msra.mxu0 %v6544_v24  ;;  %4113 = vmatmul.mubr.f32.vlgmr.msra.gmra.mrb[0].mxu1 %v240_v23  ;;  %v6566_v23 = vpack.c.bf16 %v1638_v18, %v1630_v17  ;;  %v1629_v24 = vld [vmem:[%s9315_s8 + $0x2b00] sm:$0xff]  ;;  %v6586_v19 = vpack.c.bf16 %v1718_v14, %v1710_v13 }
 0x197   : > { %7217 = vmatpush1.bf16.msra.mxu1 %v7216_v25  ;;  %6547 = vmatprep.subr.bf16.mxu0 %v6546_v26  ;;  %v1637_v25 = vld [vmem:[%s9315_s8 + $0x2b40] sm:$0xff]  ;;  %v1631_v26 = vld [vmem:[%s9315_s8 + $0x2b10] sm:$0xff] }
 0x198   : > { %7219 = vmatprep.subr.bf16.mxu1 %v7218_v30  ;;  %3402 = vmatprep.mubr.f32.mxu0 %v243_v36  ;;  %v1654_v30 = vld [vmem:[%s9315_s8 + $0x2bc8] sm:$0xff]  ;;  %v6568_v33 = vpack.c.bf16 %v1637_v25, %v1629_v24  ;;  %v7240_v34 = vpack.c.bf16 %v1639_v28, %v1631_v26  ;;  %v1719_v24 = vld [vmem:[%s9315_s8 + $0x2dd0] sm:$0xff]  ;;  %v1736_v28 = vld [vmem:[%s9315_s8 + $0x2e58] sm:$0xff] }
 0x199   : > { %4183 = vmatprep.mubr.f32.mxu1 %v243_v36  ;;  %v6570_v35 = vpack.c.bf16 %v1654_v30, %v1646_v29  ;;  %v1645_v36 = vld [vmem:[%s9315_s8 + $0x2b80] sm:$0xff]  ;;  %v1726_v25 = vld [vmem:[%s9315_s8 + $0x2e08] sm:$0xff] }
 0x19a   : > { %6549 = vmatpush1.bf16.msra.mxu0 %v6548_v37  ;;  %v1653_v37 = vld [vmem:[%s9315_s8 + $0x2bc0] sm:$0xff]  ;;  %v1734_v26 = vld [vmem:[%s9315_s8 + $0x2e48] sm:$0xff] }
 0x19b   : > { %7221 = vmatpush1.bf16.msra.mxu1 %v7220_v38  ;;  %6551 = vmatprep.subr.bf16.mxu0 %v6550_v39  ;;  %v1647_v38 = vld [vmem:[%s9315_s8 + $0x2b90] sm:$0xff]  ;;  %v7242_v39 = vpack.c.bf16 %v1656_v32, %v1648_v31  ;;  %v6572_v45 = vpack.c.bf16 %v1653_v37, %v1645_v36  ;;  %v6590_v31 = vpack.c.bf16 %v1734_v26, %v1726_v25  ;;  %v1725_v32 = vld [vmem:[%s9315_s8 + $0x2e00] sm:$0xff]  ;;  %v1742_v37 = vld [vmem:[%s9315_s8 + $0x2e88] sm:$0xff] }
 0x19c   : > { %7223 = vmatprep.subr.bf16.mxu1 %v7222_v43  ;;  %v1664_v43 = vld [vmem:[%s9315_s8 + $0x2c18] sm:$0xff]  ;;  %v7244_v46 = vpack.c.bf16 %v1655_v40, %v1647_v38  ;;  %v1735_v36 = vld [vmem:[%s9315_s8 + $0x2e50] sm:$0xff]  ;;  %v1750_v38 = vld [vmem:[%s9315_s8 + $0x2ec8] sm:$0xff] }
 0x19d   : > { %v1752_v40 = vld [vmem:[%s9315_s8 + $0x2ed8] sm:$0xff]  ;;  %v242_v25 = vld [vmem:[%s12194_s0 + $0x50] sm:$0xff] }
 0x19e   : > { %6553 = vmatpush1.bf16.msra.mxu0 %v6552_v49  ;;  %v1669_v49 = vld [vmem:[%s9315_s8 + $0x2c40] sm:$0xff] }
 0x19f   : > { %7225 = vmatpush1.bf16.msra.mxu1 %v7224_v50  ;;  %6555 = vmatprep.subr.bf16.mxu0 %v6554_v51  ;;  %v1663_v50 = vld [vmem:[%s9315_s8 + $0x2c10] sm:$0xff]  ;;  %v7246_v51 = vpack.c.bf16 %v1672_v44, %v1664_v43  ;;  %v6576_v57 = vpack.c.bf16 %v1669_v49, %v1661_v48  ;;  %v6594_v43 = vpack.c.bf16 %v1750_v38, %v1742_v37  ;;  %v1741_v44 = vld [vmem:[%s9315_s8 + $0x2e80] sm:$0xff]  ;;  %v1758_v49 = vld [vmem:[%s9315_s8 + $0x2f08] sm:$0xff] }
 0x1a0   : > { %7227 = vmatprep.subr.bf16.mxu1 %v7226_v55  ;;  %v1680_v55 = vld [vmem:[%s9315_s8 + $0x2c98] sm:$0xff]  ;;  %v7248_v58 = vpack.c.bf16 %v1671_v52, %v1663_v50  ;;  %v1751_v48 = vld [vmem:[%s9315_s8 + $0x2ed0] sm:$0xff]  ;;  %v1766_v50 = vld [vmem:[%s9315_s8 + $0x2f48] sm:$0xff] }
 0x1a1   : > { %v1768_v52 = vld [vmem:[%s9315_s8 + $0x2f58] sm:$0xff]  ;;  %v245_v38 = vld [vmem:[%s12194_s0 + $0x68] sm:$0xff] }
 0x1a2   : > { %6557 = vmatpush1.bf16.msra.mxu0 %v6556_v61  ;;  %v1685_v61 = vld [vmem:[%s9315_s8 + $0x2cc0] sm:$0xff]  ;;  %v1832_v37 = vld [vmem:[%s9315_s8 + $0x3158] sm:$0xff] }
 0x1a3   : > { %7229 = vmatpush1.bf16.msra.mxu1 %v7228_v62  ;;  %6559 = vmatprep.subr.bf16.mxu0 %v6558_v63  ;;  %v1679_v62 = vld [vmem:[%s9315_s8 + $0x2c90] sm:$0xff]  ;;  %v7250_v63 = vpack.c.bf16 %v1688_v56, %v1680_v55  ;;  %v6580_v5 = vpack.c.bf16 %v1685_v61, %v1677_v60  ;;  %v6598_v55 = vpack.c.bf16 %v1766_v50, %v1758_v49  ;;  %v1757_v56 = vld [vmem:[%s9315_s8 + $0x2f00] sm:$0xff]  ;;  %v1774_v61 = vld [vmem:[%s9315_s8 + $0x2f88] sm:$0xff] }
 0x1a4   : > { %7231 = vmatprep.subr.bf16.mxu1 %v7230_v3  ;;  %v1696_v3 = vld [vmem:[%s9315_s8 + $0x2d18] sm:$0xff]  ;;  %v7252_v6 = vpack.c.bf16 %v1687_v0, %v1679_v62  ;;  %v1767_v60 = vld [vmem:[%s9315_s8 + $0x2f50] sm:$0xff]  ;;  %v1782_v62 = vld [vmem:[%s9315_s8 + $0x2fc8] sm:$0xff] }
 0x1a5   : > { %v1784_v0 = vld [vmem:[%s9315_s8 + $0x2fd8] sm:$0xff] }
 0x1a6   : > { %6561 = vmatpush1.bf16.msra.mxu0 %v6560_v9  ;;  %v1701_v9 = vld [vmem:[%s9315_s8 + $0x2d40] sm:$0xff]  ;;  %v1840_v49 = vld [vmem:[%s9315_s8 + $0x3198] sm:$0xff] }
 0x1a7   : > { %7233 = vmatpush1.bf16.msra.mxu1 %v7232_v10  ;;  %6563 = vmatprep.subr.bf16.mxu0 %v6562_v11  ;;  %v1695_v10 = vld [vmem:[%s9315_s8 + $0x2d10] sm:$0xff]  ;;  %v7254_v11 = vpack.c.bf16 %v1704_v4, %v1696_v3  ;;  %v6584_v17 = vpack.c.bf16 %v1701_v9, %v1693_v8  ;;  %v6602_v3 = vpack.c.bf16 %v1782_v62, %v1774_v61  ;;  %v1773_v4 = vld [vmem:[%s9315_s8 + $0x2f80] sm:$0xff]  ;;  %v1790_v9 = vld [vmem:[%s9315_s8 + $0x3008] sm:$0xff] }
 0x1a8   : > { %7235 = vmatprep.subr.bf16.mxu1 %v7234_v15  ;;  %v1712_v15 = vld [vmem:[%s9315_s8 + $0x2d98] sm:$0xff]  ;;  %v7256_v18 = vpack.c.bf16 %v1703_v12, %v1695_v10  ;;  %v1783_v8 = vld [vmem:[%s9315_s8 + $0x2fd0] sm:$0xff]  ;;  %v1798_v10 = vld [vmem:[%s9315_s8 + $0x3048] sm:$0xff] }
 0x1a9   : > { %v1800_v12 = vld [vmem:[%s9315_s8 + $0x3058] sm:$0xff] }
 0x1aa   : > { %6565 = vmatpush1.bf16.msra.mxu0 %v6564_v21  ;;  %v1717_v21 = vld [vmem:[%s9315_s8 + $0x2dc0] sm:$0xff]  ;;  %v1848_v50 = vld [vmem:[%s9315_s8 + $0x31d8] sm:$0xff] }
 0x1ab   : > { %7237 = vmatpush1.bf16.msra.mxu1 %v7236_v22  ;;  %6567 = vmatprep.subr.bf16.mxu0 %v6566_v23  ;;  %v1711_v22 = vld [vmem:[%s9315_s8 + $0x2d90] sm:$0xff]  ;;  %v7258_v23 = vpack.c.bf16 %v1720_v16, %v1712_v15  ;;  %v6588_v29 = vpack.c.bf16 %v1717_v21, %v1709_v20  ;;  %v6606_v15 = vpack.c.bf16 %v1798_v10, %v1790_v9  ;;  %v1789_v16 = vld [vmem:[%s9315_s8 + $0x3000] sm:$0xff]  ;;  %v1806_v21 = vld [vmem:[%s9315_s8 + $0x3088] sm:$0xff] }
 0x1ac   : > { %7239 = vmatprep.subr.bf16.mxu1 %v7238_v27  ;;  %v1728_v27 = vld [vmem:[%s9315_s8 + $0x2e18] sm:$0xff]  ;;  %v7260_v30 = vpack.c.bf16 %v1719_v24, %v1711_v22  ;;  %v1799_v20 = vld [vmem:[%s9315_s8 + $0x3050] sm:$0xff]  ;;  %v1814_v22 = vld [vmem:[%s9315_s8 + $0x30c8] sm:$0xff] }
 0x1ad   : > { %v1816_v24 = vld [vmem:[%s9315_s8 + $0x30d8] sm:$0xff] }
 0x1ae   : > { %6569 = vmatpush1.bf16.msra.mxu0 %v6568_v33  ;;  %v1733_v33 = vld [vmem:[%s9315_s8 + $0x2e40] sm:$0xff]  ;;  %v1856_v61 = vld [vmem:[%s9315_s8 + $0x3218] sm:$0xff] }
 0x1af   : > { %7241 = vmatpush1.bf16.msra.mxu1 %v7240_v34  ;;  %6571 = vmatprep.subr.bf16.mxu0 %v6570_v35  ;;  %v1727_v34 = vld [vmem:[%s9315_s8 + $0x2e10] sm:$0xff]  ;;  %v7262_v35 = vpack.c.bf16 %v1736_v28, %v1728_v27  ;;  %v6592_v41 = vpack.c.bf16 %v1733_v33, %v1725_v32  ;;  %v6610_v28 = vpack.c.bf16 %v1814_v22, %v1806_v21  ;;  %v1864_v62 = vld [vmem:[%s9315_s8 + $0x3258] sm:$0xff] }
 0x1b0   : > { %7243 = vmatprep.subr.bf16.mxu1 %v7242_v39  ;;  %v1744_v39 = vld [vmem:[%s9315_s8 + $0x2e98] sm:$0xff]  ;;  %v7264_v42 = vpack.c.bf16 %v1735_v36, %v1727_v34  ;;  %v1815_v33 = vld [vmem:[%s9315_s8 + $0x30d0] sm:$0xff]  ;;  %v1822_v34 = vld [vmem:[%s9315_s8 + $0x3108] sm:$0xff] }
 0x1b1   : > { %v1824_v36 = vld [vmem:[%s9315_s8 + $0x3118] sm:$0xff] }
 0x1b2   : > { %6573 = vmatpush1.bf16.msra.mxu0 %v6572_v45  ;;  %v1749_v45 = vld [vmem:[%s9315_s8 + $0x2ec0] sm:$0xff]  ;;  %v1872_v9 = vld [vmem:[%s9315_s8 + $0x3298] sm:$0xff] }
 0x1b3   : > { %7245 = vmatpush1.bf16.msra.mxu1 %v7244_v46  ;;  %6575 = vmatprep.subr.bf16.mxu0 %v6574_v47  ;;  %v1743_v46 = vld [vmem:[%s9315_s8 + $0x2e90] sm:$0xff]  ;;  %v7266_v47 = vpack.c.bf16 %v1752_v40, %v1744_v39  ;;  %v6596_v53 = vpack.c.bf16 %v1749_v45, %v1741_v44  ;;  %v7286_v45 = vpack.c.bf16 %v1832_v37, %v1824_v36  ;;  %v1880_v10 = vld [vmem:[%s9315_s8 + $0x32d8] sm:$0xff] }
 0x1b4   : > { %7247 = vmatprep.subr.bf16.mxu1 %v7246_v51  ;;  %v1760_v51 = vld [vmem:[%s9315_s8 + $0x2f18] sm:$0xff]  ;;  %v7268_v54 = vpack.c.bf16 %v1751_v48, %v1743_v46  ;;  %v1823_v44 = vld [vmem:[%s9315_s8 + $0x3110] sm:$0xff]  ;;  %v1846_v48 = vld [vmem:[%s9315_s8 + $0x31c8] sm:$0xff] }
 0x1b5   : > { %v1831_v46 = vld [vmem:[%s9315_s8 + $0x3150] sm:$0xff]  ;;  %v1888_v21 = vld [vmem:[%s9315_s8 + $0x3318] sm:$0xff] }
 0x1b6   : > { %6577 = vmatpush1.bf16.msra.mxu0 %v6576_v57  ;;  %v1765_v57 = vld [vmem:[%s9315_s8 + $0x2f40] sm:$0xff]  ;;  %v1896_v22 = vld [vmem:[%s9315_s8 + $0x3358] sm:$0xff] }
 0x1b7   : > { %7249 = vmatpush1.bf16.msra.mxu1 %v7248_v58  ;;  %6579 = vmatprep.subr.bf16.mxu0 %v6578_v59  ;;  %v1759_v58 = vld [vmem:[%s9315_s8 + $0x2f10] sm:$0xff]  ;;  %v7270_v59 = vpack.c.bf16 %v1768_v52, %v1760_v51  ;;  %v6600_v1 = vpack.c.bf16 %v1765_v57, %v1757_v56  ;;  %v7288_v52 = vpack.c.bf16 %v1831_v46, %v1823_v44  ;;  %v1926_v44 = vld [vmem:[%s9315_s8 + $0x3448] sm:$0xff]  ;;  %v1928_v46 = vld [vmem:[%s9315_s8 + $0x3458] sm:$0xff] }
 0x1b8   : > { %7251 = vmatprep.subr.bf16.mxu1 %v7250_v63  ;;  %v1776_v63 = vld [vmem:[%s9315_s8 + $0x2f98] sm:$0xff]  ;;  %v7272_v2 = vpack.c.bf16 %v1767_v60, %v1759_v58  ;;  %v1839_v56 = vld [vmem:[%s9315_s8 + $0x3190] sm:$0xff]  ;;  %v7290_v57 = vpack.c.bf16 %v1848_v50, %v1840_v49  ;;  %v1862_v60 = vld [vmem:[%s9315_s8 + $0x3248] sm:$0xff] }
 0x1b9   : > { %v1847_v58 = vld [vmem:[%s9315_s8 + $0x31d0] sm:$0xff]  ;;  %v1917_v50 = vld [vmem:[%s9315_s8 + $0x3400] sm:$0xff] }
 0x1ba   : > { %6581 = vmatpush1.bf16.msra.mxu0 %v6580_v5  ;;  %v1781_v5 = vld [vmem:[%s9315_s8 + $0x2fc0] sm:$0xff] }
 0x1bb   : > { %7253 = vmatpush1.bf16.msra.mxu1 %v7252_v6  ;;  %6583 = vmatprep.subr.bf16.mxu0 %v6582_v7  ;;  %v1775_v6 = vld [vmem:[%s9315_s8 + $0x2f90] sm:$0xff]  ;;  %v7274_v7 = vpack.c.bf16 %v1784_v0, %v1776_v63  ;;  %v6604_v13 = vpack.c.bf16 %v1781_v5, %v1773_v4  ;;  %v7292_v0 = vpack.c.bf16 %v1847_v58, %v1839_v56  ;;  %v1942_v56 = vld [vmem:[%s9315_s8 + $0x34c8] sm:$0xff]  ;;  %v1944_v58 = vld [vmem:[%s9315_s8 + $0x34d8] sm:$0xff] }
 0x1bc   : > { %7255 = vmatprep.subr.bf16.mxu1 %v7254_v11  ;;  %v1792_v11 = vld [vmem:[%s9315_s8 + $0x3018] sm:$0xff]  ;;  %v7276_v14 = vpack.c.bf16 %v1783_v8, %v1775_v6  ;;  %v1855_v4 = vld [vmem:[%s9315_s8 + $0x3210] sm:$0xff]  ;;  %v7294_v5 = vpack.c.bf16 %v1864_v62, %v1856_v61  ;;  %v1878_v8 = vld [vmem:[%s9315_s8 + $0x32c8] sm:$0xff] }
 0x1bd   : > { %v1863_v6 = vld [vmem:[%s9315_s8 + $0x3250] sm:$0xff]  ;;  %v1933_v62 = vld [vmem:[%s9315_s8 + $0x3480] sm:$0xff] }
 0x1be   : > { %6585 = vmatpush1.bf16.msra.mxu0 %v6584_v17  ;;  %v1797_v17 = vld [vmem:[%s9315_s8 + $0x3040] sm:$0xff] }
 0x1bf   : > { %7257 = vmatpush1.bf16.msra.mxu1 %v7256_v18  ;;  %6587 = vmatprep.subr.bf16.mxu0 %v6586_v19  ;;  %v1791_v18 = vld [vmem:[%s9315_s8 + $0x3010] sm:$0xff]  ;;  %v7278_v19 = vpack.c.bf16 %v1800_v12, %v1792_v11  ;;  %v6608_v26 = vpack.c.bf16 %v1797_v17, %v1789_v16  ;;  %v7296_v12 = vpack.c.bf16 %v1863_v6, %v1855_v4  ;;  %v1958_v4 = vld [vmem:[%s9315_s8 + $0x3548] sm:$0xff]  ;;  %v1960_v6 = vld [vmem:[%s9315_s8 + $0x3558] sm:$0xff] }
 0x1c0   : > { %7259 = vmatprep.subr.bf16.mxu1 %v7258_v23  ;;  %v1808_v23 = vld [vmem:[%s9315_s8 + $0x3098] sm:$0xff]  ;;  %v7280_v27 = vpack.c.bf16 %v1799_v20, %v1791_v18  ;;  %v1871_v16 = vld [vmem:[%s9315_s8 + $0x3290] sm:$0xff]  ;;  %v7298_v17 = vpack.c.bf16 %v1880_v10, %v1872_v9  ;;  %v1894_v20 = vld [vmem:[%s9315_s8 + $0x3348] sm:$0xff] }
 0x1c1   : > { %v7282_v32 = vpack.c.bf16 %v1816_v24, %v1808_v23  ;;  %v1879_v18 = vld [vmem:[%s9315_s8 + $0x32d0] sm:$0xff]  ;;  %v1949_v10 = vld [vmem:[%s9315_s8 + $0x3500] sm:$0xff] }
 0x1c2   : > { %6589 = vmatpush1.bf16.msra.mxu0 %v6588_v29  ;;  %v1805_v29 = vld [vmem:[%s9315_s8 + $0x3080] sm:$0xff]  ;;  %v7300_v24 = vpack.c.bf16 %v1879_v18, %v1871_v16  ;;  %v1974_v16 = vld [vmem:[%s9315_s8 + $0x35c8] sm:$0xff]  ;;  %v1976_v18 = vld [vmem:[%s9315_s8 + $0x35d8] sm:$0xff] }
 0x1c3   : > { %7261 = vmatpush1.bf16.msra.mxu1 %v7260_v30  ;;  %6591 = vmatprep.subr.bf16.mxu0 %v6590_v31  ;;  %v1813_v30 = vld [vmem:[%s9315_s8 + $0x30c0] sm:$0xff]  ;;  %v1807_v31 = vld [vmem:[%s9315_s8 + $0x3090] sm:$0xff] }
 0x1c4   : > { %7263 = vmatprep.subr.bf16.mxu1 %v7262_v35  ;;  %v1830_v35 = vld [vmem:[%s9315_s8 + $0x3148] sm:$0xff]  ;;  %v6612_v39 = vpack.c.bf16 %v1813_v30, %v1805_v29  ;;  %v7284_v40 = vpack.c.bf16 %v1815_v33, %v1807_v31  ;;  %v7302_v29 = vpack.c.bf16 %v1896_v22, %v1888_v21  ;;  %v1895_v30 = vld [vmem:[%s9315_s8 + $0x3350] sm:$0xff]  ;;  %v1904_v33 = vld [vmem:[%s9315_s8 + $0x3398] sm:$0xff] }
 0x1c5   : > { %v1902_v31 = vld [vmem:[%s9315_s8 + $0x3388] sm:$0xff]  ;;  %v1965_v22 = vld [vmem:[%s9315_s8 + $0x3580] sm:$0xff] }
 0x1c6   : > { %6593 = vmatpush1.bf16.msra.mxu0 %v6592_v41  ;;  %v6614_v41 = vpack.c.bf16 %v1830_v35, %v1822_v34  ;;  %v1912_v34 = vld [vmem:[%s9315_s8 + $0x33d8] sm:$0xff] }
 0x1c7   : > { %7265 = vmatpush1.bf16.msra.mxu1 %v7264_v42  ;;  %6595 = vmatprep.subr.bf16.mxu0 %v6594_v43  ;;  %v1821_v42 = vld [vmem:[%s9315_s8 + $0x3100] sm:$0xff] }
 0x1c8   : > { %7267 = vmatprep.subr.bf16.mxu1 %v7266_v47  ;;  %v1829_v43 = vld [vmem:[%s9315_s8 + $0x3140] sm:$0xff]  ;;  %v1838_v47 = vld [vmem:[%s9315_s8 + $0x3188] sm:$0xff] }
 0x1c9   : > { %v6616_v51 = vpack.c.bf16 %v1829_v43, %v1821_v42  ;;  %v1911_v42 = vld [vmem:[%s9315_s8 + $0x33d0] sm:$0xff]  ;;  %v1918_v43 = vld [vmem:[%s9315_s8 + $0x3408] sm:$0xff] }
 0x1ca   : > { %6597 = vmatpush1.bf16.msra.mxu0 %v6596_v53  ;;  %v6618_v53 = vpack.c.bf16 %v1846_v48, %v1838_v47  ;;  %v6638_v49 = vpack.c.bf16 %v1926_v44, %v1918_v43 }
 0x1cb   : > { %7269 = vmatpush1.bf16.msra.mxu1 %v7268_v54  ;;  %6599 = vmatprep.subr.bf16.mxu0 %v6598_v55  ;;  %v1837_v54 = vld [vmem:[%s9315_s8 + $0x3180] sm:$0xff] }
 0x1cc   : > { %7271 = vmatprep.subr.bf16.mxu1 %v7270_v59  ;;  %v1845_v55 = vld [vmem:[%s9315_s8 + $0x31c0] sm:$0xff]  ;;  %v1854_v59 = vld [vmem:[%s9315_s8 + $0x3208] sm:$0xff] }
 0x1cd   : > { %v6620_v63 = vpack.c.bf16 %v1845_v55, %v1837_v54  ;;  %v1927_v54 = vld [vmem:[%s9315_s8 + $0x3450] sm:$0xff]  ;;  %v1934_v55 = vld [vmem:[%s9315_s8 + $0x3488] sm:$0xff] }
 0x1ce   : > { %6601 = vmatpush1.bf16.msra.mxu0 %v6600_v1  ;;  %v6622_v1 = vpack.c.bf16 %v1862_v60, %v1854_v59  ;;  %v6642_v61 = vpack.c.bf16 %v1942_v56, %v1934_v55 }
 0x1cf   : > { %7273 = vmatpush1.bf16.msra.mxu1 %v7272_v2  ;;  %6603 = vmatprep.subr.bf16.mxu0 %v6602_v3  ;;  %v1853_v2 = vld [vmem:[%s9315_s8 + $0x3200] sm:$0xff] }
 0x1d0   : > { %7275 = vmatprep.subr.bf16.mxu1 %v7274_v7  ;;  %v1861_v3 = vld [vmem:[%s9315_s8 + $0x3240] sm:$0xff]  ;;  %v1870_v7 = vld [vmem:[%s9315_s8 + $0x3288] sm:$0xff] }
 0x1d1   : > { %v6624_v11 = vpack.c.bf16 %v1861_v3, %v1853_v2  ;;  %v1943_v2 = vld [vmem:[%s9315_s8 + $0x34d0] sm:$0xff]  ;;  %v1950_v3 = vld [vmem:[%s9315_s8 + $0x3508] sm:$0xff] }
 0x1d2   : > { %6605 = vmatpush1.bf16.msra.mxu0 %v6604_v13  ;;  %v6626_v13 = vpack.c.bf16 %v1878_v8, %v1870_v7  ;;  %v6646_v9 = vpack.c.bf16 %v1958_v4, %v1950_v3 }
 0x1d3   : > { %7277 = vmatpush1.bf16.msra.mxu1 %v7276_v14  ;;  %6607 = vmatprep.subr.bf16.mxu0 %v6606_v15  ;;  %v1869_v14 = vld [vmem:[%s9315_s8 + $0x3280] sm:$0xff] }
 0x1d4   : > { %7279 = vmatprep.subr.bf16.mxu1 %v7278_v19  ;;  %v1877_v15 = vld [vmem:[%s9315_s8 + $0x32c0] sm:$0xff]  ;;  %v1886_v19 = vld [vmem:[%s9315_s8 + $0x3308] sm:$0xff] }
 0x1d5   : > { %3403 = vmatmul.mubr.f32.vlgmr.msra.gmra.mrb[0].mxu0 %v242_v25  ;;  %v6628_v23 = vpack.c.bf16 %v1877_v15, %v1869_v14  ;;  %v1959_v14 = vld [vmem:[%s9315_s8 + $0x3550] sm:$0xff]  ;;  %v1966_v15 = vld [vmem:[%s9315_s8 + $0x3588] sm:$0xff] }
 0x1d6   : > { %6609 = vmatpush1.bf16.msra.mxu0 %v6608_v26  ;;  %4184 = vmatmul.mubr.f32.vlgmr.msra.gmra.mrb[0].mxu1 %v242_v25  ;;  %v6630_v25 = vpack.c.bf16 %v1894_v20, %v1886_v19  ;;  %v1885_v26 = vld [vmem:[%s9315_s8 + $0x3300] sm:$0xff]  ;;  %v6650_v21 = vpack.c.bf16 %v1974_v16, %v1966_v15 }
 0x1d7   : > { %7281 = vmatpush1.bf16.msra.mxu1 %v7280_v27  ;;  %6611 = vmatprep.subr.bf16.mxu0 %v6610_v28  ;;  %v1893_v27 = vld [vmem:[%s9315_s8 + $0x3340] sm:$0xff]  ;;  %v1887_v28 = vld [vmem:[%s9315_s8 + $0x3310] sm:$0xff] }
 0x1d8   : > { %7283 = vmatprep.subr.bf16.mxu1 %v7282_v32  ;;  %3473 = vmatprep.mubr.f32.mxu0 %v245_v38  ;;  %v1910_v32 = vld [vmem:[%s9315_s8 + $0x33c8] sm:$0xff]  ;;  %v6632_v35 = vpack.c.bf16 %v1893_v27, %v1885_v26  ;;  %v7304_v36 = vpack.c.bf16 %v1895_v30, %v1887_v28  ;;  %v1975_v26 = vld [vmem:[%s9315_s8 + $0x35d0] sm:$0xff]  ;;  %v1992_v30 = vld [vmem:[%s9315_s8 + $0x3658] sm:$0xff] }
 0x1d9   : > { %4254 = vmatprep.mubr.f32.mxu1 %v245_v38  ;;  %v6634_v37 = vpack.c.bf16 %v1910_v32, %v1902_v31  ;;  %v1901_v38 = vld [vmem:[%s9315_s8 + $0x3380] sm:$0xff]  ;;  %v1982_v27 = vld [vmem:[%s9315_s8 + $0x3608] sm:$0xff] }
 0x1da   : > { %6613 = vmatpush1.bf16.msra.mxu0 %v6612_v39  ;;  %v1909_v39 = vld [vmem:[%s9315_s8 + $0x33c0] sm:$0xff]  ;;  %v1990_v28 = vld [vmem:[%s9315_s8 + $0x3648] sm:$0xff] }
 0x1db   : > { %7285 = vmatpush1.bf16.msra.mxu1 %v7284_v40  ;;  %6615 = vmatprep.subr.bf16.mxu0 %v6614_v41  ;;  %v1903_v40 = vld [vmem:[%s9315_s8 + $0x3390] sm:$0xff]  ;;  %v7306_v41 = vpack.c.bf16 %v1912_v34, %v1904_v33  ;;  %v6636_v47 = vpack.c.bf16 %v1909_v39, %v1901_v38  ;;  %v6654_v33 = vpack.c.bf16 %v1990_v28, %v1982_v27  ;;  %v1981_v34 = vld [vmem:[%s9315_s8 + $0x3600] sm:$0xff]  ;;  %v1998_v39 = vld [vmem:[%s9315_s8 + $0x3688] sm:$0xff] }
 0x1dc   : > { %7287 = vmatprep.subr.bf16.mxu1 %v7286_v45  ;;  %v1920_v45 = vld [vmem:[%s9315_s8 + $0x3418] sm:$0xff]  ;;  %v7308_v48 = vpack.c.bf16 %v1911_v42, %v1903_v40  ;;  %v1991_v38 = vld [vmem:[%s9315_s8 + $0x3650] sm:$0xff]  ;;  %v2006_v40 = vld [vmem:[%s9315_s8 + $0x36c8] sm:$0xff] }
 0x1dd   : > { %v2008_v42 = vld [vmem:[%s9315_s8 + $0x36d8] sm:$0xff]  ;;  %v244_v27 = vld [vmem:[%s12194_s0 + $0x60] sm:$0xff] }
 0x1de   : > { %6617 = vmatpush1.bf16.msra.mxu0 %v6616_v51  ;;  %v1925_v51 = vld [vmem:[%s9315_s8 + $0x3440] sm:$0xff] }
 0x1df   : > { %7289 = vmatpush1.bf16.msra.mxu1 %v7288_v52  ;;  %6619 = vmatprep.subr.bf16.mxu0 %v6618_v53  ;;  %v1919_v52 = vld [vmem:[%s9315_s8 + $0x3410] sm:$0xff]  ;;  %v7310_v53 = vpack.c.bf16 %v1928_v46, %v1920_v45  ;;  %v6640_v59 = vpack.c.bf16 %v1925_v51, %v1917_v50  ;;  %v6658_v45 = vpack.c.bf16 %v2006_v40, %v1998_v39  ;;  %v1997_v46 = vld [vmem:[%s9315_s8 + $0x3680] sm:$0xff]  ;;  %v2014_v51 = vld [vmem:[%s9315_s8 + $0x3708] sm:$0xff] }
 0x1e0   : > { %7291 = vmatprep.subr.bf16.mxu1 %v7290_v57  ;;  %v1936_v57 = vld [vmem:[%s9315_s8 + $0x3498] sm:$0xff]  ;;  %v7312_v60 = vpack.c.bf16 %v1927_v54, %v1919_v52  ;;  %v2007_v50 = vld [vmem:[%s9315_s8 + $0x36d0] sm:$0xff]  ;;  %v2022_v52 = vld [vmem:[%s9315_s8 + $0x3748] sm:$0xff] }
 0x1e1   : > { %v2024_v54 = vld [vmem:[%s9315_s8 + $0x3758] sm:$0xff] }
 0x1e2   : > { %6621 = vmatpush1.bf16.msra.mxu0 %v6620_v63  ;;  %v1941_v63 = vld [vmem:[%s9315_s8 + $0x34c0] sm:$0xff]  ;;  %v2088_v39 = vld [vmem:[%s9315_s8 + $0x3958] sm:$0xff] }
 0x1e3   : > { %7293 = vmatpush1.bf16.msra.mxu1 %v7292_v0  ;;  %6623 = vmatprep.subr.bf16.mxu0 %v6622_v1  ;;  %v1935_v0 = vld [vmem:[%s9315_s8 + $0x3490] sm:$0xff]  ;;  %v7314_v1 = vpack.c.bf16 %v1944_v58, %v1936_v57  ;;  %v6644_v7 = vpack.c.bf16 %v1941_v63, %v1933_v62  ;;  %v6662_v57 = vpack.c.bf16 %v2022_v52, %v2014_v51  ;;  %v2013_v58 = vld [vmem:[%s9315_s8 + $0x3700] sm:$0xff]  ;;  %v2030_v63 = vld [vmem:[%s9315_s8 + $0x3788] sm:$0xff] }
 0x1e4   : > { %7295 = vmatprep.subr.bf16.mxu1 %v7294_v5  ;;  %v1952_v5 = vld [vmem:[%s9315_s8 + $0x3518] sm:$0xff]  ;;  %v7316_v8 = vpack.c.bf16 %v1943_v2, %v1935_v0  ;;  %v2023_v62 = vld [vmem:[%s9315_s8 + $0x3750] sm:$0xff]  ;;  %v2038_v0 = vld [vmem:[%s9315_s8 + $0x37c8] sm:$0xff] }
 0x1e5   : > { %v2040_v2 = vld [vmem:[%s9315_s8 + $0x37d8] sm:$0xff] }
 0x1e6   : > { %6625 = vmatpush1.bf16.msra.mxu0 %v6624_v11  ;;  %v1957_v11 = vld [vmem:[%s9315_s8 + $0x3540] sm:$0xff]  ;;  %v247_v40 = vld [vmem:[%s12194_s0 + $0x78] sm:$0xff] }
 0x1e7   : > { %7297 = vmatpush1.bf16.msra.mxu1 %v7296_v12  ;;  %6627 = vmatprep.subr.bf16.mxu0 %v6626_v13  ;;  %v1951_v12 = vld [vmem:[%s9315_s8 + $0x3510] sm:$0xff]  ;;  %v7318_v13 = vpack.c.bf16 %v1960_v6, %v1952_v5  ;;  %v6648_v19 = vpack.c.bf16 %v1957_v11, %v1949_v10  ;;  %v6666_v5 = vpack.c.bf16 %v2038_v0, %v2030_v63  ;;  %v2029_v6 = vld [vmem:[%s9315_s8 + $0x3780] sm:$0xff]  ;;  %v2046_v11 = vld [vmem:[%s9315_s8 + $0x3808] sm:$0xff] }
 0x1e8   : > { %7299 = vmatprep.subr.bf16.mxu1 %v7298_v17  ;;  %v1968_v17 = vld [vmem:[%s9315_s8 + $0x3598] sm:$0xff]  ;;  %v7320_v20 = vpack.c.bf16 %v1959_v14, %v1951_v12  ;;  %v2039_v10 = vld [vmem:[%s9315_s8 + $0x37d0] sm:$0xff]  ;;  %v2054_v12 = vld [vmem:[%s9315_s8 + $0x3848] sm:$0xff] }
 0x1e9   : > { %v2056_v14 = vld [vmem:[%s9315_s8 + $0x3858] sm:$0xff] }
 0x1ea   : > { %6629 = vmatpush1.bf16.msra.mxu0 %v6628_v23  ;;  %v1973_v23 = vld [vmem:[%s9315_s8 + $0x35c0] sm:$0xff]  ;;  %v2096_v51 = vld [vmem:[%s9315_s8 + $0x3998] sm:$0xff] }
 0x1eb   : > { %7301 = vmatpush1.bf16.msra.mxu1 %v7300_v24  ;;  %6631 = vmatprep.subr.bf16.mxu0 %v6630_v25  ;;  %v1967_v24 = vld [vmem:[%s9315_s8 + $0x3590] sm:$0xff]  ;;  %v7322_v25 = vpack.c.bf16 %v1976_v18, %v1968_v17  ;;  %v6652_v31 = vpack.c.bf16 %v1973_v23, %v1965_v22  ;;  %v6670_v17 = vpack.c.bf16 %v2054_v12, %v2046_v11  ;;  %v2045_v18 = vld [vmem:[%s9315_s8 + $0x3800] sm:$0xff]  ;;  %v2062_v23 = vld [vmem:[%s9315_s8 + $0x3888] sm:$0xff] }
 0x1ec   : > { %7303 = vmatprep.subr.bf16.mxu1 %v7302_v29  ;;  %v1984_v29 = vld [vmem:[%s9315_s8 + $0x3618] sm:$0xff]  ;;  %v7324_v32 = vpack.c.bf16 %v1975_v26, %v1967_v24  ;;  %v2055_v22 = vld [vmem:[%s9315_s8 + $0x3850] sm:$0xff]  ;;  %v2070_v24 = vld [vmem:[%s9315_s8 + $0x38c8] sm:$0xff] }
 0x1ed   : > { %v2072_v26 = vld [vmem:[%s9315_s8 + $0x38d8] sm:$0xff] }
 0x1ee   : > { %6633 = vmatpush1.bf16.msra.mxu0 %v6632_v35  ;;  %v1989_v35 = vld [vmem:[%s9315_s8 + $0x3640] sm:$0xff]  ;;  %v2104_v52 = vld [vmem:[%s9315_s8 + $0x39d8] sm:$0xff] }
 0x1ef   : > { %7305 = vmatpush1.bf16.msra.mxu1 %v7304_v36  ;;  %6635 = vmatprep.subr.bf16.mxu0 %v6634_v37  ;;  %v1983_v36 = vld [vmem:[%s9315_s8 + $0x3610] sm:$0xff]  ;;  %v7326_v37 = vpack.c.bf16 %v1992_v30, %v1984_v29  ;;  %v6656_v43 = vpack.c.bf16 %v1989_v35, %v1981_v34  ;;  %v6674_v30 = vpack.c.bf16 %v2070_v24, %v2062_v23  ;;  %v2112_v63 = vld [vmem:[%s9315_s8 + $0x3a18] sm:$0xff] }
 0x1f0   : > { %7307 = vmatprep.subr.bf16.mxu1 %v7306_v41  ;;  %v2000_v41 = vld [vmem:[%s9315_s8 + $0x3698] sm:$0xff]  ;;  %v7328_v44 = vpack.c.bf16 %v1991_v38, %v1983_v36  ;;  %v2071_v35 = vld [vmem:[%s9315_s8 + $0x38d0] sm:$0xff]  ;;  %v2078_v36 = vld [vmem:[%s9315_s8 + $0x3908] sm:$0xff] }
 0x1f1   : > { %v2080_v38 = vld [vmem:[%s9315_s8 + $0x3918] sm:$0xff] }
 0x1f2   : > { %6637 = vmatpush1.bf16.msra.mxu0 %v6636_v47  ;;  %v2005_v47 = vld [vmem:[%s9315_s8 + $0x36c0] sm:$0xff]  ;;  %v2120_v0 = vld [vmem:[%s9315_s8 + $0x3a58] sm:$0xff] }
 0x1f3   : > { %7309 = vmatpush1.bf16.msra.mxu1 %v7308_v48  ;;  %6639 = vmatprep.subr.bf16.mxu0 %v6638_v49  ;;  %v1999_v48 = vld [vmem:[%s9315_s8 + $0x3690] sm:$0xff]  ;;  %v7330_v49 = vpack.c.bf16 %v2008_v42, %v2000_v41  ;;  %v6660_v55 = vpack.c.bf16 %v2005_v47, %v1997_v46  ;;  %v7350_v47 = vpack.c.bf16 %v2088_v39, %v2080_v38  ;;  %v2128_v11 = vld [vmem:[%s9315_s8 + $0x3a98] sm:$0xff] }
 0x1f4   : > { %7311 = vmatprep.subr.bf16.mxu1 %v7310_v53  ;;  %v2016_v53 = vld [vmem:[%s9315_s8 + $0x3718] sm:$0xff]  ;;  %v7332_v56 = vpack.c.bf16 %v2007_v50, %v1999_v48  ;;  %v2079_v46 = vld [vmem:[%s9315_s8 + $0x3910] sm:$0xff]  ;;  %v2102_v50 = vld [vmem:[%s9315_s8 + $0x39c8] sm:$0xff] }
 0x1f5   : > { %v2087_v48 = vld [vmem:[%s9315_s8 + $0x3950] sm:$0xff]  ;;  %v2136_v12 = vld [vmem:[%s9315_s8 + $0x3ad8] sm:$0xff] }
 0x1f6   : > { %6641 = vmatpush1.bf16.msra.mxu0 %v6640_v59  ;;  %v2021_v59 = vld [vmem:[%s9315_s8 + $0x3740] sm:$0xff]  ;;  %v2144_v23 = vld [vmem:[%s9315_s8 + $0x3b18] sm:$0xff] }
 0x1f7   : > { %7313 = vmatpush1.bf16.msra.mxu1 %v7312_v60  ;;  %6643 = vmatprep.subr.bf16.mxu0 %v6642_v61  ;;  %v2015_v60 = vld [vmem:[%s9315_s8 + $0x3710] sm:$0xff]  ;;  %v7334_v61 = vpack.c.bf16 %v2024_v54, %v2016_v53  ;;  %v6664_v3 = vpack.c.bf16 %v2021_v59, %v2013_v58  ;;  %v7352_v54 = vpack.c.bf16 %v2087_v48, %v2079_v46  ;;  %v2152_v24 = vld [vmem:[%s9315_s8 + $0x3b58] sm:$0xff]  ;;  %v2182_v46 = vld [vmem:[%s9315_s8 + $0x3c48] sm:$0xff] }
 0x1f8   : > { %7315 = vmatprep.subr.bf16.mxu1 %v7314_v1  ;;  %v2032_v1 = vld [vmem:[%s9315_s8 + $0x3798] sm:$0xff]  ;;  %v7336_v4 = vpack.c.bf16 %v2023_v62, %v2015_v60  ;;  %v2095_v58 = vld [vmem:[%s9315_s8 + $0x3990] sm:$0xff]  ;;  %v7354_v59 = vpack.c.bf16 %v2104_v52, %v2096_v51  ;;  %v2118_v62 = vld [vmem:[%s9315_s8 + $0x3a48] sm:$0xff] }
 0x1f9   : > { %v2103_v60 = vld [vmem:[%s9315_s8 + $0x39d0] sm:$0xff]  ;;  %v2184_v48 = vld [vmem:[%s9315_s8 + $0x3c58] sm:$0xff]  ;;  %v2173_v52 = vld [vmem:[%s9315_s8 + $0x3c00] sm:$0xff] }
 0x1fa   : > { %6645 = vmatpush1.bf16.msra.mxu0 %v6644_v7  ;;  %v2037_v7 = vld [vmem:[%s9315_s8 + $0x37c0] sm:$0xff] }
 0x1fb   : > { %7317 = vmatpush1.bf16.msra.mxu1 %v7316_v8  ;;  %6647 = vmatprep.subr.bf16.mxu0 %v6646_v9  ;;  %v2031_v8 = vld [vmem:[%s9315_s8 + $0x3790] sm:$0xff]  ;;  %v7338_v9 = vpack.c.bf16 %v2040_v2, %v2032_v1  ;;  %v6668_v15 = vpack.c.bf16 %v2037_v7, %v2029_v6  ;;  %v7356_v2 = vpack.c.bf16 %v2103_v60, %v2095_v58  ;;  %v2198_v58 = vld [vmem:[%s9315_s8 + $0x3cc8] sm:$0xff]  ;;  %v2200_v60 = vld [vmem:[%s9315_s8 + $0x3cd8] sm:$0xff] }
 0x1fc   : > { %7319 = vmatprep.subr.bf16.mxu1 %v7318_v13  ;;  %v2048_v13 = vld [vmem:[%s9315_s8 + $0x3818] sm:$0xff]  ;;  %v7340_v16 = vpack.c.bf16 %v2039_v10, %v2031_v8  ;;  %v2111_v6 = vld [vmem:[%s9315_s8 + $0x3a10] sm:$0xff]  ;;  %v7358_v7 = vpack.c.bf16 %v2120_v0, %v2112_v63  ;;  %v2134_v10 = vld [vmem:[%s9315_s8 + $0x3ac8] sm:$0xff] }
 0x1fd   : > { %v2119_v8 = vld [vmem:[%s9315_s8 + $0x3a50] sm:$0xff]  ;;  %v2189_v0 = vld [vmem:[%s9315_s8 + $0x3c80] sm:$0xff] }
 0x1fe   : > { %6649 = vmatpush1.bf16.msra.mxu0 %v6648_v19  ;;  %v2053_v19 = vld [vmem:[%s9315_s8 + $0x3840] sm:$0xff] }
 0x1ff   : > { %7321 = vmatpush1.bf16.msra.mxu1 %v7320_v20  ;;  %6651 = vmatprep.subr.bf16.mxu0 %v6650_v21  ;;  %v2047_v20 = vld [vmem:[%s9315_s8 + $0x3810] sm:$0xff]  ;;  %v7342_v21 = vpack.c.bf16 %v2056_v14, %v2048_v13  ;;  %v6672_v28 = vpack.c.bf16 %v2053_v19, %v2045_v18  ;;  %v7360_v14 = vpack.c.bf16 %v2119_v8, %v2111_v6  ;;  %v2214_v6 = vld [vmem:[%s9315_s8 + $0x3d48] sm:$0xff]  ;;  %v2216_v8 = vld [vmem:[%s9315_s8 + $0x3d58] sm:$0xff] }
 0x200   : > { %7323 = vmatprep.subr.bf16.mxu1 %v7322_v25  ;;  %v2064_v25 = vld [vmem:[%s9315_s8 + $0x3898] sm:$0xff]  ;;  %v7344_v29 = vpack.c.bf16 %v2055_v22, %v2047_v20  ;;  %v2127_v18 = vld [vmem:[%s9315_s8 + $0x3a90] sm:$0xff]  ;;  %v7362_v19 = vpack.c.bf16 %v2136_v12, %v2128_v11  ;;  %v2150_v22 = vld [vmem:[%s9315_s8 + $0x3b48] sm:$0xff] }
 0x201   : > { %v7346_v34 = vpack.c.bf16 %v2072_v26, %v2064_v25  ;;  %v2135_v20 = vld [vmem:[%s9315_s8 + $0x3ad0] sm:$0xff]  ;;  %v2205_v12 = vld [vmem:[%s9315_s8 + $0x3d00] sm:$0xff] }
 0x202   : > { %6653 = vmatpush1.bf16.msra.mxu0 %v6652_v31  ;;  %v2061_v31 = vld [vmem:[%s9315_s8 + $0x3880] sm:$0xff]  ;;  %v7364_v26 = vpack.c.bf16 %v2135_v20, %v2127_v18  ;;  %v2230_v18 = vld [vmem:[%s9315_s8 + $0x3dc8] sm:$0xff]  ;;  %v2232_v20 = vld [vmem:[%s9315_s8 + $0x3dd8] sm:$0xff] }
 0x203   : > { %7325 = vmatpush1.bf16.msra.mxu1 %v7324_v32  ;;  %6655 = vmatprep.subr.bf16.mxu0 %v6654_v33  ;;  %v2069_v32 = vld [vmem:[%s9315_s8 + $0x38c0] sm:$0xff]  ;;  %v2063_v33 = vld [vmem:[%s9315_s8 + $0x3890] sm:$0xff] }
 0x204   : > { %7327 = vmatprep.subr.bf16.mxu1 %v7326_v37  ;;  %v2086_v37 = vld [vmem:[%s9315_s8 + $0x3948] sm:$0xff]  ;;  %v6676_v41 = vpack.c.bf16 %v2069_v32, %v2061_v31  ;;  %v7348_v42 = vpack.c.bf16 %v2071_v35, %v2063_v33  ;;  %v7366_v31 = vpack.c.bf16 %v2152_v24, %v2144_v23  ;;  %v2151_v32 = vld [vmem:[%s9315_s8 + $0x3b50] sm:$0xff]  ;;  %v2160_v35 = vld [vmem:[%s9315_s8 + $0x3b98] sm:$0xff] }
 0x205   : > { %v2158_v33 = vld [vmem:[%s9315_s8 + $0x3b88] sm:$0xff]  ;;  %v2221_v24 = vld [vmem:[%s9315_s8 + $0x3d80] sm:$0xff] }
 0x206   : > { %6657 = vmatpush1.bf16.msra.mxu0 %v6656_v43  ;;  %v6678_v43 = vpack.c.bf16 %v2086_v37, %v2078_v36  ;;  %v2168_v36 = vld [vmem:[%s9315_s8 + $0x3bd8] sm:$0xff] }
 0x207   : > { %7329 = vmatpush1.bf16.msra.mxu1 %v7328_v44  ;;  %6659 = vmatprep.subr.bf16.mxu0 %v6658_v45  ;;  %v2077_v44 = vld [vmem:[%s9315_s8 + $0x3900] sm:$0xff] }
 0x208   : > { %7331 = vmatprep.subr.bf16.mxu1 %v7330_v49  ;;  %v2085_v45 = vld [vmem:[%s9315_s8 + $0x3940] sm:$0xff]  ;;  %v2094_v49 = vld [vmem:[%s9315_s8 + $0x3988] sm:$0xff] }
 0x209   : > { %v6680_v53 = vpack.c.bf16 %v2085_v45, %v2077_v44  ;;  %v2167_v44 = vld [vmem:[%s9315_s8 + $0x3bd0] sm:$0xff]  ;;  %v2174_v45 = vld [vmem:[%s9315_s8 + $0x3c08] sm:$0xff] }
 0x20a   : > { %6661 = vmatpush1.bf16.msra.mxu0 %v6660_v55  ;;  %v6682_v55 = vpack.c.bf16 %v2102_v50, %v2094_v49  ;;  %v6702_v51 = vpack.c.bf16 %v2182_v46, %v2174_v45 }
 0x20b   : > { %7333 = vmatpush1.bf16.msra.mxu1 %v7332_v56  ;;  %6663 = vmatprep.subr.bf16.mxu0 %v6662_v57  ;;  %v2093_v56 = vld [vmem:[%s9315_s8 + $0x3980] sm:$0xff] }
 0x20c   : > { %7335 = vmatprep.subr.bf16.mxu1 %v7334_v61  ;;  %v2101_v57 = vld [vmem:[%s9315_s8 + $0x39c0] sm:$0xff]  ;;  %v2110_v61 = vld [vmem:[%s9315_s8 + $0x3a08] sm:$0xff] }
 0x20d   : > { %v6684_v1 = vpack.c.bf16 %v2101_v57, %v2093_v56  ;;  %v2183_v56 = vld [vmem:[%s9315_s8 + $0x3c50] sm:$0xff]  ;;  %v2190_v57 = vld [vmem:[%s9315_s8 + $0x3c88] sm:$0xff] }
 0x20e   : > { %6665 = vmatpush1.bf16.msra.mxu0 %v6664_v3  ;;  %v6686_v3 = vpack.c.bf16 %v2118_v62, %v2110_v61  ;;  %v6706_v63 = vpack.c.bf16 %v2198_v58, %v2190_v57 }
 0x20f   : > { %7337 = vmatpush1.bf16.msra.mxu1 %v7336_v4  ;;  %6667 = vmatprep.subr.bf16.mxu0 %v6666_v5  ;;  %v2109_v4 = vld [vmem:[%s9315_s8 + $0x3a00] sm:$0xff] }
 0x210   : > { %7339 = vmatprep.subr.bf16.mxu1 %v7338_v9  ;;  %v2117_v5 = vld [vmem:[%s9315_s8 + $0x3a40] sm:$0xff]  ;;  %v2126_v9 = vld [vmem:[%s9315_s8 + $0x3a88] sm:$0xff] }
 0x211   : > { %v6688_v13 = vpack.c.bf16 %v2117_v5, %v2109_v4  ;;  %v2199_v4 = vld [vmem:[%s9315_s8 + $0x3cd0] sm:$0xff]  ;;  %v2206_v5 = vld [vmem:[%s9315_s8 + $0x3d08] sm:$0xff] }
 0x212   : > { %6669 = vmatpush1.bf16.msra.mxu0 %v6668_v15  ;;  %v6690_v15 = vpack.c.bf16 %v2134_v10, %v2126_v9  ;;  %v6710_v11 = vpack.c.bf16 %v2214_v6, %v2206_v5 }
 0x213   : > { %7341 = vmatpush1.bf16.msra.mxu1 %v7340_v16  ;;  %6671 = vmatprep.subr.bf16.mxu0 %v6670_v17  ;;  %v2125_v16 = vld [vmem:[%s9315_s8 + $0x3a80] sm:$0xff] }
 0x214   : > { %7343 = vmatprep.subr.bf16.mxu1 %v7342_v21  ;;  %v2133_v17 = vld [vmem:[%s9315_s8 + $0x3ac0] sm:$0xff]  ;;  %v2142_v21 = vld [vmem:[%s9315_s8 + $0x3b08] sm:$0xff] }
 0x215   : > { %3474 = vmatmul.mubr.f32.vlgmr.msra.gmra.mrb[0].mxu0 %v244_v27  ;;  %v6692_v25 = vpack.c.bf16 %v2133_v17, %v2125_v16  ;;  %v2215_v16 = vld [vmem:[%s9315_s8 + $0x3d50] sm:$0xff]  ;;  %v2222_v17 = vld [vmem:[%s9315_s8 + $0x3d88] sm:$0xff] }
 0x216   : > { %6673 = vmatpush1.bf16.msra.mxu0 %v6672_v28  ;;  %4255 = vmatmul.mubr.f32.vlgmr.msra.gmra.mrb[0].mxu1 %v244_v27  ;;  %v6694_v27 = vpack.c.bf16 %v2150_v22, %v2142_v21  ;;  %v2141_v28 = vld [vmem:[%s9315_s8 + $0x3b00] sm:$0xff]  ;;  %v6714_v23 = vpack.c.bf16 %v2230_v18, %v2222_v17 }
 0x217   : > { %7345 = vmatpush1.bf16.msra.mxu1 %v7344_v29  ;;  %6675 = vmatprep.subr.bf16.mxu0 %v6674_v30  ;;  %v2149_v29 = vld [vmem:[%s9315_s8 + $0x3b40] sm:$0xff]  ;;  %v2143_v30 = vld [vmem:[%s9315_s8 + $0x3b10] sm:$0xff] }
 0x218   : > { %7347 = vmatprep.subr.bf16.mxu1 %v7346_v34  ;;  %3544 = vmatprep.mubr.f32.mxu0 %v247_v40  ;;  %v2166_v34 = vld [vmem:[%s9315_s8 + $0x3bc8] sm:$0xff]  ;;  %v6696_v37 = vpack.c.bf16 %v2149_v29, %v2141_v28  ;;  %v7368_v38 = vpack.c.bf16 %v2151_v32, %v2143_v30  ;;  %v2231_v28 = vld [vmem:[%s9315_s8 + $0x3dd0] sm:$0xff]  ;;  %v2248_v32 = vld [vmem:[%s9315_s8 + $0x3e58] sm:$0xff] }
 0x219   : > { %4325 = vmatprep.mubr.f32.mxu1 %v247_v40  ;;  %v6698_v39 = vpack.c.bf16 %v2166_v34, %v2158_v33  ;;  %v2157_v40 = vld [vmem:[%s9315_s8 + $0x3b80] sm:$0xff]  ;;  %v2238_v29 = vld [vmem:[%s9315_s8 + $0x3e08] sm:$0xff] }
 0x21a   : > { %6677 = vmatpush1.bf16.msra.mxu0 %v6676_v41  ;;  %v2165_v41 = vld [vmem:[%s9315_s8 + $0x3bc0] sm:$0xff]  ;;  %v2246_v30 = vld [vmem:[%s9315_s8 + $0x3e48] sm:$0xff] }
 0x21b   : > { %7349 = vmatpush1.bf16.msra.mxu1 %v7348_v42  ;;  %6679 = vmatprep.subr.bf16.mxu0 %v6678_v43  ;;  %v2159_v42 = vld [vmem:[%s9315_s8 + $0x3b90] sm:$0xff]  ;;  %v7370_v43 = vpack.c.bf16 %v2168_v36, %v2160_v35  ;;  %v6700_v49 = vpack.c.bf16 %v2165_v41, %v2157_v40  ;;  %v6718_v35 = vpack.c.bf16 %v2246_v30, %v2238_v29  ;;  %v2237_v36 = vld [vmem:[%s9315_s8 + $0x3e00] sm:$0xff]  ;;  %v2254_v41 = vld [vmem:[%s9315_s8 + $0x3e88] sm:$0xff] }
 0x21c   : > { %7351 = vmatprep.subr.bf16.mxu1 %v7350_v47  ;;  %v2176_v47 = vld [vmem:[%s9315_s8 + $0x3c18] sm:$0xff]  ;;  %v7372_v50 = vpack.c.bf16 %v2167_v44, %v2159_v42  ;;  %v2247_v40 = vld [vmem:[%s9315_s8 + $0x3e50] sm:$0xff]  ;;  %v2262_v42 = vld [vmem:[%s9315_s8 + $0x3ec8] sm:$0xff] }
 0x21d   : > { %v2264_v44 = vld [vmem:[%s9315_s8 + $0x3ed8] sm:$0xff]  ;;  %v246_v29 = vld [vmem:[%s12194_s0 + $0x70] sm:$0xff] }
 0x21e   : > { %6681 = vmatpush1.bf16.msra.mxu0 %v6680_v53  ;;  %v2181_v53 = vld [vmem:[%s9315_s8 + $0x3c40] sm:$0xff] }
 0x21f   : > { %7353 = vmatpush1.bf16.msra.mxu1 %v7352_v54  ;;  %6683 = vmatprep.subr.bf16.mxu0 %v6682_v55  ;;  %v2175_v54 = vld [vmem:[%s9315_s8 + $0x3c10] sm:$0xff]  ;;  %v7374_v55 = vpack.c.bf16 %v2184_v48, %v2176_v47  ;;  %v6704_v61 = vpack.c.bf16 %v2181_v53, %v2173_v52  ;;  %v6722_v47 = vpack.c.bf16 %v2262_v42, %v2254_v41  ;;  %v2253_v48 = vld [vmem:[%s9315_s8 + $0x3e80] sm:$0xff]  ;;  %v2270_v53 = vld [vmem:[%s9315_s8 + $0x3f08] sm:$0xff] }
 0x220   : > { %7355 = vmatprep.subr.bf16.mxu1 %v7354_v59  ;;  %v2192_v59 = vld [vmem:[%s9315_s8 + $0x3c98] sm:$0xff]  ;;  %v7376_v62 = vpack.c.bf16 %v2183_v56, %v2175_v54  ;;  %v2263_v52 = vld [vmem:[%s9315_s8 + $0x3ed0] sm:$0xff]  ;;  %v2278_v54 = vld [vmem:[%s9315_s8 + $0x3f48] sm:$0xff] }
 0x221   : > { %v2280_v56 = vld [vmem:[%s9315_s8 + $0x3f58] sm:$0xff]  ;;  %v249_v42 = vld [vmem:[%s12194_s0 + $0x88] sm:$0xff] }
 0x222   : > { %6685 = vmatpush1.bf16.msra.mxu0 %v6684_v1  ;;  %v2197_v1 = vld [vmem:[%s9315_s8 + $0x3cc0] sm:$0xff]  ;;  %v2344_v41 = vld [vmem:[%s9315_s8 + $0x4158] sm:$0xff] }
 0x223   : > { %7357 = vmatpush1.bf16.msra.mxu1 %v7356_v2  ;;  %6687 = vmatprep.subr.bf16.mxu0 %v6686_v3  ;;  %v2191_v2 = vld [vmem:[%s9315_s8 + $0x3c90] sm:$0xff]  ;;  %v7378_v3 = vpack.c.bf16 %v2200_v60, %v2192_v59  ;;  %v6708_v9 = vpack.c.bf16 %v2197_v1, %v2189_v0  ;;  %v6726_v59 = vpack.c.bf16 %v2278_v54, %v2270_v53  ;;  %v2269_v60 = vld [vmem:[%s9315_s8 + $0x3f00] sm:$0xff]  ;;  %v2286_v1 = vld [vmem:[%s9315_s8 + $0x3f88] sm:$0xff] }
 0x224   : > { %7359 = vmatprep.subr.bf16.mxu1 %v7358_v7  ;;  %v2208_v7 = vld [vmem:[%s9315_s8 + $0x3d18] sm:$0xff]  ;;  %v7380_v10 = vpack.c.bf16 %v2199_v4, %v2191_v2  ;;  %v2279_v0 = vld [vmem:[%s9315_s8 + $0x3f50] sm:$0xff]  ;;  %v2294_v2 = vld [vmem:[%s9315_s8 + $0x3fc8] sm:$0xff] }
 0x225   : > { %v2296_v4 = vld [vmem:[%s9315_s8 + $0x3fd8] sm:$0xff] }
 0x226   : > { %6689 = vmatpush1.bf16.msra.mxu0 %v6688_v13  ;;  %v2213_v13 = vld [vmem:[%s9315_s8 + $0x3d40] sm:$0xff]  ;;  %v2352_v53 = vld [vmem:[%s9315_s8 + $0x4198] sm:$0xff] }
 0x227   : > { %7361 = vmatpush1.bf16.msra.mxu1 %v7360_v14  ;;  %6691 = vmatprep.subr.bf16.mxu0 %v6690_v15  ;;  %v2207_v14 = vld [vmem:[%s9315_s8 + $0x3d10] sm:$0xff]  ;;  %v7382_v15 = vpack.c.bf16 %v2216_v8, %v2208_v7  ;;  %v6712_v21 = vpack.c.bf16 %v2213_v13, %v2205_v12  ;;  %v6730_v7 = vpack.c.bf16 %v2294_v2, %v2286_v1  ;;  %v2285_v8 = vld [vmem:[%s9315_s8 + $0x3f80] sm:$0xff]  ;;  %v2302_v13 = vld [vmem:[%s9315_s8 + $0x4008] sm:$0xff] }
 0x228   : > { %7363 = vmatprep.subr.bf16.mxu1 %v7362_v19  ;;  %v2224_v19 = vld [vmem:[%s9315_s8 + $0x3d98] sm:$0xff]  ;;  %v7384_v22 = vpack.c.bf16 %v2215_v16, %v2207_v14  ;;  %v2295_v12 = vld [vmem:[%s9315_s8 + $0x3fd0] sm:$0xff]  ;;  %v2310_v14 = vld [vmem:[%s9315_s8 + $0x4048] sm:$0xff] }
 0x229   : > { %v2312_v16 = vld [vmem:[%s9315_s8 + $0x4058] sm:$0xff] }
 0x22a   : > { %6693 = vmatpush1.bf16.msra.mxu0 %v6692_v25  ;;  %v2229_v25 = vld [vmem:[%s9315_s8 + $0x3dc0] sm:$0xff]  ;;  %v2360_v54 = vld [vmem:[%s9315_s8 + $0x41d8] sm:$0xff] }
 0x22b   : > { %7365 = vmatpush1.bf16.msra.mxu1 %v7364_v26  ;;  %6695 = vmatprep.subr.bf16.mxu0 %v6694_v27  ;;  %v2223_v26 = vld [vmem:[%s9315_s8 + $0x3d90] sm:$0xff]  ;;  %v7386_v27 = vpack.c.bf16 %v2232_v20, %v2224_v19  ;;  %v6716_v33 = vpack.c.bf16 %v2229_v25, %v2221_v24  ;;  %v6734_v19 = vpack.c.bf16 %v2310_v14, %v2302_v13  ;;  %v2301_v20 = vld [vmem:[%s9315_s8 + $0x4000] sm:$0xff]  ;;  %v2318_v25 = vld [vmem:[%s9315_s8 + $0x4088] sm:$0xff] }
 0x22c   : > { %7367 = vmatprep.subr.bf16.mxu1 %v7366_v31  ;;  %v2240_v31 = vld [vmem:[%s9315_s8 + $0x3e18] sm:$0xff]  ;;  %v7388_v34 = vpack.c.bf16 %v2231_v28, %v2223_v26  ;;  %v2311_v24 = vld [vmem:[%s9315_s8 + $0x4050] sm:$0xff]  ;;  %v2326_v26 = vld [vmem:[%s9315_s8 + $0x40c8] sm:$0xff] }
 0x22d   : > { %v2328_v28 = vld [vmem:[%s9315_s8 + $0x40d8] sm:$0xff] }
 0x22e   : > { %6697 = vmatpush1.bf16.msra.mxu0 %v6696_v37  ;;  %v2245_v37 = vld [vmem:[%s9315_s8 + $0x3e40] sm:$0xff]  ;;  %v2368_v1 = vld [vmem:[%s9315_s8 + $0x4218] sm:$0xff] }
 0x22f   : > { %7369 = vmatpush1.bf16.msra.mxu1 %v7368_v38  ;;  %6699 = vmatprep.subr.bf16.mxu0 %v6698_v39  ;;  %v2239_v38 = vld [vmem:[%s9315_s8 + $0x3e10] sm:$0xff]  ;;  %v7390_v39 = vpack.c.bf16 %v2248_v32, %v2240_v31  ;;  %v6720_v45 = vpack.c.bf16 %v2245_v37, %v2237_v36  ;;  %v6738_v32 = vpack.c.bf16 %v2326_v26, %v2318_v25  ;;  %v2376_v2 = vld [vmem:[%s9315_s8 + $0x4258] sm:$0xff] }
 0x230   : > { %7371 = vmatprep.subr.bf16.mxu1 %v7370_v43  ;;  %v2256_v43 = vld [vmem:[%s9315_s8 + $0x3e98] sm:$0xff]  ;;  %v7392_v46 = vpack.c.bf16 %v2247_v40, %v2239_v38  ;;  %v2327_v37 = vld [vmem:[%s9315_s8 + $0x40d0] sm:$0xff]  ;;  %v2334_v38 = vld [vmem:[%s9315_s8 + $0x4108] sm:$0xff] }
 0x231   : > { %v2336_v40 = vld [vmem:[%s9315_s8 + $0x4118] sm:$0xff] }
 0x232   : > { %6701 = vmatpush1.bf16.msra.mxu0 %v6700_v49  ;;  %v2261_v49 = vld [vmem:[%s9315_s8 + $0x3ec0] sm:$0xff]  ;;  %v2384_v13 = vld [vmem:[%s9315_s8 + $0x4298] sm:$0xff] }
 0x233   : > { %7373 = vmatpush1.bf16.msra.mxu1 %v7372_v50  ;;  %6703 = vmatprep.subr.bf16.mxu0 %v6702_v51  ;;  %v2255_v50 = vld [vmem:[%s9315_s8 + $0x3e90] sm:$0xff]  ;;  %v7394_v51 = vpack.c.bf16 %v2264_v44, %v2256_v43  ;;  %v6724_v57 = vpack.c.bf16 %v2261_v49, %v2253_v48  ;;  %v7414_v49 = vpack.c.bf16 %v2344_v41, %v2336_v40  ;;  %v2392_v14 = vld [vmem:[%s9315_s8 + $0x42d8] sm:$0xff] }
 0x234   : > { %7375 = vmatprep.subr.bf16.mxu1 %v7374_v55  ;;  %v2272_v55 = vld [vmem:[%s9315_s8 + $0x3f18] sm:$0xff]  ;;  %v7396_v58 = vpack.c.bf16 %v2263_v52, %v2255_v50  ;;  %v2335_v48 = vld [vmem:[%s9315_s8 + $0x4110] sm:$0xff]  ;;  %v2358_v52 = vld [vmem:[%s9315_s8 + $0x41c8] sm:$0xff] }
 0x235   : > { %v2343_v50 = vld [vmem:[%s9315_s8 + $0x4150] sm:$0xff]  ;;  %v2400_v25 = vld [vmem:[%s9315_s8 + $0x4318] sm:$0xff] }
 0x236   : > { %6705 = vmatpush1.bf16.msra.mxu0 %v6704_v61  ;;  %v2277_v61 = vld [vmem:[%s9315_s8 + $0x3f40] sm:$0xff]  ;;  %v2408_v26 = vld [vmem:[%s9315_s8 + $0x4358] sm:$0xff] }
 0x237   : > { %7377 = vmatpush1.bf16.msra.mxu1 %v7376_v62  ;;  %6707 = vmatprep.subr.bf16.mxu0 %v6706_v63  ;;  %v2271_v62 = vld [vmem:[%s9315_s8 + $0x3f10] sm:$0xff]  ;;  %v7398_v63 = vpack.c.bf16 %v2280_v56, %v2272_v55  ;;  %v6728_v5 = vpack.c.bf16 %v2277_v61, %v2269_v60  ;;  %v7416_v56 = vpack.c.bf16 %v2343_v50, %v2335_v48  ;;  %v2438_v48 = vld [vmem:[%s9315_s8 + $0x4448] sm:$0xff]  ;;  %v2440_v50 = vld [vmem:[%s9315_s8 + $0x4458] sm:$0xff] }
 0x238   : > { %7379 = vmatprep.subr.bf16.mxu1 %v7378_v3  ;;  %v2288_v3 = vld [vmem:[%s9315_s8 + $0x3f98] sm:$0xff]  ;;  %v7400_v6 = vpack.c.bf16 %v2279_v0, %v2271_v62  ;;  %v2351_v60 = vld [vmem:[%s9315_s8 + $0x4190] sm:$0xff]  ;;  %v7418_v61 = vpack.c.bf16 %v2360_v54, %v2352_v53  ;;  %v2374_v0 = vld [vmem:[%s9315_s8 + $0x4248] sm:$0xff] }
 0x239   : > { %v2359_v62 = vld [vmem:[%s9315_s8 + $0x41d0] sm:$0xff]  ;;  %v2429_v54 = vld [vmem:[%s9315_s8 + $0x4400] sm:$0xff] }
 0x23a   : > { %6709 = vmatpush1.bf16.msra.mxu0 %v6708_v9  ;;  %v2293_v9 = vld [vmem:[%s9315_s8 + $0x3fc0] sm:$0xff] }
 0x23b   : > { %7381 = vmatpush1.bf16.msra.mxu1 %v7380_v10  ;;  %6711 = vmatprep.subr.bf16.mxu0 %v6710_v11  ;;  %v2287_v10 = vld [vmem:[%s9315_s8 + $0x3f90] sm:$0xff]  ;;  %v7402_v11 = vpack.c.bf16 %v2296_v4, %v2288_v3  ;;  %v6732_v17 = vpack.c.bf16 %v2293_v9, %v2285_v8  ;;  %v7420_v4 = vpack.c.bf16 %v2359_v62, %v2351_v60  ;;  %v2454_v60 = vld [vmem:[%s9315_s8 + $0x44c8] sm:$0xff]  ;;  %v2456_v62 = vld [vmem:[%s9315_s8 + $0x44d8] sm:$0xff] }
 0x23c   : > { %7383 = vmatprep.subr.bf16.mxu1 %v7382_v15  ;;  %v2304_v15 = vld [vmem:[%s9315_s8 + $0x4018] sm:$0xff]  ;;  %v7404_v18 = vpack.c.bf16 %v2295_v12, %v2287_v10  ;;  %v2367_v8 = vld [vmem:[%s9315_s8 + $0x4210] sm:$0xff]  ;;  %v7422_v9 = vpack.c.bf16 %v2376_v2, %v2368_v1  ;;  %v2390_v12 = vld [vmem:[%s9315_s8 + $0x42c8] sm:$0xff] }
 0x23d   : > { %v2375_v10 = vld [vmem:[%s9315_s8 + $0x4250] sm:$0xff]  ;;  %v2445_v2 = vld [vmem:[%s9315_s8 + $0x4480] sm:$0xff] }
 0x23e   : > { %6713 = vmatpush1.bf16.msra.mxu0 %v6712_v21  ;;  %v2309_v21 = vld [vmem:[%s9315_s8 + $0x4040] sm:$0xff] }
 0x23f   : > { %7385 = vmatpush1.bf16.msra.mxu1 %v7384_v22  ;;  %6715 = vmatprep.subr.bf16.mxu0 %v6714_v23  ;;  %v2303_v22 = vld [vmem:[%s9315_s8 + $0x4010] sm:$0xff]  ;;  %v7406_v23 = vpack.c.bf16 %v2312_v16, %v2304_v15  ;;  %v6736_v30 = vpack.c.bf16 %v2309_v21, %v2301_v20  ;;  %v7424_v16 = vpack.c.bf16 %v2375_v10, %v2367_v8  ;;  %v2470_v8 = vld [vmem:[%s9315_s8 + $0x4548] sm:$0xff]  ;;  %v2472_v10 = vld [vmem:[%s9315_s8 + $0x4558] sm:$0xff] }
 0x240   : > { %7387 = vmatprep.subr.bf16.mxu1 %v7386_v27  ;;  %v2320_v27 = vld [vmem:[%s9315_s8 + $0x4098] sm:$0xff]  ;;  %v7408_v31 = vpack.c.bf16 %v2311_v24, %v2303_v22  ;;  %v2383_v20 = vld [vmem:[%s9315_s8 + $0x4290] sm:$0xff]  ;;  %v7426_v21 = vpack.c.bf16 %v2392_v14, %v2384_v13  ;;  %v2406_v24 = vld [vmem:[%s9315_s8 + $0x4348] sm:$0xff] }
 0x241   : > { %v7410_v36 = vpack.c.bf16 %v2328_v28, %v2320_v27  ;;  %v2391_v22 = vld [vmem:[%s9315_s8 + $0x42d0] sm:$0xff]  ;;  %v2461_v14 = vld [vmem:[%s9315_s8 + $0x4500] sm:$0xff] }
 0x242   : > { %6717 = vmatpush1.bf16.msra.mxu0 %v6716_v33  ;;  %v2317_v33 = vld [vmem:[%s9315_s8 + $0x4080] sm:$0xff]  ;;  %v7428_v28 = vpack.c.bf16 %v2391_v22, %v2383_v20  ;;  %v2486_v20 = vld [vmem:[%s9315_s8 + $0x45c8] sm:$0xff]  ;;  %v2488_v22 = vld [vmem:[%s9315_s8 + $0x45d8] sm:$0xff] }
 0x243   : > { %7389 = vmatpush1.bf16.msra.mxu1 %v7388_v34  ;;  %6719 = vmatprep.subr.bf16.mxu0 %v6718_v35  ;;  %v2325_v34 = vld [vmem:[%s9315_s8 + $0x40c0] sm:$0xff]  ;;  %v2319_v35 = vld [vmem:[%s9315_s8 + $0x4090] sm:$0xff] }
 0x244   : > { %7391 = vmatprep.subr.bf16.mxu1 %v7390_v39  ;;  %v2342_v39 = vld [vmem:[%s9315_s8 + $0x4148] sm:$0xff]  ;;  %v6740_v43 = vpack.c.bf16 %v2325_v34, %v2317_v33  ;;  %v7412_v44 = vpack.c.bf16 %v2327_v37, %v2319_v35  ;;  %v7430_v33 = vpack.c.bf16 %v2408_v26, %v2400_v25  ;;  %v2407_v34 = vld [vmem:[%s9315_s8 + $0x4350] sm:$0xff]  ;;  %v2416_v37 = vld [vmem:[%s9315_s8 + $0x4398] sm:$0xff] }
 0x245   : > { %v2414_v35 = vld [vmem:[%s9315_s8 + $0x4388] sm:$0xff]  ;;  %v2477_v26 = vld [vmem:[%s9315_s8 + $0x4580] sm:$0xff] }
 0x246   : > { %6721 = vmatpush1.bf16.msra.mxu0 %v6720_v45  ;;  %v6742_v45 = vpack.c.bf16 %v2342_v39, %v2334_v38  ;;  %v2424_v38 = vld [vmem:[%s9315_s8 + $0x43d8] sm:$0xff] }
 0x247   : > { %7393 = vmatpush1.bf16.msra.mxu1 %v7392_v46  ;;  %6723 = vmatprep.subr.bf16.mxu0 %v6722_v47  ;;  %v2333_v46 = vld [vmem:[%s9315_s8 + $0x4100] sm:$0xff] }
 0x248   : > { %7395 = vmatprep.subr.bf16.mxu1 %v7394_v51  ;;  %v2341_v47 = vld [vmem:[%s9315_s8 + $0x4140] sm:$0xff]  ;;  %v2350_v51 = vld [vmem:[%s9315_s8 + $0x4188] sm:$0xff] }
 0x249   : > { %v6744_v55 = vpack.c.bf16 %v2341_v47, %v2333_v46  ;;  %v2423_v46 = vld [vmem:[%s9315_s8 + $0x43d0] sm:$0xff]  ;;  %v2430_v47 = vld [vmem:[%s9315_s8 + $0x4408] sm:$0xff] }
 0x24a   : > { %6725 = vmatpush1.bf16.msra.mxu0 %v6724_v57  ;;  %v6746_v57 = vpack.c.bf16 %v2358_v52, %v2350_v51  ;;  %v6766_v53 = vpack.c.bf16 %v2438_v48, %v2430_v47 }
 0x24b   : > { %7397 = vmatpush1.bf16.msra.mxu1 %v7396_v58  ;;  %6727 = vmatprep.subr.bf16.mxu0 %v6726_v59  ;;  %v2349_v58 = vld [vmem:[%s9315_s8 + $0x4180] sm:$0xff] }
 0x24c   : > { %7399 = vmatprep.subr.bf16.mxu1 %v7398_v63  ;;  %v2357_v59 = vld [vmem:[%s9315_s8 + $0x41c0] sm:$0xff]  ;;  %v2366_v63 = vld [vmem:[%s9315_s8 + $0x4208] sm:$0xff] }
 0x24d   : > { %v6748_v3 = vpack.c.bf16 %v2357_v59, %v2349_v58  ;;  %v2439_v58 = vld [vmem:[%s9315_s8 + $0x4450] sm:$0xff]  ;;  %v2446_v59 = vld [vmem:[%s9315_s8 + $0x4488] sm:$0xff] }
 0x24e   : > { %6729 = vmatpush1.bf16.msra.mxu0 %v6728_v5  ;;  %v6750_v5 = vpack.c.bf16 %v2374_v0, %v2366_v63  ;;  %v6770_v1 = vpack.c.bf16 %v2454_v60, %v2446_v59 }
 0x24f   : > { %7401 = vmatpush1.bf16.msra.mxu1 %v7400_v6  ;;  %6731 = vmatprep.subr.bf16.mxu0 %v6730_v7  ;;  %v2365_v6 = vld [vmem:[%s9315_s8 + $0x4200] sm:$0xff] }
 0x250   : > { %7403 = vmatprep.subr.bf16.mxu1 %v7402_v11  ;;  %v2373_v7 = vld [vmem:[%s9315_s8 + $0x4240] sm:$0xff]  ;;  %v2382_v11 = vld [vmem:[%s9315_s8 + $0x4288] sm:$0xff] }
 0x251   : > { %v6752_v15 = vpack.c.bf16 %v2373_v7, %v2365_v6  ;;  %v2455_v6 = vld [vmem:[%s9315_s8 + $0x44d0] sm:$0xff]  ;;  %v2462_v7 = vld [vmem:[%s9315_s8 + $0x4508] sm:$0xff] }
 0x252   : > { %6733 = vmatpush1.bf16.msra.mxu0 %v6732_v17  ;;  %v6754_v17 = vpack.c.bf16 %v2390_v12, %v2382_v11  ;;  %v6774_v13 = vpack.c.bf16 %v2470_v8, %v2462_v7 }
 0x253   : > { %7405 = vmatpush1.bf16.msra.mxu1 %v7404_v18  ;;  %6735 = vmatprep.subr.bf16.mxu0 %v6734_v19  ;;  %v2381_v18 = vld [vmem:[%s9315_s8 + $0x4280] sm:$0xff] }
 0x254   : > { %7407 = vmatprep.subr.bf16.mxu1 %v7406_v23  ;;  %v2389_v19 = vld [vmem:[%s9315_s8 + $0x42c0] sm:$0xff]  ;;  %v2398_v23 = vld [vmem:[%s9315_s8 + $0x4308] sm:$0xff] }
 0x255   : > { %3545 = vmatmul.mubr.f32.vlgmr.msra.gmra.mrb[0].mxu0 %v246_v29  ;;  %v6756_v27 = vpack.c.bf16 %v2389_v19, %v2381_v18  ;;  %v2471_v18 = vld [vmem:[%s9315_s8 + $0x4550] sm:$0xff]  ;;  %v2478_v19 = vld [vmem:[%s9315_s8 + $0x4588] sm:$0xff] }
 0x256   : > { %6737 = vmatpush1.bf16.msra.mxu0 %v6736_v30  ;;  %4326 = vmatmul.mubr.f32.vlgmr.msra.gmra.mrb[0].mxu1 %v246_v29  ;;  %v6758_v29 = vpack.c.bf16 %v2406_v24, %v2398_v23  ;;  %v2397_v30 = vld [vmem:[%s9315_s8 + $0x4300] sm:$0xff]  ;;  %v6778_v25 = vpack.c.bf16 %v2486_v20, %v2478_v19 }
 0x257   : > { %7409 = vmatpush1.bf16.msra.mxu1 %v7408_v31  ;;  %6739 = vmatprep.subr.bf16.mxu0 %v6738_v32  ;;  %v2405_v31 = vld [vmem:[%s9315_s8 + $0x4340] sm:$0xff]  ;;  %v2399_v32 = vld [vmem:[%s9315_s8 + $0x4310] sm:$0xff] }
 0x258   : > { %7411 = vmatprep.subr.bf16.mxu1 %v7410_v36  ;;  %3615 = vmatprep.mubr.f32.mxu0 %v249_v42  ;;  %v2422_v36 = vld [vmem:[%s9315_s8 + $0x43c8] sm:$0xff]  ;;  %v6760_v39 = vpack.c.bf16 %v2405_v31, %v2397_v30  ;;  %v7432_v40 = vpack.c.bf16 %v2407_v34, %v2399_v32  ;;  %v2487_v30 = vld [vmem:[%s9315_s8 + $0x45d0] sm:$0xff]  ;;  %v2504_v34 = vld [vmem:[%s9315_s8 + $0x4658] sm:$0xff] }
 0x259   : > { %4396 = vmatprep.mubr.f32.mxu1 %v249_v42  ;;  %v6762_v41 = vpack.c.bf16 %v2422_v36, %v2414_v35  ;;  %v2413_v42 = vld [vmem:[%s9315_s8 + $0x4380] sm:$0xff]  ;;  %v2494_v31 = vld [vmem:[%s9315_s8 + $0x4608] sm:$0xff] }
 0x25a   : > { %6741 = vmatpush1.bf16.msra.mxu0 %v6740_v43  ;;  %v2421_v43 = vld [vmem:[%s9315_s8 + $0x43c0] sm:$0xff]  ;;  %v2502_v32 = vld [vmem:[%s9315_s8 + $0x4648] sm:$0xff] }
 0x25b   : > { %7413 = vmatpush1.bf16.msra.mxu1 %v7412_v44  ;;  %6743 = vmatprep.subr.bf16.mxu0 %v6742_v45  ;;  %v2415_v44 = vld [vmem:[%s9315_s8 + $0x4390] sm:$0xff]  ;;  %v7434_v45 = vpack.c.bf16 %v2424_v38, %v2416_v37  ;;  %v6764_v51 = vpack.c.bf16 %v2421_v43, %v2413_v42  ;;  %v6782_v37 = vpack.c.bf16 %v2502_v32, %v2494_v31  ;;  %v2493_v38 = vld [vmem:[%s9315_s8 + $0x4600] sm:$0xff]  ;;  %v2510_v43 = vld [vmem:[%s9315_s8 + $0x4688] sm:$0xff] }
 0x25c   : > { %7415 = vmatprep.subr.bf16.mxu1 %v7414_v49  ;;  %v2432_v49 = vld [vmem:[%s9315_s8 + $0x4418] sm:$0xff]  ;;  %v7436_v52 = vpack.c.bf16 %v2423_v46, %v2415_v44  ;;  %v2503_v42 = vld [vmem:[%s9315_s8 + $0x4650] sm:$0xff]  ;;  %v2518_v44 = vld [vmem:[%s9315_s8 + $0x46c8] sm:$0xff] }
 0x25d   : > { %v2520_v46 = vld [vmem:[%s9315_s8 + $0x46d8] sm:$0xff]  ;;  %v248_v31 = vld [vmem:[%s12194_s0 + $0x80] sm:$0xff] }
 0x25e   : > { %6745 = vmatpush1.bf16.msra.mxu0 %v6744_v55  ;;  %v2437_v55 = vld [vmem:[%s9315_s8 + $0x4440] sm:$0xff] }
 0x25f   : > { %7417 = vmatpush1.bf16.msra.mxu1 %v7416_v56  ;;  %6747 = vmatprep.subr.bf16.mxu0 %v6746_v57  ;;  %v2431_v56 = vld [vmem:[%s9315_s8 + $0x4410] sm:$0xff]  ;;  %v7438_v57 = vpack.c.bf16 %v2440_v50, %v2432_v49  ;;  %v6768_v63 = vpack.c.bf16 %v2437_v55, %v2429_v54  ;;  %v6786_v49 = vpack.c.bf16 %v2518_v44, %v2510_v43  ;;  %v2509_v50 = vld [vmem:[%s9315_s8 + $0x4680] sm:$0xff]  ;;  %v2526_v55 = vld [vmem:[%s9315_s8 + $0x4708] sm:$0xff] }
 0x260   : > { %7419 = vmatprep.subr.bf16.mxu1 %v7418_v61  ;;  %v2448_v61 = vld [vmem:[%s9315_s8 + $0x4498] sm:$0xff]  ;;  %v7440_v0 = vpack.c.bf16 %v2439_v58, %v2431_v56  ;;  %v2519_v54 = vld [vmem:[%s9315_s8 + $0x46d0] sm:$0xff]  ;;  %v2534_v56 = vld [vmem:[%s9315_s8 + $0x4748] sm:$0xff] }
 0x261   : > { %v2536_v58 = vld [vmem:[%s9315_s8 + $0x4758] sm:$0xff] }
 0x262   : > { %6749 = vmatpush1.bf16.msra.mxu0 %v6748_v3  ;;  %v2453_v3 = vld [vmem:[%s9315_s8 + $0x44c0] sm:$0xff]  ;;  %v2600_v43 = vld [vmem:[%s9315_s8 + $0x4958] sm:$0xff] }
 0x263   : > { %7421 = vmatpush1.bf16.msra.mxu1 %v7420_v4  ;;  %6751 = vmatprep.subr.bf16.mxu0 %v6750_v5  ;;  %v2447_v4 = vld [vmem:[%s9315_s8 + $0x4490] sm:$0xff]  ;;  %v7442_v5 = vpack.c.bf16 %v2456_v62, %v2448_v61  ;;  %v6772_v11 = vpack.c.bf16 %v2453_v3, %v2445_v2  ;;  %v6790_v61 = vpack.c.bf16 %v2534_v56, %v2526_v55  ;;  %v2525_v62 = vld [vmem:[%s9315_s8 + $0x4700] sm:$0xff]  ;;  %v2542_v3 = vld [vmem:[%s9315_s8 + $0x4788] sm:$0xff] }
 0x264   : > { %7423 = vmatprep.subr.bf16.mxu1 %v7422_v9  ;;  %v2464_v9 = vld [vmem:[%s9315_s8 + $0x4518] sm:$0xff]  ;;  %v7444_v12 = vpack.c.bf16 %v2455_v6, %v2447_v4  ;;  %v2535_v2 = vld [vmem:[%s9315_s8 + $0x4750] sm:$0xff]  ;;  %v2550_v4 = vld [vmem:[%s9315_s8 + $0x47c8] sm:$0xff] }
 0x265   : > { %v2552_v6 = vld [vmem:[%s9315_s8 + $0x47d8] sm:$0xff] }
 0x266   : > { %6753 = vmatpush1.bf16.msra.mxu0 %v6752_v15  ;;  %v2469_v15 = vld [vmem:[%s9315_s8 + $0x4540] sm:$0xff]  ;;  %v251_v44 = vld [vmem:[%s12194_s0 + $0x98] sm:$0xff] }
 0x267   : > { %7425 = vmatpush1.bf16.msra.mxu1 %v7424_v16  ;;  %6755 = vmatprep.subr.bf16.mxu0 %v6754_v17  ;;  %v2463_v16 = vld [vmem:[%s9315_s8 + $0x4510] sm:$0xff]  ;;  %v7446_v17 = vpack.c.bf16 %v2472_v10, %v2464_v9  ;;  %v6776_v23 = vpack.c.bf16 %v2469_v15, %v2461_v14  ;;  %v6794_v9 = vpack.c.bf16 %v2550_v4, %v2542_v3  ;;  %v2541_v10 = vld [vmem:[%s9315_s8 + $0x4780] sm:$0xff]  ;;  %v2558_v15 = vld [vmem:[%s9315_s8 + $0x4808] sm:$0xff] }
 0x268   : > { %7427 = vmatprep.subr.bf16.mxu1 %v7426_v21  ;;  %v2480_v21 = vld [vmem:[%s9315_s8 + $0x4598] sm:$0xff]  ;;  %v7448_v24 = vpack.c.bf16 %v2471_v18, %v2463_v16  ;;  %v2551_v14 = vld [vmem:[%s9315_s8 + $0x47d0] sm:$0xff]  ;;  %v2566_v16 = vld [vmem:[%s9315_s8 + $0x4848] sm:$0xff] }
 0x269   : > { %v2568_v18 = vld [vmem:[%s9315_s8 + $0x4858] sm:$0xff] }
 0x26a   : > { %6757 = vmatpush1.bf16.msra.mxu0 %v6756_v27  ;;  %v2485_v27 = vld [vmem:[%s9315_s8 + $0x45c0] sm:$0xff]  ;;  %v2608_v55 = vld [vmem:[%s9315_s8 + $0x4998] sm:$0xff] }
 0x26b   : > { %7429 = vmatpush1.bf16.msra.mxu1 %v7428_v28  ;;  %6759 = vmatprep.subr.bf16.mxu0 %v6758_v29  ;;  %v2479_v28 = vld [vmem:[%s9315_s8 + $0x4590] sm:$0xff]  ;;  %v7450_v29 = vpack.c.bf16 %v2488_v22, %v2480_v21  ;;  %v6780_v35 = vpack.c.bf16 %v2485_v27, %v2477_v26  ;;  %v6798_v21 = vpack.c.bf16 %v2566_v16, %v2558_v15  ;;  %v2557_v22 = vld [vmem:[%s9315_s8 + $0x4800] sm:$0xff]  ;;  %v2574_v27 = vld [vmem:[%s9315_s8 + $0x4888] sm:$0xff] }
 0x26c   : > { %7431 = vmatprep.subr.bf16.mxu1 %v7430_v33  ;;  %v2496_v33 = vld [vmem:[%s9315_s8 + $0x4618] sm:$0xff]  ;;  %v7452_v36 = vpack.c.bf16 %v2487_v30, %v2479_v28  ;;  %v2567_v26 = vld [vmem:[%s9315_s8 + $0x4850] sm:$0xff]  ;;  %v2582_v28 = vld [vmem:[%s9315_s8 + $0x48c8] sm:$0xff] }
 0x26d   : > { %v2584_v30 = vld [vmem:[%s9315_s8 + $0x48d8] sm:$0xff] }
 0x26e   : > { %6761 = vmatpush1.bf16.msra.mxu0 %v6760_v39  ;;  %v2501_v39 = vld [vmem:[%s9315_s8 + $0x4640] sm:$0xff]  ;;  %v2616_v56 = vld [vmem:[%s9315_s8 + $0x49d8] sm:$0xff] }
 0x26f   : > { %7433 = vmatpush1.bf16.msra.mxu1 %v7432_v40  ;;  %6763 = vmatprep.subr.bf16.mxu0 %v6762_v41  ;;  %v2495_v40 = vld [vmem:[%s9315_s8 + $0x4610] sm:$0xff]  ;;  %v7454_v41 = vpack.c.bf16 %v2504_v34, %v2496_v33  ;;  %v6784_v47 = vpack.c.bf16 %v2501_v39, %v2493_v38  ;;  %v6802_v34 = vpack.c.bf16 %v2582_v28, %v2574_v27  ;;  %v2624_v3 = vld [vmem:[%s9315_s8 + $0x4a18] sm:$0xff] }
 0x270   : > { %7435 = vmatprep.subr.bf16.mxu1 %v7434_v45  ;;  %v2512_v45 = vld [vmem:[%s9315_s8 + $0x4698] sm:$0xff]  ;;  %v7456_v48 = vpack.c.bf16 %v2503_v42, %v2495_v40  ;;  %v2583_v39 = vld [vmem:[%s9315_s8 + $0x48d0] sm:$0xff]  ;;  %v2590_v40 = vld [vmem:[%s9315_s8 + $0x4908] sm:$0xff] }
 0x271   : > { %v2592_v42 = vld [vmem:[%s9315_s8 + $0x4918] sm:$0xff] }
 0x272   : > { %6765 = vmatpush1.bf16.msra.mxu0 %v6764_v51  ;;  %v2517_v51 = vld [vmem:[%s9315_s8 + $0x46c0] sm:$0xff]  ;;  %v2632_v4 = vld [vmem:[%s9315_s8 + $0x4a58] sm:$0xff] }
 0x273   : > { %7437 = vmatpush1.bf16.msra.mxu1 %v7436_v52  ;;  %6767 = vmatprep.subr.bf16.mxu0 %v6766_v53  ;;  %v2511_v52 = vld [vmem:[%s9315_s8 + $0x4690] sm:$0xff]  ;;  %v7458_v53 = vpack.c.bf16 %v2520_v46, %v2512_v45  ;;  %v6788_v59 = vpack.c.bf16 %v2517_v51, %v2509_v50  ;;  %v7478_v51 = vpack.c.bf16 %v2600_v43, %v2592_v42  ;;  %v2640_v15 = vld [vmem:[%s9315_s8 + $0x4a98] sm:$0xff] }
 0x274   : > { %7439 = vmatprep.subr.bf16.mxu1 %v7438_v57  ;;  %v2528_v57 = vld [vmem:[%s9315_s8 + $0x4718] sm:$0xff]  ;;  %v7460_v60 = vpack.c.bf16 %v2519_v54, %v2511_v52  ;;  %v2591_v50 = vld [vmem:[%s9315_s8 + $0x4910] sm:$0xff]  ;;  %v2614_v54 = vld [vmem:[%s9315_s8 + $0x49c8] sm:$0xff] }
 0x275   : > { %v2599_v52 = vld [vmem:[%s9315_s8 + $0x4950] sm:$0xff]  ;;  %v2648_v16 = vld [vmem:[%s9315_s8 + $0x4ad8] sm:$0xff] }
 0x276   : > { %6769 = vmatpush1.bf16.msra.mxu0 %v6768_v63  ;;  %v2533_v63 = vld [vmem:[%s9315_s8 + $0x4740] sm:$0xff]  ;;  %v2656_v27 = vld [vmem:[%s9315_s8 + $0x4b18] sm:$0xff] }
 0x277   : > { %7441 = vmatpush1.bf16.msra.mxu1 %v7440_v0  ;;  %6771 = vmatprep.subr.bf16.mxu0 %v6770_v1  ;;  %v2527_v0 = vld [vmem:[%s9315_s8 + $0x4710] sm:$0xff]  ;;  %v7462_v1 = vpack.c.bf16 %v2536_v58, %v2528_v57  ;;  %v6792_v7 = vpack.c.bf16 %v2533_v63, %v2525_v62  ;;  %v7480_v58 = vpack.c.bf16 %v2599_v52, %v2591_v50  ;;  %v2664_v28 = vld [vmem:[%s9315_s8 + $0x4b58] sm:$0xff]  ;;  %v2694_v50 = vld [vmem:[%s9315_s8 + $0x4c48] sm:$0xff] }
 0x278   : > { %7443 = vmatprep.subr.bf16.mxu1 %v7442_v5  ;;  %v2544_v5 = vld [vmem:[%s9315_s8 + $0x4798] sm:$0xff]  ;;  %v7464_v8 = vpack.c.bf16 %v2535_v2, %v2527_v0  ;;  %v2607_v62 = vld [vmem:[%s9315_s8 + $0x4990] sm:$0xff]  ;;  %v7482_v63 = vpack.c.bf16 %v2616_v56, %v2608_v55  ;;  %v2630_v2 = vld [vmem:[%s9315_s8 + $0x4a48] sm:$0xff] }
 0x279   : > { %v2615_v0 = vld [vmem:[%s9315_s8 + $0x49d0] sm:$0xff]  ;;  %v2696_v52 = vld [vmem:[%s9315_s8 + $0x4c58] sm:$0xff]  ;;  %v2685_v56 = vld [vmem:[%s9315_s8 + $0x4c00] sm:$0xff] }
 0x27a   : > { %6773 = vmatpush1.bf16.msra.mxu0 %v6772_v11  ;;  %v2549_v11 = vld [vmem:[%s9315_s8 + $0x47c0] sm:$0xff] }
 0x27b   : > { %7445 = vmatpush1.bf16.msra.mxu1 %v7444_v12  ;;  %6775 = vmatprep.subr.bf16.mxu0 %v6774_v13  ;;  %v2543_v12 = vld [vmem:[%s9315_s8 + $0x4790] sm:$0xff]  ;;  %v7466_v13 = vpack.c.bf16 %v2552_v6, %v2544_v5  ;;  %v6796_v19 = vpack.c.bf16 %v2549_v11, %v2541_v10  ;;  %v7484_v6 = vpack.c.bf16 %v2615_v0, %v2607_v62  ;;  %v2710_v62 = vld [vmem:[%s9315_s8 + $0x4cc8] sm:$0xff]  ;;  %v2712_v0 = vld [vmem:[%s9315_s8 + $0x4cd8] sm:$0xff] }
 0x27c   : > { %7447 = vmatprep.subr.bf16.mxu1 %v7446_v17  ;;  %v2560_v17 = vld [vmem:[%s9315_s8 + $0x4818] sm:$0xff]  ;;  %v7468_v20 = vpack.c.bf16 %v2551_v14, %v2543_v12  ;;  %v2623_v10 = vld [vmem:[%s9315_s8 + $0x4a10] sm:$0xff]  ;;  %v7486_v11 = vpack.c.bf16 %v2632_v4, %v2624_v3  ;;  %v2646_v14 = vld [vmem:[%s9315_s8 + $0x4ac8] sm:$0xff] }
 0x27d   : > { %v2631_v12 = vld [vmem:[%s9315_s8 + $0x4a50] sm:$0xff]  ;;  %v2701_v4 = vld [vmem:[%s9315_s8 + $0x4c80] sm:$0xff] }
 0x27e   : > { %6777 = vmatpush1.bf16.msra.mxu0 %v6776_v23  ;;  %v2565_v23 = vld [vmem:[%s9315_s8 + $0x4840] sm:$0xff] }
 0x27f   : > { %7449 = vmatpush1.bf16.msra.mxu1 %v7448_v24  ;;  %6779 = vmatprep.subr.bf16.mxu0 %v6778_v25  ;;  %v2559_v24 = vld [vmem:[%s9315_s8 + $0x4810] sm:$0xff]  ;;  %v7470_v25 = vpack.c.bf16 %v2568_v18, %v2560_v17  ;;  %v6800_v32 = vpack.c.bf16 %v2565_v23, %v2557_v22  ;;  %v7488_v18 = vpack.c.bf16 %v2631_v12, %v2623_v10  ;;  %v2726_v10 = vld [vmem:[%s9315_s8 + $0x4d48] sm:$0xff]  ;;  %v2728_v12 = vld [vmem:[%s9315_s8 + $0x4d58] sm:$0xff] }
 0x280   : > { %7451 = vmatprep.subr.bf16.mxu1 %v7450_v29  ;;  %v2576_v29 = vld [vmem:[%s9315_s8 + $0x4898] sm:$0xff]  ;;  %v7472_v33 = vpack.c.bf16 %v2567_v26, %v2559_v24  ;;  %v2639_v22 = vld [vmem:[%s9315_s8 + $0x4a90] sm:$0xff]  ;;  %v7490_v23 = vpack.c.bf16 %v2648_v16, %v2640_v15  ;;  %v2662_v26 = vld [vmem:[%s9315_s8 + $0x4b48] sm:$0xff] }
 0x281   : > { %v7474_v38 = vpack.c.bf16 %v2584_v30, %v2576_v29  ;;  %v2647_v24 = vld [vmem:[%s9315_s8 + $0x4ad0] sm:$0xff]  ;;  %v2717_v16 = vld [vmem:[%s9315_s8 + $0x4d00] sm:$0xff] }
 0x282   : > { %6781 = vmatpush1.bf16.msra.mxu0 %v6780_v35  ;;  %v2573_v35 = vld [vmem:[%s9315_s8 + $0x4880] sm:$0xff]  ;;  %v7492_v30 = vpack.c.bf16 %v2647_v24, %v2639_v22  ;;  %v2742_v22 = vld [vmem:[%s9315_s8 + $0x4dc8] sm:$0xff]  ;;  %v2744_v24 = vld [vmem:[%s9315_s8 + $0x4dd8] sm:$0xff] }
 0x283   : > { %7453 = vmatpush1.bf16.msra.mxu1 %v7452_v36  ;;  %6783 = vmatprep.subr.bf16.mxu0 %v6782_v37  ;;  %v2581_v36 = vld [vmem:[%s9315_s8 + $0x48c0] sm:$0xff]  ;;  %v2575_v37 = vld [vmem:[%s9315_s8 + $0x4890] sm:$0xff] }
 0x284   : > { %7455 = vmatprep.subr.bf16.mxu1 %v7454_v41  ;;  %v2598_v41 = vld [vmem:[%s9315_s8 + $0x4948] sm:$0xff]  ;;  %v6804_v45 = vpack.c.bf16 %v2581_v36, %v2573_v35  ;;  %v7476_v46 = vpack.c.bf16 %v2583_v39, %v2575_v37  ;;  %v7494_v35 = vpack.c.bf16 %v2664_v28, %v2656_v27  ;;  %v2663_v36 = vld [vmem:[%s9315_s8 + $0x4b50] sm:$0xff]  ;;  %v2672_v39 = vld [vmem:[%s9315_s8 + $0x4b98] sm:$0xff] }
 0x285   : > { %v2670_v37 = vld [vmem:[%s9315_s8 + $0x4b88] sm:$0xff]  ;;  %v2733_v28 = vld [vmem:[%s9315_s8 + $0x4d80] sm:$0xff] }
 0x286   : > { %6785 = vmatpush1.bf16.msra.mxu0 %v6784_v47  ;;  %v6806_v47 = vpack.c.bf16 %v2598_v41, %v2590_v40  ;;  %v2680_v40 = vld [vmem:[%s9315_s8 + $0x4bd8] sm:$0xff] }
 0x287   : > { %7457 = vmatpush1.bf16.msra.mxu1 %v7456_v48  ;;  %6787 = vmatprep.subr.bf16.mxu0 %v6786_v49  ;;  %v2589_v48 = vld [vmem:[%s9315_s8 + $0x4900] sm:$0xff] }
 0x288   : > { %7459 = vmatprep.subr.bf16.mxu1 %v7458_v53  ;;  %v2597_v49 = vld [vmem:[%s9315_s8 + $0x4940] sm:$0xff]  ;;  %v2606_v53 = vld [vmem:[%s9315_s8 + $0x4988] sm:$0xff] }
 0x289   : > { %v6808_v57 = vpack.c.bf16 %v2597_v49, %v2589_v48  ;;  %v2679_v48 = vld [vmem:[%s9315_s8 + $0x4bd0] sm:$0xff]  ;;  %v2686_v49 = vld [vmem:[%s9315_s8 + $0x4c08] sm:$0xff] }
 0x28a   : > { %6789 = vmatpush1.bf16.msra.mxu0 %v6788_v59  ;;  %v6810_v59 = vpack.c.bf16 %v2614_v54, %v2606_v53  ;;  %v6830_v55 = vpack.c.bf16 %v2694_v50, %v2686_v49 }
 0x28b   : > { %7461 = vmatpush1.bf16.msra.mxu1 %v7460_v60  ;;  %6791 = vmatprep.subr.bf16.mxu0 %v6790_v61  ;;  %v2605_v60 = vld [vmem:[%s9315_s8 + $0x4980] sm:$0xff] }
 0x28c   : > { %7463 = vmatprep.subr.bf16.mxu1 %v7462_v1  ;;  %v2613_v61 = vld [vmem:[%s9315_s8 + $0x49c0] sm:$0xff]  ;;  %v2622_v1 = vld [vmem:[%s9315_s8 + $0x4a08] sm:$0xff] }
 0x28d   : > { %v6812_v5 = vpack.c.bf16 %v2613_v61, %v2605_v60  ;;  %v2695_v60 = vld [vmem:[%s9315_s8 + $0x4c50] sm:$0xff]  ;;  %v2702_v61 = vld [vmem:[%s9315_s8 + $0x4c88] sm:$0xff] }
 0x28e   : > { %6793 = vmatpush1.bf16.msra.mxu0 %v6792_v7  ;;  %v6814_v7 = vpack.c.bf16 %v2630_v2, %v2622_v1  ;;  %v6834_v3 = vpack.c.bf16 %v2710_v62, %v2702_v61 }
 0x28f   : > { %7465 = vmatpush1.bf16.msra.mxu1 %v7464_v8  ;;  %6795 = vmatprep.subr.bf16.mxu0 %v6794_v9  ;;  %v2621_v8 = vld [vmem:[%s9315_s8 + $0x4a00] sm:$0xff] }
 0x290   : > { %7467 = vmatprep.subr.bf16.mxu1 %v7466_v13  ;;  %v2629_v9 = vld [vmem:[%s9315_s8 + $0x4a40] sm:$0xff]  ;;  %v2638_v13 = vld [vmem:[%s9315_s8 + $0x4a88] sm:$0xff] }
 0x291   : > { %v6816_v17 = vpack.c.bf16 %v2629_v9, %v2621_v8  ;;  %v2711_v8 = vld [vmem:[%s9315_s8 + $0x4cd0] sm:$0xff]  ;;  %v2718_v9 = vld [vmem:[%s9315_s8 + $0x4d08] sm:$0xff] }
 0x292   : > { %6797 = vmatpush1.bf16.msra.mxu0 %v6796_v19  ;;  %v6818_v19 = vpack.c.bf16 %v2646_v14, %v2638_v13  ;;  %v6838_v15 = vpack.c.bf16 %v2726_v10, %v2718_v9 }
 0x293   : > { %7469 = vmatpush1.bf16.msra.mxu1 %v7468_v20  ;;  %6799 = vmatprep.subr.bf16.mxu0 %v6798_v21  ;;  %v2637_v20 = vld [vmem:[%s9315_s8 + $0x4a80] sm:$0xff] }
 0x294   : > { %7471 = vmatprep.subr.bf16.mxu1 %v7470_v25  ;;  %v2645_v21 = vld [vmem:[%s9315_s8 + $0x4ac0] sm:$0xff]  ;;  %v2654_v25 = vld [vmem:[%s9315_s8 + $0x4b08] sm:$0xff] }
 0x295   : > { %3616 = vmatmul.mubr.f32.vlgmr.msra.gmra.mrb[0].mxu0 %v248_v31  ;;  %v6820_v29 = vpack.c.bf16 %v2645_v21, %v2637_v20  ;;  %v2727_v20 = vld [vmem:[%s9315_s8 + $0x4d50] sm:$0xff]  ;;  %v2734_v21 = vld [vmem:[%s9315_s8 + $0x4d88] sm:$0xff] }
 0x296   : > { %6801 = vmatpush1.bf16.msra.mxu0 %v6800_v32  ;;  %4397 = vmatmul.mubr.f32.vlgmr.msra.gmra.mrb[0].mxu1 %v248_v31  ;;  %v6822_v31 = vpack.c.bf16 %v2662_v26, %v2654_v25  ;;  %v2653_v32 = vld [vmem:[%s9315_s8 + $0x4b00] sm:$0xff]  ;;  %v6842_v27 = vpack.c.bf16 %v2742_v22, %v2734_v21 }
 0x297   : > { %7473 = vmatpush1.bf16.msra.mxu1 %v7472_v33  ;;  %6803 = vmatprep.subr.bf16.mxu0 %v6802_v34  ;;  %v2661_v33 = vld [vmem:[%s9315_s8 + $0x4b40] sm:$0xff]  ;;  %v2655_v34 = vld [vmem:[%s9315_s8 + $0x4b10] sm:$0xff] }
 0x298   : > { %7475 = vmatprep.subr.bf16.mxu1 %v7474_v38  ;;  %3686 = vmatprep.mubr.f32.mxu0 %v251_v44  ;;  %v2678_v38 = vld [vmem:[%s9315_s8 + $0x4bc8] sm:$0xff]  ;;  %v6824_v41 = vpack.c.bf16 %v2661_v33, %v2653_v32  ;;  %v7496_v42 = vpack.c.bf16 %v2663_v36, %v2655_v34  ;;  %v2743_v32 = vld [vmem:[%s9315_s8 + $0x4dd0] sm:$0xff]  ;;  %v2760_v36 = vld [vmem:[%s9315_s8 + $0x4e58] sm:$0xff] }
 0x299   : > { %4467 = vmatprep.mubr.f32.mxu1 %v251_v44  ;;  %v6826_v43 = vpack.c.bf16 %v2678_v38, %v2670_v37  ;;  %v2669_v44 = vld [vmem:[%s9315_s8 + $0x4b80] sm:$0xff]  ;;  %v2750_v33 = vld [vmem:[%s9315_s8 + $0x4e08] sm:$0xff] }
 0x29a   : > { %6805 = vmatpush1.bf16.msra.mxu0 %v6804_v45  ;;  %v2677_v45 = vld [vmem:[%s9315_s8 + $0x4bc0] sm:$0xff]  ;;  %v2758_v34 = vld [vmem:[%s9315_s8 + $0x4e48] sm:$0xff] }
 0x29b   : > { %7477 = vmatpush1.bf16.msra.mxu1 %v7476_v46  ;;  %6807 = vmatprep.subr.bf16.mxu0 %v6806_v47  ;;  %v2671_v46 = vld [vmem:[%s9315_s8 + $0x4b90] sm:$0xff]  ;;  %v7498_v47 = vpack.c.bf16 %v2680_v40, %v2672_v39  ;;  %v6828_v53 = vpack.c.bf16 %v2677_v45, %v2669_v44  ;;  %v6846_v39 = vpack.c.bf16 %v2758_v34, %v2750_v33  ;;  %v2749_v40 = vld [vmem:[%s9315_s8 + $0x4e00] sm:$0xff]  ;;  %v2766_v45 = vld [vmem:[%s9315_s8 + $0x4e88] sm:$0xff] }
 0x29c   : > { %7479 = vmatprep.subr.bf16.mxu1 %v7478_v51  ;;  %v2688_v51 = vld [vmem:[%s9315_s8 + $0x4c18] sm:$0xff]  ;;  %v7500_v54 = vpack.c.bf16 %v2679_v48, %v2671_v46  ;;  %v2759_v44 = vld [vmem:[%s9315_s8 + $0x4e50] sm:$0xff]  ;;  %v2774_v46 = vld [vmem:[%s9315_s8 + $0x4ec8] sm:$0xff] }
 0x29d   : > { %v2776_v48 = vld [vmem:[%s9315_s8 + $0x4ed8] sm:$0xff]  ;;  %v250_v33 = vld [vmem:[%s12194_s0 + $0x90] sm:$0xff] }
 0x29e   : > { %6809 = vmatpush1.bf16.msra.mxu0 %v6808_v57  ;;  %v2693_v57 = vld [vmem:[%s9315_s8 + $0x4c40] sm:$0xff] }
 0x29f   : > { %7481 = vmatpush1.bf16.msra.mxu1 %v7480_v58  ;;  %6811 = vmatprep.subr.bf16.mxu0 %v6810_v59  ;;  %v2687_v58 = vld [vmem:[%s9315_s8 + $0x4c10] sm:$0xff]  ;;  %v7502_v59 = vpack.c.bf16 %v2696_v52, %v2688_v51  ;;  %v6832_v1 = vpack.c.bf16 %v2693_v57, %v2685_v56  ;;  %v6850_v51 = vpack.c.bf16 %v2774_v46, %v2766_v45  ;;  %v2765_v52 = vld [vmem:[%s9315_s8 + $0x4e80] sm:$0xff]  ;;  %v2782_v57 = vld [vmem:[%s9315_s8 + $0x4f08] sm:$0xff] }
 0x2a0   : > { %7483 = vmatprep.subr.bf16.mxu1 %v7482_v63  ;;  %v2704_v63 = vld [vmem:[%s9315_s8 + $0x4c98] sm:$0xff]  ;;  %v7504_v2 = vpack.c.bf16 %v2695_v60, %v2687_v58  ;;  %v2775_v56 = vld [vmem:[%s9315_s8 + $0x4ed0] sm:$0xff]  ;;  %v2790_v58 = vld [vmem:[%s9315_s8 + $0x4f48] sm:$0xff] }
 0x2a1   : > { %v2792_v60 = vld [vmem:[%s9315_s8 + $0x4f58] sm:$0xff] }
 0x2a2   : > { %6813 = vmatpush1.bf16.msra.mxu0 %v6812_v5  ;;  %v2709_v5 = vld [vmem:[%s9315_s8 + $0x4cc0] sm:$0xff]  ;;  %v2856_v45 = vld [vmem:[%s9315_s8 + $0x5158] sm:$0xff] }
 0x2a3   : > { %7485 = vmatpush1.bf16.msra.mxu1 %v7484_v6  ;;  %6815 = vmatprep.subr.bf16.mxu0 %v6814_v7  ;;  %v2703_v6 = vld [vmem:[%s9315_s8 + $0x4c90] sm:$0xff]  ;;  %v7506_v7 = vpack.c.bf16 %v2712_v0, %v2704_v63  ;;  %v6836_v13 = vpack.c.bf16 %v2709_v5, %v2701_v4  ;;  %v6854_v63 = vpack.c.bf16 %v2790_v58, %v2782_v57  ;;  %v2781_v0 = vld [vmem:[%s9315_s8 + $0x4f00] sm:$0xff]  ;;  %v2798_v5 = vld [vmem:[%s9315_s8 + $0x4f88] sm:$0xff] }
 0x2a4   : > { %7487 = vmatprep.subr.bf16.mxu1 %v7486_v11  ;;  %v2720_v11 = vld [vmem:[%s9315_s8 + $0x4d18] sm:$0xff]  ;;  %v7508_v14 = vpack.c.bf16 %v2711_v8, %v2703_v6  ;;  %v2791_v4 = vld [vmem:[%s9315_s8 + $0x4f50] sm:$0xff]  ;;  %v2806_v6 = vld [vmem:[%s9315_s8 + $0x4fc8] sm:$0xff] }
 0x2a5   : > { %v2808_v8 = vld [vmem:[%s9315_s8 + $0x4fd8] sm:$0xff] }
 0x2a6   : > { %6817 = vmatpush1.bf16.msra.mxu0 %v6816_v17  ;;  %v2725_v17 = vld [vmem:[%s9315_s8 + $0x4d40] sm:$0xff]  ;;  %v2864_v57 = vld [vmem:[%s9315_s8 + $0x5198] sm:$0xff] }
 0x2a7   : > { %7489 = vmatpush1.bf16.msra.mxu1 %v7488_v18  ;;  %6819 = vmatprep.subr.bf16.mxu0 %v6818_v19  ;;  %v2719_v18 = vld [vmem:[%s9315_s8 + $0x4d10] sm:$0xff]  ;;  %v7510_v19 = vpack.c.bf16 %v2728_v12, %v2720_v11  ;;  %v6840_v25 = vpack.c.bf16 %v2725_v17, %v2717_v16  ;;  %v6858_v11 = vpack.c.bf16 %v2806_v6, %v2798_v5  ;;  %v2797_v12 = vld [vmem:[%s9315_s8 + $0x4f80] sm:$0xff]  ;;  %v2814_v17 = vld [vmem:[%s9315_s8 + $0x5008] sm:$0xff] }
 0x2a8   : > { %7491 = vmatprep.subr.bf16.mxu1 %v7490_v23  ;;  %v2736_v23 = vld [vmem:[%s9315_s8 + $0x4d98] sm:$0xff]  ;;  %v7512_v26 = vpack.c.bf16 %v2727_v20, %v2719_v18  ;;  %v2807_v16 = vld [vmem:[%s9315_s8 + $0x4fd0] sm:$0xff]  ;;  %v2822_v18 = vld [vmem:[%s9315_s8 + $0x5048] sm:$0xff] }
 0x2a9   : > { %v2824_v20 = vld [vmem:[%s9315_s8 + $0x5058] sm:$0xff] }
 0x2aa   : > { %6821 = vmatpush1.bf16.msra.mxu0 %v6820_v29  ;;  %v2741_v29 = vld [vmem:[%s9315_s8 + $0x4dc0] sm:$0xff]  ;;  %v2872_v58 = vld [vmem:[%s9315_s8 + $0x51d8] sm:$0xff] }
 0x2ab   : > { %7493 = vmatpush1.bf16.msra.mxu1 %v7492_v30  ;;  %6823 = vmatprep.subr.bf16.mxu0 %v6822_v31  ;;  %v2735_v30 = vld [vmem:[%s9315_s8 + $0x4d90] sm:$0xff]  ;;  %v7514_v31 = vpack.c.bf16 %v2744_v24, %v2736_v23  ;;  %v6844_v37 = vpack.c.bf16 %v2741_v29, %v2733_v28  ;;  %v6862_v23 = vpack.c.bf16 %v2822_v18, %v2814_v17  ;;  %v2813_v24 = vld [vmem:[%s9315_s8 + $0x5000] sm:$0xff]  ;;  %v2830_v29 = vld [vmem:[%s9315_s8 + $0x5088] sm:$0xff] }
 0x2ac   : > { %7495 = vmatprep.subr.bf16.mxu1 %v7494_v35  ;;  %v2752_v35 = vld [vmem:[%s9315_s8 + $0x4e18] sm:$0xff]  ;;  %v7516_v38 = vpack.c.bf16 %v2743_v32, %v2735_v30  ;;  %v2823_v28 = vld [vmem:[%s9315_s8 + $0x5050] sm:$0xff]  ;;  %v2838_v30 = vld [vmem:[%s9315_s8 + $0x50c8] sm:$0xff] }
 0x2ad   : > { %v2840_v32 = vld [vmem:[%s9315_s8 + $0x50d8] sm:$0xff] }
 0x2ae   : > { %6825 = vmatpush1.bf16.msra.mxu0 %v6824_v41  ;;  %v2757_v41 = vld [vmem:[%s9315_s8 + $0x4e40] sm:$0xff]  ;;  %v2880_v5 = vld [vmem:[%s9315_s8 + $0x5218] sm:$0xff] }
 0x2af   : > { %7497 = vmatpush1.bf16.msra.mxu1 %v7496_v42  ;;  %6827 = vmatprep.subr.bf16.mxu0 %v6826_v43  ;;  %v2751_v42 = vld [vmem:[%s9315_s8 + $0x4e10] sm:$0xff]  ;;  %v7518_v43 = vpack.c.bf16 %v2760_v36, %v2752_v35  ;;  %v6848_v49 = vpack.c.bf16 %v2757_v41, %v2749_v40  ;;  %v6866_v36 = vpack.c.bf16 %v2838_v30, %v2830_v29  ;;  %v2888_v6 = vld [vmem:[%s9315_s8 + $0x5258] sm:$0xff] }
 0x2b0   : > { %7499 = vmatprep.subr.bf16.mxu1 %v7498_v47  ;;  %v2768_v47 = vld [vmem:[%s9315_s8 + $0x4e98] sm:$0xff]  ;;  %v7520_v50 = vpack.c.bf16 %v2759_v44, %v2751_v42  ;;  %v2839_v41 = vld [vmem:[%s9315_s8 + $0x50d0] sm:$0xff]  ;;  %v2846_v42 = vld [vmem:[%s9315_s8 + $0x5108] sm:$0xff] }
 0x2b1   : > { %v2848_v44 = vld [vmem:[%s9315_s8 + $0x5118] sm:$0xff] }
 0x2b2   : > { %6829 = vmatpush1.bf16.msra.mxu0 %v6828_v53  ;;  %v2773_v53 = vld [vmem:[%s9315_s8 + $0x4ec0] sm:$0xff]  ;;  %v2896_v17 = vld [vmem:[%s9315_s8 + $0x5298] sm:$0xff] }
 0x2b3   : > { %7501 = vmatpush1.bf16.msra.mxu1 %v7500_v54  ;;  %6831 = vmatprep.subr.bf16.mxu0 %v6830_v55  ;;  %v2767_v54 = vld [vmem:[%s9315_s8 + $0x4e90] sm:$0xff]  ;;  %v7522_v55 = vpack.c.bf16 %v2776_v48, %v2768_v47  ;;  %v6852_v61 = vpack.c.bf16 %v2773_v53, %v2765_v52  ;;  %v7542_v52 = vpack.c.bf16 %v2856_v45, %v2848_v44  ;;  %v2904_v18 = vld [vmem:[%s9315_s8 + $0x52d8] sm:$0xff] }
 0x2b4   : > { %7503 = vmatprep.subr.bf16.mxu1 %v7502_v59  ;;  %v2784_v59 = vld [vmem:[%s9315_s8 + $0x4f18] sm:$0xff]  ;;  %v7524_v62 = vpack.c.bf16 %v2775_v56, %v2767_v54  ;;  %v2855_v53 = vld [vmem:[%s9315_s8 + $0x5150] sm:$0xff]  ;;  %v2862_v54 = vld [vmem:[%s9315_s8 + $0x5188] sm:$0xff]  ;;  %v9175_v56 = vmov 0.0  }
 0x2b5   : > { %v2912_v29 = vld [vmem:[%s9315_s8 + $0x5318] sm:$0xff] }
 0x2b6   : > { %6833 = vmatpush1.bf16.msra.mxu0 %v6832_v1  ;;  %v2789_v1 = vld [vmem:[%s9315_s8 + $0x4f40] sm:$0xff]  ;;  %v2920_v30 = vld [vmem:[%s9315_s8 + $0x5358] sm:$0xff] }
 0x2b7   : > { %7505 = vmatpush1.bf16.msra.mxu1 %v7504_v2  ;;  %6835 = vmatprep.subr.bf16.mxu0 %v6834_v3  ;;  %v2783_v2 = vld [vmem:[%s9315_s8 + $0x4f10] sm:$0xff]  ;;  %v7526_v3 = vpack.c.bf16 %v2792_v60, %v2784_v59  ;;  %v6856_v9 = vpack.c.bf16 %v2789_v1, %v2781_v0  ;;  %v7546_v1 = vpack.c.bf16 %v2872_v58, %v2864_v57 }
 0x2b8   : > { %7507 = vmatprep.subr.bf16.mxu1 %v7506_v7  ;;  %v2800_v7 = vld [vmem:[%s9315_s8 + $0x4f98] sm:$0xff]  ;;  %v7528_v10 = vpack.c.bf16 %v2791_v4, %v2783_v2  ;;  %v2863_v0 = vld [vmem:[%s9315_s8 + $0x5190] sm:$0xff]  ;;  %v2886_v4 = vld [vmem:[%s9315_s8 + $0x5248] sm:$0xff] }
 0x2b9   : > { %v2871_v2 = vld [vmem:[%s9315_s8 + $0x51d0] sm:$0xff] }
 0x2ba   : > { %6837 = vmatpush1.bf16.msra.mxu0 %v6836_v13  ;;  %v2805_v13 = vld [vmem:[%s9315_s8 + $0x4fc0] sm:$0xff] }
 0x2bb   : > { %7509 = vmatpush1.bf16.msra.mxu1 %v7508_v14  ;;  %6839 = vmatprep.subr.bf16.mxu0 %v6838_v15  ;;  %v2799_v14 = vld [vmem:[%s9315_s8 + $0x4f90] sm:$0xff]  ;;  %v7530_v15 = vpack.c.bf16 %v2808_v8, %v2800_v7  ;;  %v6860_v21 = vpack.c.bf16 %v2805_v13, %v2797_v12  ;;  %v7548_v8 = vpack.c.bf16 %v2871_v2, %v2863_v0  ;;  %v274_v0 = vld [vmem:[%s9315_s8 + $0xa8] sm:$0xff]  ;;  %v276_v2 = vld [vmem:[%s9315_s8 + $0xb8] sm:$0xff] }
 0x2bc   : > { %7511 = vmatprep.subr.bf16.mxu1 %v7510_v19  ;;  %v2816_v19 = vld [vmem:[%s9315_s8 + $0x5018] sm:$0xff]  ;;  %v7532_v22 = vpack.c.bf16 %v2807_v16, %v2799_v14  ;;  %v2879_v12 = vld [vmem:[%s9315_s8 + $0x5210] sm:$0xff]  ;;  %v7550_v13 = vpack.c.bf16 %v2888_v6, %v2880_v5  ;;  %v2902_v16 = vld [vmem:[%s9315_s8 + $0x52c8] sm:$0xff] }
 0x2bd   : > { %v2887_v14 = vld [vmem:[%s9315_s8 + $0x5250] sm:$0xff] }
 0x2be   : > { %6841 = vmatpush1.bf16.msra.mxu0 %v6840_v25  ;;  %v2821_v25 = vld [vmem:[%s9315_s8 + $0x5040] sm:$0xff] }
 0x2bf   : > { %7513 = vmatpush1.bf16.msra.mxu1 %v7512_v26  ;;  %6843 = vmatprep.subr.bf16.mxu0 %v6842_v27  ;;  %v2815_v26 = vld [vmem:[%s9315_s8 + $0x5010] sm:$0xff]  ;;  %v7534_v27 = vpack.c.bf16 %v2824_v20, %v2816_v19  ;;  %v6864_v34 = vpack.c.bf16 %v2821_v25, %v2813_v24  ;;  %v7552_v20 = vpack.c.bf16 %v2887_v14, %v2879_v12  ;;  %v298_v14 = vld [vmem:[%s9315_s8 + $0x168] sm:$0xff] }
 0x2c0   : > { %7515 = vmatprep.subr.bf16.mxu1 %v7514_v31  ;;  %v2832_v31 = vld [vmem:[%s9315_s8 + $0x5098] sm:$0xff]  ;;  %v7536_v35 = vpack.c.bf16 %v2823_v28, %v2815_v26  ;;  %v2895_v24 = vld [vmem:[%s9315_s8 + $0x5290] sm:$0xff]  ;;  %v7554_v25 = vpack.c.bf16 %v2904_v18, %v2896_v17  ;;  %v2918_v28 = vld [vmem:[%s9315_s8 + $0x5348] sm:$0xff] }
 0x2c1   : > { %v7538_v40 = vpack.c.bf16 %v2840_v32, %v2832_v31  ;;  %v2903_v26 = vld [vmem:[%s9315_s8 + $0x52d0] sm:$0xff] }
 0x2c2   : > { %6845 = vmatpush1.bf16.msra.mxu0 %v6844_v37  ;;  %v2829_v37 = vld [vmem:[%s9315_s8 + $0x5080] sm:$0xff]  ;;  %v7556_v32 = vpack.c.bf16 %v2903_v26, %v2895_v24  ;;  %v283_v12 = vld [vmem:[%s9315_s8 + $0xf0] sm:$0xff]  ;;  %v314_v26 = vld [vmem:[%s9315_s8 + $0x1e8] sm:$0xff] }
 0x2c3   : > { %7517 = vmatpush1.bf16.msra.mxu1 %v7516_v38  ;;  %6847 = vmatprep.subr.bf16.mxu0 %v6846_v39  ;;  %v2837_v38 = vld [vmem:[%s9315_s8 + $0x50c0] sm:$0xff]  ;;  %v2831_v39 = vld [vmem:[%s9315_s8 + $0x5090] sm:$0xff] }
 0x2c4   : > { %7519 = vmatprep.subr.bf16.mxu1 %v7518_v43  ;;  %v2854_v43 = vld [vmem:[%s9315_s8 + $0x5148] sm:$0xff]  ;;  %v6868_v46 = vpack.c.bf16 %v2837_v38, %v2829_v37  ;;  %v7540_v47 = vpack.c.bf16 %v2839_v41, %v2831_v39  ;;  %v7558_v37 = vpack.c.bf16 %v2920_v30, %v2912_v29  ;;  %v2919_v38 = vld [vmem:[%s9315_s8 + $0x5350] sm:$0xff]  ;;  %v2928_v41 = vld [vmem:[%s9315_s8 + $0x5398] sm:$0xff] }
 0x2c5   : > { %v6870_v48 = vpack.c.bf16 %v2854_v43, %v2846_v42  ;;  %v2926_v39 = vld [vmem:[%s9315_s8 + $0x5388] sm:$0xff]  ;;  %v2936_v42 = vld [vmem:[%s9315_s8 + $0x53d8] sm:$0xff]  ;;  %v299_v24 = vld [vmem:[%s9315_s8 + $0x170] sm:$0xff] }
 0x2c6   : > { %6849 = vmatpush1.bf16.msra.mxu0 %v6848_v49  ;;  %v2845_v49 = vld [vmem:[%s9315_s8 + $0x5100] sm:$0xff]  ;;  %v316_v29 = vld [vmem:[%s9315_s8 + $0x1f8] sm:$0xff] }
 0x2c7   : > { %7521 = vmatpush1.bf16.msra.mxu1 %v7520_v50  ;;  %6851 = vmatprep.subr.bf16.mxu0 %v6850_v51  ;;  %v2853_v50 = vld [vmem:[%s9315_s8 + $0x5140] sm:$0xff]  ;;  %v2847_v51 = vld [vmem:[%s9315_s8 + $0x5110] sm:$0xff] }
 0x2c8   : > { %7523 = vmatprep.subr.bf16.mxu1 %v7522_v55  ;;  %v2870_v55 = vld [vmem:[%s9315_s8 + $0x51c8] sm:$0xff]  ;;  %v6872_v59 = vpack.c.bf16 %v2853_v50, %v2845_v49  ;;  %v7544_v60 = vpack.c.bf16 %v2855_v53, %v2847_v51  ;;  %v7562_v49 = vpack.c.bf16 %v2936_v42, %v2928_v41  ;;  %v2935_v50 = vld [vmem:[%s9315_s8 + $0x53d0] sm:$0xff]  ;;  %v260_v53 = vld [vmem:[%s9315_s8 + $0x38] sm:$0xff] }
 0x2c9   : > { %v258_v51 = vld [vmem:[%s9315_s8 + $0x28] sm:$0xff]  ;;  %v332_v41 = vld [vmem:[%s9315_s8 + $0x278] sm:$0xff] }
 0x2ca   : > { %6853 = vmatpush1.bf16.msra.mxu0 %v6852_v61  ;;  %v6874_v61 = vpack.c.bf16 %v2870_v55, %v2862_v54  ;;  %v268_v54 = vld [vmem:[%s9315_s8 + $0x78] sm:$0xff] }
 0x2cb   : > { %7525 = vmatpush1.bf16.msra.mxu1 %v7524_v62  ;;  %6855 = vmatprep.subr.bf16.mxu0 %v6854_v63  ;;  %v2861_v62 = vld [vmem:[%s9315_s8 + $0x5180] sm:$0xff] }
 0x2cc   : > { %7527 = vmatprep.subr.bf16.mxu1 %v7526_v3  ;;  %v2869_v63 = vld [vmem:[%s9315_s8 + $0x51c0] sm:$0xff]  ;;  %v2878_v3 = vld [vmem:[%s9315_s8 + $0x5208] sm:$0xff] }
 0x2cd   : > { %v6876_v7 = vpack.c.bf16 %v2869_v63, %v2861_v62  ;;  %v8238_v62 = vpack.c.bf16 %v268_v54, %v260_v53  ;;  %v267_v63 = vld [vmem:[%s9315_s8 + $0x70] sm:$0xff]  ;;  %v348_v53 = vld [vmem:[%s9315_s8 + $0x2f8] sm:$0xff] }
 0x2ce   : > { %6857 = vmatpush1.bf16.msra.mxu0 %v6856_v9  ;;  %v6878_v9 = vpack.c.bf16 %v2886_v4, %v2878_v3  ;;  %v284_v3 = vld [vmem:[%s9315_s8 + $0xf8] sm:$0xff]  ;;  %v252_v4 = vld [vmem:[%s12194_s0 + $0xa0] sm:$0xff] }
 0x2cf   : > { %7529 = vmatpush1.bf16.msra.mxu1 %v7528_v10  ;;  %6859 = vmatprep.subr.bf16.mxu0 %v6858_v11  ;;  %v2877_v10 = vld [vmem:[%s9315_s8 + $0x5200] sm:$0xff] }
 0x2d0   : > { %7531 = vmatprep.subr.bf16.mxu1 %v7530_v15  ;;  %v2885_v11 = vld [vmem:[%s9315_s8 + $0x5240] sm:$0xff]  ;;  %v2894_v15 = vld [vmem:[%s9315_s8 + $0x5288] sm:$0xff] }
 0x2d1   : > { %v6880_v19 = vpack.c.bf16 %v2885_v11, %v2877_v10  ;;  %v275_v10 = vld [vmem:[%s9315_s8 + $0xb0] sm:$0xff]  ;;  %v8242_v11 = vpack.c.bf16 %v284_v3, %v276_v2  ;;  %v364_v2 = vld [vmem:[%s9315_s8 + $0x378] sm:$0xff] }
 0x2d2   : > { %6861 = vmatpush1.bf16.msra.mxu0 %v6860_v21  ;;  %v6882_v21 = vpack.c.bf16 %v2902_v16, %v2894_v15  ;;  %v292_v15 = vld [vmem:[%s9315_s8 + $0x138] sm:$0xff]  ;;  %v8244_v18 = vpack.c.bf16 %v283_v12, %v275_v10  ;;  %v363_v10 = vld [vmem:[%s9315_s8 + $0x370] sm:$0xff]  ;;  %v378_v12 = vld [vmem:[%s9315_s8 + $0x3e8] sm:$0xff] }
 0x2d3   : > { %7533 = vmatpush1.bf16.msra.mxu1 %v7532_v22  ;;  %6863 = vmatprep.subr.bf16.mxu0 %v6862_v23  ;;  %v2893_v22 = vld [vmem:[%s9315_s8 + $0x5280] sm:$0xff]  ;;  %v300_v16 = vld [vmem:[%s9315_s8 + $0x178] sm:$0xff] }
 0x2d4   : > { %7535 = vmatprep.subr.bf16.mxu1 %v7534_v27  ;;  %v2901_v23 = vld [vmem:[%s9315_s8 + $0x52c0] sm:$0xff]  ;;  %v2910_v27 = vld [vmem:[%s9315_s8 + $0x5308] sm:$0xff] }
 0x2d5   : > { %3687 = vmatmul.mubr.f32.vlgmr.msra.gmra.mrb[0].mxu0 %v250_v33  ;;  %v6884_v31 = vpack.c.bf16 %v2901_v23, %v2893_v22  ;;  %v291_v22 = vld [vmem:[%s9315_s8 + $0x130] sm:$0xff]  ;;  %v8246_v23 = vpack.c.bf16 %v300_v16, %v292_v15 }
 0x2d6   : > { %6865 = vmatpush1.bf16.msra.mxu0 %v6864_v34  ;;  %4468 = vmatmul.mubr.f32.vlgmr.msra.gmra.mrb[0].mxu1 %v250_v33  ;;  %v6886_v33 = vpack.c.bf16 %v2918_v28, %v2910_v27  ;;  %v2909_v34 = vld [vmem:[%s9315_s8 + $0x5300] sm:$0xff]  ;;  %v9048_v27 = vld [vmem:[%s12194_s0 + $0x8] sm:$0xff]  ;;  %v308_v28 = vld [vmem:[%s9315_s8 + $0x1b8] sm:$0xff] }
 0x2d7   : > { %7537 = vmatpush1.bf16.msra.mxu1 %v7536_v35  ;;  %6867 = vmatprep.subr.bf16.mxu0 %v6866_v36  ;;  %v2917_v35 = vld [vmem:[%s9315_s8 + $0x5340] sm:$0xff]  ;;  %v2911_v36 = vld [vmem:[%s9315_s8 + $0x5310] sm:$0xff] }
 0x2d8   : > { %7539 = vmatprep.subr.bf16.mxu1 %v7538_v40  ;;  %3757 = vmatprep.mubr.f32.mxu0 %v9175_v56  ;;  %v2934_v40 = vld [vmem:[%s9315_s8 + $0x53c8] sm:$0xff]  ;;  %v6888_v43 = vpack.c.bf16 %v2917_v35, %v2909_v34  ;;  %v7560_v44 = vpack.c.bf16 %v2919_v38, %v2911_v36  ;;  %v313_v34 = vld [vmem:[%s9315_s8 + $0x1e0] sm:$0xff]  ;;  %v307_v35 = vld [vmem:[%s9315_s8 + $0x1b0] sm:$0xff]  ;;  %v8250_v36 = vpack.c.bf16 %v316_v29, %v308_v28 }
 0x2d9   : > { %4538 = vmatprep.mubr.f32.mxu1 %v9175_v56  ;;  %v6890_v45 = vpack.c.bf16 %v2934_v40, %v2926_v39  ;;  %v322_v38 = vld [vmem:[%s9315_s8 + $0x228] sm:$0xff]  ;;  %v324_v40 = vld [vmem:[%s9315_s8 + $0x238] sm:$0xff] }
 0x2da   : > { %6869 = vmatpush1.bf16.msra.mxu0 %v6868_v46  ;;  %v2925_v46 = vld [vmem:[%s9315_s8 + $0x5380] sm:$0xff]  ;;  %v330_v39 = vld [vmem:[%s9315_s8 + $0x268] sm:$0xff] }
 0x2db   : > { %7541 = vmatpush1.bf16.msra.mxu1 %v7540_v47  ;;  %6871 = vmatprep.subr.bf16.mxu0 %v6870_v48  ;;  %v2933_v47 = vld [vmem:[%s9315_s8 + $0x53c0] sm:$0xff]  ;;  %v2927_v48 = vld [vmem:[%s9315_s8 + $0x5390] sm:$0xff] }
 0x2dc   : > { %7543 = vmatprep.subr.bf16.mxu1 %v7542_v52  ;;  %v266_v52 = vld [vmem:[%s9315_s8 + $0x68] sm:$0xff]  ;;  %v6892_v55 = vpack.c.bf16 %v2933_v47, %v2925_v46  ;;  %v7564_v57 = vpack.c.bf16 %v2935_v50, %v2927_v48  ;;  %v329_v46 = vld [vmem:[%s9315_s8 + $0x260] sm:$0xff]  ;;  %v323_v47 = vld [vmem:[%s9315_s8 + $0x230] sm:$0xff]  ;;  %v8254_v48 = vpack.c.bf16 %v332_v41, %v324_v40 }
 0x2dd   : > { %v7566_v58 = vpack.c.bf16 %v266_v52, %v258_v51  ;;  %v338_v50 = vld [vmem:[%s9315_s8 + $0x2a8] sm:$0xff]  ;;  %v340_v52 = vld [vmem:[%s9315_s8 + $0x2b8] sm:$0xff] }
 0x2de   : > { %6873 = vmatpush1.bf16.msra.mxu0 %v6872_v59  ;;  %v257_v59 = vld [vmem:[%s9315_s8 + $0x20] sm:$0xff]  ;;  %v346_v51 = vld [vmem:[%s9315_s8 + $0x2e8] sm:$0xff] }
 0x2df   : > { %7545 = vmatpush1.bf16.msra.mxu1 %v7544_v60  ;;  %6875 = vmatprep.subr.bf16.mxu0 %v6874_v61  ;;  %v265_v60 = vld [vmem:[%s9315_s8 + $0x60] sm:$0xff]  ;;  %v259_v61 = vld [vmem:[%s9315_s8 + $0x30] sm:$0xff] }
 0x2e0   : > { %7547 = vmatprep.subr.bf16.mxu1 %v7546_v1  ;;  %v282_v1 = vld [vmem:[%s9315_s8 + $0xe8] sm:$0xff]  ;;  %v7568_v5 = vpack.c.bf16 %v265_v60, %v257_v59  ;;  %v8240_v6 = vpack.c.bf16 %v267_v63, %v259_v61  ;;  %v345_v59 = vld [vmem:[%s9315_s8 + $0x2e0] sm:$0xff]  ;;  %v339_v60 = vld [vmem:[%s9315_s8 + $0x2b0] sm:$0xff]  ;;  %v8258_v61 = vpack.c.bf16 %v348_v53, %v340_v52 }
 0x2e1   : > { %v354_v63 = vld [vmem:[%s9315_s8 + $0x328] sm:$0xff] }
 0x2e2   : > { %6877 = vmatpush1.bf16.msra.mxu0 %v6876_v7  ;;  %v7570_v7 = vpack.c.bf16 %v282_v1, %v274_v0  ;;  %v362_v0 = vld [vmem:[%s9315_s8 + $0x368] sm:$0xff]  ;;  %v356_v1 = vld [vmem:[%s9315_s8 + $0x338] sm:$0xff] }
 0x2e3   : > { %7549 = vmatpush1.bf16.msra.mxu1 %v7548_v8  ;;  %6879 = vmatprep.subr.bf16.mxu0 %v6878_v9  ;;  %v273_v8 = vld [vmem:[%s9315_s8 + $0xa0] sm:$0xff] }
 0x2e4   : > { %7551 = vmatprep.subr.bf16.mxu1 %v7550_v13  ;;  %v281_v9 = vld [vmem:[%s9315_s8 + $0xe0] sm:$0xff]  ;;  %v290_v13 = vld [vmem:[%s9315_s8 + $0x128] sm:$0xff] }
 0x2e5   : > { %v7572_v17 = vpack.c.bf16 %v281_v9, %v273_v8  ;;  %v355_v8 = vld [vmem:[%s9315_s8 + $0x330] sm:$0xff]  ;;  %v8262_v9 = vpack.c.bf16 %v364_v2, %v356_v1 }
 0x2e6   : > { %6881 = vmatpush1.bf16.msra.mxu0 %v6880_v19  ;;  %v7574_v19 = vpack.c.bf16 %v298_v14, %v290_v13  ;;  %v372_v13 = vld [vmem:[%s9315_s8 + $0x3b8] sm:$0xff]  ;;  %v8264_v16 = vpack.c.bf16 %v363_v10, %v355_v8  ;;  %v450_v8 = vld [vmem:[%s9315_s8 + $0x628] sm:$0xff] }
 0x2e7   : > { %7553 = vmatpush1.bf16.msra.mxu1 %v7552_v20  ;;  %6883 = vmatprep.subr.bf16.mxu0 %v6882_v21  ;;  %v289_v20 = vld [vmem:[%s9315_s8 + $0x120] sm:$0xff]  ;;  %v380_v14 = vld [vmem:[%s9315_s8 + $0x3f8] sm:$0xff] }
 0x2e8   : > { %7555 = vmatprep.subr.bf16.mxu1 %v7554_v25  ;;  %v297_v21 = vld [vmem:[%s9315_s8 + $0x160] sm:$0xff]  ;;  %v306_v25 = vld [vmem:[%s9315_s8 + $0x1a8] sm:$0xff]  ;;  %v452_v10 = vld [vmem:[%s9315_s8 + $0x638] sm:$0xff] }
 0x2e9   : > { %v7576_v30 = vpack.c.bf16 %v297_v21, %v289_v20  ;;  %v371_v20 = vld [vmem:[%s9315_s8 + $0x3b0] sm:$0xff]  ;;  %v8266_v21 = vpack.c.bf16 %v380_v14, %v372_v13 }
 0x2ea   : > { %6885 = vmatpush1.bf16.msra.mxu0 %v6884_v31  ;;  %v8248_v31 = vpack.c.bf16 %v299_v24, %v291_v22  ;;  %v379_v22 = vld [vmem:[%s9315_s8 + $0x3f0] sm:$0xff]  ;;  %v394_v24 = vld [vmem:[%s9315_s8 + $0x468] sm:$0xff] }
 0x2eb   : > { %7557 = vmatpush1.bf16.msra.mxu1 %v7556_v32  ;;  %6887 = vmatprep.subr.bf16.mxu0 %v6886_v33  ;;  %v7578_v32 = vpack.c.bf16 %v314_v26, %v306_v25  ;;  %v305_v33 = vld [vmem:[%s9315_s8 + $0x1a0] sm:$0xff]  ;;  %v388_v25 = vld [vmem:[%s9315_s8 + $0x438] sm:$0xff]  ;;  %v8268_v28 = vpack.c.bf16 %v379_v22, %v371_v20  ;;  %v466_v20 = vld [vmem:[%s9315_s8 + $0x6a8] sm:$0xff] }
 0x2ec   : > { %7559 = vmatprep.subr.bf16.mxu1 %v7558_v37  ;;  %v315_v37 = vld [vmem:[%s9315_s8 + $0x1f0] sm:$0xff]  ;;  %v7580_v42 = vpack.c.bf16 %v313_v34, %v305_v33  ;;  %v396_v26 = vld [vmem:[%s9315_s8 + $0x478] sm:$0xff] }
 0x2ed   : > { %v8270_v33 = vpack.c.bf16 %v396_v26, %v388_v25  ;;  %v395_v34 = vld [vmem:[%s9315_s8 + $0x470] sm:$0xff]  ;;  %v468_v22 = vld [vmem:[%s9315_s8 + $0x6b8] sm:$0xff] }
 0x2ee   : > { %6889 = vmatpush1.bf16.msra.mxu0 %v6888_v43  ;;  %v8252_v43 = vpack.c.bf16 %v315_v37, %v307_v35  ;;  %v402_v35 = vld [vmem:[%s9315_s8 + $0x4a8] sm:$0xff]  ;;  %v404_v37 = vld [vmem:[%s9315_s8 + $0x4b8] sm:$0xff] }
 0x2ef   : > { %7561 = vmatpush1.bf16.msra.mxu1 %v7560_v44  ;;  %6891 = vmatprep.subr.bf16.mxu0 %v6890_v45  ;;  %v7582_v44 = vpack.c.bf16 %v330_v39, %v322_v38  ;;  %v321_v45 = vld [vmem:[%s9315_s8 + $0x220] sm:$0xff]  ;;  %v412_v38 = vld [vmem:[%s9315_s8 + $0x4f8] sm:$0xff] }
 0x2f0   : > { %7563 = vmatprep.subr.bf16.mxu1 %v7562_v49  ;;  %v331_v49 = vld [vmem:[%s9315_s8 + $0x270] sm:$0xff]  ;;  %v7584_v54 = vpack.c.bf16 %v329_v46, %v321_v45  ;;  %v8274_v45 = vpack.c.bf16 %v412_v38, %v404_v37 }
 0x2f1   : > { %v411_v46 = vld [vmem:[%s9315_s8 + $0x4f0] sm:$0xff] }
 0x2f2   : > { %6893 = vmatpush1.bf16.msra.mxu0 %v6892_v55  ;;  %v8256_v55 = vpack.c.bf16 %v331_v49, %v323_v47  ;;  %v418_v47 = vld [vmem:[%s9315_s8 + $0x528] sm:$0xff]  ;;  %v420_v49 = vld [vmem:[%s9315_s8 + $0x538] sm:$0xff] }
 0x2f3   : > { %7565 = vmatpush1.bf16.msra.mxu1 %v7564_v57  ;;  %7567 = vmatprep.subr.bf16.mxu0 %v7566_v58  ;;  %v7586_v57 = vpack.c.bf16 %v346_v51, %v338_v50  ;;  %v337_v58 = vld [vmem:[%s9315_s8 + $0x2a0] sm:$0xff]  ;;  %v428_v50 = vld [vmem:[%s9315_s8 + $0x578] sm:$0xff] }
 0x2f4   : > { %8239 = vmatprep.subr.bf16.mxu1 %v8238_v62  ;;  %v347_v62 = vld [vmem:[%s9315_s8 + $0x2f0] sm:$0xff]  ;;  %v7588_v3 = vpack.c.bf16 %v345_v59, %v337_v58  ;;  %v8278_v58 = vpack.c.bf16 %v428_v50, %v420_v49 }
 0x2f5   : > { %3758 = vmatmul.mubr.f32.vlgmr.msra.gmra.mrb[0].mxu0 %v252_v4  ;;  %v427_v59 = vld [vmem:[%s9315_s8 + $0x570] sm:$0xff] }
 0x2f6   : > { %4539 = vmatmul.mubr.f32.vlgmr.msra.gmra.mrb[0].mxu1 %v252_v4  ;;  %7569 = vmatpush1.bf16.msra.mxu0 %v7568_v5  ;;  %v8260_v4 = vpack.c.bf16 %v347_v62, %v339_v60  ;;  %v7590_v5 = vpack.c.bf16 %v362_v0, %v354_v63  ;;  %v434_v60 = vld [vmem:[%s9315_s8 + $0x5a8] sm:$0xff]  ;;  %v436_v62 = vld [vmem:[%s9315_s8 + $0x5b8] sm:$0xff] }
 0x2f7   : > { %8241 = vmatpush1.bf16.msra.mxu1 %v8240_v6  ;;  %7571 = vmatprep.subr.bf16.mxu0 %v7570_v7  ;;  %v353_v6 = vld [vmem:[%s9315_s8 + $0x320] sm:$0xff]  ;;  %v444_v63 = vld [vmem:[%s9315_s8 + $0x5f8] sm:$0xff] }
 0x2f8   : > { %8243 = vmatprep.subr.bf16.mxu1 %v8242_v11  ;;  %4609 = vmatprep.mubr.f32.mxu0 %v9048_v27  ;;  %v361_v7 = vld [vmem:[%s9315_s8 + $0x360] sm:$0xff]  ;;  %v370_v11 = vld [vmem:[%s9315_s8 + $0x3a8] sm:$0xff] }
 0x2f9   : > { %5390 = vmatprep.mubr.f32.mxu1 %v9048_v27  ;;  %v7592_v15 = vpack.c.bf16 %v361_v7, %v353_v6  ;;  %v8282_v6 = vpack.c.bf16 %v444_v63, %v436_v62  ;;  %v443_v7 = vld [vmem:[%s9315_s8 + $0x5f0] sm:$0xff] }
 0x2fa   : > { %7573 = vmatpush1.bf16.msra.mxu0 %v7572_v17  ;;  %v7594_v17 = vpack.c.bf16 %v378_v12, %v370_v11  ;;  %v460_v11 = vld [vmem:[%s9315_s8 + $0x678] sm:$0xff] }
 0x2fb   : > { %8245 = vmatpush1.bf16.msra.mxu1 %v8244_v18  ;;  %7575 = vmatprep.subr.bf16.mxu0 %v7574_v19  ;;  %v369_v18 = vld [vmem:[%s9315_s8 + $0x3a0] sm:$0xff] }
 0x2fc   : > { %8247 = vmatprep.subr.bf16.mxu1 %v8246_v23  ;;  %v377_v19 = vld [vmem:[%s9315_s8 + $0x3e0] sm:$0xff]  ;;  %v386_v23 = vld [vmem:[%s9315_s8 + $0x428] sm:$0xff] }
 0x2fd   : > { %v7596_v27 = vpack.c.bf16 %v377_v19, %v369_v18  ;;  %v7598_v29 = vpack.c.bf16 %v394_v24, %v386_v23  ;;  %v8286_v18 = vpack.c.bf16 %v460_v11, %v452_v10  ;;  %v459_v19 = vld [vmem:[%s9315_s8 + $0x670] sm:$0xff]  ;;  %v476_v23 = vld [vmem:[%s9315_s8 + $0x6f8] sm:$0xff] }
 0x2fe   : > { %7577 = vmatpush1.bf16.msra.mxu0 %v7576_v30  ;;  %v385_v30 = vld [vmem:[%s9315_s8 + $0x420] sm:$0xff] }
 0x2ff   : > { %8249 = vmatpush1.bf16.msra.mxu1 %v8248_v31  ;;  %7579 = vmatprep.subr.bf16.mxu0 %v7578_v32  ;;  %v393_v31 = vld [vmem:[%s9315_s8 + $0x460] sm:$0xff]  ;;  %v387_v32 = vld [vmem:[%s9315_s8 + $0x430] sm:$0xff] }
 0x300   : > { %8251 = vmatprep.subr.bf16.mxu1 %v8250_v36  ;;  %v410_v36 = vld [vmem:[%s9315_s8 + $0x4e8] sm:$0xff]  ;;  %v7600_v39 = vpack.c.bf16 %v393_v31, %v385_v30  ;;  %v8272_v40 = vpack.c.bf16 %v395_v34, %v387_v32  ;;  %v8290_v30 = vpack.c.bf16 %v476_v23, %v468_v22  ;;  %v475_v31 = vld [vmem:[%s9315_s8 + $0x6f0] sm:$0xff]  ;;  %v484_v34 = vld [vmem:[%s9315_s8 + $0x738] sm:$0xff] }
 0x301   : > { %v7602_v41 = vpack.c.bf16 %v410_v36, %v402_v35  ;;  %v482_v32 = vld [vmem:[%s9315_s8 + $0x728] sm:$0xff]  ;;  %v492_v35 = vld [vmem:[%s9315_s8 + $0x778] sm:$0xff] }
 0x302   : > { %7581 = vmatpush1.bf16.msra.mxu0 %v7580_v42  ;;  %v401_v42 = vld [vmem:[%s9315_s8 + $0x4a0] sm:$0xff] }
 0x303   : > { %8253 = vmatpush1.bf16.msra.mxu1 %v8252_v43  ;;  %7583 = vmatprep.subr.bf16.mxu0 %v7582_v44  ;;  %v409_v43 = vld [vmem:[%s9315_s8 + $0x4e0] sm:$0xff]  ;;  %v403_v44 = vld [vmem:[%s9315_s8 + $0x4b0] sm:$0xff] }
 0x304   : > { %8255 = vmatprep.subr.bf16.mxu1 %v8254_v48  ;;  %v426_v48 = vld [vmem:[%s9315_s8 + $0x568] sm:$0xff]  ;;  %v7604_v51 = vpack.c.bf16 %v409_v43, %v401_v42  ;;  %v8276_v52 = vpack.c.bf16 %v411_v46, %v403_v44  ;;  %v8294_v42 = vpack.c.bf16 %v492_v35, %v484_v34  ;;  %v491_v43 = vld [vmem:[%s9315_s8 + $0x770] sm:$0xff]  ;;  %v500_v46 = vld [vmem:[%s9315_s8 + $0x7b8] sm:$0xff] }
 0x305   : > { %v7606_v53 = vpack.c.bf16 %v426_v48, %v418_v47  ;;  %v498_v44 = vld [vmem:[%s9315_s8 + $0x7a8] sm:$0xff]  ;;  %v508_v47 = vld [vmem:[%s9315_s8 + $0x7f8] sm:$0xff] }
 0x306   : > { %7585 = vmatpush1.bf16.msra.mxu0 %v7584_v54  ;;  %v417_v54 = vld [vmem:[%s9315_s8 + $0x520] sm:$0xff]  ;;  %v572_v34 = vld [vmem:[%s9315_s8 + $0x9f8] sm:$0xff] }
 0x307   : > { %8257 = vmatpush1.bf16.msra.mxu1 %v8256_v55  ;;  %7587 = vmatprep.subr.bf16.mxu0 %v7586_v57  ;;  %v425_v55 = vld [vmem:[%s9315_s8 + $0x560] sm:$0xff]  ;;  %v419_v57 = vld [vmem:[%s9315_s8 + $0x530] sm:$0xff] }
 0x308   : > { %8259 = vmatprep.subr.bf16.mxu1 %v8258_v61  ;;  %v442_v61 = vld [vmem:[%s9315_s8 + $0x5e8] sm:$0xff]  ;;  %v7608_v0 = vpack.c.bf16 %v425_v55, %v417_v54  ;;  %v8280_v1 = vpack.c.bf16 %v427_v59, %v419_v57  ;;  %v8298_v54 = vpack.c.bf16 %v508_v47, %v500_v46  ;;  %v507_v55 = vld [vmem:[%s9315_s8 + $0x7f0] sm:$0xff]  ;;  %v516_v59 = vld [vmem:[%s9315_s8 + $0x838] sm:$0xff] }
 0x309   : > { %v7610_v2 = vpack.c.bf16 %v442_v61, %v434_v60  ;;  %v514_v57 = vld [vmem:[%s9315_s8 + $0x828] sm:$0xff]  ;;  %v524_v60 = vld [vmem:[%s9315_s8 + $0x878] sm:$0xff] }
 0x30a   : > { %7589 = vmatpush1.bf16.msra.mxu0 %v7588_v3  ;;  %v433_v3 = vld [vmem:[%s9315_s8 + $0x5a0] sm:$0xff]  ;;  %v588_v46 = vld [vmem:[%s9315_s8 + $0xa78] sm:$0xff] }
 0x30b   : > { %8261 = vmatpush1.bf16.msra.mxu1 %v8260_v4  ;;  %7591 = vmatprep.subr.bf16.mxu0 %v7590_v5  ;;  %v441_v4 = vld [vmem:[%s9315_s8 + $0x5e0] sm:$0xff]  ;;  %v435_v5 = vld [vmem:[%s9315_s8 + $0x5b0] sm:$0xff] }
 0x30c   : > { %8263 = vmatprep.subr.bf16.mxu1 %v8262_v9  ;;  %v458_v9 = vld [vmem:[%s9315_s8 + $0x668] sm:$0xff]  ;;  %v7612_v12 = vpack.c.bf16 %v441_v4, %v433_v3  ;;  %v8284_v13 = vpack.c.bf16 %v443_v7, %v435_v5  ;;  %v8302_v3 = vpack.c.bf16 %v524_v60, %v516_v59  ;;  %v523_v4 = vld [vmem:[%s9315_s8 + $0x870] sm:$0xff]  ;;  %v532_v7 = vld [vmem:[%s9315_s8 + $0x8b8] sm:$0xff] }
 0x30d   : > { %v7614_v14 = vpack.c.bf16 %v458_v9, %v450_v8  ;;  %v530_v5 = vld [vmem:[%s9315_s8 + $0x8a8] sm:$0xff]  ;;  %v540_v8 = vld [vmem:[%s9315_s8 + $0x8f8] sm:$0xff] }
 0x30e   : > { %7593 = vmatpush1.bf16.msra.mxu0 %v7592_v15  ;;  %v449_v15 = vld [vmem:[%s9315_s8 + $0x620] sm:$0xff]  ;;  %v604_v59 = vld [vmem:[%s9315_s8 + $0xaf8] sm:$0xff] }
 0x30f   : > { %8265 = vmatpush1.bf16.msra.mxu1 %v8264_v16  ;;  %7595 = vmatprep.subr.bf16.mxu0 %v7594_v17  ;;  %v457_v16 = vld [vmem:[%s9315_s8 + $0x660] sm:$0xff]  ;;  %v451_v17 = vld [vmem:[%s9315_s8 + $0x630] sm:$0xff] }
 0x310   : > { %8267 = vmatprep.subr.bf16.mxu1 %v8266_v21  ;;  %v474_v21 = vld [vmem:[%s9315_s8 + $0x6e8] sm:$0xff]  ;;  %v7616_v24 = vpack.c.bf16 %v457_v16, %v449_v15  ;;  %v8288_v25 = vpack.c.bf16 %v459_v19, %v451_v17  ;;  %v8306_v15 = vpack.c.bf16 %v540_v8, %v532_v7  ;;  %v539_v16 = vld [vmem:[%s9315_s8 + $0x8f0] sm:$0xff]  ;;  %v9049_v19 = vld [vmem:[%s12194_s0] sm:$0xff] }
 0x311   : > { %v7618_v26 = vpack.c.bf16 %v474_v21, %v466_v20  ;;  %v546_v17 = vld [vmem:[%s9315_s8 + $0x928] sm:$0xff]  ;;  %v548_v20 = vld [vmem:[%s9315_s8 + $0x938] sm:$0xff] }
 0x312   : > { %7597 = vmatpush1.bf16.msra.mxu0 %v7596_v27  ;;  %v465_v27 = vld [vmem:[%s9315_s8 + $0x6a0] sm:$0xff]  ;;  %v556_v21 = vld [vmem:[%s9315_s8 + $0x978] sm:$0xff] }
 0x313   : > { %8269 = vmatpush1.bf16.msra.mxu1 %v8268_v28  ;;  %7599 = vmatprep.subr.bf16.mxu0 %v7598_v29  ;;  %v473_v28 = vld [vmem:[%s9315_s8 + $0x6e0] sm:$0xff]  ;;  %v467_v29 = vld [vmem:[%s9315_s8 + $0x6b0] sm:$0xff]  ;;  %v620_v7 = vld [vmem:[%s9315_s8 + $0xb78] sm:$0xff] }
 0x314   : > { %8271 = vmatprep.subr.bf16.mxu1 %v8270_v33  ;;  %v490_v33 = vld [vmem:[%s9315_s8 + $0x768] sm:$0xff]  ;;  %v7620_v36 = vpack.c.bf16 %v473_v28, %v465_v27  ;;  %v8292_v37 = vpack.c.bf16 %v475_v31, %v467_v29  ;;  %v547_v27 = vld [vmem:[%s9315_s8 + $0x930] sm:$0xff]  ;;  %v8310_v28 = vpack.c.bf16 %v556_v21, %v548_v20 }
 0x315   : > { %v7622_v38 = vpack.c.bf16 %v490_v33, %v482_v32  ;;  %v555_v29 = vld [vmem:[%s9315_s8 + $0x970] sm:$0xff]  ;;  %v570_v31 = vld [vmem:[%s9315_s8 + $0x9e8] sm:$0xff]  ;;  %v9050_v32 = vld [vmem:[%s12194_s0 + $0x18] sm:$0xff] }
 0x316   : > { %7601 = vmatpush1.bf16.msra.mxu0 %v7600_v39  ;;  %v481_v39 = vld [vmem:[%s9315_s8 + $0x720] sm:$0xff]  ;;  %v564_v33 = vld [vmem:[%s9315_s8 + $0x9b8] sm:$0xff] }
 0x317   : > { %8273 = vmatpush1.bf16.msra.mxu1 %v8272_v40  ;;  %7603 = vmatprep.subr.bf16.mxu0 %v7602_v41  ;;  %v489_v40 = vld [vmem:[%s9315_s8 + $0x760] sm:$0xff]  ;;  %v483_v41 = vld [vmem:[%s9315_s8 + $0x730] sm:$0xff] }
 0x318   : > { %8275 = vmatprep.subr.bf16.mxu1 %v8274_v45  ;;  %v506_v45 = vld [vmem:[%s9315_s8 + $0x7e8] sm:$0xff]  ;;  %v7624_v48 = vpack.c.bf16 %v489_v40, %v481_v39  ;;  %v8296_v49 = vpack.c.bf16 %v491_v43, %v483_v41  ;;  %v569_v39 = vld [vmem:[%s9315_s8 + $0x9e0] sm:$0xff]  ;;  %v563_v40 = vld [vmem:[%s9315_s8 + $0x9b0] sm:$0xff]  ;;  %v8314_v41 = vpack.c.bf16 %v572_v34, %v564_v33 }
 0x319   : > { %v7626_v50 = vpack.c.bf16 %v506_v45, %v498_v44  ;;  %v578_v43 = vld [vmem:[%s9315_s8 + $0xa28] sm:$0xff]  ;;  %v580_v45 = vld [vmem:[%s9315_s8 + $0xa38] sm:$0xff] }
 0x31a   : > { %7605 = vmatpush1.bf16.msra.mxu0 %v7604_v51  ;;  %v497_v51 = vld [vmem:[%s9315_s8 + $0x7a0] sm:$0xff]  ;;  %v586_v44 = vld [vmem:[%s9315_s8 + $0xa68] sm:$0xff] }
 0x31b   : > { %8277 = vmatpush1.bf16.msra.mxu1 %v8276_v52  ;;  %7607 = vmatprep.subr.bf16.mxu0 %v7606_v53  ;;  %v505_v52 = vld [vmem:[%s9315_s8 + $0x7e0] sm:$0xff]  ;;  %v499_v53 = vld [vmem:[%s9315_s8 + $0x7b0] sm:$0xff] }
 0x31c   : > { %8279 = vmatprep.subr.bf16.mxu1 %v8278_v58  ;;  %v522_v58 = vld [vmem:[%s9315_s8 + $0x868] sm:$0xff]  ;;  %v7628_v61 = vpack.c.bf16 %v505_v52, %v497_v51  ;;  %v8300_v62 = vpack.c.bf16 %v507_v55, %v499_v53  ;;  %v585_v51 = vld [vmem:[%s9315_s8 + $0xa60] sm:$0xff]  ;;  %v579_v52 = vld [vmem:[%s9315_s8 + $0xa30] sm:$0xff]  ;;  %v8318_v53 = vpack.c.bf16 %v588_v46, %v580_v45 }
 0x31d   : > { %v7630_v63 = vpack.c.bf16 %v522_v58, %v514_v57  ;;  %v594_v55 = vld [vmem:[%s9315_s8 + $0xaa8] sm:$0xff]  ;;  %v596_v58 = vld [vmem:[%s9315_s8 + $0xab8] sm:$0xff] }
 0x31e   : > { %7609 = vmatpush1.bf16.msra.mxu0 %v7608_v0  ;;  %v513_v0 = vld [vmem:[%s9315_s8 + $0x820] sm:$0xff]  ;;  %v602_v57 = vld [vmem:[%s9315_s8 + $0xae8] sm:$0xff] }
 0x31f   : > { %8281 = vmatpush1.bf16.msra.mxu1 %v8280_v1  ;;  %7611 = vmatprep.subr.bf16.mxu0 %v7610_v2  ;;  %v521_v1 = vld [vmem:[%s9315_s8 + $0x860] sm:$0xff]  ;;  %v515_v2 = vld [vmem:[%s9315_s8 + $0x830] sm:$0xff] }
 0x320   : > { %8283 = vmatprep.subr.bf16.mxu1 %v8282_v6  ;;  %v538_v6 = vld [vmem:[%s9315_s8 + $0x8e8] sm:$0xff]  ;;  %v7632_v9 = vpack.c.bf16 %v521_v1, %v513_v0  ;;  %v8304_v10 = vpack.c.bf16 %v523_v4, %v515_v2  ;;  %v601_v0 = vld [vmem:[%s9315_s8 + $0xae0] sm:$0xff]  ;;  %v595_v1 = vld [vmem:[%s9315_s8 + $0xab0] sm:$0xff]  ;;  %v8322_v2 = vpack.c.bf16 %v604_v59, %v596_v58 }
 0x321   : > { %v7634_v11 = vpack.c.bf16 %v538_v6, %v530_v5  ;;  %v610_v4 = vld [vmem:[%s9315_s8 + $0xb28] sm:$0xff]  ;;  %v612_v6 = vld [vmem:[%s9315_s8 + $0xb38] sm:$0xff] }
 0x322   : > { %7613 = vmatpush1.bf16.msra.mxu0 %v7612_v12  ;;  %v529_v12 = vld [vmem:[%s9315_s8 + $0x8a0] sm:$0xff]  ;;  %v618_v5 = vld [vmem:[%s9315_s8 + $0xb68] sm:$0xff] }
 0x323   : > { %8285 = vmatpush1.bf16.msra.mxu1 %v8284_v13  ;;  %7615 = vmatprep.subr.bf16.mxu0 %v7614_v14  ;;  %v537_v13 = vld [vmem:[%s9315_s8 + $0x8e0] sm:$0xff]  ;;  %v531_v14 = vld [vmem:[%s9315_s8 + $0x8b0] sm:$0xff] }
 0x324   : > { %8287 = vmatprep.subr.bf16.mxu1 %v8286_v18  ;;  %v554_v18 = vld [vmem:[%s9315_s8 + $0x968] sm:$0xff]  ;;  %v7636_v22 = vpack.c.bf16 %v537_v13, %v529_v12  ;;  %v8308_v23 = vpack.c.bf16 %v539_v16, %v531_v14  ;;  %v617_v12 = vld [vmem:[%s9315_s8 + $0xb60] sm:$0xff]  ;;  %v611_v13 = vld [vmem:[%s9315_s8 + $0xb30] sm:$0xff]  ;;  %v8326_v14 = vpack.c.bf16 %v620_v7, %v612_v6 }
 0x325   : > { %v626_v16 = vld [vmem:[%s9315_s8 + $0xba8] sm:$0xff] }
 0x326   : > { %7617 = vmatpush1.bf16.msra.mxu0 %v7616_v24  ;;  %v7638_v24 = vpack.c.bf16 %v554_v18, %v546_v17  ;;  %v634_v17 = vld [vmem:[%s9315_s8 + $0xbe8] sm:$0xff]  ;;  %v628_v18 = vld [vmem:[%s9315_s8 + $0xbb8] sm:$0xff] }
 0x327   : > { %8289 = vmatpush1.bf16.msra.mxu1 %v8288_v25  ;;  %7619 = vmatprep.subr.bf16.mxu0 %v7618_v26  ;;  %v545_v25 = vld [vmem:[%s9315_s8 + $0x920] sm:$0xff] }
 0x328   : > { %8291 = vmatprep.subr.bf16.mxu1 %v8290_v30  ;;  %v553_v26 = vld [vmem:[%s9315_s8 + $0x960] sm:$0xff]  ;;  %v562_v30 = vld [vmem:[%s9315_s8 + $0x9a8] sm:$0xff] }
 0x329   : > { %v7640_v35 = vpack.c.bf16 %v553_v26, %v545_v25  ;;  %v627_v25 = vld [vmem:[%s9315_s8 + $0xbb0] sm:$0xff] }
 0x32a   : > { %7621 = vmatpush1.bf16.msra.mxu0 %v7620_v36  ;;  %v8312_v36 = vpack.c.bf16 %v555_v29, %v547_v27  ;;  %v635_v27 = vld [vmem:[%s9315_s8 + $0xbf0] sm:$0xff]  ;;  %v650_v29 = vld [vmem:[%s9315_s8 + $0xc68] sm:$0xff] }
 0x32b   : > { %8293 = vmatpush1.bf16.msra.mxu1 %v8292_v37  ;;  %7623 = vmatprep.subr.bf16.mxu0 %v7622_v38  ;;  %v7642_v37 = vpack.c.bf16 %v570_v31, %v562_v30  ;;  %v561_v38 = vld [vmem:[%s9315_s8 + $0x9a0] sm:$0xff]  ;;  %v644_v30 = vld [vmem:[%s9315_s8 + $0xc38] sm:$0xff]  ;;  %v8332_v33 = vpack.c.bf16 %v635_v27, %v627_v25  ;;  %v722_v25 = vld [vmem:[%s9315_s8 + $0xea8] sm:$0xff] }
 0x32c   : > { %8295 = vmatprep.subr.bf16.mxu1 %v8294_v42  ;;  %v571_v42 = vld [vmem:[%s9315_s8 + $0x9f0] sm:$0xff]  ;;  %v7644_v47 = vpack.c.bf16 %v569_v39, %v561_v38  ;;  %v652_v31 = vld [vmem:[%s9315_s8 + $0xc78] sm:$0xff] }
 0x32d   : > { %v8334_v38 = vpack.c.bf16 %v652_v31, %v644_v30  ;;  %v651_v39 = vld [vmem:[%s9315_s8 + $0xc70] sm:$0xff]  ;;  %v724_v27 = vld [vmem:[%s9315_s8 + $0xeb8] sm:$0xff] }
 0x32e   : > { %7625 = vmatpush1.bf16.msra.mxu0 %v7624_v48  ;;  %v8316_v48 = vpack.c.bf16 %v571_v42, %v563_v40  ;;  %v658_v40 = vld [vmem:[%s9315_s8 + $0xca8] sm:$0xff]  ;;  %v660_v42 = vld [vmem:[%s9315_s8 + $0xcb8] sm:$0xff] }
 0x32f   : > { %8297 = vmatpush1.bf16.msra.mxu1 %v8296_v49  ;;  %7627 = vmatprep.subr.bf16.mxu0 %v7626_v50  ;;  %v7646_v49 = vpack.c.bf16 %v586_v44, %v578_v43  ;;  %v577_v50 = vld [vmem:[%s9315_s8 + $0xa20] sm:$0xff]  ;;  %v668_v43 = vld [vmem:[%s9315_s8 + $0xcf8] sm:$0xff] }
 0x330   : > { %8299 = vmatprep.subr.bf16.mxu1 %v8298_v54  ;;  %v587_v54 = vld [vmem:[%s9315_s8 + $0xa70] sm:$0xff]  ;;  %v7648_v60 = vpack.c.bf16 %v585_v51, %v577_v50  ;;  %v8338_v50 = vpack.c.bf16 %v668_v43, %v660_v42 }
 0x331   : > { %v667_v51 = vld [vmem:[%s9315_s8 + $0xcf0] sm:$0xff] }
 0x332   : > { %7629 = vmatpush1.bf16.msra.mxu0 %v7628_v61  ;;  %v8320_v61 = vpack.c.bf16 %v587_v54, %v579_v52  ;;  %v674_v52 = vld [vmem:[%s9315_s8 + $0xd28] sm:$0xff]  ;;  %v676_v54 = vld [vmem:[%s9315_s8 + $0xd38] sm:$0xff] }
 0x333   : > { %8301 = vmatpush1.bf16.msra.mxu1 %v8300_v62  ;;  %7631 = vmatprep.subr.bf16.mxu0 %v7630_v63  ;;  %v7650_v62 = vpack.c.bf16 %v602_v57, %v594_v55  ;;  %v593_v63 = vld [vmem:[%s9315_s8 + $0xaa0] sm:$0xff]  ;;  %v684_v55 = vld [vmem:[%s9315_s8 + $0xd78] sm:$0xff] }
 0x334   : > { %8303 = vmatprep.subr.bf16.mxu1 %v8302_v3  ;;  %v603_v3 = vld [vmem:[%s9315_s8 + $0xaf0] sm:$0xff]  ;;  %v7652_v8 = vpack.c.bf16 %v601_v0, %v593_v63  ;;  %v8342_v63 = vpack.c.bf16 %v684_v55, %v676_v54 }
 0x335   : > { %4610 = vmatmul.mubr.f32.vlgmr.msra.gmra.mrb[2].mxu0 %v9049_v19  ;;  %v683_v0 = vld [vmem:[%s9315_s8 + $0xd70] sm:$0xff] }
 0x336   : > { %7633 = vmatpush1.bf16.msra.mxu0 %v7632_v9  ;;  %5391 = vmatmul.mubr.f32.vlgmr.msra.gmra.mrb[2].mxu1 %v9049_v19  ;;  %v8324_v9 = vpack.c.bf16 %v603_v3, %v595_v1  ;;  %v636_v19 = vld [vmem:[%s9315_s8 + $0xbf8] sm:$0xff]  ;;  %v690_v1 = vld [vmem:[%s9315_s8 + $0xda8] sm:$0xff] }
 0x337   : > { %8305 = vmatpush1.bf16.msra.mxu1 %v8304_v10  ;;  %7635 = vmatprep.subr.bf16.mxu0 %v7634_v11  ;;  %v7654_v10 = vpack.c.bf16 %v618_v5, %v610_v4  ;;  %v609_v11 = vld [vmem:[%s9315_s8 + $0xb20] sm:$0xff]  ;;  %v8330_v26 = vpack.c.bf16 %v636_v19, %v628_v18  ;;  %v692_v3 = vld [vmem:[%s9315_s8 + $0xdb8] sm:$0xff] }
 0x338   : > { %8307 = vmatprep.subr.bf16.mxu1 %v8306_v15  ;;  %4680 = vmatprep.mubr.f32.mxu0 %v9050_v32  ;;  %v619_v15 = vld [vmem:[%s9315_s8 + $0xb70] sm:$0xff]  ;;  %v7656_v20 = vpack.c.bf16 %v617_v12, %v609_v11  ;;  %v700_v4 = vld [vmem:[%s9315_s8 + $0xdf8] sm:$0xff] }
 0x339   : > { %5461 = vmatprep.mubr.f32.mxu1 %v9050_v32  ;;  %v8328_v21 = vpack.c.bf16 %v619_v15, %v611_v13  ;;  %v8346_v11 = vpack.c.bf16 %v700_v4, %v692_v3  ;;  %v699_v12 = vld [vmem:[%s9315_s8 + $0xdf0] sm:$0xff]  ;;  %v706_v13 = vld [vmem:[%s9315_s8 + $0xe28] sm:$0xff]  ;;  %v708_v15 = vld [vmem:[%s9315_s8 + $0xe38] sm:$0xff] }
 0x33a   : > { %7637 = vmatpush1.bf16.msra.mxu0 %v7636_v22  ;;  %v7658_v22 = vpack.c.bf16 %v634_v17, %v626_v16  ;;  %v716_v16 = vld [vmem:[%s9315_s8 + $0xe78] sm:$0xff] }
 0x33b   : > { %8309 = vmatpush1.bf16.msra.mxu1 %v8308_v23  ;;  %7639 = vmatprep.subr.bf16.mxu0 %v7638_v24  ;;  %v625_v23 = vld [vmem:[%s9315_s8 + $0xba0] sm:$0xff] }
 0x33c   : > { %8311 = vmatprep.subr.bf16.mxu1 %v8310_v28  ;;  %v633_v24 = vld [vmem:[%s9315_s8 + $0xbe0] sm:$0xff]  ;;  %v642_v28 = vld [vmem:[%s9315_s8 + $0xc28] sm:$0xff] }
 0x33d   : > { %v7660_v32 = vpack.c.bf16 %v633_v24, %v625_v23  ;;  %v7662_v34 = vpack.c.bf16 %v650_v29, %v642_v28  ;;  %v8350_v23 = vpack.c.bf16 %v716_v16, %v708_v15  ;;  %v715_v24 = vld [vmem:[%s9315_s8 + $0xe70] sm:$0xff]  ;;  %v732_v28 = vld [vmem:[%s9315_s8 + $0xef8] sm:$0xff] }
 0x33e   : > { %7641 = vmatpush1.bf16.msra.mxu0 %v7640_v35  ;;  %v641_v35 = vld [vmem:[%s9315_s8 + $0xc20] sm:$0xff] }
 0x33f   : > { %8313 = vmatpush1.bf16.msra.mxu1 %v8312_v36  ;;  %7643 = vmatprep.subr.bf16.mxu0 %v7642_v37  ;;  %v649_v36 = vld [vmem:[%s9315_s8 + $0xc60] sm:$0xff]  ;;  %v643_v37 = vld [vmem:[%s9315_s8 + $0xc30] sm:$0xff] }
 0x340   : > { %8315 = vmatprep.subr.bf16.mxu1 %v8314_v41  ;;  %v666_v41 = vld [vmem:[%s9315_s8 + $0xce8] sm:$0xff]  ;;  %v7664_v44 = vpack.c.bf16 %v649_v36, %v641_v35  ;;  %v8336_v45 = vpack.c.bf16 %v651_v39, %v643_v37  ;;  %v8354_v35 = vpack.c.bf16 %v732_v28, %v724_v27  ;;  %v731_v36 = vld [vmem:[%s9315_s8 + $0xef0] sm:$0xff]  ;;  %v740_v39 = vld [vmem:[%s9315_s8 + $0xf38] sm:$0xff] }
 0x341   : > { %v7666_v46 = vpack.c.bf16 %v666_v41, %v658_v40  ;;  %v738_v37 = vld [vmem:[%s9315_s8 + $0xf28] sm:$0xff]  ;;  %v748_v40 = vld [vmem:[%s9315_s8 + $0xf78] sm:$0xff] }
 0x342   : > { %7645 = vmatpush1.bf16.msra.mxu0 %v7644_v47  ;;  %v657_v47 = vld [vmem:[%s9315_s8 + $0xca0] sm:$0xff] }
 0x343   : > { %8317 = vmatpush1.bf16.msra.mxu1 %v8316_v48  ;;  %7647 = vmatprep.subr.bf16.mxu0 %v7646_v49  ;;  %v665_v48 = vld [vmem:[%s9315_s8 + $0xce0] sm:$0xff]  ;;  %v659_v49 = vld [vmem:[%s9315_s8 + $0xcb0] sm:$0xff] }
 0x344   : > { %8319 = vmatprep.subr.bf16.mxu1 %v8318_v53  ;;  %v682_v53 = vld [vmem:[%s9315_s8 + $0xd68] sm:$0xff]  ;;  %v7668_v57 = vpack.c.bf16 %v665_v48, %v657_v47  ;;  %v8340_v58 = vpack.c.bf16 %v667_v51, %v659_v49  ;;  %v8358_v47 = vpack.c.bf16 %v748_v40, %v740_v39  ;;  %v747_v48 = vld [vmem:[%s9315_s8 + $0xf70] sm:$0xff]  ;;  %v756_v51 = vld [vmem:[%s9315_s8 + $0xfb8] sm:$0xff] }
 0x345   : > { %v7670_v59 = vpack.c.bf16 %v682_v53, %v674_v52  ;;  %v754_v49 = vld [vmem:[%s9315_s8 + $0xfa8] sm:$0xff]  ;;  %v764_v52 = vld [vmem:[%s9315_s8 + $0xff8] sm:$0xff] }
 0x346   : > { %7649 = vmatpush1.bf16.msra.mxu0 %v7648_v60  ;;  %v673_v60 = vld [vmem:[%s9315_s8 + $0xd20] sm:$0xff]  ;;  %v828_v39 = vld [vmem:[%s9315_s8 + $0x11f8] sm:$0xff] }
 0x347   : > { %8321 = vmatpush1.bf16.msra.mxu1 %v8320_v61  ;;  %7651 = vmatprep.subr.bf16.mxu0 %v7650_v62  ;;  %v681_v61 = vld [vmem:[%s9315_s8 + $0xd60] sm:$0xff]  ;;  %v675_v62 = vld [vmem:[%s9315_s8 + $0xd30] sm:$0xff] }
 0x348   : > { %8323 = vmatprep.subr.bf16.mxu1 %v8322_v2  ;;  %v698_v2 = vld [vmem:[%s9315_s8 + $0xde8] sm:$0xff]  ;;  %v7672_v5 = vpack.c.bf16 %v681_v61, %v673_v60  ;;  %v8344_v6 = vpack.c.bf16 %v683_v0, %v675_v62  ;;  %v8362_v60 = vpack.c.bf16 %v764_v52, %v756_v51  ;;  %v763_v61 = vld [vmem:[%s9315_s8 + $0xff0] sm:$0xff]  ;;  %v772_v0 = vld [vmem:[%s9315_s8 + $0x1038] sm:$0xff] }
 0x349   : > { %v7674_v7 = vpack.c.bf16 %v698_v2, %v690_v1  ;;  %v770_v62 = vld [vmem:[%s9315_s8 + $0x1028] sm:$0xff]  ;;  %v780_v1 = vld [vmem:[%s9315_s8 + $0x1078] sm:$0xff] }
 0x34a   : > { %7653 = vmatpush1.bf16.msra.mxu0 %v7652_v8  ;;  %v689_v8 = vld [vmem:[%s9315_s8 + $0xda0] sm:$0xff]  ;;  %v844_v51 = vld [vmem:[%s9315_s8 + $0x1278] sm:$0xff] }
 0x34b   : > { %8325 = vmatpush1.bf16.msra.mxu1 %v8324_v9  ;;  %7655 = vmatprep.subr.bf16.mxu0 %v7654_v10  ;;  %v697_v9 = vld [vmem:[%s9315_s8 + $0xde0] sm:$0xff]  ;;  %v691_v10 = vld [vmem:[%s9315_s8 + $0xdb0] sm:$0xff] }
 0x34c   : > { %8327 = vmatprep.subr.bf16.mxu1 %v8326_v14  ;;  %v714_v14 = vld [vmem:[%s9315_s8 + $0xe68] sm:$0xff]  ;;  %v7676_v17 = vpack.c.bf16 %v697_v9, %v689_v8  ;;  %v8348_v18 = vpack.c.bf16 %v699_v12, %v691_v10  ;;  %v8366_v8 = vpack.c.bf16 %v780_v1, %v772_v0  ;;  %v779_v9 = vld [vmem:[%s9315_s8 + $0x1070] sm:$0xff]  ;;  %v788_v12 = vld [vmem:[%s9315_s8 + $0x10b8] sm:$0xff] }
 0x34d   : > { %v7678_v19 = vpack.c.bf16 %v714_v14, %v706_v13  ;;  %v786_v10 = vld [vmem:[%s9315_s8 + $0x10a8] sm:$0xff]  ;;  %v796_v13 = vld [vmem:[%s9315_s8 + $0x10f8] sm:$0xff] }
 0x34e   : > { %7657 = vmatpush1.bf16.msra.mxu0 %v7656_v20  ;;  %v705_v20 = vld [vmem:[%s9315_s8 + $0xe20] sm:$0xff]  ;;  %v860_v0 = vld [vmem:[%s9315_s8 + $0x12f8] sm:$0xff] }
 0x34f   : > { %8329 = vmatpush1.bf16.msra.mxu1 %v8328_v21  ;;  %7659 = vmatprep.subr.bf16.mxu0 %v7658_v22  ;;  %v713_v21 = vld [vmem:[%s9315_s8 + $0xe60] sm:$0xff]  ;;  %v707_v22 = vld [vmem:[%s9315_s8 + $0xe30] sm:$0xff] }
 0x350   : > { %8331 = vmatprep.subr.bf16.mxu1 %v8330_v26  ;;  %v730_v26 = vld [vmem:[%s9315_s8 + $0xee8] sm:$0xff]  ;;  %v7680_v29 = vpack.c.bf16 %v713_v21, %v705_v20  ;;  %v8352_v30 = vpack.c.bf16 %v715_v24, %v707_v22  ;;  %v8370_v20 = vpack.c.bf16 %v796_v13, %v788_v12  ;;  %v795_v21 = vld [vmem:[%s9315_s8 + $0x10f0] sm:$0xff]  ;;  %v876_v12 = vld [vmem:[%s9315_s8 + $0x1378] sm:$0xff] }
 0x351   : > { %v7682_v31 = vpack.c.bf16 %v730_v26, %v722_v25  ;;  %v802_v22 = vld [vmem:[%s9315_s8 + $0x1128] sm:$0xff]  ;;  %v9051_v24 = vld [vmem:[%s12194_s0 + $0x10] sm:$0xff]  ;;  %v804_v25 = vld [vmem:[%s9315_s8 + $0x1138] sm:$0xff] }
 0x352   : > { %7661 = vmatpush1.bf16.msra.mxu0 %v7660_v32  ;;  %v721_v32 = vld [vmem:[%s9315_s8 + $0xea0] sm:$0xff]  ;;  %v812_v26 = vld [vmem:[%s9315_s8 + $0x1178] sm:$0xff] }
 0x353   : > { %8333 = vmatpush1.bf16.msra.mxu1 %v8332_v33  ;;  %7663 = vmatprep.subr.bf16.mxu0 %v7662_v34  ;;  %v729_v33 = vld [vmem:[%s9315_s8 + $0xee0] sm:$0xff]  ;;  %v723_v34 = vld [vmem:[%s9315_s8 + $0xeb0] sm:$0xff] }
 0x354   : > { %8335 = vmatprep.subr.bf16.mxu1 %v8334_v38  ;;  %v746_v38 = vld [vmem:[%s9315_s8 + $0xf68] sm:$0xff]  ;;  %v7684_v41 = vpack.c.bf16 %v729_v33, %v721_v32  ;;  %v8356_v42 = vpack.c.bf16 %v731_v36, %v723_v34  ;;  %v803_v32 = vld [vmem:[%s9315_s8 + $0x1130] sm:$0xff]  ;;  %v8374_v33 = vpack.c.bf16 %v812_v26, %v804_v25 }
 0x355   : > { %v7686_v43 = vpack.c.bf16 %v746_v38, %v738_v37  ;;  %v811_v34 = vld [vmem:[%s9315_s8 + $0x1170] sm:$0xff]  ;;  %v826_v36 = vld [vmem:[%s9315_s8 + $0x11e8] sm:$0xff]  ;;  %v820_v38 = vld [vmem:[%s9315_s8 + $0x11b8] sm:$0xff] }
 0x356   : > { %7665 = vmatpush1.bf16.msra.mxu0 %v7664_v44  ;;  %v737_v44 = vld [vmem:[%s9315_s8 + $0xf20] sm:$0xff]  ;;  %v9052_v37 = vld [vmem:[%s12194_s0 + $0x28] sm:$0xff] }
 0x357   : > { %8337 = vmatpush1.bf16.msra.mxu1 %v8336_v45  ;;  %7667 = vmatprep.subr.bf16.mxu0 %v7666_v46  ;;  %v745_v45 = vld [vmem:[%s9315_s8 + $0xf60] sm:$0xff]  ;;  %v739_v46 = vld [vmem:[%s9315_s8 + $0xf30] sm:$0xff] }
 0x358   : > { %8339 = vmatprep.subr.bf16.mxu1 %v8338_v50  ;;  %v762_v50 = vld [vmem:[%s9315_s8 + $0xfe8] sm:$0xff]  ;;  %v7688_v53 = vpack.c.bf16 %v745_v45, %v737_v44  ;;  %v8360_v54 = vpack.c.bf16 %v747_v48, %v739_v46  ;;  %v825_v44 = vld [vmem:[%s9315_s8 + $0x11e0] sm:$0xff]  ;;  %v819_v45 = vld [vmem:[%s9315_s8 + $0x11b0] sm:$0xff]  ;;  %v8378_v46 = vpack.c.bf16 %v828_v39, %v820_v38 }
 0x359   : > { %v7690_v55 = vpack.c.bf16 %v762_v50, %v754_v49  ;;  %v834_v48 = vld [vmem:[%s9315_s8 + $0x1228] sm:$0xff]  ;;  %v836_v50 = vld [vmem:[%s9315_s8 + $0x1238] sm:$0xff] }
 0x35a   : > { %7669 = vmatpush1.bf16.msra.mxu0 %v7668_v57  ;;  %v753_v57 = vld [vmem:[%s9315_s8 + $0xfa0] sm:$0xff]  ;;  %v842_v49 = vld [vmem:[%s9315_s8 + $0x1268] sm:$0xff] }
 0x35b   : > { %8341 = vmatpush1.bf16.msra.mxu1 %v8340_v58  ;;  %7671 = vmatprep.subr.bf16.mxu0 %v7670_v59  ;;  %v761_v58 = vld [vmem:[%s9315_s8 + $0xfe0] sm:$0xff]  ;;  %v755_v59 = vld [vmem:[%s9315_s8 + $0xfb0] sm:$0xff] }
 0x35c   : > { %8343 = vmatprep.subr.bf16.mxu1 %v8342_v63  ;;  %v778_v63 = vld [vmem:[%s9315_s8 + $0x1068] sm:$0xff]  ;;  %v7692_v2 = vpack.c.bf16 %v761_v58, %v753_v57  ;;  %v8364_v3 = vpack.c.bf16 %v763_v61, %v755_v59  ;;  %v841_v57 = vld [vmem:[%s9315_s8 + $0x1260] sm:$0xff]  ;;  %v835_v58 = vld [vmem:[%s9315_s8 + $0x1230] sm:$0xff]  ;;  %v8382_v59 = vpack.c.bf16 %v844_v51, %v836_v50 }
 0x35d   : > { %v7694_v4 = vpack.c.bf16 %v778_v63, %v770_v62  ;;  %v850_v61 = vld [vmem:[%s9315_s8 + $0x12a8] sm:$0xff]  ;;  %v852_v63 = vld [vmem:[%s9315_s8 + $0x12b8] sm:$0xff] }
 0x35e   : > { %7673 = vmatpush1.bf16.msra.mxu0 %v7672_v5  ;;  %v769_v5 = vld [vmem:[%s9315_s8 + $0x1020] sm:$0xff]  ;;  %v858_v62 = vld [vmem:[%s9315_s8 + $0x12e8] sm:$0xff] }
 0x35f   : > { %8345 = vmatpush1.bf16.msra.mxu1 %v8344_v6  ;;  %7675 = vmatprep.subr.bf16.mxu0 %v7674_v7  ;;  %v777_v6 = vld [vmem:[%s9315_s8 + $0x1060] sm:$0xff]  ;;  %v771_v7 = vld [vmem:[%s9315_s8 + $0x1030] sm:$0xff] }
 0x360   : > { %8347 = vmatprep.subr.bf16.mxu1 %v8346_v11  ;;  %v794_v11 = vld [vmem:[%s9315_s8 + $0x10e8] sm:$0xff]  ;;  %v7696_v14 = vpack.c.bf16 %v777_v6, %v769_v5  ;;  %v8368_v15 = vpack.c.bf16 %v779_v9, %v771_v7  ;;  %v857_v5 = vld [vmem:[%s9315_s8 + $0x12e0] sm:$0xff]  ;;  %v851_v6 = vld [vmem:[%s9315_s8 + $0x12b0] sm:$0xff]  ;;  %v8386_v7 = vpack.c.bf16 %v860_v0, %v852_v63 }
 0x361   : > { %v7698_v16 = vpack.c.bf16 %v794_v11, %v786_v10  ;;  %v866_v9 = vld [vmem:[%s9315_s8 + $0x1328] sm:$0xff]  ;;  %v868_v11 = vld [vmem:[%s9315_s8 + $0x1338] sm:$0xff] }
 0x362   : > { %7677 = vmatpush1.bf16.msra.mxu0 %v7676_v17  ;;  %v785_v17 = vld [vmem:[%s9315_s8 + $0x10a0] sm:$0xff]  ;;  %v874_v10 = vld [vmem:[%s9315_s8 + $0x1368] sm:$0xff] }
 0x363   : > { %8349 = vmatpush1.bf16.msra.mxu1 %v8348_v18  ;;  %7679 = vmatprep.subr.bf16.mxu0 %v7678_v19  ;;  %v793_v18 = vld [vmem:[%s9315_s8 + $0x10e0] sm:$0xff]  ;;  %v787_v19 = vld [vmem:[%s9315_s8 + $0x10b0] sm:$0xff] }
 0x364   : > { %8351 = vmatprep.subr.bf16.mxu1 %v8350_v23  ;;  %v810_v23 = vld [vmem:[%s9315_s8 + $0x1168] sm:$0xff]  ;;  %v7700_v27 = vpack.c.bf16 %v793_v18, %v785_v17  ;;  %v8372_v28 = vpack.c.bf16 %v795_v21, %v787_v19  ;;  %v873_v17 = vld [vmem:[%s9315_s8 + $0x1360] sm:$0xff]  ;;  %v867_v18 = vld [vmem:[%s9315_s8 + $0x1330] sm:$0xff]  ;;  %v8390_v19 = vpack.c.bf16 %v876_v12, %v868_v11 }
 0x365   : > { %v882_v21 = vld [vmem:[%s9315_s8 + $0x13a8] sm:$0xff] }
 0x366   : > { %7681 = vmatpush1.bf16.msra.mxu0 %v7680_v29  ;;  %v7702_v29 = vpack.c.bf16 %v810_v23, %v802_v22  ;;  %v890_v22 = vld [vmem:[%s9315_s8 + $0x13e8] sm:$0xff]  ;;  %v884_v23 = vld [vmem:[%s9315_s8 + $0x13b8] sm:$0xff] }
 0x367   : > { %8353 = vmatpush1.bf16.msra.mxu1 %v8352_v30  ;;  %7683 = vmatprep.subr.bf16.mxu0 %v7682_v31  ;;  %v801_v30 = vld [vmem:[%s9315_s8 + $0x1120] sm:$0xff] }
 0x368   : > { %8355 = vmatprep.subr.bf16.mxu1 %v8354_v35  ;;  %v809_v31 = vld [vmem:[%s9315_s8 + $0x1160] sm:$0xff]  ;;  %v818_v35 = vld [vmem:[%s9315_s8 + $0x11a8] sm:$0xff] }
 0x369   : > { %v7704_v40 = vpack.c.bf16 %v809_v31, %v801_v30  ;;  %v883_v30 = vld [vmem:[%s9315_s8 + $0x13b0] sm:$0xff] }
 0x36a   : > { %7685 = vmatpush1.bf16.msra.mxu0 %v7684_v41  ;;  %v8376_v41 = vpack.c.bf16 %v811_v34, %v803_v32  ;;  %v891_v32 = vld [vmem:[%s9315_s8 + $0x13f0] sm:$0xff]  ;;  %v906_v34 = vld [vmem:[%s9315_s8 + $0x1468] sm:$0xff] }
 0x36b   : > { %8357 = vmatpush1.bf16.msra.mxu1 %v8356_v42  ;;  %7687 = vmatprep.subr.bf16.mxu0 %v7686_v43  ;;  %v7706_v42 = vpack.c.bf16 %v826_v36, %v818_v35  ;;  %v817_v43 = vld [vmem:[%s9315_s8 + $0x11a0] sm:$0xff]  ;;  %v900_v35 = vld [vmem:[%s9315_s8 + $0x1438] sm:$0xff]  ;;  %v8396_v38 = vpack.c.bf16 %v891_v32, %v883_v30  ;;  %v978_v30 = vld [vmem:[%s9315_s8 + $0x16a8] sm:$0xff] }
 0x36c   : > { %8359 = vmatprep.subr.bf16.mxu1 %v8358_v47  ;;  %v827_v47 = vld [vmem:[%s9315_s8 + $0x11f0] sm:$0xff]  ;;  %v7708_v52 = vpack.c.bf16 %v825_v44, %v817_v43  ;;  %v908_v36 = vld [vmem:[%s9315_s8 + $0x1478] sm:$0xff] }
 0x36d   : > { %v8398_v43 = vpack.c.bf16 %v908_v36, %v900_v35  ;;  %v907_v44 = vld [vmem:[%s9315_s8 + $0x1470] sm:$0xff]  ;;  %v980_v32 = vld [vmem:[%s9315_s8 + $0x16b8] sm:$0xff] }
 0x36e   : > { %7689 = vmatpush1.bf16.msra.mxu0 %v7688_v53  ;;  %v8380_v53 = vpack.c.bf16 %v827_v47, %v819_v45  ;;  %v914_v45 = vld [vmem:[%s9315_s8 + $0x14a8] sm:$0xff]  ;;  %v916_v47 = vld [vmem:[%s9315_s8 + $0x14b8] sm:$0xff] }
 0x36f   : > { %8361 = vmatpush1.bf16.msra.mxu1 %v8360_v54  ;;  %7691 = vmatprep.subr.bf16.mxu0 %v7690_v55  ;;  %v7710_v54 = vpack.c.bf16 %v842_v49, %v834_v48  ;;  %v833_v55 = vld [vmem:[%s9315_s8 + $0x1220] sm:$0xff]  ;;  %v924_v48 = vld [vmem:[%s9315_s8 + $0x14f8] sm:$0xff] }
 0x370   : > { %8363 = vmatprep.subr.bf16.mxu1 %v8362_v60  ;;  %v843_v60 = vld [vmem:[%s9315_s8 + $0x1270] sm:$0xff]  ;;  %v7712_v1 = vpack.c.bf16 %v841_v57, %v833_v55  ;;  %v8402_v55 = vpack.c.bf16 %v924_v48, %v916_v47 }
 0x371   : > { %v923_v57 = vld [vmem:[%s9315_s8 + $0x14f0] sm:$0xff] }
 0x372   : > { %7693 = vmatpush1.bf16.msra.mxu0 %v7692_v2  ;;  %v8384_v2 = vpack.c.bf16 %v843_v60, %v835_v58  ;;  %v930_v58 = vld [vmem:[%s9315_s8 + $0x1528] sm:$0xff]  ;;  %v932_v60 = vld [vmem:[%s9315_s8 + $0x1538] sm:$0xff] }
 0x373   : > { %8365 = vmatpush1.bf16.msra.mxu1 %v8364_v3  ;;  %7695 = vmatprep.subr.bf16.mxu0 %v7694_v4  ;;  %v7714_v3 = vpack.c.bf16 %v858_v62, %v850_v61  ;;  %v849_v4 = vld [vmem:[%s9315_s8 + $0x12a0] sm:$0xff]  ;;  %v940_v61 = vld [vmem:[%s9315_s8 + $0x1578] sm:$0xff] }
 0x374   : > { %8367 = vmatprep.subr.bf16.mxu1 %v8366_v8  ;;  %v859_v8 = vld [vmem:[%s9315_s8 + $0x12f0] sm:$0xff]  ;;  %v7716_v13 = vpack.c.bf16 %v857_v5, %v849_v4  ;;  %v8406_v4 = vpack.c.bf16 %v940_v61, %v932_v60 }
 0x375   : > { %4681 = vmatmul.mubr.f32.vlgmr.msra.gmra.mrb[2].mxu0 %v9051_v24  ;;  %v939_v5 = vld [vmem:[%s9315_s8 + $0x1570] sm:$0xff] }
 0x376   : > { %7697 = vmatpush1.bf16.msra.mxu0 %v7696_v14  ;;  %5462 = vmatmul.mubr.f32.vlgmr.msra.gmra.mrb[2].mxu1 %v9051_v24  ;;  %v8388_v14 = vpack.c.bf16 %v859_v8, %v851_v6  ;;  %v892_v24 = vld [vmem:[%s9315_s8 + $0x13f8] sm:$0xff]  ;;  %v946_v6 = vld [vmem:[%s9315_s8 + $0x15a8] sm:$0xff] }
 0x377   : > { %8369 = vmatpush1.bf16.msra.mxu1 %v8368_v15  ;;  %7699 = vmatprep.subr.bf16.mxu0 %v7698_v16  ;;  %v7718_v15 = vpack.c.bf16 %v874_v10, %v866_v9  ;;  %v865_v16 = vld [vmem:[%s9315_s8 + $0x1320] sm:$0xff]  ;;  %v8394_v31 = vpack.c.bf16 %v892_v24, %v884_v23  ;;  %v948_v8 = vld [vmem:[%s9315_s8 + $0x15b8] sm:$0xff] }
 0x378   : > { %8371 = vmatprep.subr.bf16.mxu1 %v8370_v20  ;;  %4751 = vmatprep.mubr.f32.mxu0 %v9052_v37  ;;  %v875_v20 = vld [vmem:[%s9315_s8 + $0x1370] sm:$0xff]  ;;  %v7720_v25 = vpack.c.bf16 %v873_v17, %v865_v16  ;;  %v956_v9 = vld [vmem:[%s9315_s8 + $0x15f8] sm:$0xff] }
 0x379   : > { %5532 = vmatprep.mubr.f32.mxu1 %v9052_v37  ;;  %v8392_v26 = vpack.c.bf16 %v875_v20, %v867_v18  ;;  %v8410_v16 = vpack.c.bf16 %v956_v9, %v948_v8  ;;  %v955_v17 = vld [vmem:[%s9315_s8 + $0x15f0] sm:$0xff]  ;;  %v962_v18 = vld [vmem:[%s9315_s8 + $0x1628] sm:$0xff]  ;;  %v964_v20 = vld [vmem:[%s9315_s8 + $0x1638] sm:$0xff] }
 0x37a   : > { %7701 = vmatpush1.bf16.msra.mxu0 %v7700_v27  ;;  %v7722_v27 = vpack.c.bf16 %v890_v22, %v882_v21  ;;  %v972_v21 = vld [vmem:[%s9315_s8 + $0x1678] sm:$0xff] }
 0x37b   : > { %8373 = vmatpush1.bf16.msra.mxu1 %v8372_v28  ;;  %7703 = vmatprep.subr.bf16.mxu0 %v7702_v29  ;;  %v881_v28 = vld [vmem:[%s9315_s8 + $0x13a0] sm:$0xff] }
 0x37c   : > { %8375 = vmatprep.subr.bf16.mxu1 %v8374_v33  ;;  %v889_v29 = vld [vmem:[%s9315_s8 + $0x13e0] sm:$0xff]  ;;  %v898_v33 = vld [vmem:[%s9315_s8 + $0x1428] sm:$0xff] }
 0x37d   : > { %v7724_v37 = vpack.c.bf16 %v889_v29, %v881_v28  ;;  %v7726_v39 = vpack.c.bf16 %v906_v34, %v898_v33  ;;  %v8414_v28 = vpack.c.bf16 %v972_v21, %v964_v20  ;;  %v971_v29 = vld [vmem:[%s9315_s8 + $0x1670] sm:$0xff]  ;;  %v988_v33 = vld [vmem:[%s9315_s8 + $0x16f8] sm:$0xff] }
 0x37e   : > { %7705 = vmatpush1.bf16.msra.mxu0 %v7704_v40  ;;  %v897_v40 = vld [vmem:[%s9315_s8 + $0x1420] sm:$0xff] }
 0x37f   : > { %8377 = vmatpush1.bf16.msra.mxu1 %v8376_v41  ;;  %7707 = vmatprep.subr.bf16.mxu0 %v7706_v42  ;;  %v905_v41 = vld [vmem:[%s9315_s8 + $0x1460] sm:$0xff]  ;;  %v899_v42 = vld [vmem:[%s9315_s8 + $0x1430] sm:$0xff] }
 0x380   : > { %8379 = vmatprep.subr.bf16.mxu1 %v8378_v46  ;;  %v922_v46 = vld [vmem:[%s9315_s8 + $0x14e8] sm:$0xff]  ;;  %v7728_v49 = vpack.c.bf16 %v905_v41, %v897_v40  ;;  %v8400_v50 = vpack.c.bf16 %v907_v44, %v899_v42  ;;  %v8418_v40 = vpack.c.bf16 %v988_v33, %v980_v32  ;;  %v987_v41 = vld [vmem:[%s9315_s8 + $0x16f0] sm:$0xff]  ;;  %v996_v44 = vld [vmem:[%s9315_s8 + $0x1738] sm:$0xff] }
 0x381   : > { %v7730_v51 = vpack.c.bf16 %v922_v46, %v914_v45  ;;  %v994_v42 = vld [vmem:[%s9315_s8 + $0x1728] sm:$0xff]  ;;  %v1004_v45 = vld [vmem:[%s9315_s8 + $0x1778] sm:$0xff] }
 0x382   : > { %7709 = vmatpush1.bf16.msra.mxu0 %v7708_v52  ;;  %v913_v52 = vld [vmem:[%s9315_s8 + $0x14a0] sm:$0xff] }
 0x383   : > { %8381 = vmatpush1.bf16.msra.mxu1 %v8380_v53  ;;  %7711 = vmatprep.subr.bf16.mxu0 %v7710_v54  ;;  %v921_v53 = vld [vmem:[%s9315_s8 + $0x14e0] sm:$0xff]  ;;  %v915_v54 = vld [vmem:[%s9315_s8 + $0x14b0] sm:$0xff] }
 0x384   : > { %8383 = vmatprep.subr.bf16.mxu1 %v8382_v59  ;;  %v938_v59 = vld [vmem:[%s9315_s8 + $0x1568] sm:$0xff]  ;;  %v7732_v62 = vpack.c.bf16 %v921_v53, %v913_v52  ;;  %v8404_v63 = vpack.c.bf16 %v923_v57, %v915_v54  ;;  %v8422_v52 = vpack.c.bf16 %v1004_v45, %v996_v44  ;;  %v1003_v53 = vld [vmem:[%s9315_s8 + $0x1770] sm:$0xff]  ;;  %v1012_v57 = vld [vmem:[%s9315_s8 + $0x17b8] sm:$0xff]  ;;  %v2943_v45 = vlaneseq }
 0x385   : > { %v7734_v0 = vpack.c.bf16 %v938_v59, %v930_v58  ;;  %v1010_v54 = vld [vmem:[%s9315_s8 + $0x17a8] sm:$0xff]  ;;  %v1020_v58 = vld [vmem:[%s9315_s8 + $0x17f8] sm:$0xff] }
 0x386   : > { %7713 = vmatpush1.bf16.msra.mxu0 %v7712_v1  ;;  %v929_v1 = vld [vmem:[%s9315_s8 + $0x1520] sm:$0xff]  ;;  %v1084_v44 = vld [vmem:[%s9315_s8 + $0x19f8] sm:$0xff] }
 0x387   : > { %8385 = vmatpush1.bf16.msra.mxu1 %v8384_v2  ;;  %7715 = vmatprep.subr.bf16.mxu0 %v7714_v3  ;;  %v937_v2 = vld [vmem:[%s9315_s8 + $0x1560] sm:$0xff]  ;;  %v931_v3 = vld [vmem:[%s9315_s8 + $0x1530] sm:$0xff] }
 0x388   : > { %8387 = vmatprep.subr.bf16.mxu1 %v8386_v7  ;;  %v954_v7 = vld [vmem:[%s9315_s8 + $0x15e8] sm:$0xff]  ;;  %v7736_v10 = vpack.c.bf16 %v937_v2, %v929_v1  ;;  %v8408_v11 = vpack.c.bf16 %v939_v5, %v931_v3  ;;  %v8426_v1 = vpack.c.bf16 %v1020_v58, %v1012_v57  ;;  %v1019_v2 = vld [vmem:[%s9315_s8 + $0x17f0] sm:$0xff]  ;;  %v1028_v5 = vld [vmem:[%s9315_s8 + $0x1838] sm:$0xff] }
 0x389   : > { %v7738_v12 = vpack.c.bf16 %v954_v7, %v946_v6  ;;  %v1026_v3 = vld [vmem:[%s9315_s8 + $0x1828] sm:$0xff]  ;;  %v1036_v6 = vld [vmem:[%s9315_s8 + $0x1878] sm:$0xff] }
 0x38a   : > { %7717 = vmatpush1.bf16.msra.mxu0 %v7716_v13  ;;  %v945_v13 = vld [vmem:[%s9315_s8 + $0x15a0] sm:$0xff]  ;;  %v1092_v57 = vld [vmem:[%s9315_s8 + $0x1a38] sm:$0xff] }
 0x38b   : > { %8389 = vmatpush1.bf16.msra.mxu1 %v8388_v14  ;;  %7719 = vmatprep.subr.bf16.mxu0 %v7718_v15  ;;  %v953_v14 = vld [vmem:[%s9315_s8 + $0x15e0] sm:$0xff]  ;;  %v947_v15 = vld [vmem:[%s9315_s8 + $0x15b0] sm:$0xff]  ;;  %v1100_v58 = vld [vmem:[%s9315_s8 + $0x1a78] sm:$0xff] }
 0x38c   : > { %8391 = vmatprep.subr.bf16.mxu1 %v8390_v19  ;;  %v970_v19 = vld [vmem:[%s9315_s8 + $0x1668] sm:$0xff]  ;;  %v7740_v22 = vpack.c.bf16 %v953_v14, %v945_v13  ;;  %v8412_v23 = vpack.c.bf16 %v955_v17, %v947_v15  ;;  %v8430_v13 = vpack.c.bf16 %v1036_v6, %v1028_v5  ;;  %v1035_v14 = vld [vmem:[%s9315_s8 + $0x1870] sm:$0xff]  ;;  %v1044_v17 = vld [vmem:[%s9315_s8 + $0x18b8] sm:$0xff] }
 0x38d   : > { %v7742_v24 = vpack.c.bf16 %v970_v19, %v962_v18  ;;  %v1042_v15 = vld [vmem:[%s9315_s8 + $0x18a8] sm:$0xff]  ;;  %v1052_v18 = vld [vmem:[%s9315_s8 + $0x18f8] sm:$0xff] }
 0x38e   : > { %7721 = vmatpush1.bf16.msra.mxu0 %v7720_v25  ;;  %v961_v25 = vld [vmem:[%s9315_s8 + $0x1620] sm:$0xff]  ;;  %v1114_v5 = vld [vmem:[%s9315_s8 + $0x1ae8] sm:$0xff] }
 0x38f   : > { %8393 = vmatpush1.bf16.msra.mxu1 %v8392_v26  ;;  %7723 = vmatprep.subr.bf16.mxu0 %v7722_v27  ;;  %v969_v26 = vld [vmem:[%s9315_s8 + $0x1660] sm:$0xff]  ;;  %v963_v27 = vld [vmem:[%s9315_s8 + $0x1630] sm:$0xff] }
 0x390   : > { %8395 = vmatprep.subr.bf16.mxu1 %v8394_v31  ;;  %v986_v31 = vld [vmem:[%s9315_s8 + $0x16e8] sm:$0xff]  ;;  %v7744_v34 = vpack.c.bf16 %v969_v26, %v961_v25  ;;  %v8416_v35 = vpack.c.bf16 %v971_v29, %v963_v27  ;;  %v8434_v25 = vpack.c.bf16 %v1052_v18, %v1044_v17  ;;  %v1051_v26 = vld [vmem:[%s9315_s8 + $0x18f0] sm:$0xff]  ;;  %v9053_v29 = vld [vmem:[%s12194_s0 + $0x20] sm:$0xff] }
 0x391   : > { %v7746_v36 = vpack.c.bf16 %v986_v31, %v978_v30  ;;  %v1058_v27 = vld [vmem:[%s9315_s8 + $0x1928] sm:$0xff]  ;;  %v1060_v30 = vld [vmem:[%s9315_s8 + $0x1938] sm:$0xff]  ;;  %v1113_v17 = vld [vmem:[%s9315_s8 + $0x1ae0] sm:$0xff] }
 0x392   : > { %7725 = vmatpush1.bf16.msra.mxu0 %v7724_v37  ;;  %v977_v37 = vld [vmem:[%s9315_s8 + $0x16a0] sm:$0xff]  ;;  %v1068_v31 = vld [vmem:[%s9315_s8 + $0x1978] sm:$0xff]  ;;  %v1107_v18 = vld [vmem:[%s9315_s8 + $0x1ab0] sm:$0xff] }
 0x393   : > { %8397 = vmatpush1.bf16.msra.mxu1 %v8396_v38  ;;  %7727 = vmatprep.subr.bf16.mxu0 %v7726_v39  ;;  %v985_v38 = vld [vmem:[%s9315_s8 + $0x16e0] sm:$0xff]  ;;  %v979_v39 = vld [vmem:[%s9315_s8 + $0x16b0] sm:$0xff] }
 0x394   : > { %8399 = vmatprep.subr.bf16.mxu1 %v8398_v43  ;;  %v1002_v43 = vld [vmem:[%s9315_s8 + $0x1768] sm:$0xff]  ;;  %v7748_v46 = vpack.c.bf16 %v985_v38, %v977_v37  ;;  %v8420_v47 = vpack.c.bf16 %v987_v41, %v979_v39  ;;  %v1059_v37 = vld [vmem:[%s9315_s8 + $0x1930] sm:$0xff]  ;;  %v8438_v38 = vpack.c.bf16 %v1068_v31, %v1060_v30 }
 0x395   : > { %v7750_v48 = vpack.c.bf16 %v1002_v43, %v994_v42  ;;  %v1067_v39 = vld [vmem:[%s9315_s8 + $0x1970] sm:$0xff]  ;;  %v1082_v41 = vld [vmem:[%s9315_s8 + $0x19e8] sm:$0xff]  ;;  %v9054_v42 = vld [vmem:[%s12194_s0 + $0x38] sm:$0xff] }
 0x396   : > { %7729 = vmatpush1.bf16.msra.mxu0 %v7728_v49  ;;  %v993_v49 = vld [vmem:[%s9315_s8 + $0x1720] sm:$0xff]  ;;  %v1076_v43 = vld [vmem:[%s9315_s8 + $0x19b8] sm:$0xff] }
 0x397   : > { %8401 = vmatpush1.bf16.msra.mxu1 %v8400_v50  ;;  %7731 = vmatprep.subr.bf16.mxu0 %v7730_v51  ;;  %v1001_v50 = vld [vmem:[%s9315_s8 + $0x1760] sm:$0xff]  ;;  %v995_v51 = vld [vmem:[%s9315_s8 + $0x1730] sm:$0xff] }
 0x398   : > { %8403 = vmatprep.subr.bf16.mxu1 %v8402_v55  ;;  %v1018_v55 = vld [vmem:[%s9315_s8 + $0x17e8] sm:$0xff]  ;;  %v7752_v59 = vpack.c.bf16 %v1001_v50, %v993_v49  ;;  %v8424_v60 = vpack.c.bf16 %v1003_v53, %v995_v51  ;;  %v1073_v49 = vld [vmem:[%s9315_s8 + $0x19a0] sm:$0xff]  ;;  %v1075_v51 = vld [vmem:[%s9315_s8 + $0x19b0] sm:$0xff] }
 0x399   : > { %v7754_v61 = vpack.c.bf16 %v1018_v55, %v1010_v54  ;;  %v1081_v50 = vld [vmem:[%s9315_s8 + $0x19e0] sm:$0xff]  ;;  %v1083_v53 = vld [vmem:[%s9315_s8 + $0x19f0] sm:$0xff]  ;;  %v1090_v54 = vld [vmem:[%s9315_s8 + $0x1a28] sm:$0xff] }
 0x39a   : > { %7733 = vmatpush1.bf16.msra.mxu0 %v7732_v62  ;;  %v1009_v62 = vld [vmem:[%s9315_s8 + $0x17a0] sm:$0xff]  ;;  %v1098_v55 = vld [vmem:[%s9315_s8 + $0x1a68] sm:$0xff] }
 0x39b   : > { %8405 = vmatpush1.bf16.msra.mxu1 %v8404_v63  ;;  %7735 = vmatprep.subr.bf16.mxu0 %v7734_v0  ;;  %v1017_v63 = vld [vmem:[%s9315_s8 + $0x17e0] sm:$0xff]  ;;  %v1011_v0 = vld [vmem:[%s9315_s8 + $0x17b0] sm:$0xff] }
 0x39c   : > { %8407 = vmatprep.subr.bf16.mxu1 %v8406_v4  ;;  %v1034_v4 = vld [vmem:[%s9315_s8 + $0x1868] sm:$0xff]  ;;  %v7756_v7 = vpack.c.bf16 %v1017_v63, %v1009_v62  ;;  %v8428_v8 = vpack.c.bf16 %v1019_v2, %v1011_v0  ;;  %v7774_v62 = vpack.c.bf16 %v1098_v55, %v1090_v54  ;;  %v1089_v63 = vld [vmem:[%s9315_s8 + $0x1a20] sm:$0xff]  ;;  %v8446_v2 = vpack.c.bf16 %v1100_v58, %v1092_v57  ;;  %v1139_v54 = vld [vmem:[%s9315_s8 + $0x1bb0] sm:$0xff] }
 0x39d   : > { %v7758_v9 = vpack.c.bf16 %v1034_v4, %v1026_v3  ;;  %v1097_v0 = vld [vmem:[%s9315_s8 + $0x1a60] sm:$0xff]  ;;  %v1099_v3 = vld [vmem:[%s9315_s8 + $0x1a70] sm:$0xff]  ;;  %v1106_v4 = vld [vmem:[%s9315_s8 + $0x1aa8] sm:$0xff] }
 0x39e   : > { %7737 = vmatpush1.bf16.msra.mxu0 %v7736_v10  ;;  %v1025_v10 = vld [vmem:[%s9315_s8 + $0x1820] sm:$0xff]  ;;  %v1147_v57 = vld [vmem:[%s9315_s8 + $0x1bf0] sm:$0xff]  ;;  %v1154_v58 = vld [vmem:[%s9315_s8 + $0x1c28] sm:$0xff] }
 0x39f   : > { %8409 = vmatpush1.bf16.msra.mxu1 %v8408_v11  ;;  %7739 = vmatprep.subr.bf16.mxu0 %v7738_v12  ;;  %v1033_v11 = vld [vmem:[%s9315_s8 + $0x1860] sm:$0xff]  ;;  %v1027_v12 = vld [vmem:[%s9315_s8 + $0x1830] sm:$0xff] }
 0x3a0   : > { %8411 = vmatprep.subr.bf16.mxu1 %v8410_v16  ;;  %v1050_v16 = vld [vmem:[%s9315_s8 + $0x18e8] sm:$0xff]  ;;  %v7760_v19 = vpack.c.bf16 %v1033_v11, %v1025_v10  ;;  %v8432_v20 = vpack.c.bf16 %v1035_v14, %v1027_v12 }
 0x3a1   : > { %v7762_v21 = vpack.c.bf16 %v1050_v16, %v1042_v15  ;;  %v2941_v10 = vld [vmem:[%s9321_s30] sm:$0xff]  ;;  %v7778_v15 = vpack.c.bf16 %v1114_v5, %v1106_v4  ;;  %v1155_v4 = vld [vmem:[%s9315_s8 + $0x1c30] sm:$0xff] }
 0x3a2   : > { %7741 = vmatpush1.bf16.msra.mxu0 %v7740_v22  ;;  %v1041_v22 = vld [vmem:[%s9315_s8 + $0x18a0] sm:$0xff] }
 0x3a3   : > { %8413 = vmatpush1.bf16.msra.mxu1 %v8412_v23  ;;  %7743 = vmatprep.subr.bf16.mxu0 %v7742_v24  ;;  %v1049_v23 = vld [vmem:[%s9315_s8 + $0x18e0] sm:$0xff]  ;;  %v1043_v24 = vld [vmem:[%s9315_s8 + $0x18b0] sm:$0xff] }
 0x3a4   : > { %8415 = vmatprep.subr.bf16.mxu1 %v8414_v28  ;;  %v1066_v28 = vld [vmem:[%s9315_s8 + $0x1968] sm:$0xff]  ;;  %v7764_v32 = vpack.c.bf16 %v1049_v23, %v1041_v22  ;;  %v8436_v33 = vpack.c.bf16 %v1051_v26, %v1043_v24  ;;  %v1105_v16 = vld [vmem:[%s9315_s8 + $0x1aa0] sm:$0xff]  ;;  %v1124_v24 = vld [vmem:[%s9315_s8 + $0x1b38] sm:$0xff] }
 0x3a5   : > { %v1130_v22 = vld [vmem:[%s9315_s8 + $0x1b68] sm:$0xff] }
 0x3a6   : > { %7745 = vmatpush1.bf16.msra.mxu0 %v7744_v34  ;;  %v7766_v34 = vpack.c.bf16 %v1066_v28, %v1058_v27  ;;  %v7780_v28 = vpack.c.bf16 %v1113_v17, %v1105_v16  ;;  %v1171_v16 = vld [vmem:[%s9315_s8 + $0x1cb0] sm:$0xff] }
 0x3a7   : > { %8417 = vmatpush1.bf16.msra.mxu1 %v8416_v35  ;;  %7747 = vmatprep.subr.bf16.mxu0 %v7746_v36  ;;  %v1057_v35 = vld [vmem:[%s9315_s8 + $0x1920] sm:$0xff] }
 0x3a8   : > { %8419 = vmatprep.subr.bf16.mxu1 %v8418_v40  ;;  %v1065_v36 = vld [vmem:[%s9315_s8 + $0x1960] sm:$0xff]  ;;  %v1074_v40 = vld [vmem:[%s9315_s8 + $0x19a8] sm:$0xff] }
 0x3aa   : > { %7749 = vmatpush1.bf16.msra.mxu0 %v7748_v46  ;;  %v7768_v46 = vpack.c.bf16 %v1065_v36, %v1057_v35 }
 0x3ab   : > { %8421 = vmatpush1.bf16.msra.mxu1 %v8420_v47  ;;  %7751 = vmatprep.subr.bf16.mxu0 %v7750_v48  ;;  %v8440_v47 = vpack.c.bf16 %v1067_v39, %v1059_v37  ;;  %v7770_v48 = vpack.c.bf16 %v1082_v41, %v1074_v40  ;;  %v1131_v37 = vld [vmem:[%s9315_s8 + $0x1b70] sm:$0xff]  ;;  %v1146_v39 = vld [vmem:[%s9315_s8 + $0x1be8] sm:$0xff] }
 0x3ac   : > { %8423 = vmatprep.subr.bf16.mxu1 %v8422_v52  ;;  %v8442_v52 = vpack.c.bf16 %v1084_v44, %v1076_v43  ;;  %v1140_v43 = vld [vmem:[%s9315_s8 + $0x1bb8] sm:$0xff] }
 0x3ad   : > { %v1148_v44 = vld [vmem:[%s9315_s8 + $0x1bf8] sm:$0xff] }
 0x3ae   : > { %7753 = vmatpush1.bf16.msra.mxu0 %v7752_v59  ;;  %v11182_v59 = vshrl.u32 %v2943_v45, 7  ;;  %v8458_v55 = vpack.c.bf16 %v1148_v44, %v1140_v43  ;;  %v1218_v43 = vld [vmem:[%s9315_s8 + $0x1e28] sm:$0xff] }
 0x3af   : > { %8425 = vmatpush1.bf16.msra.mxu1 %v8424_v60  ;;  %7755 = vmatprep.subr.bf16.mxu0 %v7754_v61  ;;  %v7772_v60 = vpack.c.bf16 %v1081_v50, %v1073_v49  ;;  %v8444_v61 = vpack.c.bf16 %v1083_v53, %v1075_v51  ;;  %v1145_v53 = vld [vmem:[%s9315_s8 + $0x1be0] sm:$0xff]  ;;  %v1226_v44 = vld [vmem:[%s9315_s8 + $0x1e68] sm:$0xff] }
 0x3b0   : > { %8427 = vmatprep.subr.bf16.mxu1 %v8426_v1  ;;  %v1091_v1 = vld [vmem:[%s9315_s8 + $0x1a30] sm:$0xff]  ;;  %v2945_v6 = vsub.s32 0, %v11182_v59  ;;  %v2953_v11 = vsub.s32 2, %v11182_v59  ;;  %v2949_v12 = vsub.s32 1, %v11182_v59  ;;  %v2957_v14 = vsub.s32 3, %v11182_v59 }
 0x3b2   : > { %7757 = vmatpush1.bf16.msra.mxu0 %v7756_v7  ;;  %v1108_v7 = vld [vmem:[%s9315_s8 + $0x1ab8] sm:$0xff]  ;;  %v2946_v23 = vrot.slane %v2941_v10, %v2945_v6  ;;  %v2954_v26 = vrot.slane %v2941_v10, %v2953_v11  ;;  %v2950_v27 = vrot.slane %v2941_v10, %v2949_v12  ;;  %v1163_v6 = vld [vmem:[%s9315_s8 + $0x1c70] sm:$0xff] }
 0x3b3   : > { %8429 = vmatpush1.bf16.msra.mxu1 %v8428_v8  ;;  %7759 = vmatprep.subr.bf16.mxu0 %v7758_v9  ;;  %v1116_v8 = vld [vmem:[%s9315_s8 + $0x1af8] sm:$0xff]  ;;  %v7776_v9 = vpack.c.bf16 %v1097_v0, %v1089_v63  ;;  %v8460_v0 = vpack.c.bf16 %v1147_v57, %v1139_v54  ;;  %v8464_v12 = vpack.c.bf16 %v1163_v6, %v1155_v4  ;;  %v1227_v54 = vld [vmem:[%s9315_s8 + $0x1e70] sm:$0xff]  ;;  %v1242_v57 = vld [vmem:[%s9315_s8 + $0x1ee8] sm:$0xff] }
 0x3b4   : > { %8431 = vmatprep.subr.bf16.mxu1 %v8430_v13  ;;  %v8448_v13 = vpack.c.bf16 %v1099_v3, %v1091_v1  ;;  %v1161_v3 = vld [vmem:[%s9315_s8 + $0x1c60] sm:$0xff]  ;;  %v1243_v4 = vld [vmem:[%s9315_s8 + $0x1ef0] sm:$0xff]  ;;  %v1258_v6 = vld [vmem:[%s9315_s8 + $0x1f68] sm:$0xff] }
 0x3b5   : > { %4752 = vmatmul.mubr.f32.vlgmr.msra.gmra.mrb[2].mxu0 %v9053_v29 }
 0x3b6   : > { %7761 = vmatpush1.bf16.msra.mxu0 %v7760_v19  ;;  %5533 = vmatmul.mubr.f32.vlgmr.msra.gmra.mrb[2].mxu1 %v9053_v29  ;;  %v8450_v19 = vpack.c.bf16 %v1116_v8, %v1108_v7  ;;  %v2958_v29 = vrot.slane %v2941_v10, %v2957_v14  ;;  %v1170_v7 = vld [vmem:[%s9315_s8 + $0x1ca8] sm:$0xff]  ;;  %v1180_v10 = vld [vmem:[%s9315_s8 + $0x1cf8] sm:$0xff]  ;;  %v1169_v14 = vld [vmem:[%s9315_s8 + $0x1ca0] sm:$0xff] }
 0x3b7   : > { %8433 = vmatpush1.bf16.msra.mxu1 %v8432_v20  ;;  %7763 = vmatprep.subr.bf16.mxu0 %v7762_v21  ;;  %v1115_v20 = vld [vmem:[%s9315_s8 + $0x1af0] sm:$0xff]  ;;  %v1122_v21 = vld [vmem:[%s9315_s8 + $0x1b28] sm:$0xff] }
 0x3b8   : > { %8435 = vmatprep.subr.bf16.mxu1 %v8434_v25  ;;  %4822 = vmatprep.mubr.f32.mxu0 %v9054_v42  ;;  %v1132_v25 = vld [vmem:[%s9315_s8 + $0x1b78] sm:$0xff]  ;;  %v8452_v30 = vpack.c.bf16 %v1115_v20, %v1107_v18  ;;  %v7782_v31 = vpack.c.bf16 %v1130_v22, %v1122_v21  ;;  %v1178_v8 = vld [vmem:[%s9315_s8 + $0x1ce8] sm:$0xff]  ;;  %v1179_v18 = vld [vmem:[%s9315_s8 + $0x1cf0] sm:$0xff] }
 0x3b9   : > { %5603 = vmatprep.mubr.f32.mxu1 %v9054_v42  ;;  %v8454_v36 = vpack.c.bf16 %v1132_v25, %v1124_v24  ;;  %v1194_v20 = vld [vmem:[%s9315_s8 + $0x1d68] sm:$0xff]  ;;  %v1188_v21 = vld [vmem:[%s9315_s8 + $0x1d38] sm:$0xff]  ;;  %v8468_v24 = vpack.c.bf16 %v1179_v18, %v1171_v16  ;;  %v1259_v16 = vld [vmem:[%s9315_s8 + $0x1f70] sm:$0xff] }
 0x3ba   : > { %7765 = vmatpush1.bf16.msra.mxu0 %v7764_v32  ;;  %v1121_v32 = vld [vmem:[%s9315_s8 + $0x1b20] sm:$0xff]  ;;  %v1196_v22 = vld [vmem:[%s9315_s8 + $0x1d78] sm:$0xff]  ;;  %v1274_v18 = vld [vmem:[%s9315_s8 + $0x1fe8] sm:$0xff] }
 0x3bb   : > { %8437 = vmatpush1.bf16.msra.mxu1 %v8436_v33  ;;  %7767 = vmatprep.subr.bf16.mxu0 %v7766_v34  ;;  %v1129_v33 = vld [vmem:[%s9315_s8 + $0x1b60] sm:$0xff]  ;;  %v1123_v34 = vld [vmem:[%s9315_s8 + $0x1b30] sm:$0xff] }
 0x3bc   : > { %8439 = vmatprep.subr.bf16.mxu1 %v8438_v38  ;;  %v1138_v38 = vld [vmem:[%s9315_s8 + $0x1ba8] sm:$0xff]  ;;  %v8456_v50 = vpack.c.bf16 %v1131_v37, %v1123_v34  ;;  %v1212_v34 = vld [vmem:[%s9315_s8 + $0x1df8] sm:$0xff] }
 0x3bd   : > { %v7786_v51 = vpack.c.bf16 %v1146_v39, %v1138_v38  ;;  %v1201_v38 = vld [vmem:[%s9315_s8 + $0x1da0] sm:$0xff] }
 0x3be   : > { %7769 = vmatpush1.bf16.msra.mxu0 %v7768_v46  ;;  %v1209_v39 = vld [vmem:[%s9315_s8 + $0x1de0] sm:$0xff] }
 0x3bf   : > { %8441 = vmatpush1.bf16.msra.mxu1 %v8440_v47  ;;  %7771 = vmatprep.subr.bf16.mxu0 %v7770_v48  ;;  %v7784_v48 = vpack.c.bf16 %v1129_v33, %v1121_v32  ;;  %v1210_v32 = vld [vmem:[%s9315_s8 + $0x1de8] sm:$0xff]  ;;  %v1204_v33 = vld [vmem:[%s9315_s8 + $0x1db8] sm:$0xff] }
 0x3c0   : > { %8443 = vmatprep.subr.bf16.mxu1 %v8442_v52  ;;  %v1137_v52 = vld [vmem:[%s9315_s8 + $0x1ba0] sm:$0xff] }
 0x3c1   : > { %v7788_v63 = vpack.c.bf16 %v1145_v53, %v1137_v52  ;;  %v1219_v52 = vld [vmem:[%s9315_s8 + $0x1e30] sm:$0xff] }
 0x3c2   : > { %7773 = vmatpush1.bf16.msra.mxu0 %v7772_v60  ;;  %v1162_v60 = vld [vmem:[%s9315_s8 + $0x1c68] sm:$0xff] }
 0x3c3   : > { %8445 = vmatpush1.bf16.msra.mxu1 %v8444_v61  ;;  %7775 = vmatprep.subr.bf16.mxu0 %v7774_v62  ;;  %v1156_v61 = vld [vmem:[%s9315_s8 + $0x1c38] sm:$0xff]  ;;  %v7790_v1 = vpack.c.bf16 %v1162_v60, %v1154_v58 }
 0x3c4   : > { %8447 = vmatprep.subr.bf16.mxu1 %v8446_v2  ;;  %v1164_v62 = vld [vmem:[%s9315_s8 + $0x1c78] sm:$0xff]  ;;  %v1153_v2 = vld [vmem:[%s9315_s8 + $0x1c20] sm:$0xff] }
 0x3c5   : > { %v8462_v5 = vpack.c.bf16 %v1164_v62, %v1156_v61  ;;  %v7792_v11 = vpack.c.bf16 %v1161_v3, %v1153_v2  ;;  %v1236_v58 = vld [vmem:[%s9315_s8 + $0x1eb8] sm:$0xff]  ;;  %v8480_v62 = vpack.c.bf16 %v1227_v54, %v1219_v52  ;;  %v1235_v2 = vld [vmem:[%s9315_s8 + $0x1eb0] sm:$0xff]  ;;  %v1322_v54 = vld [vmem:[%s9315_s8 + $0x2168] sm:$0xff] }
 0x3c6   : > { %7777 = vmatpush1.bf16.msra.mxu0 %v7776_v9  ;;  %v1172_v9 = vld [vmem:[%s9315_s8 + $0x1cb8] sm:$0xff]  ;;  %v1307_v52 = vld [vmem:[%s9315_s8 + $0x20f0] sm:$0xff] }
 0x3c7   : > { %8449 = vmatpush1.bf16.msra.mxu1 %v8448_v13  ;;  %7779 = vmatprep.subr.bf16.mxu0 %v7778_v15  ;;  %v7794_v13 = vpack.c.bf16 %v1178_v8, %v1170_v7  ;;  %v1177_v15 = vld [vmem:[%s9315_s8 + $0x1ce0] sm:$0xff]  ;;  %v8466_v17 = vpack.c.bf16 %v1180_v10, %v1172_v9  ;;  %v1244_v60 = vld [vmem:[%s9315_s8 + $0x1ef8] sm:$0xff]  ;;  %v8484_v10 = vpack.c.bf16 %v1243_v4, %v1235_v2  ;;  %v1330_v4 = vld [vmem:[%s9315_s8 + $0x21a8] sm:$0xff] }
 0x3c8   : > { %v3759_v35 = vpop.f32.mrb[0].mxu0  ;;  %8451 = vmatprep.subr.bf16.mxu1 %v8450_v19  ;;  %v1186_v19 = vld [vmem:[%s9315_s8 + $0x1d28] sm:$0xff]  ;;  %v8482_v3 = vpack.c.bf16 %v1244_v60, %v1236_v58  ;;  %v1252_v7 = vld [vmem:[%s9315_s8 + $0x1f38] sm:$0xff] }
 0x3c9   : > { %v8910_v40 = vadd.f32 %v3759_v35, %v2946_v23  ;;  %v4540_v41 = vpop.f32.mrb[0].mxu1  ;;  %v3761_v42 = vpop.f32.mrb[1].mxu0  ;;  %v7796_v23 = vpack.c.bf16 %v1177_v15, %v1169_v14  ;;  %v7798_v25 = vpack.c.bf16 %v1194_v20, %v1186_v19  ;;  %v1260_v8 = vld [vmem:[%s9315_s8 + $0x1f78] sm:$0xff]  ;;  %v1251_v14 = vld [vmem:[%s9315_s8 + $0x1f30] sm:$0xff] }
 0x3ca   : > { %v8912_v45 = vadd.f32 %v4540_v41, %v2954_v26  ;;  %v8911_v46 = vadd.f32 %v3761_v42, %v2950_v27  ;;  %v4542_v47 = vpop.f32.mrb[1].mxu1  ;;  %7781 = vmatpush1.bf16.msra.mxu0 %v7780_v28  ;;  %v1185_v26 = vld [vmem:[%s9315_s8 + $0x1d20] sm:$0xff]  ;;  %v1187_v28 = vld [vmem:[%s9315_s8 + $0x1d30] sm:$0xff]  ;;  %v8474_v41 = vpack.c.bf16 %v1212_v34, %v1204_v33  ;;  %v8486_v15 = vpack.c.bf16 %v1260_v8, %v1252_v7  ;;  %v1268_v19 = vld [vmem:[%s9315_s8 + $0x1fb8] sm:$0xff] }
 0x3cb   : > { %6107 = vst [vmem:[%s11217_s29] sm:$0xff] %v8910_v40  ;;  %v8913_v49 = vadd.f32 %v4542_v47, %v2958_v29  ;;  %8453 = vmatpush1.bf16.msra.mxu1 %v8452_v30  ;;  %7783 = vmatprep.subr.bf16.mxu0 %v7782_v31  ;;  %v1193_v27 = vld [vmem:[%s9315_s8 + $0x1d60] sm:$0xff]  ;;  %v8470_v29 = vpack.c.bf16 %v1196_v22, %v1188_v21  ;;  %v1195_v30 = vld [vmem:[%s9315_s8 + $0x1d70] sm:$0xff]  ;;  %v1202_v31 = vld [vmem:[%s9315_s8 + $0x1da8] sm:$0xff] }
 0x3cc   : > { %6109 = vst [vmem:[%s11217_s29 + $0x10] sm:$0xff] %v8912_v45  ;;  %6108 = vst [vmem:[%s11217_s29 + $0x8] sm:$0xff] %v8911_v46  ;;  %8455 = vmatprep.subr.bf16.mxu1 %v8454_v36  ;;  %v7800_v35 = vpack.c.bf16 %v1193_v27, %v1185_v26  ;;  %v8472_v36 = vpack.c.bf16 %v1195_v30, %v1187_v28  ;;  %v7802_v37 = vpack.c.bf16 %v1210_v32, %v1202_v31  ;;  %v1203_v40 = vld [vmem:[%s9315_s8 + $0x1db0] sm:$0xff]  ;;  %v1220_v45 = vld [vmem:[%s9315_s8 + $0x1e38] sm:$0xff] }
 0x3cd   : > { %6110 = vst [vmem:[%s11217_s29 + $0x18] sm:$0xff] %v8913_v49  ;;  %v1211_v42 = vld [vmem:[%s9315_s8 + $0x1df0] sm:$0xff]  ;;  %v1228_v46 = vld [vmem:[%s9315_s8 + $0x1e78] sm:$0xff]  ;;  %v7804_v47 = vpack.c.bf16 %v1209_v39, %v1201_v38  ;;  %v7806_v49 = vpack.c.bf16 %v1226_v44, %v1218_v43  ;;  %v8488_v22 = vpack.c.bf16 %v1259_v16, %v1251_v14  ;;  %v1290_v30 = vld [vmem:[%s9315_s8 + $0x2068] sm:$0xff] }
 0x3ce   : > { %7785 = vmatpush1.bf16.msra.mxu0 %v7784_v48  ;;  %v8476_v48 = vpack.c.bf16 %v1211_v42, %v1203_v40  ;;  %v8478_v53 = vpack.c.bf16 %v1228_v46, %v1220_v45  ;;  %v1276_v20 = vld [vmem:[%s9315_s8 + $0x1ff8] sm:$0xff]  ;;  %v1267_v26 = vld [vmem:[%s9315_s8 + $0x1fb0] sm:$0xff]  ;;  %v1306_v42 = vld [vmem:[%s9315_s8 + $0x20e8] sm:$0xff] }
 0x3cf   : > { %8457 = vmatpush1.bf16.msra.mxu1 %v8456_v50  ;;  %7787 = vmatprep.subr.bf16.mxu0 %v7786_v51  ;;  %v1217_v50 = vld [vmem:[%s9315_s8 + $0x1e20] sm:$0xff]  ;;  %v8490_v27 = vpack.c.bf16 %v1276_v20, %v1268_v19  ;;  %v1275_v28 = vld [vmem:[%s9315_s8 + $0x1ff0] sm:$0xff]  ;;  %v1284_v31 = vld [vmem:[%s9315_s8 + $0x2038] sm:$0xff] }
 0x3d0   : > { %8459 = vmatprep.subr.bf16.mxu1 %v8458_v55  ;;  %v1225_v51 = vld [vmem:[%s9315_s8 + $0x1e60] sm:$0xff]  ;;  %v1234_v55 = vld [vmem:[%s9315_s8 + $0x1ea8] sm:$0xff]  ;;  %v1292_v32 = vld [vmem:[%s9315_s8 + $0x2078] sm:$0xff]  ;;  %v8492_v34 = vpack.c.bf16 %v1275_v28, %v1267_v26 }
 0x3d1   : > { %v7808_v61 = vpack.c.bf16 %v1225_v51, %v1217_v50  ;;  %v1283_v38 = vld [vmem:[%s9315_s8 + $0x2030] sm:$0xff]  ;;  %v8494_v39 = vpack.c.bf16 %v1292_v32, %v1284_v31  ;;  %v1300_v43 = vld [vmem:[%s9315_s8 + $0x20b8] sm:$0xff] }
 0x3d2   : > { %7789 = vmatpush1.bf16.msra.mxu0 %v7788_v63  ;;  %v7810_v63 = vpack.c.bf16 %v1242_v57, %v1234_v55  ;;  %v1291_v40 = vld [vmem:[%s9315_s8 + $0x2070] sm:$0xff]  ;;  %v1308_v44 = vld [vmem:[%s9315_s8 + $0x20f8] sm:$0xff] }
 0x3d3   : > { %8461 = vmatpush1.bf16.msra.mxu1 %v8460_v0  ;;  %7791 = vmatprep.subr.bf16.mxu0 %v7790_v1  ;;  %v1233_v0 = vld [vmem:[%s9315_s8 + $0x1ea0] sm:$0xff]  ;;  %v8496_v46 = vpack.c.bf16 %v1291_v40, %v1283_v38  ;;  %v1299_v50 = vld [vmem:[%s9315_s8 + $0x20b0] sm:$0xff]  ;;  %v8498_v51 = vpack.c.bf16 %v1308_v44, %v1300_v43  ;;  %v1316_v57 = vld [vmem:[%s9315_s8 + $0x2138] sm:$0xff] }
 0x3d4   : > { %8463 = vmatprep.subr.bf16.mxu1 %v8462_v5  ;;  %v1241_v1 = vld [vmem:[%s9315_s8 + $0x1ee0] sm:$0xff]  ;;  %v1250_v5 = vld [vmem:[%s9315_s8 + $0x1f28] sm:$0xff]  ;;  %v9055_v55 = vld [vmem:[%s12194_s0 + $0x30] sm:$0xff] }
 0x3d5   : > { %v7812_v9 = vpack.c.bf16 %v1241_v1, %v1233_v0  ;;  %v1324_v58 = vld [vmem:[%s9315_s8 + $0x2178] sm:$0xff]  ;;  %v1321_v0 = vld [vmem:[%s9315_s8 + $0x2160] sm:$0xff]  ;;  %v1315_v1 = vld [vmem:[%s9315_s8 + $0x2130] sm:$0xff] }
 0x3d6   : > { %7793 = vmatpush1.bf16.msra.mxu0 %v7792_v11  ;;  %v7814_v11 = vpack.c.bf16 %v1258_v6, %v1250_v5  ;;  %v8502_v2 = vpack.c.bf16 %v1324_v58, %v1316_v57  ;;  %v1338_v5 = vld [vmem:[%s9315_s8 + $0x21e8] sm:$0xff]  ;;  %v1332_v7 = vld [vmem:[%s9315_s8 + $0x21b8] sm:$0xff]  ;;  %v1331_v14 = vld [vmem:[%s9315_s8 + $0x21b0] sm:$0xff] }
 0x3d7   : > { %8465 = vmatpush1.bf16.msra.mxu1 %v8464_v12  ;;  %7795 = vmatprep.subr.bf16.mxu0 %v7794_v13  ;;  %v1249_v12 = vld [vmem:[%s9315_s8 + $0x1f20] sm:$0xff]  ;;  %v9056_v6 = vld [vmem:[%s12194_s0 + $0x48] sm:$0xff]  ;;  %v1340_v8 = vld [vmem:[%s9315_s8 + $0x21f8] sm:$0xff] }
 0x3d8   : > { %8467 = vmatprep.subr.bf16.mxu1 %v8466_v17  ;;  %v1257_v13 = vld [vmem:[%s9315_s8 + $0x1f60] sm:$0xff]  ;;  %v1266_v17 = vld [vmem:[%s9315_s8 + $0x1fa8] sm:$0xff]  ;;  %v1339_v16 = vld [vmem:[%s9315_s8 + $0x21f0] sm:$0xff] }
 0x3d9   : > { %v7816_v21 = vpack.c.bf16 %v1257_v13, %v1249_v12  ;;  %v1329_v12 = vld [vmem:[%s9315_s8 + $0x21a0] sm:$0xff]  ;;  %v1348_v19 = vld [vmem:[%s9315_s8 + $0x2238] sm:$0xff]  ;;  %v1347_v26 = vld [vmem:[%s9315_s8 + $0x2230] sm:$0xff] }
 0x3da   : > { %7797 = vmatpush1.bf16.msra.mxu0 %v7796_v23  ;;  %v7818_v23 = vpack.c.bf16 %v1274_v18, %v1266_v17  ;;  %v1337_v13 = vld [vmem:[%s9315_s8 + $0x21e0] sm:$0xff]  ;;  %v1346_v17 = vld [vmem:[%s9315_s8 + $0x2228] sm:$0xff]  ;;  %v1356_v20 = vld [vmem:[%s9315_s8 + $0x2278] sm:$0xff] }
 0x3db   : > { %8469 = vmatpush1.bf16.msra.mxu1 %v8468_v24  ;;  %7799 = vmatprep.subr.bf16.mxu0 %v7798_v25  ;;  %v1265_v24 = vld [vmem:[%s9315_s8 + $0x1fa0] sm:$0xff]  ;;  %v1354_v18 = vld [vmem:[%s9315_s8 + $0x2268] sm:$0xff]  ;;  %v1355_v28 = vld [vmem:[%s9315_s8 + $0x2270] sm:$0xff] }
 0x3dc   : > { %8471 = vmatprep.subr.bf16.mxu1 %v8470_v29  ;;  %v1273_v25 = vld [vmem:[%s9315_s8 + $0x1fe0] sm:$0xff]  ;;  %v1282_v29 = vld [vmem:[%s9315_s8 + $0x2028] sm:$0xff]  ;;  %v1364_v31 = vld [vmem:[%s9315_s8 + $0x22b8] sm:$0xff] }
 0x3dd   : > { %v7820_v33 = vpack.c.bf16 %v1273_v25, %v1265_v24  ;;  %v1345_v24 = vld [vmem:[%s9315_s8 + $0x2220] sm:$0xff]  ;;  %v1372_v32 = vld [vmem:[%s9315_s8 + $0x22f8] sm:$0xff]  ;;  %v1363_v38 = vld [vmem:[%s9315_s8 + $0x22b0] sm:$0xff] }
 0x3de   : > { %7801 = vmatpush1.bf16.msra.mxu0 %v7800_v35  ;;  %v7822_v35 = vpack.c.bf16 %v1290_v30, %v1282_v29  ;;  %v1353_v25 = vld [vmem:[%s9315_s8 + $0x2260] sm:$0xff]  ;;  %v1362_v29 = vld [vmem:[%s9315_s8 + $0x22a8] sm:$0xff]  ;;  %v1371_v40 = vld [vmem:[%s9315_s8 + $0x22f0] sm:$0xff] }
 0x3df   : > { %8473 = vmatpush1.bf16.msra.mxu1 %v8472_v36  ;;  %7803 = vmatprep.subr.bf16.mxu0 %v7802_v37  ;;  %v1281_v36 = vld [vmem:[%s9315_s8 + $0x2020] sm:$0xff]  ;;  %v1370_v30 = vld [vmem:[%s9315_s8 + $0x22e8] sm:$0xff]  ;;  %v1380_v43 = vld [vmem:[%s9315_s8 + $0x2338] sm:$0xff] }
 0x3e0   : > { %8475 = vmatprep.subr.bf16.mxu1 %v8474_v41  ;;  %v1289_v37 = vld [vmem:[%s9315_s8 + $0x2060] sm:$0xff]  ;;  %v1298_v41 = vld [vmem:[%s9315_s8 + $0x20a8] sm:$0xff]  ;;  %v1388_v44 = vld [vmem:[%s9315_s8 + $0x2378] sm:$0xff] }
 0x3e1   : > { %v7824_v45 = vpack.c.bf16 %v1289_v37, %v1281_v36  ;;  %v1361_v36 = vld [vmem:[%s9315_s8 + $0x22a0] sm:$0xff]  ;;  %v1404_v57 = vld [vmem:[%s9315_s8 + $0x23f8] sm:$0xff] }
 0x3e2   : > { %7805 = vmatpush1.bf16.msra.mxu0 %v7804_v47  ;;  %v7826_v47 = vpack.c.bf16 %v1306_v42, %v1298_v41  ;;  %v1369_v37 = vld [vmem:[%s9315_s8 + $0x22e0] sm:$0xff]  ;;  %v1378_v41 = vld [vmem:[%s9315_s8 + $0x2328] sm:$0xff] }
 0x3e3   : > { %8477 = vmatpush1.bf16.msra.mxu1 %v8476_v48  ;;  %7807 = vmatprep.subr.bf16.mxu0 %v7806_v49  ;;  %v1297_v48 = vld [vmem:[%s9315_s8 + $0x20a0] sm:$0xff]  ;;  %v1386_v42 = vld [vmem:[%s9315_s8 + $0x2368] sm:$0xff] }
 0x3e4   : > { %8479 = vmatprep.subr.bf16.mxu1 %v8478_v53  ;;  %v1305_v49 = vld [vmem:[%s9315_s8 + $0x20e0] sm:$0xff]  ;;  %v1314_v53 = vld [vmem:[%s9315_s8 + $0x2128] sm:$0xff] }
 0x3e5   : > { %v7828_v60 = vpack.c.bf16 %v1305_v49, %v1297_v48  ;;  %v1377_v48 = vld [vmem:[%s9315_s8 + $0x2320] sm:$0xff] }
 0x3e6   : > { %7809 = vmatpush1.bf16.msra.mxu0 %v7808_v61  ;;  %v8500_v61 = vpack.c.bf16 %v1307_v52, %v1299_v50  ;;  %v1385_v49 = vld [vmem:[%s9315_s8 + $0x2360] sm:$0xff]  ;;  %v1379_v50 = vld [vmem:[%s9315_s8 + $0x2330] sm:$0xff] }
 0x3e7   : > { %8481 = vmatpush1.bf16.msra.mxu1 %v8480_v62  ;;  %7811 = vmatprep.subr.bf16.mxu0 %v7810_v63  ;;  %v7830_v62 = vpack.c.bf16 %v1322_v54, %v1314_v53  ;;  %v1313_v63 = vld [vmem:[%s9315_s8 + $0x2120] sm:$0xff]  ;;  %v1387_v52 = vld [vmem:[%s9315_s8 + $0x2370] sm:$0xff]  ;;  %v1394_v53 = vld [vmem:[%s9315_s8 + $0x23a8] sm:$0xff]  ;;  %v7848_v58 = vpack.c.bf16 %v1385_v49, %v1377_v48 }
 0x3e8   : > { %8483 = vmatprep.subr.bf16.mxu1 %v8482_v3  ;;  %v1323_v3 = vld [vmem:[%s9315_s8 + $0x2170] sm:$0xff]  ;;  %v1402_v54 = vld [vmem:[%s9315_s8 + $0x23e8] sm:$0xff] }
 0x3e9   : > { %v1459_v48 = vld [vmem:[%s9315_s8 + $0x25b0] sm:$0xff] }
 0x3ea   : > { %7813 = vmatpush1.bf16.msra.mxu0 %v7812_v9  ;;  %v7832_v9 = vpack.c.bf16 %v1321_v0, %v1313_v63  ;;  %v1401_v63 = vld [vmem:[%s9315_s8 + $0x23e0] sm:$0xff]  ;;  %v1395_v0 = vld [vmem:[%s9315_s8 + $0x23b0] sm:$0xff] }
 0x3eb   : > { %8485 = vmatpush1.bf16.msra.mxu1 %v8484_v10  ;;  %7815 = vmatprep.subr.bf16.mxu0 %v7814_v11  ;;  %v8504_v10 = vpack.c.bf16 %v1323_v3, %v1315_v1  ;;  %v7834_v11 = vpack.c.bf16 %v1338_v5, %v1330_v4  ;;  %v1410_v3 = vld [vmem:[%s9315_s8 + $0x2428] sm:$0xff]  ;;  %v1412_v5 = vld [vmem:[%s9315_s8 + $0x2438] sm:$0xff] }
 0x3ec   : > { %8487 = vmatprep.subr.bf16.mxu1 %v8486_v15  ;;  %v8506_v15 = vpack.c.bf16 %v1340_v8, %v1332_v7  ;;  %v1418_v4 = vld [vmem:[%s9315_s8 + $0x2468] sm:$0xff] }
 0x3ee   : > { %7817 = vmatpush1.bf16.msra.mxu0 %v7816_v21  ;;  %v7836_v21 = vpack.c.bf16 %v1337_v13, %v1329_v12  ;;  %v1411_v12 = vld [vmem:[%s9315_s8 + $0x2430] sm:$0xff] }
 0x3ef   : > { %8489 = vmatpush1.bf16.msra.mxu1 %v8488_v22  ;;  %7819 = vmatprep.subr.bf16.mxu0 %v7818_v23  ;;  %v8508_v22 = vpack.c.bf16 %v1339_v16, %v1331_v14  ;;  %v7838_v23 = vpack.c.bf16 %v1354_v18, %v1346_v17  ;;  %v1419_v14 = vld [vmem:[%s9315_s8 + $0x2470] sm:$0xff]  ;;  %v1434_v16 = vld [vmem:[%s9315_s8 + $0x24e8] sm:$0xff]  ;;  %v1428_v17 = vld [vmem:[%s9315_s8 + $0x24b8] sm:$0xff] }
 0x3f0   : > { %8491 = vmatprep.subr.bf16.mxu1 %v8490_v27  ;;  %v8510_v27 = vpack.c.bf16 %v1356_v20, %v1348_v19  ;;  %v1436_v18 = vld [vmem:[%s9315_s8 + $0x24f8] sm:$0xff]  ;;  %v8528_v20 = vpack.c.bf16 %v1419_v14, %v1411_v12  ;;  %v1499_v12 = vld [vmem:[%s9315_s8 + $0x26f0] sm:$0xff]  ;;  %v1514_v14 = vld [vmem:[%s9315_s8 + $0x2768] sm:$0xff] }
 0x3f2   : > { %7821 = vmatpush1.bf16.msra.mxu0 %v7820_v33  ;;  %v7840_v33 = vpack.c.bf16 %v1353_v25, %v1345_v24  ;;  %v1427_v24 = vld [vmem:[%s9315_s8 + $0x24b0] sm:$0xff]  ;;  %v8530_v25 = vpack.c.bf16 %v1436_v18, %v1428_v17 }
 0x3f3   : > { %8493 = vmatpush1.bf16.msra.mxu1 %v8492_v34  ;;  %7823 = vmatprep.subr.bf16.mxu0 %v7822_v35  ;;  %v8512_v34 = vpack.c.bf16 %v1355_v28, %v1347_v26  ;;  %v7842_v35 = vpack.c.bf16 %v1370_v30, %v1362_v29  ;;  %v1435_v26 = vld [vmem:[%s9315_s8 + $0x24f0] sm:$0xff]  ;;  %v1450_v28 = vld [vmem:[%s9315_s8 + $0x2568] sm:$0xff]  ;;  %v1444_v29 = vld [vmem:[%s9315_s8 + $0x2538] sm:$0xff] }
 0x3f4   : > { %8495 = vmatprep.subr.bf16.mxu1 %v8494_v39  ;;  %v8514_v39 = vpack.c.bf16 %v1372_v32, %v1364_v31  ;;  %v1452_v30 = vld [vmem:[%s9315_s8 + $0x2578] sm:$0xff]  ;;  %v8532_v32 = vpack.c.bf16 %v1435_v26, %v1427_v24  ;;  %v1515_v24 = vld [vmem:[%s9315_s8 + $0x2770] sm:$0xff]  ;;  %v1530_v26 = vld [vmem:[%s9315_s8 + $0x27e8] sm:$0xff] }
 0x3f5   : > { %4823 = vmatmul.mubr.f32.vlgmr.msra.gmra.mrb[2].mxu0 %v9055_v55 }
 0x3f6   : > { %7825 = vmatpush1.bf16.msra.mxu0 %v7824_v45  ;;  %5604 = vmatmul.mubr.f32.vlgmr.msra.gmra.mrb[2].mxu1 %v9055_v55  ;;  %v7844_v45 = vpack.c.bf16 %v1369_v37, %v1361_v36  ;;  %v1396_v55 = vld [vmem:[%s9315_s8 + $0x23b8] sm:$0xff]  ;;  %v1443_v36 = vld [vmem:[%s9315_s8 + $0x2530] sm:$0xff]  ;;  %v8534_v37 = vpack.c.bf16 %v1452_v30, %v1444_v29 }
 0x3f7   : > { %8497 = vmatpush1.bf16.msra.mxu1 %v8496_v46  ;;  %7827 = vmatprep.subr.bf16.mxu0 %v7826_v47  ;;  %v8516_v46 = vpack.c.bf16 %v1371_v40, %v1363_v38  ;;  %v7846_v47 = vpack.c.bf16 %v1386_v42, %v1378_v41  ;;  %v8522_v1 = vpack.c.bf16 %v1404_v57, %v1396_v55  ;;  %v1451_v38 = vld [vmem:[%s9315_s8 + $0x2570] sm:$0xff]  ;;  %v1466_v40 = vld [vmem:[%s9315_s8 + $0x25e8] sm:$0xff]  ;;  %v1460_v41 = vld [vmem:[%s9315_s8 + $0x25b8] sm:$0xff] }
 0x3f8   : > { %8499 = vmatprep.subr.bf16.mxu1 %v8498_v51  ;;  %4893 = vmatprep.mubr.f32.mxu0 %v9056_v6  ;;  %v8518_v51 = vpack.c.bf16 %v1388_v44, %v1380_v43  ;;  %v1468_v42 = vld [vmem:[%s9315_s8 + $0x25f8] sm:$0xff]  ;;  %v8536_v44 = vpack.c.bf16 %v1451_v38, %v1443_v36  ;;  %v1531_v36 = vld [vmem:[%s9315_s8 + $0x27f0] sm:$0xff]  ;;  %v1546_v38 = vld [vmem:[%s9315_s8 + $0x2868] sm:$0xff] }
 0x3f9   : > { %5674 = vmatprep.mubr.f32.mxu1 %v9056_v6  ;;  %v1420_v6 = vld [vmem:[%s9315_s8 + $0x2478] sm:$0xff]  ;;  %v8538_v49 = vpack.c.bf16 %v1468_v42, %v1460_v41 }
 0x3fa   : > { %7829 = vmatpush1.bf16.msra.mxu0 %v7828_v60  ;;  %v8520_v60 = vpack.c.bf16 %v1387_v52, %v1379_v50  ;;  %v8526_v13 = vpack.c.bf16 %v1420_v6, %v1412_v5  ;;  %v1467_v50 = vld [vmem:[%s9315_s8 + $0x25f0] sm:$0xff]  ;;  %v1482_v52 = vld [vmem:[%s9315_s8 + $0x2668] sm:$0xff] }
 0x3fb   : > { %8501 = vmatpush1.bf16.msra.mxu1 %v8500_v61  ;;  %7831 = vmatprep.subr.bf16.mxu0 %v7830_v62  ;;  %v7850_v61 = vpack.c.bf16 %v1402_v54, %v1394_v53  ;;  %v1393_v62 = vld [vmem:[%s9315_s8 + $0x23a0] sm:$0xff]  ;;  %v1476_v53 = vld [vmem:[%s9315_s8 + $0x2638] sm:$0xff]  ;;  %v8540_v57 = vpack.c.bf16 %v1467_v50, %v1459_v48  ;;  %v1547_v48 = vld [vmem:[%s9315_s8 + $0x2870] sm:$0xff] }
 0x3fc   : > { %8503 = vmatprep.subr.bf16.mxu1 %v8502_v2  ;;  %v1403_v2 = vld [vmem:[%s9315_s8 + $0x23f0] sm:$0xff]  ;;  %v7852_v7 = vpack.c.bf16 %v1401_v63, %v1393_v62  ;;  %v1484_v54 = vld [vmem:[%s9315_s8 + $0x2678] sm:$0xff]  ;;  %v1562_v50 = vld [vmem:[%s9315_s8 + $0x28e8] sm:$0xff] }
 0x3fd   : > { %v8524_v8 = vpack.c.bf16 %v1403_v2, %v1395_v0  ;;  %v1475_v62 = vld [vmem:[%s9315_s8 + $0x2630] sm:$0xff]  ;;  %v8542_v63 = vpack.c.bf16 %v1484_v54, %v1476_v53  ;;  %v1498_v2 = vld [vmem:[%s9315_s8 + $0x26e8] sm:$0xff] }
 0x3fe   : > { %7833 = vmatpush1.bf16.msra.mxu0 %v7832_v9  ;;  %v7854_v9 = vpack.c.bf16 %v1418_v4, %v1410_v3  ;;  %v1483_v0 = vld [vmem:[%s9315_s8 + $0x2670] sm:$0xff]  ;;  %v1492_v3 = vld [vmem:[%s9315_s8 + $0x26b8] sm:$0xff] }
 0x3ff   : > { %8505 = vmatpush1.bf16.msra.mxu1 %v8504_v10  ;;  %7835 = vmatprep.subr.bf16.mxu0 %v7834_v11  ;;  %v1409_v10 = vld [vmem:[%s9315_s8 + $0x2420] sm:$0xff]  ;;  %v1500_v4 = vld [vmem:[%s9315_s8 + $0x26f8] sm:$0xff]  ;;  %v8544_v6 = vpack.c.bf16 %v1483_v0, %v1475_v62  ;;  %v1563_v62 = vld [vmem:[%s9315_s8 + $0x28f0] sm:$0xff] }
 0x400   : > { %8507 = vmatprep.subr.bf16.mxu1 %v8506_v15  ;;  %v1417_v11 = vld [vmem:[%s9315_s8 + $0x2460] sm:$0xff]  ;;  %v1426_v15 = vld [vmem:[%s9315_s8 + $0x24a8] sm:$0xff] }
 0x401   : > { %v7856_v19 = vpack.c.bf16 %v1417_v11, %v1409_v10  ;;  %v1491_v10 = vld [vmem:[%s9315_s8 + $0x26b0] sm:$0xff]  ;;  %v8546_v11 = vpack.c.bf16 %v1500_v4, %v1492_v3  ;;  %v1578_v0 = vld [vmem:[%s9315_s8 + $0x2968] sm:$0xff]  ;;  %v1580_v3 = vld [vmem:[%s9315_s8 + $0x2978] sm:$0xff] }
 0x402   : > { %7837 = vmatpush1.bf16.msra.mxu0 %v7836_v21  ;;  %v7858_v21 = vpack.c.bf16 %v1434_v16, %v1426_v15  ;;  %v1508_v15 = vld [vmem:[%s9315_s8 + $0x2738] sm:$0xff]  ;;  %v8548_v18 = vpack.c.bf16 %v1499_v12, %v1491_v10  ;;  %v1586_v12 = vld [vmem:[%s9315_s8 + $0x29a8] sm:$0xff] }
 0x403   : > { %8509 = vmatpush1.bf16.msra.mxu1 %v8508_v22  ;;  %7839 = vmatprep.subr.bf16.mxu0 %v7838_v23  ;;  %v1425_v22 = vld [vmem:[%s9315_s8 + $0x24a0] sm:$0xff]  ;;  %v1516_v16 = vld [vmem:[%s9315_s8 + $0x2778] sm:$0xff] }
 0x404   : > { %8511 = vmatprep.subr.bf16.mxu1 %v8510_v27  ;;  %v1433_v23 = vld [vmem:[%s9315_s8 + $0x24e0] sm:$0xff]  ;;  %v1442_v27 = vld [vmem:[%s9315_s8 + $0x2528] sm:$0xff] }
 0x405   : > { %v7860_v31 = vpack.c.bf16 %v1433_v23, %v1425_v22  ;;  %v1507_v22 = vld [vmem:[%s9315_s8 + $0x2730] sm:$0xff]  ;;  %v8550_v23 = vpack.c.bf16 %v1516_v16, %v1508_v15  ;;  %v1588_v15 = vld [vmem:[%s9315_s8 + $0x29b8] sm:$0xff] }
 0x406   : > { %7841 = vmatpush1.bf16.msra.mxu0 %v7840_v33  ;;  %v7862_v33 = vpack.c.bf16 %v1450_v28, %v1442_v27  ;;  %v1524_v27 = vld [vmem:[%s9315_s8 + $0x27b8] sm:$0xff]  ;;  %v8552_v30 = vpack.c.bf16 %v1515_v24, %v1507_v22  ;;  %v1587_v22 = vld [vmem:[%s9315_s8 + $0x29b0] sm:$0xff] }
 0x407   : > { %8513 = vmatpush1.bf16.msra.mxu1 %v8512_v34  ;;  %7843 = vmatprep.subr.bf16.mxu0 %v7842_v35  ;;  %v1441_v34 = vld [vmem:[%s9315_s8 + $0x2520] sm:$0xff]  ;;  %v1532_v28 = vld [vmem:[%s9315_s8 + $0x27f8] sm:$0xff]  ;;  %v1595_v24 = vld [vmem:[%s9315_s8 + $0x29f0] sm:$0xff] }
 0x408   : > { %8515 = vmatprep.subr.bf16.mxu1 %v8514_v39  ;;  %v1449_v35 = vld [vmem:[%s9315_s8 + $0x2560] sm:$0xff]  ;;  %v1458_v39 = vld [vmem:[%s9315_s8 + $0x25a8] sm:$0xff]  ;;  %v1596_v16 = vld [vmem:[%s9315_s8 + $0x29f8] sm:$0xff] }
 0x409   : > { %v7864_v43 = vpack.c.bf16 %v1449_v35, %v1441_v34  ;;  %v1523_v34 = vld [vmem:[%s9315_s8 + $0x27b0] sm:$0xff]  ;;  %v8554_v35 = vpack.c.bf16 %v1532_v28, %v1524_v27  ;;  %v1604_v27 = vld [vmem:[%s9315_s8 + $0x2a38] sm:$0xff] }
 0x40a   : > { %7845 = vmatpush1.bf16.msra.mxu0 %v7844_v45  ;;  %v7866_v45 = vpack.c.bf16 %v1466_v40, %v1458_v39  ;;  %v1540_v39 = vld [vmem:[%s9315_s8 + $0x2838] sm:$0xff]  ;;  %v8556_v42 = vpack.c.bf16 %v1531_v36, %v1523_v34  ;;  %v1603_v34 = vld [vmem:[%s9315_s8 + $0x2a30] sm:$0xff] }
 0x40b   : > { %8517 = vmatpush1.bf16.msra.mxu1 %v8516_v46  ;;  %7847 = vmatprep.subr.bf16.mxu0 %v7846_v47  ;;  %v1457_v46 = vld [vmem:[%s9315_s8 + $0x25a0] sm:$0xff]  ;;  %v1548_v40 = vld [vmem:[%s9315_s8 + $0x2878] sm:$0xff]  ;;  %v1611_v36 = vld [vmem:[%s9315_s8 + $0x2a70] sm:$0xff] }
 0x40c   : > { %8519 = vmatprep.subr.bf16.mxu1 %v8518_v51  ;;  %v1465_v47 = vld [vmem:[%s9315_s8 + $0x25e0] sm:$0xff]  ;;  %v1474_v51 = vld [vmem:[%s9315_s8 + $0x2628] sm:$0xff]  ;;  %v1612_v28 = vld [vmem:[%s9315_s8 + $0x2a78] sm:$0xff] }
 0x40d   : > { %v7868_v55 = vpack.c.bf16 %v1465_v47, %v1457_v46  ;;  %v1539_v46 = vld [vmem:[%s9315_s8 + $0x2830] sm:$0xff]  ;;  %v8558_v47 = vpack.c.bf16 %v1548_v40, %v1540_v39  ;;  %v1620_v39 = vld [vmem:[%s9315_s8 + $0x2ab8] sm:$0xff] }
 0x40e   : > { %7849 = vmatpush1.bf16.msra.mxu0 %v7848_v58  ;;  %v7870_v58 = vpack.c.bf16 %v1482_v52, %v1474_v51  ;;  %v1556_v51 = vld [vmem:[%s9315_s8 + $0x28b8] sm:$0xff]  ;;  %v8560_v54 = vpack.c.bf16 %v1547_v48, %v1539_v46  ;;  %v1619_v46 = vld [vmem:[%s9315_s8 + $0x2ab0] sm:$0xff] }
 0x40f   : > { %8521 = vmatpush1.bf16.msra.mxu1 %v8520_v60  ;;  %7851 = vmatprep.subr.bf16.mxu0 %v7850_v61  ;;  %v1473_v60 = vld [vmem:[%s9315_s8 + $0x2620] sm:$0xff]  ;;  %v1564_v52 = vld [vmem:[%s9315_s8 + $0x28f8] sm:$0xff]  ;;  %v1627_v48 = vld [vmem:[%s9315_s8 + $0x2af0] sm:$0xff] }
 0x410   : > { %8523 = vmatprep.subr.bf16.mxu1 %v8522_v1  ;;  %v1481_v61 = vld [vmem:[%s9315_s8 + $0x2660] sm:$0xff]  ;;  %v1490_v1 = vld [vmem:[%s9315_s8 + $0x26a8] sm:$0xff]  ;;  %v1628_v40 = vld [vmem:[%s9315_s8 + $0x2af8] sm:$0xff] }
 0x411   : > { %v7872_v5 = vpack.c.bf16 %v1481_v61, %v1473_v60  ;;  %v1555_v60 = vld [vmem:[%s9315_s8 + $0x28b0] sm:$0xff]  ;;  %v8562_v61 = vpack.c.bf16 %v1564_v52, %v1556_v51  ;;  %v1636_v51 = vld [vmem:[%s9315_s8 + $0x2b38] sm:$0xff] }
 0x412   : > { %7853 = vmatpush1.bf16.msra.mxu0 %v7852_v7  ;;  %v7874_v7 = vpack.c.bf16 %v1498_v2, %v1490_v1  ;;  %v9057_v1 = vld [vmem:[%s12194_s0 + $0x40] sm:$0xff]  ;;  %v1572_v2 = vld [vmem:[%s9315_s8 + $0x2938] sm:$0xff] }
 0x413   : > { %8525 = vmatpush1.bf16.msra.mxu1 %v8524_v8  ;;  %7855 = vmatprep.subr.bf16.mxu0 %v7854_v9  ;;  %v1489_v8 = vld [vmem:[%s9315_s8 + $0x26a0] sm:$0xff]  ;;  %v8566_v10 = vpack.c.bf16 %v1580_v3, %v1572_v2  ;;  %v1644_v52 = vld [vmem:[%s9315_s8 + $0x2b78] sm:$0xff] }
 0x414   : > { %8527 = vmatprep.subr.bf16.mxu1 %v8526_v13  ;;  %v1497_v9 = vld [vmem:[%s9315_s8 + $0x26e0] sm:$0xff]  ;;  %v1506_v13 = vld [vmem:[%s9315_s8 + $0x2728] sm:$0xff]  ;;  %v1660_v2 = vld [vmem:[%s9315_s8 + $0x2bf8] sm:$0xff] }
 0x415   : > { %v7876_v17 = vpack.c.bf16 %v1497_v9, %v1489_v8  ;;  %v1577_v8 = vld [vmem:[%s9315_s8 + $0x2960] sm:$0xff]  ;;  %v1571_v9 = vld [vmem:[%s9315_s8 + $0x2930] sm:$0xff] }
 0x416   : > { %7857 = vmatpush1.bf16.msra.mxu0 %v7856_v19  ;;  %v7878_v19 = vpack.c.bf16 %v1514_v14, %v1506_v13  ;;  %v1594_v13 = vld [vmem:[%s9315_s8 + $0x29e8] sm:$0xff]  ;;  %v9058_v14 = vld [vmem:[%s12194_s0 + $0x58] sm:$0xff] }
 0x417   : > { %8529 = vmatpush1.bf16.msra.mxu1 %v8528_v20  ;;  %7859 = vmatprep.subr.bf16.mxu0 %v7858_v21  ;;  %v1505_v20 = vld [vmem:[%s9315_s8 + $0x2720] sm:$0xff] }
 0x418   : > { %8531 = vmatprep.subr.bf16.mxu1 %v8530_v25  ;;  %v1513_v21 = vld [vmem:[%s9315_s8 + $0x2760] sm:$0xff]  ;;  %v1522_v25 = vld [vmem:[%s9315_s8 + $0x27a8] sm:$0xff] }
 0x419   : > { %v7880_v29 = vpack.c.bf16 %v1513_v21, %v1505_v20  ;;  %v1585_v20 = vld [vmem:[%s9315_s8 + $0x29a0] sm:$0xff] }
 0x41a   : > { %7861 = vmatpush1.bf16.msra.mxu0 %v7860_v31  ;;  %v7882_v31 = vpack.c.bf16 %v1530_v26, %v1522_v25  ;;  %v1593_v21 = vld [vmem:[%s9315_s8 + $0x29e0] sm:$0xff]  ;;  %v1602_v25 = vld [vmem:[%s9315_s8 + $0x2a28] sm:$0xff] }
 0x41b   : > { %8533 = vmatpush1.bf16.msra.mxu1 %v8532_v32  ;;  %7863 = vmatprep.subr.bf16.mxu0 %v7862_v33  ;;  %v1521_v32 = vld [vmem:[%s9315_s8 + $0x27a0] sm:$0xff]  ;;  %v1610_v26 = vld [vmem:[%s9315_s8 + $0x2a68] sm:$0xff] }
 0x41c   : > { %8535 = vmatprep.subr.bf16.mxu1 %v8534_v37  ;;  %v1529_v33 = vld [vmem:[%s9315_s8 + $0x27e0] sm:$0xff]  ;;  %v1538_v37 = vld [vmem:[%s9315_s8 + $0x2828] sm:$0xff] }
 0x41d   : > { %v7884_v41 = vpack.c.bf16 %v1529_v33, %v1521_v32  ;;  %v1601_v32 = vld [vmem:[%s9315_s8 + $0x2a20] sm:$0xff] }
 0x41e   : > { %7865 = vmatpush1.bf16.msra.mxu0 %v7864_v43  ;;  %v7886_v43 = vpack.c.bf16 %v1546_v38, %v1538_v37  ;;  %v1609_v33 = vld [vmem:[%s9315_s8 + $0x2a60] sm:$0xff]  ;;  %v1618_v37 = vld [vmem:[%s9315_s8 + $0x2aa8] sm:$0xff] }
 0x41f   : > { %8537 = vmatpush1.bf16.msra.mxu1 %v8536_v44  ;;  %7867 = vmatprep.subr.bf16.mxu0 %v7866_v45  ;;  %v1537_v44 = vld [vmem:[%s9315_s8 + $0x2820] sm:$0xff]  ;;  %v1626_v38 = vld [vmem:[%s9315_s8 + $0x2ae8] sm:$0xff] }
 0x420   : > { %8539 = vmatprep.subr.bf16.mxu1 %v8538_v49  ;;  %v1545_v45 = vld [vmem:[%s9315_s8 + $0x2860] sm:$0xff]  ;;  %v1554_v49 = vld [vmem:[%s9315_s8 + $0x28a8] sm:$0xff] }
 0x421   : > { %v7888_v53 = vpack.c.bf16 %v1545_v45, %v1537_v44  ;;  %v1617_v44 = vld [vmem:[%s9315_s8 + $0x2aa0] sm:$0xff] }
 0x422   : > { %7869 = vmatpush1.bf16.msra.mxu0 %v7868_v55  ;;  %v7890_v55 = vpack.c.bf16 %v1562_v50, %v1554_v49  ;;  %v1625_v45 = vld [vmem:[%s9315_s8 + $0x2ae0] sm:$0xff]  ;;  %v1634_v49 = vld [vmem:[%s9315_s8 + $0x2b28] sm:$0xff] }
 0x423   : > { %8541 = vmatpush1.bf16.msra.mxu1 %v8540_v57  ;;  %7871 = vmatprep.subr.bf16.mxu0 %v7870_v58  ;;  %v1553_v57 = vld [vmem:[%s9315_s8 + $0x28a0] sm:$0xff]  ;;  %v1642_v50 = vld [vmem:[%s9315_s8 + $0x2b68] sm:$0xff] }
 0x424   : > { %8543 = vmatprep.subr.bf16.mxu1 %v8542_v63  ;;  %v1561_v58 = vld [vmem:[%s9315_s8 + $0x28e0] sm:$0xff]  ;;  %v1570_v63 = vld [vmem:[%s9315_s8 + $0x2928] sm:$0xff] }
 0x425   : > { %v7892_v4 = vpack.c.bf16 %v1561_v58, %v1553_v57  ;;  %v1633_v57 = vld [vmem:[%s9315_s8 + $0x2b20] sm:$0xff] }
 0x426   : > { %7873 = vmatpush1.bf16.msra.mxu0 %v7872_v5  ;;  %v8564_v5 = vpack.c.bf16 %v1563_v62, %v1555_v60  ;;  %v1641_v58 = vld [vmem:[%s9315_s8 + $0x2b60] sm:$0xff]  ;;  %v1635_v60 = vld [vmem:[%s9315_s8 + $0x2b30] sm:$0xff] }
 0x427   : > { %8545 = vmatpush1.bf16.msra.mxu1 %v8544_v6  ;;  %7875 = vmatprep.subr.bf16.mxu0 %v7874_v7  ;;  %v7894_v6 = vpack.c.bf16 %v1578_v0, %v1570_v63  ;;  %v1569_v7 = vld [vmem:[%s9315_s8 + $0x2920] sm:$0xff]  ;;  %v1643_v62 = vld [vmem:[%s9315_s8 + $0x2b70] sm:$0xff]  ;;  %v1650_v63 = vld [vmem:[%s9315_s8 + $0x2ba8] sm:$0xff]  ;;  %v7912_v3 = vpack.c.bf16 %v1641_v58, %v1633_v57 }
 0x428   : > { %8547 = vmatprep.subr.bf16.mxu1 %v8546_v11  ;;  %v1579_v11 = vld [vmem:[%s9315_s8 + $0x2970] sm:$0xff]  ;;  %v1658_v0 = vld [vmem:[%s9315_s8 + $0x2be8] sm:$0xff] }
 0x429   : > { %v1715_v57 = vld [vmem:[%s9315_s8 + $0x2db0] sm:$0xff] }
 0x42a   : > { %7877 = vmatpush1.bf16.msra.mxu0 %v7876_v17  ;;  %v7896_v17 = vpack.c.bf16 %v1577_v8, %v1569_v7  ;;  %v1657_v7 = vld [vmem:[%s9315_s8 + $0x2be0] sm:$0xff]  ;;  %v1651_v8 = vld [vmem:[%s9315_s8 + $0x2bb0] sm:$0xff] }
 0x42b   : > { %8549 = vmatpush1.bf16.msra.mxu1 %v8548_v18  ;;  %7879 = vmatprep.subr.bf16.mxu0 %v7878_v19  ;;  %v8568_v18 = vpack.c.bf16 %v1579_v11, %v1571_v9  ;;  %v7898_v19 = vpack.c.bf16 %v1594_v13, %v1586_v12  ;;  %v1666_v11 = vld [vmem:[%s9315_s8 + $0x2c28] sm:$0xff]  ;;  %v1668_v13 = vld [vmem:[%s9315_s8 + $0x2c38] sm:$0xff] }
 0x42c   : > { %8551 = vmatprep.subr.bf16.mxu1 %v8550_v23  ;;  %v8570_v23 = vpack.c.bf16 %v1596_v16, %v1588_v15  ;;  %v1674_v12 = vld [vmem:[%s9315_s8 + $0x2c68] sm:$0xff] }
 0x42e   : > { %7881 = vmatpush1.bf16.msra.mxu0 %v7880_v29  ;;  %v7900_v29 = vpack.c.bf16 %v1593_v21, %v1585_v20  ;;  %v1667_v20 = vld [vmem:[%s9315_s8 + $0x2c30] sm:$0xff] }
 0x42f   : > { %8553 = vmatpush1.bf16.msra.mxu1 %v8552_v30  ;;  %7883 = vmatprep.subr.bf16.mxu0 %v7882_v31  ;;  %v8572_v30 = vpack.c.bf16 %v1595_v24, %v1587_v22  ;;  %v7902_v31 = vpack.c.bf16 %v1610_v26, %v1602_v25  ;;  %v1675_v22 = vld [vmem:[%s9315_s8 + $0x2c70] sm:$0xff]  ;;  %v1690_v24 = vld [vmem:[%s9315_s8 + $0x2ce8] sm:$0xff]  ;;  %v1684_v25 = vld [vmem:[%s9315_s8 + $0x2cb8] sm:$0xff] }
 0x430   : > { %8555 = vmatprep.subr.bf16.mxu1 %v8554_v35  ;;  %v8574_v35 = vpack.c.bf16 %v1612_v28, %v1604_v27  ;;  %v1692_v26 = vld [vmem:[%s9315_s8 + $0x2cf8] sm:$0xff]  ;;  %v8592_v28 = vpack.c.bf16 %v1675_v22, %v1667_v20  ;;  %v1755_v20 = vld [vmem:[%s9315_s8 + $0x2ef0] sm:$0xff]  ;;  %v1770_v22 = vld [vmem:[%s9315_s8 + $0x2f68] sm:$0xff] }
 0x432   : > { %7885 = vmatpush1.bf16.msra.mxu0 %v7884_v41  ;;  %v7904_v41 = vpack.c.bf16 %v1609_v33, %v1601_v32  ;;  %v1683_v32 = vld [vmem:[%s9315_s8 + $0x2cb0] sm:$0xff]  ;;  %v8594_v33 = vpack.c.bf16 %v1692_v26, %v1684_v25 }
 0x433   : > { %8557 = vmatpush1.bf16.msra.mxu1 %v8556_v42  ;;  %7887 = vmatprep.subr.bf16.mxu0 %v7886_v43  ;;  %v8576_v42 = vpack.c.bf16 %v1611_v36, %v1603_v34  ;;  %v7906_v43 = vpack.c.bf16 %v1626_v38, %v1618_v37  ;;  %v1691_v34 = vld [vmem:[%s9315_s8 + $0x2cf0] sm:$0xff]  ;;  %v1706_v36 = vld [vmem:[%s9315_s8 + $0x2d68] sm:$0xff]  ;;  %v1700_v37 = vld [vmem:[%s9315_s8 + $0x2d38] sm:$0xff] }
 0x434   : > { %8559 = vmatprep.subr.bf16.mxu1 %v8558_v47  ;;  %v8578_v47 = vpack.c.bf16 %v1628_v40, %v1620_v39  ;;  %v1708_v38 = vld [vmem:[%s9315_s8 + $0x2d78] sm:$0xff]  ;;  %v8596_v40 = vpack.c.bf16 %v1691_v34, %v1683_v32  ;;  %v1771_v32 = vld [vmem:[%s9315_s8 + $0x2f70] sm:$0xff]  ;;  %v1786_v34 = vld [vmem:[%s9315_s8 + $0x2fe8] sm:$0xff] }
 0x435   : > { %4894 = vmatmul.mubr.f32.vlgmr.msra.gmra.mrb[2].mxu0 %v9057_v1 }
 0x436   : > { %7889 = vmatpush1.bf16.msra.mxu0 %v7888_v53  ;;  %5675 = vmatmul.mubr.f32.vlgmr.msra.gmra.mrb[2].mxu1 %v9057_v1  ;;  %v7908_v53 = vpack.c.bf16 %v1625_v45, %v1617_v44  ;;  %v1652_v1 = vld [vmem:[%s9315_s8 + $0x2bb8] sm:$0xff]  ;;  %v1699_v44 = vld [vmem:[%s9315_s8 + $0x2d30] sm:$0xff]  ;;  %v8598_v45 = vpack.c.bf16 %v1708_v38, %v1700_v37 }
 0x437   : > { %8561 = vmatpush1.bf16.msra.mxu1 %v8560_v54  ;;  %7891 = vmatprep.subr.bf16.mxu0 %v7890_v55  ;;  %v8580_v54 = vpack.c.bf16 %v1627_v48, %v1619_v46  ;;  %v7910_v55 = vpack.c.bf16 %v1642_v50, %v1634_v49  ;;  %v8586_v9 = vpack.c.bf16 %v1660_v2, %v1652_v1  ;;  %v1707_v46 = vld [vmem:[%s9315_s8 + $0x2d70] sm:$0xff]  ;;  %v1722_v48 = vld [vmem:[%s9315_s8 + $0x2de8] sm:$0xff]  ;;  %v1716_v49 = vld [vmem:[%s9315_s8 + $0x2db8] sm:$0xff] }
 0x438   : > { %8563 = vmatprep.subr.bf16.mxu1 %v8562_v61  ;;  %4964 = vmatprep.mubr.f32.mxu0 %v9058_v14  ;;  %v8582_v61 = vpack.c.bf16 %v1644_v52, %v1636_v51  ;;  %v1724_v50 = vld [vmem:[%s9315_s8 + $0x2df8] sm:$0xff]  ;;  %v8600_v52 = vpack.c.bf16 %v1707_v46, %v1699_v44  ;;  %v1787_v44 = vld [vmem:[%s9315_s8 + $0x2ff0] sm:$0xff]  ;;  %v1802_v46 = vld [vmem:[%s9315_s8 + $0x3068] sm:$0xff] }
 0x439   : > { %5745 = vmatprep.mubr.f32.mxu1 %v9058_v14  ;;  %v1676_v14 = vld [vmem:[%s9315_s8 + $0x2c78] sm:$0xff]  ;;  %v8602_v58 = vpack.c.bf16 %v1724_v50, %v1716_v49 }
 0x43a   : > { %7893 = vmatpush1.bf16.msra.mxu0 %v7892_v4  ;;  %v8584_v4 = vpack.c.bf16 %v1643_v62, %v1635_v60  ;;  %v8590_v21 = vpack.c.bf16 %v1676_v14, %v1668_v13  ;;  %v1723_v60 = vld [vmem:[%s9315_s8 + $0x2df0] sm:$0xff]  ;;  %v1738_v62 = vld [vmem:[%s9315_s8 + $0x2e68] sm:$0xff] }
 0x43b   : > { %8565 = vmatpush1.bf16.msra.mxu1 %v8564_v5  ;;  %7895 = vmatprep.subr.bf16.mxu0 %v7894_v6  ;;  %v7914_v5 = vpack.c.bf16 %v1658_v0, %v1650_v63  ;;  %v1649_v6 = vld [vmem:[%s9315_s8 + $0x2ba0] sm:$0xff]  ;;  %v1732_v63 = vld [vmem:[%s9315_s8 + $0x2e38] sm:$0xff]  ;;  %v8604_v2 = vpack.c.bf16 %v1723_v60, %v1715_v57  ;;  %v1803_v57 = vld [vmem:[%s9315_s8 + $0x3070] sm:$0xff] }
 0x43c   : > { %8567 = vmatprep.subr.bf16.mxu1 %v8566_v10  ;;  %v1659_v10 = vld [vmem:[%s9315_s8 + $0x2bf0] sm:$0xff]  ;;  %v7916_v15 = vpack.c.bf16 %v1657_v7, %v1649_v6  ;;  %v1740_v0 = vld [vmem:[%s9315_s8 + $0x2e78] sm:$0xff]  ;;  %v1818_v60 = vld [vmem:[%s9315_s8 + $0x30e8] sm:$0xff] }
 0x43d   : > { %v8588_v16 = vpack.c.bf16 %v1659_v10, %v1651_v8  ;;  %v1731_v6 = vld [vmem:[%s9315_s8 + $0x2e30] sm:$0xff]  ;;  %v8606_v7 = vpack.c.bf16 %v1740_v0, %v1732_v63  ;;  %v1754_v10 = vld [vmem:[%s9315_s8 + $0x2ee8] sm:$0xff] }
 0x43e   : > { %7897 = vmatpush1.bf16.msra.mxu0 %v7896_v17  ;;  %v7918_v17 = vpack.c.bf16 %v1674_v12, %v1666_v11  ;;  %v1739_v8 = vld [vmem:[%s9315_s8 + $0x2e70] sm:$0xff]  ;;  %v1748_v11 = vld [vmem:[%s9315_s8 + $0x2eb8] sm:$0xff] }
 0x43f   : > { %8569 = vmatpush1.bf16.msra.mxu1 %v8568_v18  ;;  %7899 = vmatprep.subr.bf16.mxu0 %v7898_v19  ;;  %v1665_v18 = vld [vmem:[%s9315_s8 + $0x2c20] sm:$0xff]  ;;  %v1756_v12 = vld [vmem:[%s9315_s8 + $0x2ef8] sm:$0xff]  ;;  %v8608_v14 = vpack.c.bf16 %v1739_v8, %v1731_v6  ;;  %v1819_v6 = vld [vmem:[%s9315_s8 + $0x30f0] sm:$0xff] }
 0x440   : > { %8571 = vmatprep.subr.bf16.mxu1 %v8570_v23  ;;  %v1673_v19 = vld [vmem:[%s9315_s8 + $0x2c60] sm:$0xff]  ;;  %v1682_v23 = vld [vmem:[%s9315_s8 + $0x2ca8] sm:$0xff] }
 0x441   : > { %v7920_v27 = vpack.c.bf16 %v1673_v19, %v1665_v18  ;;  %v1747_v18 = vld [vmem:[%s9315_s8 + $0x2eb0] sm:$0xff]  ;;  %v8610_v19 = vpack.c.bf16 %v1756_v12, %v1748_v11  ;;  %v1834_v8 = vld [vmem:[%s9315_s8 + $0x3168] sm:$0xff]  ;;  %v1836_v11 = vld [vmem:[%s9315_s8 + $0x3178] sm:$0xff] }
 0x442   : > { %7901 = vmatpush1.bf16.msra.mxu0 %v7900_v29  ;;  %v7922_v29 = vpack.c.bf16 %v1690_v24, %v1682_v23  ;;  %v1764_v23 = vld [vmem:[%s9315_s8 + $0x2f38] sm:$0xff]  ;;  %v8612_v26 = vpack.c.bf16 %v1755_v20, %v1747_v18  ;;  %v1842_v20 = vld [vmem:[%s9315_s8 + $0x31a8] sm:$0xff] }
 0x443   : > { %8573 = vmatpush1.bf16.msra.mxu1 %v8572_v30  ;;  %7903 = vmatprep.subr.bf16.mxu0 %v7902_v31  ;;  %v1681_v30 = vld [vmem:[%s9315_s8 + $0x2ca0] sm:$0xff]  ;;  %v1772_v24 = vld [vmem:[%s9315_s8 + $0x2f78] sm:$0xff] }
 0x444   : > { %8575 = vmatprep.subr.bf16.mxu1 %v8574_v35  ;;  %v1689_v31 = vld [vmem:[%s9315_s8 + $0x2ce0] sm:$0xff]  ;;  %v1698_v35 = vld [vmem:[%s9315_s8 + $0x2d28] sm:$0xff] }
 0x445   : > { %v7924_v39 = vpack.c.bf16 %v1689_v31, %v1681_v30  ;;  %v1763_v30 = vld [vmem:[%s9315_s8 + $0x2f30] sm:$0xff]  ;;  %v8614_v31 = vpack.c.bf16 %v1772_v24, %v1764_v23  ;;  %v1844_v23 = vld [vmem:[%s9315_s8 + $0x31b8] sm:$0xff] }
 0x446   : > { %7905 = vmatpush1.bf16.msra.mxu0 %v7904_v41  ;;  %v7926_v41 = vpack.c.bf16 %v1706_v36, %v1698_v35  ;;  %v1780_v35 = vld [vmem:[%s9315_s8 + $0x2fb8] sm:$0xff]  ;;  %v8616_v38 = vpack.c.bf16 %v1771_v32, %v1763_v30  ;;  %v1843_v30 = vld [vmem:[%s9315_s8 + $0x31b0] sm:$0xff] }
 0x447   : > { %8577 = vmatpush1.bf16.msra.mxu1 %v8576_v42  ;;  %7907 = vmatprep.subr.bf16.mxu0 %v7906_v43  ;;  %v1697_v42 = vld [vmem:[%s9315_s8 + $0x2d20] sm:$0xff]  ;;  %v1788_v36 = vld [vmem:[%s9315_s8 + $0x2ff8] sm:$0xff]  ;;  %v1851_v32 = vld [vmem:[%s9315_s8 + $0x31f0] sm:$0xff] }
 0x448   : > { %8579 = vmatprep.subr.bf16.mxu1 %v8578_v47  ;;  %v1705_v43 = vld [vmem:[%s9315_s8 + $0x2d60] sm:$0xff]  ;;  %v1714_v47 = vld [vmem:[%s9315_s8 + $0x2da8] sm:$0xff]  ;;  %v1852_v24 = vld [vmem:[%s9315_s8 + $0x31f8] sm:$0xff] }
 0x449   : > { %v7928_v51 = vpack.c.bf16 %v1705_v43, %v1697_v42  ;;  %v1779_v42 = vld [vmem:[%s9315_s8 + $0x2fb0] sm:$0xff]  ;;  %v8618_v43 = vpack.c.bf16 %v1788_v36, %v1780_v35  ;;  %v1860_v35 = vld [vmem:[%s9315_s8 + $0x3238] sm:$0xff] }
 0x44a   : > { %7909 = vmatpush1.bf16.msra.mxu0 %v7908_v53  ;;  %v7930_v53 = vpack.c.bf16 %v1722_v48, %v1714_v47  ;;  %v1796_v47 = vld [vmem:[%s9315_s8 + $0x3038] sm:$0xff]  ;;  %v8620_v50 = vpack.c.bf16 %v1787_v44, %v1779_v42  ;;  %v1859_v42 = vld [vmem:[%s9315_s8 + $0x3230] sm:$0xff] }
 0x44b   : > { %8581 = vmatpush1.bf16.msra.mxu1 %v8580_v54  ;;  %7911 = vmatprep.subr.bf16.mxu0 %v7910_v55  ;;  %v1713_v54 = vld [vmem:[%s9315_s8 + $0x2da0] sm:$0xff]  ;;  %v1804_v48 = vld [vmem:[%s9315_s8 + $0x3078] sm:$0xff]  ;;  %v1867_v44 = vld [vmem:[%s9315_s8 + $0x3270] sm:$0xff] }
 0x44c   : > { %8583 = vmatprep.subr.bf16.mxu1 %v8582_v61  ;;  %v1721_v55 = vld [vmem:[%s9315_s8 + $0x2de0] sm:$0xff]  ;;  %v1730_v61 = vld [vmem:[%s9315_s8 + $0x2e28] sm:$0xff]  ;;  %v1868_v36 = vld [vmem:[%s9315_s8 + $0x3278] sm:$0xff] }
 0x44d   : > { %v7932_v1 = vpack.c.bf16 %v1721_v55, %v1713_v54  ;;  %v1795_v54 = vld [vmem:[%s9315_s8 + $0x3030] sm:$0xff]  ;;  %v8622_v55 = vpack.c.bf16 %v1804_v48, %v1796_v47  ;;  %v1876_v47 = vld [vmem:[%s9315_s8 + $0x32b8] sm:$0xff] }
 0x44e   : > { %7913 = vmatpush1.bf16.msra.mxu0 %v7912_v3  ;;  %v7934_v3 = vpack.c.bf16 %v1738_v62, %v1730_v61  ;;  %v1812_v61 = vld [vmem:[%s9315_s8 + $0x30b8] sm:$0xff]  ;;  %v8624_v0 = vpack.c.bf16 %v1803_v57, %v1795_v54  ;;  %v1875_v54 = vld [vmem:[%s9315_s8 + $0x32b0] sm:$0xff] }
 0x44f   : > { %8585 = vmatpush1.bf16.msra.mxu1 %v8584_v4  ;;  %7915 = vmatprep.subr.bf16.mxu0 %v7914_v5  ;;  %v1729_v4 = vld [vmem:[%s9315_s8 + $0x2e20] sm:$0xff]  ;;  %v1820_v62 = vld [vmem:[%s9315_s8 + $0x30f8] sm:$0xff]  ;;  %v1883_v57 = vld [vmem:[%s9315_s8 + $0x32f0] sm:$0xff] }
 0x450   : > { %8587 = vmatprep.subr.bf16.mxu1 %v8586_v9  ;;  %v1737_v5 = vld [vmem:[%s9315_s8 + $0x2e60] sm:$0xff]  ;;  %v1746_v9 = vld [vmem:[%s9315_s8 + $0x2ea8] sm:$0xff]  ;;  %v1884_v48 = vld [vmem:[%s9315_s8 + $0x32f8] sm:$0xff] }
 0x451   : > { %v7936_v13 = vpack.c.bf16 %v1737_v5, %v1729_v4  ;;  %v1811_v4 = vld [vmem:[%s9315_s8 + $0x30b0] sm:$0xff]  ;;  %v8626_v5 = vpack.c.bf16 %v1820_v62, %v1812_v61  ;;  %v1892_v61 = vld [vmem:[%s9315_s8 + $0x3338] sm:$0xff] }
 0x452   : > { %7917 = vmatpush1.bf16.msra.mxu0 %v7916_v15  ;;  %v7938_v15 = vpack.c.bf16 %v1754_v10, %v1746_v9  ;;  %v9059_v9 = vld [vmem:[%s12194_s0 + $0x50] sm:$0xff]  ;;  %v1828_v10 = vld [vmem:[%s9315_s8 + $0x3138] sm:$0xff] }
 0x453   : > { %8589 = vmatpush1.bf16.msra.mxu1 %v8588_v16  ;;  %7919 = vmatprep.subr.bf16.mxu0 %v7918_v17  ;;  %v1745_v16 = vld [vmem:[%s9315_s8 + $0x2ea0] sm:$0xff]  ;;  %v8630_v18 = vpack.c.bf16 %v1836_v11, %v1828_v10  ;;  %v1900_v62 = vld [vmem:[%s9315_s8 + $0x3378] sm:$0xff] }
 0x454   : > { %8591 = vmatprep.subr.bf16.mxu1 %v8590_v21  ;;  %v1753_v17 = vld [vmem:[%s9315_s8 + $0x2ee0] sm:$0xff]  ;;  %v1762_v21 = vld [vmem:[%s9315_s8 + $0x2f28] sm:$0xff]  ;;  %v1916_v10 = vld [vmem:[%s9315_s8 + $0x33f8] sm:$0xff] }
 0x455   : > { %v7940_v25 = vpack.c.bf16 %v1753_v17, %v1745_v16  ;;  %v1833_v16 = vld [vmem:[%s9315_s8 + $0x3160] sm:$0xff]  ;;  %v1827_v17 = vld [vmem:[%s9315_s8 + $0x3130] sm:$0xff] }
 0x456   : > { %7921 = vmatpush1.bf16.msra.mxu0 %v7920_v27  ;;  %v7942_v27 = vpack.c.bf16 %v1770_v22, %v1762_v21  ;;  %v1850_v21 = vld [vmem:[%s9315_s8 + $0x31e8] sm:$0xff] }
 0x457   : > { %8593 = vmatpush1.bf16.msra.mxu1 %v8592_v28  ;;  %7923 = vmatprep.subr.bf16.mxu0 %v7922_v29  ;;  %v1761_v28 = vld [vmem:[%s9315_s8 + $0x2f20] sm:$0xff]  ;;  %v9060_v22 = vld [vmem:[%s12194_s0 + $0x68] sm:$0xff] }
 0x458   : > { %8595 = vmatprep.subr.bf16.mxu1 %v8594_v33  ;;  %v1769_v29 = vld [vmem:[%s9315_s8 + $0x2f60] sm:$0xff]  ;;  %v1778_v33 = vld [vmem:[%s9315_s8 + $0x2fa8] sm:$0xff] }
 0x459   : > { %v7944_v37 = vpack.c.bf16 %v1769_v29, %v1761_v28  ;;  %v1841_v28 = vld [vmem:[%s9315_s8 + $0x31a0] sm:$0xff] }
 0x45a   : > { %7925 = vmatpush1.bf16.msra.mxu0 %v7924_v39  ;;  %v7946_v39 = vpack.c.bf16 %v1786_v34, %v1778_v33  ;;  %v1849_v29 = vld [vmem:[%s9315_s8 + $0x31e0] sm:$0xff]  ;;  %v1858_v33 = vld [vmem:[%s9315_s8 + $0x3228] sm:$0xff] }
 0x45b   : > { %8597 = vmatpush1.bf16.msra.mxu1 %v8596_v40  ;;  %7927 = vmatprep.subr.bf16.mxu0 %v7926_v41  ;;  %v1777_v40 = vld [vmem:[%s9315_s8 + $0x2fa0] sm:$0xff]  ;;  %v1866_v34 = vld [vmem:[%s9315_s8 + $0x3268] sm:$0xff] }
 0x45c   : > { %8599 = vmatprep.subr.bf16.mxu1 %v8598_v45  ;;  %v1785_v41 = vld [vmem:[%s9315_s8 + $0x2fe0] sm:$0xff]  ;;  %v1794_v45 = vld [vmem:[%s9315_s8 + $0x3028] sm:$0xff] }
 0x45d   : > { %v7948_v49 = vpack.c.bf16 %v1785_v41, %v1777_v40  ;;  %v1857_v40 = vld [vmem:[%s9315_s8 + $0x3220] sm:$0xff] }
 0x45e   : > { %7929 = vmatpush1.bf16.msra.mxu0 %v7928_v51  ;;  %v7950_v51 = vpack.c.bf16 %v1802_v46, %v1794_v45  ;;  %v1865_v41 = vld [vmem:[%s9315_s8 + $0x3260] sm:$0xff]  ;;  %v1874_v45 = vld [vmem:[%s9315_s8 + $0x32a8] sm:$0xff] }
 0x45f   : > { %8601 = vmatpush1.bf16.msra.mxu1 %v8600_v52  ;;  %7931 = vmatprep.subr.bf16.mxu0 %v7930_v53  ;;  %v1793_v52 = vld [vmem:[%s9315_s8 + $0x3020] sm:$0xff]  ;;  %v1882_v46 = vld [vmem:[%s9315_s8 + $0x32e8] sm:$0xff] }
 0x460   : > { %8603 = vmatprep.subr.bf16.mxu1 %v8602_v58  ;;  %v1801_v53 = vld [vmem:[%s9315_s8 + $0x3060] sm:$0xff]  ;;  %v1810_v58 = vld [vmem:[%s9315_s8 + $0x30a8] sm:$0xff] }
 0x461   : > { %v7952_v63 = vpack.c.bf16 %v1801_v53, %v1793_v52  ;;  %v1873_v52 = vld [vmem:[%s9315_s8 + $0x32a0] sm:$0xff] }
 0x462   : > { %7933 = vmatpush1.bf16.msra.mxu0 %v7932_v1  ;;  %v7954_v1 = vpack.c.bf16 %v1818_v60, %v1810_v58  ;;  %v1881_v53 = vld [vmem:[%s9315_s8 + $0x32e0] sm:$0xff]  ;;  %v1890_v58 = vld [vmem:[%s9315_s8 + $0x3328] sm:$0xff] }
 0x463   : > { %8605 = vmatpush1.bf16.msra.mxu1 %v8604_v2  ;;  %7935 = vmatprep.subr.bf16.mxu0 %v7934_v3  ;;  %v1809_v2 = vld [vmem:[%s9315_s8 + $0x30a0] sm:$0xff]  ;;  %v1898_v60 = vld [vmem:[%s9315_s8 + $0x3368] sm:$0xff] }
 0x464   : > { %8607 = vmatprep.subr.bf16.mxu1 %v8606_v7  ;;  %v1817_v3 = vld [vmem:[%s9315_s8 + $0x30e0] sm:$0xff]  ;;  %v1826_v7 = vld [vmem:[%s9315_s8 + $0x3128] sm:$0xff] }
 0x465   : > { %v7956_v12 = vpack.c.bf16 %v1817_v3, %v1809_v2  ;;  %v1889_v2 = vld [vmem:[%s9315_s8 + $0x3320] sm:$0xff] }
 0x466   : > { %7937 = vmatpush1.bf16.msra.mxu0 %v7936_v13  ;;  %v8628_v13 = vpack.c.bf16 %v1819_v6, %v1811_v4  ;;  %v1897_v3 = vld [vmem:[%s9315_s8 + $0x3360] sm:$0xff]  ;;  %v1891_v4 = vld [vmem:[%s9315_s8 + $0x3330] sm:$0xff] }
 0x467   : > { %8609 = vmatpush1.bf16.msra.mxu1 %v8608_v14  ;;  %7939 = vmatprep.subr.bf16.mxu0 %v7938_v15  ;;  %v7958_v14 = vpack.c.bf16 %v1834_v8, %v1826_v7  ;;  %v1825_v15 = vld [vmem:[%s9315_s8 + $0x3120] sm:$0xff]  ;;  %v1899_v6 = vld [vmem:[%s9315_s8 + $0x3370] sm:$0xff]  ;;  %v1906_v7 = vld [vmem:[%s9315_s8 + $0x33a8] sm:$0xff]  ;;  %v7976_v11 = vpack.c.bf16 %v1897_v3, %v1889_v2 }
 0x468   : > { %8611 = vmatprep.subr.bf16.mxu1 %v8610_v19  ;;  %v1835_v19 = vld [vmem:[%s9315_s8 + $0x3170] sm:$0xff]  ;;  %v1914_v8 = vld [vmem:[%s9315_s8 + $0x33e8] sm:$0xff] }
 0x469   : > { %v1971_v2 = vld [vmem:[%s9315_s8 + $0x35b0] sm:$0xff] }
 0x46a   : > { %7941 = vmatpush1.bf16.msra.mxu0 %v7940_v25  ;;  %v7960_v25 = vpack.c.bf16 %v1833_v16, %v1825_v15  ;;  %v1913_v15 = vld [vmem:[%s9315_s8 + $0x33e0] sm:$0xff]  ;;  %v1907_v16 = vld [vmem:[%s9315_s8 + $0x33b0] sm:$0xff] }
 0x46b   : > { %8613 = vmatpush1.bf16.msra.mxu1 %v8612_v26  ;;  %7943 = vmatprep.subr.bf16.mxu0 %v7942_v27  ;;  %v8632_v26 = vpack.c.bf16 %v1835_v19, %v1827_v17  ;;  %v7962_v27 = vpack.c.bf16 %v1850_v21, %v1842_v20  ;;  %v1922_v19 = vld [vmem:[%s9315_s8 + $0x3428] sm:$0xff]  ;;  %v1924_v21 = vld [vmem:[%s9315_s8 + $0x3438] sm:$0xff] }
 0x46c   : > { %8615 = vmatprep.subr.bf16.mxu1 %v8614_v31  ;;  %v8634_v31 = vpack.c.bf16 %v1852_v24, %v1844_v23  ;;  %v1930_v20 = vld [vmem:[%s9315_s8 + $0x3468] sm:$0xff] }
 0x46e   : > { %7945 = vmatpush1.bf16.msra.mxu0 %v7944_v37  ;;  %v7964_v37 = vpack.c.bf16 %v1849_v29, %v1841_v28  ;;  %v1923_v28 = vld [vmem:[%s9315_s8 + $0x3430] sm:$0xff] }
 0x46f   : > { %8617 = vmatpush1.bf16.msra.mxu1 %v8616_v38  ;;  %7947 = vmatprep.subr.bf16.mxu0 %v7946_v39  ;;  %v8636_v38 = vpack.c.bf16 %v1851_v32, %v1843_v30  ;;  %v7966_v39 = vpack.c.bf16 %v1866_v34, %v1858_v33  ;;  %v1931_v30 = vld [vmem:[%s9315_s8 + $0x3470] sm:$0xff]  ;;  %v1946_v32 = vld [vmem:[%s9315_s8 + $0x34e8] sm:$0xff]  ;;  %v1940_v33 = vld [vmem:[%s9315_s8 + $0x34b8] sm:$0xff] }
 0x470   : > { %8619 = vmatprep.subr.bf16.mxu1 %v8618_v43  ;;  %v8638_v43 = vpack.c.bf16 %v1868_v36, %v1860_v35  ;;  %v1948_v34 = vld [vmem:[%s9315_s8 + $0x34f8] sm:$0xff]  ;;  %v8656_v36 = vpack.c.bf16 %v1931_v30, %v1923_v28  ;;  %v2011_v28 = vld [vmem:[%s9315_s8 + $0x36f0] sm:$0xff]  ;;  %v2026_v30 = vld [vmem:[%s9315_s8 + $0x3768] sm:$0xff] }
 0x472   : > { %7949 = vmatpush1.bf16.msra.mxu0 %v7948_v49  ;;  %v7968_v49 = vpack.c.bf16 %v1865_v41, %v1857_v40  ;;  %v1939_v40 = vld [vmem:[%s9315_s8 + $0x34b0] sm:$0xff]  ;;  %v8658_v41 = vpack.c.bf16 %v1948_v34, %v1940_v33 }
 0x473   : > { %8621 = vmatpush1.bf16.msra.mxu1 %v8620_v50  ;;  %7951 = vmatprep.subr.bf16.mxu0 %v7950_v51  ;;  %v8640_v50 = vpack.c.bf16 %v1867_v44, %v1859_v42  ;;  %v7970_v51 = vpack.c.bf16 %v1882_v46, %v1874_v45  ;;  %v1947_v42 = vld [vmem:[%s9315_s8 + $0x34f0] sm:$0xff]  ;;  %v1962_v44 = vld [vmem:[%s9315_s8 + $0x3568] sm:$0xff]  ;;  %v1956_v45 = vld [vmem:[%s9315_s8 + $0x3538] sm:$0xff] }
 0x474   : > { %8623 = vmatprep.subr.bf16.mxu1 %v8622_v55  ;;  %v8642_v55 = vpack.c.bf16 %v1884_v48, %v1876_v47  ;;  %v1964_v46 = vld [vmem:[%s9315_s8 + $0x3578] sm:$0xff]  ;;  %v8660_v48 = vpack.c.bf16 %v1947_v42, %v1939_v40  ;;  %v2027_v40 = vld [vmem:[%s9315_s8 + $0x3770] sm:$0xff]  ;;  %v2042_v42 = vld [vmem:[%s9315_s8 + $0x37e8] sm:$0xff] }
 0x475   : > { %4965 = vmatmul.mubr.f32.vlgmr.msra.gmra.mrb[2].mxu0 %v9059_v9 }
 0x476   : > { %7953 = vmatpush1.bf16.msra.mxu0 %v7952_v63  ;;  %5746 = vmatmul.mubr.f32.vlgmr.msra.gmra.mrb[2].mxu1 %v9059_v9  ;;  %v7972_v63 = vpack.c.bf16 %v1881_v53, %v1873_v52  ;;  %v1908_v9 = vld [vmem:[%s9315_s8 + $0x33b8] sm:$0xff]  ;;  %v1955_v52 = vld [vmem:[%s9315_s8 + $0x3530] sm:$0xff]  ;;  %v8662_v53 = vpack.c.bf16 %v1964_v46, %v1956_v45 }
 0x477   : > { %8625 = vmatpush1.bf16.msra.mxu1 %v8624_v0  ;;  %7955 = vmatprep.subr.bf16.mxu0 %v7954_v1  ;;  %v8644_v0 = vpack.c.bf16 %v1883_v57, %v1875_v54  ;;  %v7974_v1 = vpack.c.bf16 %v1898_v60, %v1890_v58  ;;  %v8650_v17 = vpack.c.bf16 %v1916_v10, %v1908_v9  ;;  %v1963_v54 = vld [vmem:[%s9315_s8 + $0x3570] sm:$0xff]  ;;  %v1978_v57 = vld [vmem:[%s9315_s8 + $0x35e8] sm:$0xff]  ;;  %v1972_v58 = vld [vmem:[%s9315_s8 + $0x35b8] sm:$0xff] }
 0x478   : > { %8627 = vmatprep.subr.bf16.mxu1 %v8626_v5  ;;  %5035 = vmatprep.mubr.f32.mxu0 %v9060_v22  ;;  %v8646_v5 = vpack.c.bf16 %v1900_v62, %v1892_v61  ;;  %v1980_v60 = vld [vmem:[%s9315_s8 + $0x35f8] sm:$0xff]  ;;  %v8664_v62 = vpack.c.bf16 %v1963_v54, %v1955_v52  ;;  %v2043_v52 = vld [vmem:[%s9315_s8 + $0x37f0] sm:$0xff]  ;;  %v2058_v54 = vld [vmem:[%s9315_s8 + $0x3868] sm:$0xff] }
 0x479   : > { %5816 = vmatprep.mubr.f32.mxu1 %v9060_v22  ;;  %v1932_v22 = vld [vmem:[%s9315_s8 + $0x3478] sm:$0xff]  ;;  %v8666_v3 = vpack.c.bf16 %v1980_v60, %v1972_v58 }
 0x47a   : > { %7957 = vmatpush1.bf16.msra.mxu0 %v7956_v12  ;;  %v8648_v12 = vpack.c.bf16 %v1899_v6, %v1891_v4  ;;  %v8654_v29 = vpack.c.bf16 %v1932_v22, %v1924_v21  ;;  %v1979_v4 = vld [vmem:[%s9315_s8 + $0x35f0] sm:$0xff]  ;;  %v1994_v6 = vld [vmem:[%s9315_s8 + $0x3668] sm:$0xff] }
 0x47b   : > { %8629 = vmatpush1.bf16.msra.mxu1 %v8628_v13  ;;  %7959 = vmatprep.subr.bf16.mxu0 %v7958_v14  ;;  %v7978_v13 = vpack.c.bf16 %v1914_v8, %v1906_v7  ;;  %v1905_v14 = vld [vmem:[%s9315_s8 + $0x33a0] sm:$0xff]  ;;  %v1988_v7 = vld [vmem:[%s9315_s8 + $0x3638] sm:$0xff]  ;;  %v8668_v10 = vpack.c.bf16 %v1979_v4, %v1971_v2  ;;  %v2059_v2 = vld [vmem:[%s9315_s8 + $0x3870] sm:$0xff] }
 0x47c   : > { %8631 = vmatprep.subr.bf16.mxu1 %v8630_v18  ;;  %v1915_v18 = vld [vmem:[%s9315_s8 + $0x33f0] sm:$0xff]  ;;  %v7980_v23 = vpack.c.bf16 %v1913_v15, %v1905_v14  ;;  %v1996_v8 = vld [vmem:[%s9315_s8 + $0x3678] sm:$0xff]  ;;  %v2074_v4 = vld [vmem:[%s9315_s8 + $0x38e8] sm:$0xff] }
 0x47d   : > { %v8652_v24 = vpack.c.bf16 %v1915_v18, %v1907_v16  ;;  %v1987_v14 = vld [vmem:[%s9315_s8 + $0x3630] sm:$0xff]  ;;  %v8670_v15 = vpack.c.bf16 %v1996_v8, %v1988_v7  ;;  %v2010_v18 = vld [vmem:[%s9315_s8 + $0x36e8] sm:$0xff] }
 0x47e   : > { %7961 = vmatpush1.bf16.msra.mxu0 %v7960_v25  ;;  %v7982_v25 = vpack.c.bf16 %v1930_v20, %v1922_v19  ;;  %v1995_v16 = vld [vmem:[%s9315_s8 + $0x3670] sm:$0xff]  ;;  %v2004_v19 = vld [vmem:[%s9315_s8 + $0x36b8] sm:$0xff] }
 0x47f   : > { %8633 = vmatpush1.bf16.msra.mxu1 %v8632_v26  ;;  %7963 = vmatprep.subr.bf16.mxu0 %v7962_v27  ;;  %v1921_v26 = vld [vmem:[%s9315_s8 + $0x3420] sm:$0xff]  ;;  %v2012_v20 = vld [vmem:[%s9315_s8 + $0x36f8] sm:$0xff]  ;;  %v8672_v22 = vpack.c.bf16 %v1995_v16, %v1987_v14  ;;  %v2075_v14 = vld [vmem:[%s9315_s8 + $0x38f0] sm:$0xff] }
 0x480   : > { %8635 = vmatprep.subr.bf16.mxu1 %v8634_v31  ;;  %v1929_v27 = vld [vmem:[%s9315_s8 + $0x3460] sm:$0xff]  ;;  %v1938_v31 = vld [vmem:[%s9315_s8 + $0x34a8] sm:$0xff] }
 0x481   : > { %v7984_v35 = vpack.c.bf16 %v1929_v27, %v1921_v26  ;;  %v2003_v26 = vld [vmem:[%s9315_s8 + $0x36b0] sm:$0xff]  ;;  %v8674_v27 = vpack.c.bf16 %v2012_v20, %v2004_v19  ;;  %v2090_v16 = vld [vmem:[%s9315_s8 + $0x3968] sm:$0xff]  ;;  %v2092_v19 = vld [vmem:[%s9315_s8 + $0x3978] sm:$0xff] }
 0x482   : > { %7965 = vmatpush1.bf16.msra.mxu0 %v7964_v37  ;;  %v7986_v37 = vpack.c.bf16 %v1946_v32, %v1938_v31  ;;  %v2020_v31 = vld [vmem:[%s9315_s8 + $0x3738] sm:$0xff]  ;;  %v8676_v34 = vpack.c.bf16 %v2011_v28, %v2003_v26  ;;  %v2098_v28 = vld [vmem:[%s9315_s8 + $0x39a8] sm:$0xff] }
 0x483   : > { %8637 = vmatpush1.bf16.msra.mxu1 %v8636_v38  ;;  %7967 = vmatprep.subr.bf16.mxu0 %v7966_v39  ;;  %v1937_v38 = vld [vmem:[%s9315_s8 + $0x34a0] sm:$0xff]  ;;  %v2028_v32 = vld [vmem:[%s9315_s8 + $0x3778] sm:$0xff] }
 0x484   : > { %8639 = vmatprep.subr.bf16.mxu1 %v8638_v43  ;;  %v1945_v39 = vld [vmem:[%s9315_s8 + $0x34e0] sm:$0xff]  ;;  %v1954_v43 = vld [vmem:[%s9315_s8 + $0x3528] sm:$0xff] }
 0x485   : > { %v7988_v47 = vpack.c.bf16 %v1945_v39, %v1937_v38  ;;  %v2019_v38 = vld [vmem:[%s9315_s8 + $0x3730] sm:$0xff]  ;;  %v8678_v39 = vpack.c.bf16 %v2028_v32, %v2020_v31  ;;  %v2100_v31 = vld [vmem:[%s9315_s8 + $0x39b8] sm:$0xff] }
 0x486   : > { %7969 = vmatpush1.bf16.msra.mxu0 %v7968_v49  ;;  %v7990_v49 = vpack.c.bf16 %v1962_v44, %v1954_v43  ;;  %v2036_v43 = vld [vmem:[%s9315_s8 + $0x37b8] sm:$0xff]  ;;  %v8680_v46 = vpack.c.bf16 %v2027_v40, %v2019_v38  ;;  %v2099_v38 = vld [vmem:[%s9315_s8 + $0x39b0] sm:$0xff] }
 0x487   : > { %8641 = vmatpush1.bf16.msra.mxu1 %v8640_v50  ;;  %7971 = vmatprep.subr.bf16.mxu0 %v7970_v51  ;;  %v1953_v50 = vld [vmem:[%s9315_s8 + $0x3520] sm:$0xff]  ;;  %v2044_v44 = vld [vmem:[%s9315_s8 + $0x37f8] sm:$0xff]  ;;  %v2107_v40 = vld [vmem:[%s9315_s8 + $0x39f0] sm:$0xff] }
 0x488   : > { %8643 = vmatprep.subr.bf16.mxu1 %v8642_v55  ;;  %v1961_v51 = vld [vmem:[%s9315_s8 + $0x3560] sm:$0xff]  ;;  %v1970_v55 = vld [vmem:[%s9315_s8 + $0x35a8] sm:$0xff]  ;;  %v2108_v32 = vld [vmem:[%s9315_s8 + $0x39f8] sm:$0xff] }
 0x489   : > { %v7992_v61 = vpack.c.bf16 %v1961_v51, %v1953_v50  ;;  %v2035_v50 = vld [vmem:[%s9315_s8 + $0x37b0] sm:$0xff]  ;;  %v8682_v51 = vpack.c.bf16 %v2044_v44, %v2036_v43  ;;  %v2116_v43 = vld [vmem:[%s9315_s8 + $0x3a38] sm:$0xff] }
 0x48a   : > { %7973 = vmatpush1.bf16.msra.mxu0 %v7972_v63  ;;  %v7994_v63 = vpack.c.bf16 %v1978_v57, %v1970_v55  ;;  %v2052_v55 = vld [vmem:[%s9315_s8 + $0x3838] sm:$0xff]  ;;  %v8684_v60 = vpack.c.bf16 %v2043_v52, %v2035_v50  ;;  %v2115_v50 = vld [vmem:[%s9315_s8 + $0x3a30] sm:$0xff] }
 0x48b   : > { %8645 = vmatpush1.bf16.msra.mxu1 %v8644_v0  ;;  %7975 = vmatprep.subr.bf16.mxu0 %v7974_v1  ;;  %v1969_v0 = vld [vmem:[%s9315_s8 + $0x35a0] sm:$0xff]  ;;  %v2060_v57 = vld [vmem:[%s9315_s8 + $0x3878] sm:$0xff]  ;;  %v2123_v52 = vld [vmem:[%s9315_s8 + $0x3a70] sm:$0xff] }
 0x48c   : > { %8647 = vmatprep.subr.bf16.mxu1 %v8646_v5  ;;  %v1977_v1 = vld [vmem:[%s9315_s8 + $0x35e0] sm:$0xff]  ;;  %v1986_v5 = vld [vmem:[%s9315_s8 + $0x3628] sm:$0xff]  ;;  %v2124_v44 = vld [vmem:[%s9315_s8 + $0x3a78] sm:$0xff] }
 0x48d   : > { %v7996_v9 = vpack.c.bf16 %v1977_v1, %v1969_v0  ;;  %v2051_v0 = vld [vmem:[%s9315_s8 + $0x3830] sm:$0xff]  ;;  %v8686_v1 = vpack.c.bf16 %v2060_v57, %v2052_v55  ;;  %v2132_v55 = vld [vmem:[%s9315_s8 + $0x3ab8] sm:$0xff] }
 0x48e   : > { %7977 = vmatpush1.bf16.msra.mxu0 %v7976_v11  ;;  %v7998_v11 = vpack.c.bf16 %v1994_v6, %v1986_v5  ;;  %v2068_v5 = vld [vmem:[%s9315_s8 + $0x38b8] sm:$0xff]  ;;  %v8688_v8 = vpack.c.bf16 %v2059_v2, %v2051_v0  ;;  %v2131_v0 = vld [vmem:[%s9315_s8 + $0x3ab0] sm:$0xff] }
 0x48f   : > { %8649 = vmatpush1.bf16.msra.mxu1 %v8648_v12  ;;  %7979 = vmatprep.subr.bf16.mxu0 %v7978_v13  ;;  %v1985_v12 = vld [vmem:[%s9315_s8 + $0x3620] sm:$0xff]  ;;  %v2076_v6 = vld [vmem:[%s9315_s8 + $0x38f8] sm:$0xff]  ;;  %v2139_v2 = vld [vmem:[%s9315_s8 + $0x3af0] sm:$0xff] }
 0x490   : > { %8651 = vmatprep.subr.bf16.mxu1 %v8650_v17  ;;  %v1993_v13 = vld [vmem:[%s9315_s8 + $0x3660] sm:$0xff]  ;;  %v2002_v17 = vld [vmem:[%s9315_s8 + $0x36a8] sm:$0xff]  ;;  %v2140_v57 = vld [vmem:[%s9315_s8 + $0x3af8] sm:$0xff] }
 0x491   : > { %v8000_v21 = vpack.c.bf16 %v1993_v13, %v1985_v12  ;;  %v2067_v12 = vld [vmem:[%s9315_s8 + $0x38b0] sm:$0xff]  ;;  %v8690_v13 = vpack.c.bf16 %v2076_v6, %v2068_v5  ;;  %v2148_v5 = vld [vmem:[%s9315_s8 + $0x3b38] sm:$0xff] }
 0x492   : > { %7981 = vmatpush1.bf16.msra.mxu0 %v7980_v23  ;;  %v8002_v23 = vpack.c.bf16 %v2010_v18, %v2002_v17  ;;  %v9061_v17 = vld [vmem:[%s12194_s0 + $0x60] sm:$0xff]  ;;  %v2084_v18 = vld [vmem:[%s9315_s8 + $0x3938] sm:$0xff] }
 0x493   : > { %8653 = vmatpush1.bf16.msra.mxu1 %v8652_v24  ;;  %7983 = vmatprep.subr.bf16.mxu0 %v7982_v25  ;;  %v2001_v24 = vld [vmem:[%s9315_s8 + $0x36a0] sm:$0xff]  ;;  %v8694_v26 = vpack.c.bf16 %v2092_v19, %v2084_v18  ;;  %v2156_v6 = vld [vmem:[%s9315_s8 + $0x3b78] sm:$0xff] }
 0x494   : > { %8655 = vmatprep.subr.bf16.mxu1 %v8654_v29  ;;  %v2009_v25 = vld [vmem:[%s9315_s8 + $0x36e0] sm:$0xff]  ;;  %v2018_v29 = vld [vmem:[%s9315_s8 + $0x3728] sm:$0xff]  ;;  %v2172_v18 = vld [vmem:[%s9315_s8 + $0x3bf8] sm:$0xff] }
 0x495   : > { %v8004_v33 = vpack.c.bf16 %v2009_v25, %v2001_v24  ;;  %v2089_v24 = vld [vmem:[%s9315_s8 + $0x3960] sm:$0xff]  ;;  %v2083_v25 = vld [vmem:[%s9315_s8 + $0x3930] sm:$0xff] }
 0x496   : > { %7985 = vmatpush1.bf16.msra.mxu0 %v7984_v35  ;;  %v8006_v35 = vpack.c.bf16 %v2026_v30, %v2018_v29  ;;  %v2106_v29 = vld [vmem:[%s9315_s8 + $0x39e8] sm:$0xff]  ;;  %v9062_v30 = vld [vmem:[%s12194_s0 + $0x78] sm:$0xff] }
 0x497   : > { %8657 = vmatpush1.bf16.msra.mxu1 %v8656_v36  ;;  %7987 = vmatprep.subr.bf16.mxu0 %v7986_v37  ;;  %v2017_v36 = vld [vmem:[%s9315_s8 + $0x3720] sm:$0xff] }
 0x498   : > { %8659 = vmatprep.subr.bf16.mxu1 %v8658_v41  ;;  %v2025_v37 = vld [vmem:[%s9315_s8 + $0x3760] sm:$0xff]  ;;  %v2034_v41 = vld [vmem:[%s9315_s8 + $0x37a8] sm:$0xff] }
 0x499   : > { %v8008_v45 = vpack.c.bf16 %v2025_v37, %v2017_v36  ;;  %v2097_v36 = vld [vmem:[%s9315_s8 + $0x39a0] sm:$0xff] }
 0x49a   : > { %7989 = vmatpush1.bf16.msra.mxu0 %v7988_v47  ;;  %v8010_v47 = vpack.c.bf16 %v2042_v42, %v2034_v41  ;;  %v2105_v37 = vld [vmem:[%s9315_s8 + $0x39e0] sm:$0xff]  ;;  %v2114_v41 = vld [vmem:[%s9315_s8 + $0x3a28] sm:$0xff] }
 0x49b   : > { %8661 = vmatpush1.bf16.msra.mxu1 %v8660_v48  ;;  %7991 = vmatprep.subr.bf16.mxu0 %v7990_v49  ;;  %v2033_v48 = vld [vmem:[%s9315_s8 + $0x37a0] sm:$0xff]  ;;  %v2122_v42 = vld [vmem:[%s9315_s8 + $0x3a68] sm:$0xff] }
 0x49c   : > { %8663 = vmatprep.subr.bf16.mxu1 %v8662_v53  ;;  %v2041_v49 = vld [vmem:[%s9315_s8 + $0x37e0] sm:$0xff]  ;;  %v2050_v53 = vld [vmem:[%s9315_s8 + $0x3828] sm:$0xff] }
 0x49d   : > { %v8012_v58 = vpack.c.bf16 %v2041_v49, %v2033_v48  ;;  %v2113_v48 = vld [vmem:[%s9315_s8 + $0x3a20] sm:$0xff] }
 0x49e   : > { %7993 = vmatpush1.bf16.msra.mxu0 %v7992_v61  ;;  %v8014_v61 = vpack.c.bf16 %v2058_v54, %v2050_v53  ;;  %v2121_v49 = vld [vmem:[%s9315_s8 + $0x3a60] sm:$0xff]  ;;  %v2130_v53 = vld [vmem:[%s9315_s8 + $0x3aa8] sm:$0xff] }
 0x49f   : > { %8665 = vmatpush1.bf16.msra.mxu1 %v8664_v62  ;;  %7995 = vmatprep.subr.bf16.mxu0 %v7994_v63  ;;  %v2049_v62 = vld [vmem:[%s9315_s8 + $0x3820] sm:$0xff]  ;;  %v2138_v54 = vld [vmem:[%s9315_s8 + $0x3ae8] sm:$0xff] }
 0x4a0   : > { %8667 = vmatprep.subr.bf16.mxu1 %v8666_v3  ;;  %v2057_v63 = vld [vmem:[%s9315_s8 + $0x3860] sm:$0xff]  ;;  %v2066_v3 = vld [vmem:[%s9315_s8 + $0x38a8] sm:$0xff] }
 0x4a1   : > { %v8016_v7 = vpack.c.bf16 %v2057_v63, %v2049_v62  ;;  %v2129_v62 = vld [vmem:[%s9315_s8 + $0x3aa0] sm:$0xff] }
 0x4a2   : > { %7997 = vmatpush1.bf16.msra.mxu0 %v7996_v9  ;;  %v8018_v9 = vpack.c.bf16 %v2074_v4, %v2066_v3  ;;  %v2137_v63 = vld [vmem:[%s9315_s8 + $0x3ae0] sm:$0xff]  ;;  %v2146_v3 = vld [vmem:[%s9315_s8 + $0x3b28] sm:$0xff] }
 0x4a3   : > { %8669 = vmatpush1.bf16.msra.mxu1 %v8668_v10  ;;  %7999 = vmatprep.subr.bf16.mxu0 %v7998_v11  ;;  %v2065_v10 = vld [vmem:[%s9315_s8 + $0x38a0] sm:$0xff]  ;;  %v2154_v4 = vld [vmem:[%s9315_s8 + $0x3b68] sm:$0xff] }
 0x4a4   : > { %8671 = vmatprep.subr.bf16.mxu1 %v8670_v15  ;;  %v2073_v11 = vld [vmem:[%s9315_s8 + $0x38e0] sm:$0xff]  ;;  %v2082_v15 = vld [vmem:[%s9315_s8 + $0x3928] sm:$0xff] }
 0x4a5   : > { %v8020_v20 = vpack.c.bf16 %v2073_v11, %v2065_v10  ;;  %v2145_v10 = vld [vmem:[%s9315_s8 + $0x3b20] sm:$0xff] }
 0x4a6   : > { %8001 = vmatpush1.bf16.msra.mxu0 %v8000_v21  ;;  %v8692_v21 = vpack.c.bf16 %v2075_v14, %v2067_v12  ;;  %v2153_v11 = vld [vmem:[%s9315_s8 + $0x3b60] sm:$0xff]  ;;  %v2147_v12 = vld [vmem:[%s9315_s8 + $0x3b30] sm:$0xff] }
 0x4a7   : > { %8673 = vmatpush1.bf16.msra.mxu1 %v8672_v22  ;;  %8003 = vmatprep.subr.bf16.mxu0 %v8002_v23  ;;  %v8022_v22 = vpack.c.bf16 %v2090_v16, %v2082_v15  ;;  %v2081_v23 = vld [vmem:[%s9315_s8 + $0x3920] sm:$0xff]  ;;  %v2155_v14 = vld [vmem:[%s9315_s8 + $0x3b70] sm:$0xff]  ;;  %v2162_v15 = vld [vmem:[%s9315_s8 + $0x3ba8] sm:$0xff]  ;;  %v8040_v19 = vpack.c.bf16 %v2153_v11, %v2145_v10 }
 0x4a8   : > { %8675 = vmatprep.subr.bf16.mxu1 %v8674_v27  ;;  %v2091_v27 = vld [vmem:[%s9315_s8 + $0x3970] sm:$0xff]  ;;  %v2170_v16 = vld [vmem:[%s9315_s8 + $0x3be8] sm:$0xff] }
 0x4a9   : > { %v2227_v10 = vld [vmem:[%s9315_s8 + $0x3db0] sm:$0xff] }
 0x4aa   : > { %8005 = vmatpush1.bf16.msra.mxu0 %v8004_v33  ;;  %v8024_v33 = vpack.c.bf16 %v2089_v24, %v2081_v23  ;;  %v2169_v23 = vld [vmem:[%s9315_s8 + $0x3be0] sm:$0xff]  ;;  %v2163_v24 = vld [vmem:[%s9315_s8 + $0x3bb0] sm:$0xff] }
 0x4ab   : > { %8677 = vmatpush1.bf16.msra.mxu1 %v8676_v34  ;;  %8007 = vmatprep.subr.bf16.mxu0 %v8006_v35  ;;  %v8696_v34 = vpack.c.bf16 %v2091_v27, %v2083_v25  ;;  %v8026_v35 = vpack.c.bf16 %v2106_v29, %v2098_v28  ;;  %v2178_v27 = vld [vmem:[%s9315_s8 + $0x3c28] sm:$0xff]  ;;  %v2180_v29 = vld [vmem:[%s9315_s8 + $0x3c38] sm:$0xff] }
 0x4ac   : > { %8679 = vmatprep.subr.bf16.mxu1 %v8678_v39  ;;  %v8698_v39 = vpack.c.bf16 %v2108_v32, %v2100_v31  ;;  %v2186_v28 = vld [vmem:[%s9315_s8 + $0x3c68] sm:$0xff] }
 0x4ae   : > { %8009 = vmatpush1.bf16.msra.mxu0 %v8008_v45  ;;  %v8028_v45 = vpack.c.bf16 %v2105_v37, %v2097_v36  ;;  %v2179_v36 = vld [vmem:[%s9315_s8 + $0x3c30] sm:$0xff] }
 0x4af   : > { %8681 = vmatpush1.bf16.msra.mxu1 %v8680_v46  ;;  %8011 = vmatprep.subr.bf16.mxu0 %v8010_v47  ;;  %v8700_v46 = vpack.c.bf16 %v2107_v40, %v2099_v38  ;;  %v8030_v47 = vpack.c.bf16 %v2122_v42, %v2114_v41  ;;  %v2187_v38 = vld [vmem:[%s9315_s8 + $0x3c70] sm:$0xff]  ;;  %v2202_v40 = vld [vmem:[%s9315_s8 + $0x3ce8] sm:$0xff]  ;;  %v2196_v41 = vld [vmem:[%s9315_s8 + $0x3cb8] sm:$0xff] }
 0x4b0   : > { %8683 = vmatprep.subr.bf16.mxu1 %v8682_v51  ;;  %v8702_v51 = vpack.c.bf16 %v2124_v44, %v2116_v43  ;;  %v2204_v42 = vld [vmem:[%s9315_s8 + $0x3cf8] sm:$0xff]  ;;  %v8720_v44 = vpack.c.bf16 %v2187_v38, %v2179_v36  ;;  %v2267_v36 = vld [vmem:[%s9315_s8 + $0x3ef0] sm:$0xff]  ;;  %v2282_v38 = vld [vmem:[%s9315_s8 + $0x3f68] sm:$0xff] }
 0x4b2   : > { %8013 = vmatpush1.bf16.msra.mxu0 %v8012_v58  ;;  %v8032_v58 = vpack.c.bf16 %v2121_v49, %v2113_v48  ;;  %v2195_v48 = vld [vmem:[%s9315_s8 + $0x3cb0] sm:$0xff]  ;;  %v8722_v49 = vpack.c.bf16 %v2204_v42, %v2196_v41 }
 0x4b3   : > { %8685 = vmatpush1.bf16.msra.mxu1 %v8684_v60  ;;  %8015 = vmatprep.subr.bf16.mxu0 %v8014_v61  ;;  %v8704_v60 = vpack.c.bf16 %v2123_v52, %v2115_v50  ;;  %v8034_v61 = vpack.c.bf16 %v2138_v54, %v2130_v53  ;;  %v2203_v50 = vld [vmem:[%s9315_s8 + $0x3cf0] sm:$0xff]  ;;  %v2218_v52 = vld [vmem:[%s9315_s8 + $0x3d68] sm:$0xff]  ;;  %v2212_v53 = vld [vmem:[%s9315_s8 + $0x3d38] sm:$0xff] }
 0x4b4   : > { %8687 = vmatprep.subr.bf16.mxu1 %v8686_v1  ;;  %v8706_v1 = vpack.c.bf16 %v2140_v57, %v2132_v55  ;;  %v2220_v54 = vld [vmem:[%s9315_s8 + $0x3d78] sm:$0xff]  ;;  %v8724_v57 = vpack.c.bf16 %v2203_v50, %v2195_v48  ;;  %v2283_v48 = vld [vmem:[%s9315_s8 + $0x3f70] sm:$0xff]  ;;  %v2298_v50 = vld [vmem:[%s9315_s8 + $0x3fe8] sm:$0xff] }
 0x4b5   : > { %5036 = vmatmul.mubr.f32.vlgmr.msra.gmra.mrb[2].mxu0 %v9061_v17 }
 0x4b6   : > { %8017 = vmatpush1.bf16.msra.mxu0 %v8016_v7  ;;  %5817 = vmatmul.mubr.f32.vlgmr.msra.gmra.mrb[2].mxu1 %v9061_v17  ;;  %v8036_v7 = vpack.c.bf16 %v2137_v63, %v2129_v62  ;;  %v2164_v17 = vld [vmem:[%s9315_s8 + $0x3bb8] sm:$0xff]  ;;  %v2211_v62 = vld [vmem:[%s9315_s8 + $0x3d30] sm:$0xff]  ;;  %v8726_v63 = vpack.c.bf16 %v2220_v54, %v2212_v53 }
 0x4b7   : > { %8689 = vmatpush1.bf16.msra.mxu1 %v8688_v8  ;;  %8019 = vmatprep.subr.bf16.mxu0 %v8018_v9  ;;  %v8708_v8 = vpack.c.bf16 %v2139_v2, %v2131_v0  ;;  %v8038_v9 = vpack.c.bf16 %v2154_v4, %v2146_v3  ;;  %v8714_v25 = vpack.c.bf16 %v2172_v18, %v2164_v17  ;;  %v2219_v0 = vld [vmem:[%s9315_s8 + $0x3d70] sm:$0xff]  ;;  %v2234_v2 = vld [vmem:[%s9315_s8 + $0x3de8] sm:$0xff]  ;;  %v2228_v3 = vld [vmem:[%s9315_s8 + $0x3db8] sm:$0xff] }
 0x4b8   : > { %8691 = vmatprep.subr.bf16.mxu1 %v8690_v13  ;;  %5106 = vmatprep.mubr.f32.mxu0 %v9062_v30  ;;  %v8710_v13 = vpack.c.bf16 %v2156_v6, %v2148_v5  ;;  %v2236_v4 = vld [vmem:[%s9315_s8 + $0x3df8] sm:$0xff]  ;;  %v8728_v6 = vpack.c.bf16 %v2219_v0, %v2211_v62  ;;  %v2299_v62 = vld [vmem:[%s9315_s8 + $0x3ff0] sm:$0xff]  ;;  %v2314_v0 = vld [vmem:[%s9315_s8 + $0x4068] sm:$0xff] }
 0x4b9   : > { %5887 = vmatprep.mubr.f32.mxu1 %v9062_v30  ;;  %v2188_v30 = vld [vmem:[%s9315_s8 + $0x3c78] sm:$0xff]  ;;  %v8730_v11 = vpack.c.bf16 %v2236_v4, %v2228_v3 }
 0x4ba   : > { %8021 = vmatpush1.bf16.msra.mxu0 %v8020_v20  ;;  %v8712_v20 = vpack.c.bf16 %v2155_v14, %v2147_v12  ;;  %v8718_v37 = vpack.c.bf16 %v2188_v30, %v2180_v29  ;;  %v2235_v12 = vld [vmem:[%s9315_s8 + $0x3df0] sm:$0xff]  ;;  %v2250_v14 = vld [vmem:[%s9315_s8 + $0x3e68] sm:$0xff] }
 0x4bb   : > { %8693 = vmatpush1.bf16.msra.mxu1 %v8692_v21  ;;  %8023 = vmatprep.subr.bf16.mxu0 %v8022_v22  ;;  %v8042_v21 = vpack.c.bf16 %v2170_v16, %v2162_v15  ;;  %v2161_v22 = vld [vmem:[%s9315_s8 + $0x3ba0] sm:$0xff]  ;;  %v2244_v15 = vld [vmem:[%s9315_s8 + $0x3e38] sm:$0xff]  ;;  %v8732_v18 = vpack.c.bf16 %v2235_v12, %v2227_v10  ;;  %v2315_v10 = vld [vmem:[%s9315_s8 + $0x4070] sm:$0xff] }
 0x4bc   : > { %8695 = vmatprep.subr.bf16.mxu1 %v8694_v26  ;;  %v2171_v26 = vld [vmem:[%s9315_s8 + $0x3bf0] sm:$0xff]  ;;  %v8044_v31 = vpack.c.bf16 %v2169_v23, %v2161_v22  ;;  %v2252_v16 = vld [vmem:[%s9315_s8 + $0x3e78] sm:$0xff]  ;;  %v2330_v12 = vld [vmem:[%s9315_s8 + $0x40e8] sm:$0xff] }
 0x4bd   : > { %v8716_v32 = vpack.c.bf16 %v2171_v26, %v2163_v24  ;;  %v2243_v22 = vld [vmem:[%s9315_s8 + $0x3e30] sm:$0xff]  ;;  %v8734_v23 = vpack.c.bf16 %v2252_v16, %v2244_v15  ;;  %v2266_v26 = vld [vmem:[%s9315_s8 + $0x3ee8] sm:$0xff] }
 0x4be   : > { %8025 = vmatpush1.bf16.msra.mxu0 %v8024_v33  ;;  %v8046_v33 = vpack.c.bf16 %v2186_v28, %v2178_v27  ;;  %v2251_v24 = vld [vmem:[%s9315_s8 + $0x3e70] sm:$0xff]  ;;  %v2260_v27 = vld [vmem:[%s9315_s8 + $0x3eb8] sm:$0xff] }
 0x4bf   : > { %8697 = vmatpush1.bf16.msra.mxu1 %v8696_v34  ;;  %8027 = vmatprep.subr.bf16.mxu0 %v8026_v35  ;;  %v2177_v34 = vld [vmem:[%s9315_s8 + $0x3c20] sm:$0xff]  ;;  %v2268_v28 = vld [vmem:[%s9315_s8 + $0x3ef8] sm:$0xff]  ;;  %v8736_v30 = vpack.c.bf16 %v2251_v24, %v2243_v22  ;;  %v2331_v22 = vld [vmem:[%s9315_s8 + $0x40f0] sm:$0xff] }
 0x4c0   : > { %8699 = vmatprep.subr.bf16.mxu1 %v8698_v39  ;;  %v2185_v35 = vld [vmem:[%s9315_s8 + $0x3c60] sm:$0xff]  ;;  %v2194_v39 = vld [vmem:[%s9315_s8 + $0x3ca8] sm:$0xff] }
 0x4c1   : > { %v8048_v43 = vpack.c.bf16 %v2185_v35, %v2177_v34  ;;  %v2259_v34 = vld [vmem:[%s9315_s8 + $0x3eb0] sm:$0xff]  ;;  %v8738_v35 = vpack.c.bf16 %v2268_v28, %v2260_v27  ;;  %v2346_v24 = vld [vmem:[%s9315_s8 + $0x4168] sm:$0xff]  ;;  %v2348_v27 = vld [vmem:[%s9315_s8 + $0x4178] sm:$0xff] }
 0x4c2   : > { %8029 = vmatpush1.bf16.msra.mxu0 %v8028_v45  ;;  %v8050_v45 = vpack.c.bf16 %v2202_v40, %v2194_v39  ;;  %v2276_v39 = vld [vmem:[%s9315_s8 + $0x3f38] sm:$0xff]  ;;  %v8740_v42 = vpack.c.bf16 %v2267_v36, %v2259_v34  ;;  %v2354_v36 = vld [vmem:[%s9315_s8 + $0x41a8] sm:$0xff] }
 0x4c3   : > { %8701 = vmatpush1.bf16.msra.mxu1 %v8700_v46  ;;  %8031 = vmatprep.subr.bf16.mxu0 %v8030_v47  ;;  %v2193_v46 = vld [vmem:[%s9315_s8 + $0x3ca0] sm:$0xff]  ;;  %v2284_v40 = vld [vmem:[%s9315_s8 + $0x3f78] sm:$0xff] }
 0x4c4   : > { %8703 = vmatprep.subr.bf16.mxu1 %v8702_v51  ;;  %v2201_v47 = vld [vmem:[%s9315_s8 + $0x3ce0] sm:$0xff]  ;;  %v2210_v51 = vld [vmem:[%s9315_s8 + $0x3d28] sm:$0xff] }
 0x4c5   : > { %v8052_v55 = vpack.c.bf16 %v2201_v47, %v2193_v46  ;;  %v2275_v46 = vld [vmem:[%s9315_s8 + $0x3f30] sm:$0xff]  ;;  %v8742_v47 = vpack.c.bf16 %v2284_v40, %v2276_v39  ;;  %v2356_v39 = vld [vmem:[%s9315_s8 + $0x41b8] sm:$0xff] }
 0x4c6   : > { %8033 = vmatpush1.bf16.msra.mxu0 %v8032_v58  ;;  %v8054_v58 = vpack.c.bf16 %v2218_v52, %v2210_v51  ;;  %v2292_v51 = vld [vmem:[%s9315_s8 + $0x3fb8] sm:$0xff]  ;;  %v8744_v54 = vpack.c.bf16 %v2283_v48, %v2275_v46  ;;  %v2355_v46 = vld [vmem:[%s9315_s8 + $0x41b0] sm:$0xff] }
 0x4c7   : > { %8705 = vmatpush1.bf16.msra.mxu1 %v8704_v60  ;;  %8035 = vmatprep.subr.bf16.mxu0 %v8034_v61  ;;  %v2209_v60 = vld [vmem:[%s9315_s8 + $0x3d20] sm:$0xff]  ;;  %v2300_v52 = vld [vmem:[%s9315_s8 + $0x3ff8] sm:$0xff]  ;;  %v2363_v48 = vld [vmem:[%s9315_s8 + $0x41f0] sm:$0xff] }
 0x4c8   : > { %8707 = vmatprep.subr.bf16.mxu1 %v8706_v1  ;;  %v2217_v61 = vld [vmem:[%s9315_s8 + $0x3d60] sm:$0xff]  ;;  %v2226_v1 = vld [vmem:[%s9315_s8 + $0x3da8] sm:$0xff]  ;;  %v2364_v40 = vld [vmem:[%s9315_s8 + $0x41f8] sm:$0xff] }
 0x4c9   : > { %v8056_v5 = vpack.c.bf16 %v2217_v61, %v2209_v60  ;;  %v2291_v60 = vld [vmem:[%s9315_s8 + $0x3fb0] sm:$0xff]  ;;  %v8746_v61 = vpack.c.bf16 %v2300_v52, %v2292_v51  ;;  %v2372_v51 = vld [vmem:[%s9315_s8 + $0x4238] sm:$0xff] }
 0x4ca   : > { %8037 = vmatpush1.bf16.msra.mxu0 %v8036_v7  ;;  %v8058_v7 = vpack.c.bf16 %v2234_v2, %v2226_v1  ;;  %v2308_v1 = vld [vmem:[%s9315_s8 + $0x4038] sm:$0xff]  ;;  %v8748_v4 = vpack.c.bf16 %v2299_v62, %v2291_v60  ;;  %v2371_v60 = vld [vmem:[%s9315_s8 + $0x4230] sm:$0xff] }
 0x4cb   : > { %8709 = vmatpush1.bf16.msra.mxu1 %v8708_v8  ;;  %8039 = vmatprep.subr.bf16.mxu0 %v8038_v9  ;;  %v2225_v8 = vld [vmem:[%s9315_s8 + $0x3da0] sm:$0xff]  ;;  %v2316_v2 = vld [vmem:[%s9315_s8 + $0x4078] sm:$0xff]  ;;  %v2379_v62 = vld [vmem:[%s9315_s8 + $0x4270] sm:$0xff] }
 0x4cc   : > { %8711 = vmatprep.subr.bf16.mxu1 %v8710_v13  ;;  %v2233_v9 = vld [vmem:[%s9315_s8 + $0x3de0] sm:$0xff]  ;;  %v2242_v13 = vld [vmem:[%s9315_s8 + $0x3e28] sm:$0xff]  ;;  %v2380_v52 = vld [vmem:[%s9315_s8 + $0x4278] sm:$0xff] }
 0x4cd   : > { %v8060_v17 = vpack.c.bf16 %v2233_v9, %v2225_v8  ;;  %v2307_v8 = vld [vmem:[%s9315_s8 + $0x4030] sm:$0xff]  ;;  %v8750_v9 = vpack.c.bf16 %v2316_v2, %v2308_v1  ;;  %v2388_v1 = vld [vmem:[%s9315_s8 + $0x42b8] sm:$0xff] }
 0x4ce   : > { %8041 = vmatpush1.bf16.msra.mxu0 %v8040_v19  ;;  %v8062_v19 = vpack.c.bf16 %v2250_v14, %v2242_v13  ;;  %v2324_v13 = vld [vmem:[%s9315_s8 + $0x40b8] sm:$0xff]  ;;  %v8752_v16 = vpack.c.bf16 %v2315_v10, %v2307_v8  ;;  %v2387_v8 = vld [vmem:[%s9315_s8 + $0x42b0] sm:$0xff] }
 0x4cf   : > { %8713 = vmatpush1.bf16.msra.mxu1 %v8712_v20  ;;  %8043 = vmatprep.subr.bf16.mxu0 %v8042_v21  ;;  %v2241_v20 = vld [vmem:[%s9315_s8 + $0x3e20] sm:$0xff]  ;;  %v2332_v14 = vld [vmem:[%s9315_s8 + $0x40f8] sm:$0xff]  ;;  %v2395_v10 = vld [vmem:[%s9315_s8 + $0x42f0] sm:$0xff] }
 0x4d0   : > { %8715 = vmatprep.subr.bf16.mxu1 %v8714_v25  ;;  %v2249_v21 = vld [vmem:[%s9315_s8 + $0x3e60] sm:$0xff]  ;;  %v2258_v25 = vld [vmem:[%s9315_s8 + $0x3ea8] sm:$0xff]  ;;  %v2396_v2 = vld [vmem:[%s9315_s8 + $0x42f8] sm:$0xff] }
 0x4d1   : > { %v8064_v29 = vpack.c.bf16 %v2249_v21, %v2241_v20  ;;  %v2323_v20 = vld [vmem:[%s9315_s8 + $0x40b0] sm:$0xff]  ;;  %v8754_v21 = vpack.c.bf16 %v2332_v14, %v2324_v13  ;;  %v2404_v13 = vld [vmem:[%s9315_s8 + $0x4338] sm:$0xff] }
 0x4d2   : > { %8045 = vmatpush1.bf16.msra.mxu0 %v8044_v31  ;;  %v8066_v31 = vpack.c.bf16 %v2266_v26, %v2258_v25  ;;  %v9063_v25 = vld [vmem:[%s12194_s0 + $0x70] sm:$0xff]  ;;  %v2340_v26 = vld [vmem:[%s9315_s8 + $0x4138] sm:$0xff] }
 0x4d3   : > { %8717 = vmatpush1.bf16.msra.mxu1 %v8716_v32  ;;  %8047 = vmatprep.subr.bf16.mxu0 %v8046_v33  ;;  %v2257_v32 = vld [vmem:[%s9315_s8 + $0x3ea0] sm:$0xff]  ;;  %v8758_v34 = vpack.c.bf16 %v2348_v27, %v2340_v26  ;;  %v2412_v14 = vld [vmem:[%s9315_s8 + $0x4378] sm:$0xff] }
 0x4d4   : > { %8719 = vmatprep.subr.bf16.mxu1 %v8718_v37  ;;  %v2265_v33 = vld [vmem:[%s9315_s8 + $0x3ee0] sm:$0xff]  ;;  %v2274_v37 = vld [vmem:[%s9315_s8 + $0x3f28] sm:$0xff]  ;;  %v2428_v26 = vld [vmem:[%s9315_s8 + $0x43f8] sm:$0xff] }
 0x4d5   : > { %v8068_v41 = vpack.c.bf16 %v2265_v33, %v2257_v32  ;;  %v2345_v32 = vld [vmem:[%s9315_s8 + $0x4160] sm:$0xff]  ;;  %v2339_v33 = vld [vmem:[%s9315_s8 + $0x4130] sm:$0xff] }
 0x4d6   : > { %8049 = vmatpush1.bf16.msra.mxu0 %v8048_v43  ;;  %v8070_v43 = vpack.c.bf16 %v2282_v38, %v2274_v37  ;;  %v2362_v37 = vld [vmem:[%s9315_s8 + $0x41e8] sm:$0xff] }
 0x4d7   : > { %8721 = vmatpush1.bf16.msra.mxu1 %v8720_v44  ;;  %8051 = vmatprep.subr.bf16.mxu0 %v8050_v45  ;;  %v2273_v44 = vld [vmem:[%s9315_s8 + $0x3f20] sm:$0xff]  ;;  %v9064_v38 = vld [vmem:[%s12194_s0 + $0x88] sm:$0xff] }
 0x4d8   : > { %8723 = vmatprep.subr.bf16.mxu1 %v8722_v49  ;;  %v2281_v45 = vld [vmem:[%s9315_s8 + $0x3f60] sm:$0xff]  ;;  %v2290_v49 = vld [vmem:[%s9315_s8 + $0x3fa8] sm:$0xff] }
 0x4d9   : > { %v8072_v53 = vpack.c.bf16 %v2281_v45, %v2273_v44  ;;  %v2353_v44 = vld [vmem:[%s9315_s8 + $0x41a0] sm:$0xff] }
 0x4da   : > { %8053 = vmatpush1.bf16.msra.mxu0 %v8052_v55  ;;  %v8074_v55 = vpack.c.bf16 %v2298_v50, %v2290_v49  ;;  %v2361_v45 = vld [vmem:[%s9315_s8 + $0x41e0] sm:$0xff]  ;;  %v2370_v49 = vld [vmem:[%s9315_s8 + $0x4228] sm:$0xff] }
 0x4db   : > { %8725 = vmatpush1.bf16.msra.mxu1 %v8724_v57  ;;  %8055 = vmatprep.subr.bf16.mxu0 %v8054_v58  ;;  %v2289_v57 = vld [vmem:[%s9315_s8 + $0x3fa0] sm:$0xff]  ;;  %v2378_v50 = vld [vmem:[%s9315_s8 + $0x4268] sm:$0xff] }
 0x4dc   : > { %8727 = vmatprep.subr.bf16.mxu1 %v8726_v63  ;;  %v2297_v58 = vld [vmem:[%s9315_s8 + $0x3fe0] sm:$0xff]  ;;  %v2306_v63 = vld [vmem:[%s9315_s8 + $0x4028] sm:$0xff] }
 0x4dd   : > { %v8076_v3 = vpack.c.bf16 %v2297_v58, %v2289_v57  ;;  %v2369_v57 = vld [vmem:[%s9315_s8 + $0x4220] sm:$0xff] }
 0x4de   : > { %8057 = vmatpush1.bf16.msra.mxu0 %v8056_v5  ;;  %v8078_v5 = vpack.c.bf16 %v2314_v0, %v2306_v63  ;;  %v2377_v58 = vld [vmem:[%s9315_s8 + $0x4260] sm:$0xff]  ;;  %v2386_v63 = vld [vmem:[%s9315_s8 + $0x42a8] sm:$0xff] }
 0x4df   : > { %8729 = vmatpush1.bf16.msra.mxu1 %v8728_v6  ;;  %8059 = vmatprep.subr.bf16.mxu0 %v8058_v7  ;;  %v2305_v6 = vld [vmem:[%s9315_s8 + $0x4020] sm:$0xff]  ;;  %v2394_v0 = vld [vmem:[%s9315_s8 + $0x42e8] sm:$0xff] }
 0x4e0   : > { %8731 = vmatprep.subr.bf16.mxu1 %v8730_v11  ;;  %v2313_v7 = vld [vmem:[%s9315_s8 + $0x4060] sm:$0xff]  ;;  %v2322_v11 = vld [vmem:[%s9315_s8 + $0x40a8] sm:$0xff] }
 0x4e1   : > { %v8080_v15 = vpack.c.bf16 %v2313_v7, %v2305_v6  ;;  %v2385_v6 = vld [vmem:[%s9315_s8 + $0x42a0] sm:$0xff] }
 0x4e2   : > { %8061 = vmatpush1.bf16.msra.mxu0 %v8060_v17  ;;  %v8082_v17 = vpack.c.bf16 %v2330_v12, %v2322_v11  ;;  %v2393_v7 = vld [vmem:[%s9315_s8 + $0x42e0] sm:$0xff]  ;;  %v2402_v11 = vld [vmem:[%s9315_s8 + $0x4328] sm:$0xff] }
 0x4e3   : > { %8733 = vmatpush1.bf16.msra.mxu1 %v8732_v18  ;;  %8063 = vmatprep.subr.bf16.mxu0 %v8062_v19  ;;  %v2321_v18 = vld [vmem:[%s9315_s8 + $0x40a0] sm:$0xff]  ;;  %v2410_v12 = vld [vmem:[%s9315_s8 + $0x4368] sm:$0xff] }
 0x4e4   : > { %8735 = vmatprep.subr.bf16.mxu1 %v8734_v23  ;;  %v2329_v19 = vld [vmem:[%s9315_s8 + $0x40e0] sm:$0xff]  ;;  %v2338_v23 = vld [vmem:[%s9315_s8 + $0x4128] sm:$0xff] }
 0x4e5   : > { %v8084_v28 = vpack.c.bf16 %v2329_v19, %v2321_v18  ;;  %v2401_v18 = vld [vmem:[%s9315_s8 + $0x4320] sm:$0xff] }
 0x4e6   : > { %8065 = vmatpush1.bf16.msra.mxu0 %v8064_v29  ;;  %v8756_v29 = vpack.c.bf16 %v2331_v22, %v2323_v20  ;;  %v2409_v19 = vld [vmem:[%s9315_s8 + $0x4360] sm:$0xff]  ;;  %v2403_v20 = vld [vmem:[%s9315_s8 + $0x4330] sm:$0xff] }
 0x4e7   : > { %8737 = vmatpush1.bf16.msra.mxu1 %v8736_v30  ;;  %8067 = vmatprep.subr.bf16.mxu0 %v8066_v31  ;;  %v8086_v30 = vpack.c.bf16 %v2346_v24, %v2338_v23  ;;  %v2337_v31 = vld [vmem:[%s9315_s8 + $0x4120] sm:$0xff]  ;;  %v2411_v22 = vld [vmem:[%s9315_s8 + $0x4370] sm:$0xff]  ;;  %v2418_v23 = vld [vmem:[%s9315_s8 + $0x43a8] sm:$0xff]  ;;  %v8104_v27 = vpack.c.bf16 %v2409_v19, %v2401_v18 }
 0x4e8   : > { %8739 = vmatprep.subr.bf16.mxu1 %v8738_v35  ;;  %v2347_v35 = vld [vmem:[%s9315_s8 + $0x4170] sm:$0xff]  ;;  %v2426_v24 = vld [vmem:[%s9315_s8 + $0x43e8] sm:$0xff] }
 0x4e9   : > { %v2483_v18 = vld [vmem:[%s9315_s8 + $0x45b0] sm:$0xff] }
 0x4ea   : > { %8069 = vmatpush1.bf16.msra.mxu0 %v8068_v41  ;;  %v8088_v41 = vpack.c.bf16 %v2345_v32, %v2337_v31  ;;  %v2425_v31 = vld [vmem:[%s9315_s8 + $0x43e0] sm:$0xff]  ;;  %v2419_v32 = vld [vmem:[%s9315_s8 + $0x43b0] sm:$0xff] }
 0x4eb   : > { %8741 = vmatpush1.bf16.msra.mxu1 %v8740_v42  ;;  %8071 = vmatprep.subr.bf16.mxu0 %v8070_v43  ;;  %v8760_v42 = vpack.c.bf16 %v2347_v35, %v2339_v33  ;;  %v8090_v43 = vpack.c.bf16 %v2362_v37, %v2354_v36  ;;  %v2434_v35 = vld [vmem:[%s9315_s8 + $0x4428] sm:$0xff]  ;;  %v2436_v37 = vld [vmem:[%s9315_s8 + $0x4438] sm:$0xff] }
 0x4ec   : > { %8743 = vmatprep.subr.bf16.mxu1 %v8742_v47  ;;  %v8762_v47 = vpack.c.bf16 %v2364_v40, %v2356_v39  ;;  %v2442_v36 = vld [vmem:[%s9315_s8 + $0x4468] sm:$0xff] }
 0x4ee   : > { %8073 = vmatpush1.bf16.msra.mxu0 %v8072_v53  ;;  %v8092_v53 = vpack.c.bf16 %v2361_v45, %v2353_v44  ;;  %v2435_v44 = vld [vmem:[%s9315_s8 + $0x4430] sm:$0xff] }
 0x4ef   : > { %8745 = vmatpush1.bf16.msra.mxu1 %v8744_v54  ;;  %8075 = vmatprep.subr.bf16.mxu0 %v8074_v55  ;;  %v8764_v54 = vpack.c.bf16 %v2363_v48, %v2355_v46  ;;  %v8094_v55 = vpack.c.bf16 %v2378_v50, %v2370_v49  ;;  %v2443_v46 = vld [vmem:[%s9315_s8 + $0x4470] sm:$0xff]  ;;  %v2458_v48 = vld [vmem:[%s9315_s8 + $0x44e8] sm:$0xff]  ;;  %v2452_v49 = vld [vmem:[%s9315_s8 + $0x44b8] sm:$0xff] }
 0x4f0   : > { %8747 = vmatprep.subr.bf16.mxu1 %v8746_v61  ;;  %v8766_v61 = vpack.c.bf16 %v2380_v52, %v2372_v51  ;;  %v2460_v50 = vld [vmem:[%s9315_s8 + $0x44f8] sm:$0xff]  ;;  %v8784_v52 = vpack.c.bf16 %v2443_v46, %v2435_v44  ;;  %v2523_v44 = vld [vmem:[%s9315_s8 + $0x46f0] sm:$0xff]  ;;  %v2538_v46 = vld [vmem:[%s9315_s8 + $0x4768] sm:$0xff] }
 0x4f2   : > { %8077 = vmatpush1.bf16.msra.mxu0 %v8076_v3  ;;  %v8096_v3 = vpack.c.bf16 %v2377_v58, %v2369_v57  ;;  %v2451_v57 = vld [vmem:[%s9315_s8 + $0x44b0] sm:$0xff]  ;;  %v8786_v58 = vpack.c.bf16 %v2460_v50, %v2452_v49 }
 0x4f3   : > { %8749 = vmatpush1.bf16.msra.mxu1 %v8748_v4  ;;  %8079 = vmatprep.subr.bf16.mxu0 %v8078_v5  ;;  %v8768_v4 = vpack.c.bf16 %v2379_v62, %v2371_v60  ;;  %v8098_v5 = vpack.c.bf16 %v2394_v0, %v2386_v63  ;;  %v2459_v60 = vld [vmem:[%s9315_s8 + $0x44f0] sm:$0xff]  ;;  %v2474_v62 = vld [vmem:[%s9315_s8 + $0x4568] sm:$0xff]  ;;  %v2468_v63 = vld [vmem:[%s9315_s8 + $0x4538] sm:$0xff] }
 0x4f4   : > { %8751 = vmatprep.subr.bf16.mxu1 %v8750_v9  ;;  %v8770_v9 = vpack.c.bf16 %v2396_v2, %v2388_v1  ;;  %v2476_v0 = vld [vmem:[%s9315_s8 + $0x4578] sm:$0xff]  ;;  %v8788_v2 = vpack.c.bf16 %v2459_v60, %v2451_v57  ;;  %v2539_v57 = vld [vmem:[%s9315_s8 + $0x4770] sm:$0xff]  ;;  %v2554_v60 = vld [vmem:[%s9315_s8 + $0x47e8] sm:$0xff] }
 0x4f5   : > { %5107 = vmatmul.mubr.f32.vlgmr.msra.gmra.mrb[2].mxu0 %v9063_v25 }
 0x4f6   : > { %8081 = vmatpush1.bf16.msra.mxu0 %v8080_v15  ;;  %5888 = vmatmul.mubr.f32.vlgmr.msra.gmra.mrb[2].mxu1 %v9063_v25  ;;  %v8100_v15 = vpack.c.bf16 %v2393_v7, %v2385_v6  ;;  %v2420_v25 = vld [vmem:[%s9315_s8 + $0x43b8] sm:$0xff]  ;;  %v2467_v6 = vld [vmem:[%s9315_s8 + $0x4530] sm:$0xff]  ;;  %v8790_v7 = vpack.c.bf16 %v2476_v0, %v2468_v63 }
 0x4f7   : > { %8753 = vmatpush1.bf16.msra.mxu1 %v8752_v16  ;;  %8083 = vmatprep.subr.bf16.mxu0 %v8082_v17  ;;  %v8772_v16 = vpack.c.bf16 %v2395_v10, %v2387_v8  ;;  %v8102_v17 = vpack.c.bf16 %v2410_v12, %v2402_v11  ;;  %v8778_v33 = vpack.c.bf16 %v2428_v26, %v2420_v25  ;;  %v2475_v8 = vld [vmem:[%s9315_s8 + $0x4570] sm:$0xff]  ;;  %v2490_v10 = vld [vmem:[%s9315_s8 + $0x45e8] sm:$0xff]  ;;  %v2484_v11 = vld [vmem:[%s9315_s8 + $0x45b8] sm:$0xff] }
 0x4f8   : > { %8755 = vmatprep.subr.bf16.mxu1 %v8754_v21  ;;  %5177 = vmatprep.mubr.f32.mxu0 %v9064_v38  ;;  %v8774_v21 = vpack.c.bf16 %v2412_v14, %v2404_v13  ;;  %v2492_v12 = vld [vmem:[%s9315_s8 + $0x45f8] sm:$0xff]  ;;  %v8792_v14 = vpack.c.bf16 %v2475_v8, %v2467_v6  ;;  %v2555_v6 = vld [vmem:[%s9315_s8 + $0x47f0] sm:$0xff]  ;;  %v2570_v8 = vld [vmem:[%s9315_s8 + $0x4868] sm:$0xff] }
 0x4f9   : > { %5958 = vmatprep.mubr.f32.mxu1 %v9064_v38  ;;  %v2444_v38 = vld [vmem:[%s9315_s8 + $0x4478] sm:$0xff]  ;;  %v8794_v19 = vpack.c.bf16 %v2492_v12, %v2484_v11 }
 0x4fa   : > { %8085 = vmatpush1.bf16.msra.mxu0 %v8084_v28  ;;  %v8776_v28 = vpack.c.bf16 %v2411_v22, %v2403_v20  ;;  %v8782_v45 = vpack.c.bf16 %v2444_v38, %v2436_v37  ;;  %v2491_v20 = vld [vmem:[%s9315_s8 + $0x45f0] sm:$0xff]  ;;  %v2506_v22 = vld [vmem:[%s9315_s8 + $0x4668] sm:$0xff] }
 0x4fb   : > { %8757 = vmatpush1.bf16.msra.mxu1 %v8756_v29  ;;  %8087 = vmatprep.subr.bf16.mxu0 %v8086_v30  ;;  %v8106_v29 = vpack.c.bf16 %v2426_v24, %v2418_v23  ;;  %v2417_v30 = vld [vmem:[%s9315_s8 + $0x43a0] sm:$0xff]  ;;  %v2500_v23 = vld [vmem:[%s9315_s8 + $0x4638] sm:$0xff]  ;;  %v8796_v26 = vpack.c.bf16 %v2491_v20, %v2483_v18  ;;  %v2571_v18 = vld [vmem:[%s9315_s8 + $0x4870] sm:$0xff] }
 0x4fc   : > { %8759 = vmatprep.subr.bf16.mxu1 %v8758_v34  ;;  %v2427_v34 = vld [vmem:[%s9315_s8 + $0x43f0] sm:$0xff]  ;;  %v8108_v39 = vpack.c.bf16 %v2425_v31, %v2417_v30  ;;  %v2508_v24 = vld [vmem:[%s9315_s8 + $0x4678] sm:$0xff]  ;;  %v2586_v20 = vld [vmem:[%s9315_s8 + $0x48e8] sm:$0xff] }
 0x4fd   : > { %v8780_v40 = vpack.c.bf16 %v2427_v34, %v2419_v32  ;;  %v2499_v30 = vld [vmem:[%s9315_s8 + $0x4630] sm:$0xff]  ;;  %v8798_v31 = vpack.c.bf16 %v2508_v24, %v2500_v23  ;;  %v2522_v34 = vld [vmem:[%s9315_s8 + $0x46e8] sm:$0xff] }
 0x4fe   : > { %8089 = vmatpush1.bf16.msra.mxu0 %v8088_v41  ;;  %v8110_v41 = vpack.c.bf16 %v2442_v36, %v2434_v35  ;;  %v2507_v32 = vld [vmem:[%s9315_s8 + $0x4670] sm:$0xff]  ;;  %v2516_v35 = vld [vmem:[%s9315_s8 + $0x46b8] sm:$0xff] }
 0x4ff   : > { %8761 = vmatpush1.bf16.msra.mxu1 %v8760_v42  ;;  %8091 = vmatprep.subr.bf16.mxu0 %v8090_v43  ;;  %v2433_v42 = vld [vmem:[%s9315_s8 + $0x4420] sm:$0xff]  ;;  %v2524_v36 = vld [vmem:[%s9315_s8 + $0x46f8] sm:$0xff]  ;;  %v8800_v38 = vpack.c.bf16 %v2507_v32, %v2499_v30  ;;  %v2587_v30 = vld [vmem:[%s9315_s8 + $0x48f0] sm:$0xff] }
 0x500   : > { %8763 = vmatprep.subr.bf16.mxu1 %v8762_v47  ;;  %v2441_v43 = vld [vmem:[%s9315_s8 + $0x4460] sm:$0xff]  ;;  %v2450_v47 = vld [vmem:[%s9315_s8 + $0x44a8] sm:$0xff] }
 0x501   : > { %v8112_v51 = vpack.c.bf16 %v2441_v43, %v2433_v42  ;;  %v2515_v42 = vld [vmem:[%s9315_s8 + $0x46b0] sm:$0xff]  ;;  %v8802_v43 = vpack.c.bf16 %v2524_v36, %v2516_v35  ;;  %v2602_v32 = vld [vmem:[%s9315_s8 + $0x4968] sm:$0xff]  ;;  %v2604_v35 = vld [vmem:[%s9315_s8 + $0x4978] sm:$0xff] }
 0x502   : > { %8093 = vmatpush1.bf16.msra.mxu0 %v8092_v53  ;;  %v8114_v53 = vpack.c.bf16 %v2458_v48, %v2450_v47  ;;  %v2532_v47 = vld [vmem:[%s9315_s8 + $0x4738] sm:$0xff]  ;;  %v8804_v50 = vpack.c.bf16 %v2523_v44, %v2515_v42  ;;  %v2610_v44 = vld [vmem:[%s9315_s8 + $0x49a8] sm:$0xff] }
 0x503   : > { %8765 = vmatpush1.bf16.msra.mxu1 %v8764_v54  ;;  %8095 = vmatprep.subr.bf16.mxu0 %v8094_v55  ;;  %v2449_v54 = vld [vmem:[%s9315_s8 + $0x44a0] sm:$0xff]  ;;  %v2540_v48 = vld [vmem:[%s9315_s8 + $0x4778] sm:$0xff] }
 0x504   : > { %8767 = vmatprep.subr.bf16.mxu1 %v8766_v61  ;;  %v2457_v55 = vld [vmem:[%s9315_s8 + $0x44e0] sm:$0xff]  ;;  %v2466_v61 = vld [vmem:[%s9315_s8 + $0x4528] sm:$0xff] }
 0x505   : > { %v8116_v1 = vpack.c.bf16 %v2457_v55, %v2449_v54  ;;  %v2531_v54 = vld [vmem:[%s9315_s8 + $0x4730] sm:$0xff]  ;;  %v8806_v55 = vpack.c.bf16 %v2540_v48, %v2532_v47  ;;  %v2612_v47 = vld [vmem:[%s9315_s8 + $0x49b8] sm:$0xff] }
 0x506   : > { %8097 = vmatpush1.bf16.msra.mxu0 %v8096_v3  ;;  %v8118_v3 = vpack.c.bf16 %v2474_v62, %v2466_v61  ;;  %v2548_v61 = vld [vmem:[%s9315_s8 + $0x47b8] sm:$0xff]  ;;  %v8808_v0 = vpack.c.bf16 %v2539_v57, %v2531_v54  ;;  %v2611_v54 = vld [vmem:[%s9315_s8 + $0x49b0] sm:$0xff] }
 0x507   : > { %8769 = vmatpush1.bf16.msra.mxu1 %v8768_v4  ;;  %8099 = vmatprep.subr.bf16.mxu0 %v8098_v5  ;;  %v2465_v4 = vld [vmem:[%s9315_s8 + $0x4520] sm:$0xff]  ;;  %v2556_v62 = vld [vmem:[%s9315_s8 + $0x47f8] sm:$0xff]  ;;  %v2619_v57 = vld [vmem:[%s9315_s8 + $0x49f0] sm:$0xff] }
 0x508   : > { %8771 = vmatprep.subr.bf16.mxu1 %v8770_v9  ;;  %v2473_v5 = vld [vmem:[%s9315_s8 + $0x4560] sm:$0xff]  ;;  %v2482_v9 = vld [vmem:[%s9315_s8 + $0x45a8] sm:$0xff]  ;;  %v2620_v48 = vld [vmem:[%s9315_s8 + $0x49f8] sm:$0xff] }
 0x509   : > { %v8120_v13 = vpack.c.bf16 %v2473_v5, %v2465_v4  ;;  %v2547_v4 = vld [vmem:[%s9315_s8 + $0x47b0] sm:$0xff]  ;;  %v8810_v5 = vpack.c.bf16 %v2556_v62, %v2548_v61  ;;  %v2628_v61 = vld [vmem:[%s9315_s8 + $0x4a38] sm:$0xff] }
 0x50a   : > { %8101 = vmatpush1.bf16.msra.mxu0 %v8100_v15  ;;  %v8122_v15 = vpack.c.bf16 %v2490_v10, %v2482_v9  ;;  %v2564_v9 = vld [vmem:[%s9315_s8 + $0x4838] sm:$0xff]  ;;  %v8812_v12 = vpack.c.bf16 %v2555_v6, %v2547_v4  ;;  %v2627_v4 = vld [vmem:[%s9315_s8 + $0x4a30] sm:$0xff] }
 0x50b   : > { %8773 = vmatpush1.bf16.msra.mxu1 %v8772_v16  ;;  %8103 = vmatprep.subr.bf16.mxu0 %v8102_v17  ;;  %v2481_v16 = vld [vmem:[%s9315_s8 + $0x45a0] sm:$0xff]  ;;  %v2572_v10 = vld [vmem:[%s9315_s8 + $0x4878] sm:$0xff]  ;;  %v2635_v6 = vld [vmem:[%s9315_s8 + $0x4a70] sm:$0xff] }
 0x50c   : > { %8775 = vmatprep.subr.bf16.mxu1 %v8774_v21  ;;  %v2489_v17 = vld [vmem:[%s9315_s8 + $0x45e0] sm:$0xff]  ;;  %v2498_v21 = vld [vmem:[%s9315_s8 + $0x4628] sm:$0xff]  ;;  %v2636_v62 = vld [vmem:[%s9315_s8 + $0x4a78] sm:$0xff] }
 0x50d   : > { %v8124_v25 = vpack.c.bf16 %v2489_v17, %v2481_v16  ;;  %v2563_v16 = vld [vmem:[%s9315_s8 + $0x4830] sm:$0xff]  ;;  %v8814_v17 = vpack.c.bf16 %v2572_v10, %v2564_v9  ;;  %v2644_v9 = vld [vmem:[%s9315_s8 + $0x4ab8] sm:$0xff] }
 0x50e   : > { %8105 = vmatpush1.bf16.msra.mxu0 %v8104_v27  ;;  %v8126_v27 = vpack.c.bf16 %v2506_v22, %v2498_v21  ;;  %v2580_v21 = vld [vmem:[%s9315_s8 + $0x48b8] sm:$0xff]  ;;  %v8816_v24 = vpack.c.bf16 %v2571_v18, %v2563_v16  ;;  %v2643_v16 = vld [vmem:[%s9315_s8 + $0x4ab0] sm:$0xff] }
 0x50f   : > { %8777 = vmatpush1.bf16.msra.mxu1 %v8776_v28  ;;  %8107 = vmatprep.subr.bf16.mxu0 %v8106_v29  ;;  %v2497_v28 = vld [vmem:[%s9315_s8 + $0x4620] sm:$0xff]  ;;  %v2588_v22 = vld [vmem:[%s9315_s8 + $0x48f8] sm:$0xff]  ;;  %v2651_v18 = vld [vmem:[%s9315_s8 + $0x4af0] sm:$0xff] }
 0x510   : > { %8779 = vmatprep.subr.bf16.mxu1 %v8778_v33  ;;  %v2505_v29 = vld [vmem:[%s9315_s8 + $0x4660] sm:$0xff]  ;;  %v2514_v33 = vld [vmem:[%s9315_s8 + $0x46a8] sm:$0xff]  ;;  %v2652_v10 = vld [vmem:[%s9315_s8 + $0x4af8] sm:$0xff] }
 0x511   : > { %v8128_v37 = vpack.c.bf16 %v2505_v29, %v2497_v28  ;;  %v2579_v28 = vld [vmem:[%s9315_s8 + $0x48b0] sm:$0xff]  ;;  %v8818_v29 = vpack.c.bf16 %v2588_v22, %v2580_v21  ;;  %v2660_v21 = vld [vmem:[%s9315_s8 + $0x4b38] sm:$0xff] }
 0x512   : > { %8109 = vmatpush1.bf16.msra.mxu0 %v8108_v39  ;;  %v8130_v39 = vpack.c.bf16 %v2522_v34, %v2514_v33  ;;  %v9065_v33 = vld [vmem:[%s12194_s0 + $0x80] sm:$0xff]  ;;  %v2596_v34 = vld [vmem:[%s9315_s8 + $0x4938] sm:$0xff] }
 0x513   : > { %8781 = vmatpush1.bf16.msra.mxu1 %v8780_v40  ;;  %8111 = vmatprep.subr.bf16.mxu0 %v8110_v41  ;;  %v2513_v40 = vld [vmem:[%s9315_s8 + $0x46a0] sm:$0xff]  ;;  %v8822_v42 = vpack.c.bf16 %v2604_v35, %v2596_v34  ;;  %v2668_v22 = vld [vmem:[%s9315_s8 + $0x4b78] sm:$0xff] }
 0x514   : > { %8783 = vmatprep.subr.bf16.mxu1 %v8782_v45  ;;  %v2521_v41 = vld [vmem:[%s9315_s8 + $0x46e0] sm:$0xff]  ;;  %v2530_v45 = vld [vmem:[%s9315_s8 + $0x4728] sm:$0xff]  ;;  %v2684_v34 = vld [vmem:[%s9315_s8 + $0x4bf8] sm:$0xff] }
 0x515   : > { %v8132_v49 = vpack.c.bf16 %v2521_v41, %v2513_v40  ;;  %v2601_v40 = vld [vmem:[%s9315_s8 + $0x4960] sm:$0xff]  ;;  %v2595_v41 = vld [vmem:[%s9315_s8 + $0x4930] sm:$0xff] }
 0x516   : > { %8113 = vmatpush1.bf16.msra.mxu0 %v8112_v51  ;;  %v8134_v51 = vpack.c.bf16 %v2538_v46, %v2530_v45  ;;  %v2618_v45 = vld [vmem:[%s9315_s8 + $0x49e8] sm:$0xff]  ;;  %v9066_v46 = vld [vmem:[%s12194_s0 + $0x98] sm:$0xff] }
 0x517   : > { %8785 = vmatpush1.bf16.msra.mxu1 %v8784_v52  ;;  %8115 = vmatprep.subr.bf16.mxu0 %v8114_v53  ;;  %v2529_v52 = vld [vmem:[%s9315_s8 + $0x4720] sm:$0xff] }
 0x518   : > { %8787 = vmatprep.subr.bf16.mxu1 %v8786_v58  ;;  %v2537_v53 = vld [vmem:[%s9315_s8 + $0x4760] sm:$0xff]  ;;  %v2546_v58 = vld [vmem:[%s9315_s8 + $0x47a8] sm:$0xff] }
 0x519   : > { %v8136_v63 = vpack.c.bf16 %v2537_v53, %v2529_v52  ;;  %v2609_v52 = vld [vmem:[%s9315_s8 + $0x49a0] sm:$0xff] }
 0x51a   : > { %8117 = vmatpush1.bf16.msra.mxu0 %v8116_v1  ;;  %v8138_v1 = vpack.c.bf16 %v2554_v60, %v2546_v58  ;;  %v2617_v53 = vld [vmem:[%s9315_s8 + $0x49e0] sm:$0xff]  ;;  %v2626_v58 = vld [vmem:[%s9315_s8 + $0x4a28] sm:$0xff] }
 0x51b   : > { %8789 = vmatpush1.bf16.msra.mxu1 %v8788_v2  ;;  %8119 = vmatprep.subr.bf16.mxu0 %v8118_v3  ;;  %v2545_v2 = vld [vmem:[%s9315_s8 + $0x47a0] sm:$0xff]  ;;  %v2634_v60 = vld [vmem:[%s9315_s8 + $0x4a68] sm:$0xff] }
 0x51c   : > { %8791 = vmatprep.subr.bf16.mxu1 %v8790_v7  ;;  %v2553_v3 = vld [vmem:[%s9315_s8 + $0x47e0] sm:$0xff]  ;;  %v2562_v7 = vld [vmem:[%s9315_s8 + $0x4828] sm:$0xff] }
 0x51d   : > { %v8140_v11 = vpack.c.bf16 %v2553_v3, %v2545_v2  ;;  %v2625_v2 = vld [vmem:[%s9315_s8 + $0x4a20] sm:$0xff] }
 0x51e   : > { %8121 = vmatpush1.bf16.msra.mxu0 %v8120_v13  ;;  %v8142_v13 = vpack.c.bf16 %v2570_v8, %v2562_v7  ;;  %v2633_v3 = vld [vmem:[%s9315_s8 + $0x4a60] sm:$0xff]  ;;  %v2642_v7 = vld [vmem:[%s9315_s8 + $0x4aa8] sm:$0xff] }
 0x51f   : > { %8793 = vmatpush1.bf16.msra.mxu1 %v8792_v14  ;;  %8123 = vmatprep.subr.bf16.mxu0 %v8122_v15  ;;  %v2561_v14 = vld [vmem:[%s9315_s8 + $0x4820] sm:$0xff]  ;;  %v2650_v8 = vld [vmem:[%s9315_s8 + $0x4ae8] sm:$0xff] }
 0x520   : > { %8795 = vmatprep.subr.bf16.mxu1 %v8794_v19  ;;  %v2569_v15 = vld [vmem:[%s9315_s8 + $0x4860] sm:$0xff]  ;;  %v2578_v19 = vld [vmem:[%s9315_s8 + $0x48a8] sm:$0xff] }
 0x521   : > { %v8144_v23 = vpack.c.bf16 %v2569_v15, %v2561_v14  ;;  %v2641_v14 = vld [vmem:[%s9315_s8 + $0x4aa0] sm:$0xff] }
 0x522   : > { %8125 = vmatpush1.bf16.msra.mxu0 %v8124_v25  ;;  %v8146_v25 = vpack.c.bf16 %v2586_v20, %v2578_v19  ;;  %v2649_v15 = vld [vmem:[%s9315_s8 + $0x4ae0] sm:$0xff]  ;;  %v2658_v19 = vld [vmem:[%s9315_s8 + $0x4b28] sm:$0xff] }
 0x523   : > { %8797 = vmatpush1.bf16.msra.mxu1 %v8796_v26  ;;  %8127 = vmatprep.subr.bf16.mxu0 %v8126_v27  ;;  %v2577_v26 = vld [vmem:[%s9315_s8 + $0x48a0] sm:$0xff]  ;;  %v2666_v20 = vld [vmem:[%s9315_s8 + $0x4b68] sm:$0xff] }
 0x524   : > { %8799 = vmatprep.subr.bf16.mxu1 %v8798_v31  ;;  %v2585_v27 = vld [vmem:[%s9315_s8 + $0x48e0] sm:$0xff]  ;;  %v2594_v31 = vld [vmem:[%s9315_s8 + $0x4928] sm:$0xff] }
 0x525   : > { %v8148_v36 = vpack.c.bf16 %v2585_v27, %v2577_v26  ;;  %v2657_v26 = vld [vmem:[%s9315_s8 + $0x4b20] sm:$0xff] }
 0x526   : > { %8129 = vmatpush1.bf16.msra.mxu0 %v8128_v37  ;;  %v8820_v37 = vpack.c.bf16 %v2587_v30, %v2579_v28  ;;  %v2665_v27 = vld [vmem:[%s9315_s8 + $0x4b60] sm:$0xff]  ;;  %v2659_v28 = vld [vmem:[%s9315_s8 + $0x4b30] sm:$0xff] }
 0x527   : > { %8801 = vmatpush1.bf16.msra.mxu1 %v8800_v38  ;;  %8131 = vmatprep.subr.bf16.mxu0 %v8130_v39  ;;  %v8150_v38 = vpack.c.bf16 %v2602_v32, %v2594_v31  ;;  %v2593_v39 = vld [vmem:[%s9315_s8 + $0x4920] sm:$0xff]  ;;  %v2667_v30 = vld [vmem:[%s9315_s8 + $0x4b70] sm:$0xff]  ;;  %v2674_v31 = vld [vmem:[%s9315_s8 + $0x4ba8] sm:$0xff]  ;;  %v8168_v35 = vpack.c.bf16 %v2665_v27, %v2657_v26 }
 0x528   : > { %8803 = vmatprep.subr.bf16.mxu1 %v8802_v43  ;;  %v2603_v43 = vld [vmem:[%s9315_s8 + $0x4970] sm:$0xff]  ;;  %v2682_v32 = vld [vmem:[%s9315_s8 + $0x4be8] sm:$0xff] }
 0x529   : > { %v2739_v26 = vld [vmem:[%s9315_s8 + $0x4db0] sm:$0xff] }
 0x52a   : > { %8133 = vmatpush1.bf16.msra.mxu0 %v8132_v49  ;;  %v8152_v49 = vpack.c.bf16 %v2601_v40, %v2593_v39  ;;  %v2681_v39 = vld [vmem:[%s9315_s8 + $0x4be0] sm:$0xff]  ;;  %v2675_v40 = vld [vmem:[%s9315_s8 + $0x4bb0] sm:$0xff] }
 0x52b   : > { %8805 = vmatpush1.bf16.msra.mxu1 %v8804_v50  ;;  %8135 = vmatprep.subr.bf16.mxu0 %v8134_v51  ;;  %v8824_v50 = vpack.c.bf16 %v2603_v43, %v2595_v41  ;;  %v8154_v51 = vpack.c.bf16 %v2618_v45, %v2610_v44  ;;  %v2690_v43 = vld [vmem:[%s9315_s8 + $0x4c28] sm:$0xff]  ;;  %v2692_v45 = vld [vmem:[%s9315_s8 + $0x4c38] sm:$0xff] }
 0x52c   : > { %8807 = vmatprep.subr.bf16.mxu1 %v8806_v55  ;;  %v8826_v55 = vpack.c.bf16 %v2620_v48, %v2612_v47  ;;  %v2698_v44 = vld [vmem:[%s9315_s8 + $0x4c68] sm:$0xff] }
 0x52e   : > { %8137 = vmatpush1.bf16.msra.mxu0 %v8136_v63  ;;  %v8156_v63 = vpack.c.bf16 %v2617_v53, %v2609_v52  ;;  %v2691_v52 = vld [vmem:[%s9315_s8 + $0x4c30] sm:$0xff] }
 0x52f   : > { %8809 = vmatpush1.bf16.msra.mxu1 %v8808_v0  ;;  %8139 = vmatprep.subr.bf16.mxu0 %v8138_v1  ;;  %v8828_v0 = vpack.c.bf16 %v2619_v57, %v2611_v54  ;;  %v8158_v1 = vpack.c.bf16 %v2634_v60, %v2626_v58  ;;  %v2699_v54 = vld [vmem:[%s9315_s8 + $0x4c70] sm:$0xff]  ;;  %v2714_v57 = vld [vmem:[%s9315_s8 + $0x4ce8] sm:$0xff]  ;;  %v2708_v58 = vld [vmem:[%s9315_s8 + $0x4cb8] sm:$0xff] }
 0x530   : > { %8811 = vmatprep.subr.bf16.mxu1 %v8810_v5  ;;  %v8830_v5 = vpack.c.bf16 %v2636_v62, %v2628_v61  ;;  %v2716_v60 = vld [vmem:[%s9315_s8 + $0x4cf8] sm:$0xff]  ;;  %v8848_v62 = vpack.c.bf16 %v2699_v54, %v2691_v52  ;;  %v2779_v52 = vld [vmem:[%s9315_s8 + $0x4ef0] sm:$0xff]  ;;  %v2794_v54 = vld [vmem:[%s9315_s8 + $0x4f68] sm:$0xff] }
 0x532   : > { %8141 = vmatpush1.bf16.msra.mxu0 %v8140_v11  ;;  %v8160_v11 = vpack.c.bf16 %v2633_v3, %v2625_v2  ;;  %v2707_v2 = vld [vmem:[%s9315_s8 + $0x4cb0] sm:$0xff]  ;;  %v8850_v3 = vpack.c.bf16 %v2716_v60, %v2708_v58 }
 0x533   : > { %8813 = vmatpush1.bf16.msra.mxu1 %v8812_v12  ;;  %8143 = vmatprep.subr.bf16.mxu0 %v8142_v13  ;;  %v8832_v12 = vpack.c.bf16 %v2635_v6, %v2627_v4  ;;  %v8162_v13 = vpack.c.bf16 %v2650_v8, %v2642_v7  ;;  %v2715_v4 = vld [vmem:[%s9315_s8 + $0x4cf0] sm:$0xff]  ;;  %v2730_v6 = vld [vmem:[%s9315_s8 + $0x4d68] sm:$0xff]  ;;  %v2724_v7 = vld [vmem:[%s9315_s8 + $0x4d38] sm:$0xff] }
 0x534   : > { %8815 = vmatprep.subr.bf16.mxu1 %v8814_v17  ;;  %v8834_v17 = vpack.c.bf16 %v2652_v10, %v2644_v9  ;;  %v2732_v8 = vld [vmem:[%s9315_s8 + $0x4d78] sm:$0xff]  ;;  %v8852_v10 = vpack.c.bf16 %v2715_v4, %v2707_v2  ;;  %v2795_v2 = vld [vmem:[%s9315_s8 + $0x4f70] sm:$0xff]  ;;  %v2810_v4 = vld [vmem:[%s9315_s8 + $0x4fe8] sm:$0xff] }
 0x535   : > { %5178 = vmatmul.mubr.f32.vlgmr.msra.gmra.mrb[2].mxu0 %v9065_v33 }
 0x536   : > { %8145 = vmatpush1.bf16.msra.mxu0 %v8144_v23  ;;  %5959 = vmatmul.mubr.f32.vlgmr.msra.gmra.mrb[2].mxu1 %v9065_v33  ;;  %v8164_v23 = vpack.c.bf16 %v2649_v15, %v2641_v14  ;;  %v2676_v33 = vld [vmem:[%s9315_s8 + $0x4bb8] sm:$0xff]  ;;  %v2723_v14 = vld [vmem:[%s9315_s8 + $0x4d30] sm:$0xff]  ;;  %v8854_v15 = vpack.c.bf16 %v2732_v8, %v2724_v7 }
 0x537   : > { %8817 = vmatpush1.bf16.msra.mxu1 %v8816_v24  ;;  %8147 = vmatprep.subr.bf16.mxu0 %v8146_v25  ;;  %v8836_v24 = vpack.c.bf16 %v2651_v18, %v2643_v16  ;;  %v8166_v25 = vpack.c.bf16 %v2666_v20, %v2658_v19  ;;  %v8842_v41 = vpack.c.bf16 %v2684_v34, %v2676_v33  ;;  %v2731_v16 = vld [vmem:[%s9315_s8 + $0x4d70] sm:$0xff]  ;;  %v2746_v18 = vld [vmem:[%s9315_s8 + $0x4de8] sm:$0xff]  ;;  %v2740_v19 = vld [vmem:[%s9315_s8 + $0x4db8] sm:$0xff] }
 0x538   : > { %8819 = vmatprep.subr.bf16.mxu1 %v8818_v29  ;;  %5248 = vmatprep.mubr.f32.mxu0 %v9066_v46  ;;  %v8838_v29 = vpack.c.bf16 %v2668_v22, %v2660_v21  ;;  %v2748_v20 = vld [vmem:[%s9315_s8 + $0x4df8] sm:$0xff]  ;;  %v8856_v22 = vpack.c.bf16 %v2731_v16, %v2723_v14  ;;  %v2811_v14 = vld [vmem:[%s9315_s8 + $0x4ff0] sm:$0xff]  ;;  %v2826_v16 = vld [vmem:[%s9315_s8 + $0x5068] sm:$0xff] }
 0x539   : > { %6029 = vmatprep.mubr.f32.mxu1 %v9066_v46  ;;  %v2700_v46 = vld [vmem:[%s9315_s8 + $0x4c78] sm:$0xff]  ;;  %v8858_v27 = vpack.c.bf16 %v2748_v20, %v2740_v19 }
 0x53a   : > { %8149 = vmatpush1.bf16.msra.mxu0 %v8148_v36  ;;  %v8840_v36 = vpack.c.bf16 %v2667_v30, %v2659_v28  ;;  %v8846_v53 = vpack.c.bf16 %v2700_v46, %v2692_v45  ;;  %v2747_v28 = vld [vmem:[%s9315_s8 + $0x4df0] sm:$0xff]  ;;  %v2762_v30 = vld [vmem:[%s9315_s8 + $0x4e68] sm:$0xff] }
 0x53b   : > { %8821 = vmatpush1.bf16.msra.mxu1 %v8820_v37  ;;  %8151 = vmatprep.subr.bf16.mxu0 %v8150_v38  ;;  %v8170_v37 = vpack.c.bf16 %v2682_v32, %v2674_v31  ;;  %v2673_v38 = vld [vmem:[%s9315_s8 + $0x4ba0] sm:$0xff]  ;;  %v2756_v31 = vld [vmem:[%s9315_s8 + $0x4e38] sm:$0xff]  ;;  %v8860_v34 = vpack.c.bf16 %v2747_v28, %v2739_v26  ;;  %v2827_v26 = vld [vmem:[%s9315_s8 + $0x5070] sm:$0xff] }
 0x53c   : > { %8823 = vmatprep.subr.bf16.mxu1 %v8822_v42  ;;  %v2683_v42 = vld [vmem:[%s9315_s8 + $0x4bf0] sm:$0xff]  ;;  %v8172_v47 = vpack.c.bf16 %v2681_v39, %v2673_v38  ;;  %v2764_v32 = vld [vmem:[%s9315_s8 + $0x4e78] sm:$0xff]  ;;  %v2842_v28 = vld [vmem:[%s9315_s8 + $0x50e8] sm:$0xff] }
 0x53d   : > { %v8844_v48 = vpack.c.bf16 %v2683_v42, %v2675_v40  ;;  %v2755_v38 = vld [vmem:[%s9315_s8 + $0x4e30] sm:$0xff]  ;;  %v8862_v39 = vpack.c.bf16 %v2764_v32, %v2756_v31  ;;  %v2778_v42 = vld [vmem:[%s9315_s8 + $0x4ee8] sm:$0xff] }
 0x53e   : > { %8153 = vmatpush1.bf16.msra.mxu0 %v8152_v49  ;;  %v8174_v49 = vpack.c.bf16 %v2698_v44, %v2690_v43  ;;  %v2763_v40 = vld [vmem:[%s9315_s8 + $0x4e70] sm:$0xff]  ;;  %v2772_v43 = vld [vmem:[%s9315_s8 + $0x4eb8] sm:$0xff] }
 0x53f   : > { %8825 = vmatpush1.bf16.msra.mxu1 %v8824_v50  ;;  %8155 = vmatprep.subr.bf16.mxu0 %v8154_v51  ;;  %v2689_v50 = vld [vmem:[%s9315_s8 + $0x4c20] sm:$0xff]  ;;  %v2780_v44 = vld [vmem:[%s9315_s8 + $0x4ef8] sm:$0xff]  ;;  %v8864_v46 = vpack.c.bf16 %v2763_v40, %v2755_v38  ;;  %v2843_v38 = vld [vmem:[%s9315_s8 + $0x50f0] sm:$0xff] }
 0x540   : > { %8827 = vmatprep.subr.bf16.mxu1 %v8826_v55  ;;  %v2697_v51 = vld [vmem:[%s9315_s8 + $0x4c60] sm:$0xff]  ;;  %v2706_v55 = vld [vmem:[%s9315_s8 + $0x4ca8] sm:$0xff] }
 0x541   : > { %v8176_v61 = vpack.c.bf16 %v2697_v51, %v2689_v50  ;;  %v2771_v50 = vld [vmem:[%s9315_s8 + $0x4eb0] sm:$0xff]  ;;  %v8866_v51 = vpack.c.bf16 %v2780_v44, %v2772_v43  ;;  %v2858_v40 = vld [vmem:[%s9315_s8 + $0x5168] sm:$0xff]  ;;  %v2860_v43 = vld [vmem:[%s9315_s8 + $0x5178] sm:$0xff] }
 0x542   : > { %8157 = vmatpush1.bf16.msra.mxu0 %v8156_v63  ;;  %v8178_v63 = vpack.c.bf16 %v2714_v57, %v2706_v55  ;;  %v2788_v55 = vld [vmem:[%s9315_s8 + $0x4f38] sm:$0xff]  ;;  %v8868_v60 = vpack.c.bf16 %v2779_v52, %v2771_v50  ;;  %v2866_v52 = vld [vmem:[%s9315_s8 + $0x51a8] sm:$0xff] }
 0x543   : > { %8829 = vmatpush1.bf16.msra.mxu1 %v8828_v0  ;;  %8159 = vmatprep.subr.bf16.mxu0 %v8158_v1  ;;  %v2705_v0 = vld [vmem:[%s9315_s8 + $0x4ca0] sm:$0xff]  ;;  %v2796_v57 = vld [vmem:[%s9315_s8 + $0x4f78] sm:$0xff] }
 0x544   : > { %8831 = vmatprep.subr.bf16.mxu1 %v8830_v5  ;;  %v2713_v1 = vld [vmem:[%s9315_s8 + $0x4ce0] sm:$0xff]  ;;  %v2722_v5 = vld [vmem:[%s9315_s8 + $0x4d28] sm:$0xff] }
 0x545   : > { %v8180_v9 = vpack.c.bf16 %v2713_v1, %v2705_v0  ;;  %v2787_v0 = vld [vmem:[%s9315_s8 + $0x4f30] sm:$0xff]  ;;  %v8870_v1 = vpack.c.bf16 %v2796_v57, %v2788_v55  ;;  %v2876_v55 = vld [vmem:[%s9315_s8 + $0x51f8] sm:$0xff] }
 0x546   : > { %8161 = vmatpush1.bf16.msra.mxu0 %v8160_v11  ;;  %v8182_v11 = vpack.c.bf16 %v2730_v6, %v2722_v5  ;;  %v2804_v5 = vld [vmem:[%s9315_s8 + $0x4fb8] sm:$0xff]  ;;  %v8872_v8 = vpack.c.bf16 %v2795_v2, %v2787_v0  ;;  %v2882_v2 = vld [vmem:[%s9315_s8 + $0x5228] sm:$0xff] }
 0x547   : > { %8833 = vmatpush1.bf16.msra.mxu1 %v8832_v12  ;;  %8163 = vmatprep.subr.bf16.mxu0 %v8162_v13  ;;  %v2721_v12 = vld [vmem:[%s9315_s8 + $0x4d20] sm:$0xff]  ;;  %v2812_v6 = vld [vmem:[%s9315_s8 + $0x4ff8] sm:$0xff] }
 0x548   : > { %8835 = vmatprep.subr.bf16.mxu1 %v8834_v17  ;;  %v2729_v13 = vld [vmem:[%s9315_s8 + $0x4d60] sm:$0xff]  ;;  %v2738_v17 = vld [vmem:[%s9315_s8 + $0x4da8] sm:$0xff] }
 0x549   : > { %v8184_v21 = vpack.c.bf16 %v2729_v13, %v2721_v12  ;;  %v2803_v12 = vld [vmem:[%s9315_s8 + $0x4fb0] sm:$0xff]  ;;  %v8874_v13 = vpack.c.bf16 %v2812_v6, %v2804_v5 }
 0x54a   : > { %8165 = vmatpush1.bf16.msra.mxu0 %v8164_v23  ;;  %v8186_v23 = vpack.c.bf16 %v2746_v18, %v2738_v17  ;;  %v2820_v17 = vld [vmem:[%s9315_s8 + $0x5038] sm:$0xff]  ;;  %v8876_v20 = vpack.c.bf16 %v2811_v14, %v2803_v12  ;;  %v2891_v12 = vld [vmem:[%s9315_s8 + $0x5270] sm:$0xff]  ;;  %v2906_v14 = vld [vmem:[%s9315_s8 + $0x52e8] sm:$0xff] }
 0x54b   : > { %8837 = vmatpush1.bf16.msra.mxu1 %v8836_v24  ;;  %8167 = vmatprep.subr.bf16.mxu0 %v8166_v25  ;;  %v2737_v24 = vld [vmem:[%s9315_s8 + $0x4da0] sm:$0xff]  ;;  %v2828_v18 = vld [vmem:[%s9315_s8 + $0x5078] sm:$0xff] }
 0x54c   : > { %8839 = vmatprep.subr.bf16.mxu1 %v8838_v29  ;;  %v2745_v25 = vld [vmem:[%s9315_s8 + $0x4de0] sm:$0xff]  ;;  %v2754_v29 = vld [vmem:[%s9315_s8 + $0x4e28] sm:$0xff] }
 0x54d   : > { %v8188_v33 = vpack.c.bf16 %v2745_v25, %v2737_v24  ;;  %v2819_v24 = vld [vmem:[%s9315_s8 + $0x5030] sm:$0xff]  ;;  %v8878_v25 = vpack.c.bf16 %v2828_v18, %v2820_v17 }
 0x54e   : > { %8169 = vmatpush1.bf16.msra.mxu0 %v8168_v35  ;;  %v8190_v35 = vpack.c.bf16 %v2762_v30, %v2754_v29  ;;  %v2836_v29 = vld [vmem:[%s9315_s8 + $0x50b8] sm:$0xff]  ;;  %v8880_v32 = vpack.c.bf16 %v2827_v26, %v2819_v24  ;;  %v2907_v24 = vld [vmem:[%s9315_s8 + $0x52f0] sm:$0xff]  ;;  %v2922_v26 = vld [vmem:[%s9315_s8 + $0x5368] sm:$0xff] }
 0x54f   : > { %8841 = vmatpush1.bf16.msra.mxu1 %v8840_v36  ;;  %8171 = vmatprep.subr.bf16.mxu0 %v8170_v37  ;;  %v2753_v36 = vld [vmem:[%s9315_s8 + $0x4e20] sm:$0xff]  ;;  %v2844_v30 = vld [vmem:[%s9315_s8 + $0x50f8] sm:$0xff] }
 0x550   : > { %8843 = vmatprep.subr.bf16.mxu1 %v8842_v41  ;;  %v2761_v37 = vld [vmem:[%s9315_s8 + $0x4e60] sm:$0xff]  ;;  %v2770_v41 = vld [vmem:[%s9315_s8 + $0x4ea8] sm:$0xff] }
 0x551   : > { %v8192_v45 = vpack.c.bf16 %v2761_v37, %v2753_v36  ;;  %v2835_v36 = vld [vmem:[%s9315_s8 + $0x50b0] sm:$0xff]  ;;  %v8882_v37 = vpack.c.bf16 %v2844_v30, %v2836_v29 }
 0x552   : > { %8173 = vmatpush1.bf16.msra.mxu0 %v8172_v47  ;;  %v8194_v47 = vpack.c.bf16 %v2778_v42, %v2770_v41  ;;  %v9067_v41 = vld [vmem:[%s12194_s0 + $0x90] sm:$0xff]  ;;  %v2852_v42 = vld [vmem:[%s9315_s8 + $0x5138] sm:$0xff] }
 0x553   : > { %8845 = vmatpush1.bf16.msra.mxu1 %v8844_v48  ;;  %8175 = vmatprep.subr.bf16.mxu0 %v8174_v49  ;;  %v2769_v48 = vld [vmem:[%s9315_s8 + $0x4ea0] sm:$0xff]  ;;  %v8886_v50 = vpack.c.bf16 %v2860_v43, %v2852_v42 }
 0x554   : > { %8847 = vmatprep.subr.bf16.mxu1 %v8846_v53  ;;  %v2777_v49 = vld [vmem:[%s9315_s8 + $0x4ee0] sm:$0xff]  ;;  %v2786_v53 = vld [vmem:[%s9315_s8 + $0x4f28] sm:$0xff] }
 0x555   : > { %v8196_v58 = vpack.c.bf16 %v2777_v49, %v2769_v48  ;;  %v2857_v48 = vld [vmem:[%s9315_s8 + $0x5160] sm:$0xff]  ;;  %v2851_v49 = vld [vmem:[%s9315_s8 + $0x5130] sm:$0xff] }
 0x556   : > { %8177 = vmatpush1.bf16.msra.mxu0 %v8176_v61  ;;  %v8198_v61 = vpack.c.bf16 %v2794_v54, %v2786_v53  ;;  %v2874_v53 = vld [vmem:[%s9315_s8 + $0x51e8] sm:$0xff]  ;;  %v2868_v54 = vld [vmem:[%s9315_s8 + $0x51b8] sm:$0xff] }
 0x557   : > { %8849 = vmatpush1.bf16.msra.mxu1 %v8848_v62  ;;  %8179 = vmatprep.subr.bf16.mxu0 %v8178_v63  ;;  %v2785_v62 = vld [vmem:[%s9315_s8 + $0x4f20] sm:$0xff]  ;;  %v8890_v0 = vpack.c.bf16 %v2876_v55, %v2868_v54  ;;  %v2965_v54 = vsub.s32 5, %v11182_v59  ;;  %v2973_v55 = vsub.s32 7, %v11182_v59 }
 0x558   : > { %8851 = vmatprep.subr.bf16.mxu1 %v8850_v3  ;;  %v2793_v63 = vld [vmem:[%s9315_s8 + $0x4f60] sm:$0xff]  ;;  %v2802_v3 = vld [vmem:[%s9315_s8 + $0x4fa8] sm:$0xff] }
 0x559   : > { %v8200_v7 = vpack.c.bf16 %v2793_v63, %v2785_v62  ;;  %v2873_v62 = vld [vmem:[%s9315_s8 + $0x51e0] sm:$0xff]  ;;  %v2867_v63 = vld [vmem:[%s9315_s8 + $0x51b0] sm:$0xff] }
 0x55a   : > { %8181 = vmatpush1.bf16.msra.mxu0 %v8180_v9  ;;  %v8202_v9 = vpack.c.bf16 %v2810_v4, %v2802_v3  ;;  %v2884_v3 = vld [vmem:[%s9315_s8 + $0x5238] sm:$0xff] }
 0x55b   : > { %8853 = vmatpush1.bf16.msra.mxu1 %v8852_v10  ;;  %8183 = vmatprep.subr.bf16.mxu0 %v8182_v11  ;;  %v2801_v10 = vld [vmem:[%s9315_s8 + $0x4fa0] sm:$0xff]  ;;  %v2892_v4 = vld [vmem:[%s9315_s8 + $0x5278] sm:$0xff] }
 0x55c   : > { %8855 = vmatprep.subr.bf16.mxu1 %v8854_v15  ;;  %v2809_v11 = vld [vmem:[%s9315_s8 + $0x4fe0] sm:$0xff]  ;;  %v2818_v15 = vld [vmem:[%s9315_s8 + $0x5028] sm:$0xff] }
 0x55d   : > { %v8204_v19 = vpack.c.bf16 %v2809_v11, %v2801_v10  ;;  %v2883_v10 = vld [vmem:[%s9315_s8 + $0x5230] sm:$0xff]  ;;  %v8894_v11 = vpack.c.bf16 %v2892_v4, %v2884_v3 }
 0x55e   : > { %8185 = vmatpush1.bf16.msra.mxu0 %v8184_v21  ;;  %v8206_v21 = vpack.c.bf16 %v2826_v16, %v2818_v15  ;;  %v2900_v15 = vld [vmem:[%s9315_s8 + $0x52b8] sm:$0xff]  ;;  %v8896_v18 = vpack.c.bf16 %v2891_v12, %v2883_v10 }
 0x55f   : > { %8857 = vmatpush1.bf16.msra.mxu1 %v8856_v22  ;;  %8187 = vmatprep.subr.bf16.mxu0 %v8186_v23  ;;  %v2817_v22 = vld [vmem:[%s9315_s8 + $0x5020] sm:$0xff]  ;;  %v2908_v16 = vld [vmem:[%s9315_s8 + $0x52f8] sm:$0xff] }
 0x560   : > { %8859 = vmatprep.subr.bf16.mxu1 %v8858_v27  ;;  %v2825_v23 = vld [vmem:[%s9315_s8 + $0x5060] sm:$0xff]  ;;  %v2834_v27 = vld [vmem:[%s9315_s8 + $0x50a8] sm:$0xff] }
 0x561   : > { %v8208_v31 = vpack.c.bf16 %v2825_v23, %v2817_v22  ;;  %v2899_v22 = vld [vmem:[%s9315_s8 + $0x52b0] sm:$0xff]  ;;  %v8898_v23 = vpack.c.bf16 %v2908_v16, %v2900_v15 }
 0x562   : > { %8189 = vmatpush1.bf16.msra.mxu0 %v8188_v33  ;;  %v8210_v33 = vpack.c.bf16 %v2842_v28, %v2834_v27  ;;  %v2916_v27 = vld [vmem:[%s9315_s8 + $0x5338] sm:$0xff]  ;;  %v8900_v30 = vpack.c.bf16 %v2907_v24, %v2899_v22 }
 0x563   : > { %8861 = vmatpush1.bf16.msra.mxu1 %v8860_v34  ;;  %8191 = vmatprep.subr.bf16.mxu0 %v8190_v35  ;;  %v2833_v34 = vld [vmem:[%s9315_s8 + $0x50a0] sm:$0xff]  ;;  %v2924_v28 = vld [vmem:[%s9315_s8 + $0x5378] sm:$0xff] }
 0x564   : > { %8863 = vmatprep.subr.bf16.mxu1 %v8862_v39  ;;  %v2841_v35 = vld [vmem:[%s9315_s8 + $0x50e0] sm:$0xff]  ;;  %v2850_v39 = vld [vmem:[%s9315_s8 + $0x5128] sm:$0xff] }
 0x565   : > { %v8212_v44 = vpack.c.bf16 %v2841_v35, %v2833_v34  ;;  %v2915_v34 = vld [vmem:[%s9315_s8 + $0x5330] sm:$0xff]  ;;  %v8902_v35 = vpack.c.bf16 %v2924_v28, %v2916_v27 }
 0x566   : > { %8193 = vmatpush1.bf16.msra.mxu0 %v8192_v45  ;;  %v8884_v45 = vpack.c.bf16 %v2843_v38, %v2835_v36  ;;  %v2923_v36 = vld [vmem:[%s9315_s8 + $0x5370] sm:$0xff]  ;;  %v2938_v38 = vld [vmem:[%s9315_s8 + $0x53e8] sm:$0xff] }
 0x567   : > { %8865 = vmatpush1.bf16.msra.mxu1 %v8864_v46  ;;  %8195 = vmatprep.subr.bf16.mxu0 %v8194_v47  ;;  %v8214_v46 = vpack.c.bf16 %v2858_v40, %v2850_v39  ;;  %v2849_v47 = vld [vmem:[%s9315_s8 + $0x5120] sm:$0xff]  ;;  %v2932_v39 = vld [vmem:[%s9315_s8 + $0x53b8] sm:$0xff]  ;;  %v8904_v42 = vpack.c.bf16 %v2923_v36, %v2915_v34 }
 0x568   : > { %8867 = vmatprep.subr.bf16.mxu1 %v8866_v51  ;;  %v2859_v51 = vld [vmem:[%s9315_s8 + $0x5170] sm:$0xff]  ;;  %v8216_v57 = vpack.c.bf16 %v2857_v48, %v2849_v47  ;;  %v2940_v40 = vld [vmem:[%s9315_s8 + $0x53f8] sm:$0xff] }
 0x569   : > { %v2931_v47 = vld [vmem:[%s9315_s8 + $0x53b0] sm:$0xff] }
 0x56a   : > { %8197 = vmatpush1.bf16.msra.mxu0 %v8196_v58  ;;  %v8888_v58 = vpack.c.bf16 %v2859_v51, %v2851_v49  ;;  %v2939_v48 = vld [vmem:[%s9315_s8 + $0x53f0] sm:$0xff]  ;;  %v9068_v51 = vld [vmem:[%s12194_s0 + $0xa0] sm:$0xff] }
 0x56b   : > { %8869 = vmatpush1.bf16.msra.mxu1 %v8868_v60  ;;  %8199 = vmatprep.subr.bf16.mxu0 %v8198_v61  ;;  %v8218_v60 = vpack.c.bf16 %v2874_v53, %v2866_v52  ;;  %v2865_v61 = vld [vmem:[%s9315_s8 + $0x51a0] sm:$0xff]  ;;  %v2961_v52 = vsub.s32 4, %v11182_v59  ;;  %v2969_v53 = vsub.s32 6, %v11182_v59 }
 0x56c   : > { %8871 = vmatprep.subr.bf16.mxu1 %v8870_v1  ;;  %v2875_v1 = vld [vmem:[%s9315_s8 + $0x51f0] sm:$0xff]  ;;  %v8220_v5 = vpack.c.bf16 %v2873_v62, %v2865_v61 }
 0x56d   : > { %v8892_v6 = vpack.c.bf16 %v2875_v1, %v2867_v63 }
 0x56e   : > { %8201 = vmatpush1.bf16.msra.mxu0 %v8200_v7 }
 0x56f   : > { %8873 = vmatpush1.bf16.msra.mxu1 %v8872_v8  ;;  %8203 = vmatprep.subr.bf16.mxu0 %v8202_v9  ;;  %v2881_v8 = vld [vmem:[%s9315_s8 + $0x5220] sm:$0xff] }
 0x570   : > { %8875 = vmatprep.subr.bf16.mxu1 %v8874_v13  ;;  %v2889_v9 = vld [vmem:[%s9315_s8 + $0x5260] sm:$0xff]  ;;  %v2898_v13 = vld [vmem:[%s9315_s8 + $0x52a8] sm:$0xff] }
 0x571   : > { %v8224_v17 = vpack.c.bf16 %v2889_v9, %v2881_v8 }
 0x572   : > { %8205 = vmatpush1.bf16.msra.mxu0 %v8204_v19  ;;  %v8226_v19 = vpack.c.bf16 %v2906_v14, %v2898_v13 }
 0x573   : > { %8877 = vmatpush1.bf16.msra.mxu1 %v8876_v20  ;;  %8207 = vmatprep.subr.bf16.mxu0 %v8206_v21  ;;  %v2897_v20 = vld [vmem:[%s9315_s8 + $0x52a0] sm:$0xff] }
 0x574   : > { %8879 = vmatprep.subr.bf16.mxu1 %v8878_v25  ;;  %v2905_v21 = vld [vmem:[%s9315_s8 + $0x52e0] sm:$0xff]  ;;  %v2914_v25 = vld [vmem:[%s9315_s8 + $0x5328] sm:$0xff] }
 0x575   : > { %5249 = vmatmul.mubr.f32.vlgmr.msra.gmra.mrb[2].mxu0 %v9067_v41  ;;  %v8228_v29 = vpack.c.bf16 %v2905_v21, %v2897_v20 }
 0x576   : > { %8209 = vmatpush1.bf16.msra.mxu0 %v8208_v31  ;;  %6030 = vmatmul.mubr.f32.vlgmr.msra.gmra.mrb[2].mxu1 %v9067_v41  ;;  %v8230_v31 = vpack.c.bf16 %v2922_v26, %v2914_v25 }
 0x577   : > { %8881 = vmatpush1.bf16.msra.mxu1 %v8880_v32  ;;  %8211 = vmatprep.subr.bf16.mxu0 %v8210_v33  ;;  %v2913_v32 = vld [vmem:[%s9315_s8 + $0x5320] sm:$0xff] }
 0x578   : > { %8883 = vmatprep.subr.bf16.mxu1 %v8882_v37  ;;  %5319 = vmatprep.mubr.f32.mxu0 %v9175_v56  ;;  %v2921_v33 = vld [vmem:[%s9315_s8 + $0x5360] sm:$0xff]  ;;  %v2930_v37 = vld [vmem:[%s9315_s8 + $0x53a8] sm:$0xff] }
 0x579   : > { %6100 = vmatprep.mubr.f32.mxu1 %v9175_v56  ;;  %v2890_v56 = vld [vmem:[%s9315_s8 + $0x5268] sm:$0xff]  ;;  %v8232_v41 = vpack.c.bf16 %v2921_v33, %v2913_v32  ;;  %v8234_v43 = vpack.c.bf16 %v2938_v38, %v2930_v37 }
 0x57a   : > { %8213 = vmatpush1.bf16.msra.mxu0 %v8212_v44  ;;  %v8222_v7 = vpack.c.bf16 %v2890_v56, %v2882_v2  ;;  %v2929_v44 = vld [vmem:[%s9315_s8 + $0x53a0] sm:$0xff] }
 0x57b   : > { %8885 = vmatpush1.bf16.msra.mxu1 %v8884_v45  ;;  %8215 = vmatprep.subr.bf16.mxu0 %v8214_v46  ;;  %v2937_v45 = vld [vmem:[%s9315_s8 + $0x53e0] sm:$0xff]  ;;  %v8906_v46 = vpack.c.bf16 %v2940_v40, %v2932_v39 }
 0x57c   : > { %8887 = vmatprep.subr.bf16.mxu1 %v8886_v50  ;;  %v8236_v49 = vpack.c.bf16 %v2937_v45, %v2929_v44  ;;  %v8908_v50 = vpack.c.bf16 %v2939_v48, %v2931_v47 }
 0x57e   : > { %8217 = vmatpush1.bf16.msra.mxu0 %v8216_v57  ;;  %v9069_v57 = vld [vmem:[%s9321_s30] sm:$0xff] }
 0x57f   : > { %8889 = vmatpush1.bf16.msra.mxu1 %v8888_v58  ;;  %8219 = vmatprep.subr.bf16.mxu0 %v8218_v60  ;;  %v2962_v58 = vrot.slane %v9069_v57, %v2961_v52  ;;  %v2970_v60 = vrot.slane %v9069_v57, %v2969_v53  ;;  %v2966_v61 = vrot.slane %v9069_v57, %v2965_v54 }
 0x580   : > { %8891 = vmatprep.subr.bf16.mxu1 %v8890_v0  ;;  %v2974_v62 = vrot.slane %v9069_v57, %v2973_v55 }
 0x582   : > { %8221 = vmatpush1.bf16.msra.mxu0 %v8220_v5 }
 0x583   : > { %8893 = vmatpush1.bf16.msra.mxu1 %v8892_v6  ;;  %8223 = vmatprep.subr.bf16.mxu0 %v8222_v7 }
 0x584   : > { %8895 = vmatprep.subr.bf16.mxu1 %v8894_v11 }
 0x586   : > { %8225 = vmatpush1.bf16.msra.mxu0 %v8224_v17 }
 0x587   : > { %8897 = vmatpush1.bf16.msra.mxu1 %v8896_v18  ;;  %8227 = vmatprep.subr.bf16.mxu0 %v8226_v19 }
 0x588   : > { %8899 = vmatprep.subr.bf16.mxu1 %v8898_v23 }
 0x58a   : > { %8229 = vmatpush1.bf16.msra.mxu0 %v8228_v29 }
 0x58b   : > { %8901 = vmatpush1.bf16.msra.mxu1 %v8900_v30  ;;  %8231 = vmatprep.subr.bf16.mxu0 %v8230_v31 }
 0x58c   : > { %8903 = vmatprep.subr.bf16.mxu1 %v8902_v35 }
 0x58e   : > { %8233 = vmatpush1.bf16.msra.mxu0 %v8232_v41 }
 0x58f   : > { %8905 = vmatpush1.bf16.msra.mxu1 %v8904_v42  ;;  %8235 = vmatprep.subr.bf16.mxu0 %v8234_v43 }
 0x590   : > { %8907 = vmatprep.subr.bf16.mxu1 %v8906_v46 }
 0x592   : > { %8237 = vmatpush1.bf16.msra.mxu0 %v8236_v49 }
 0x593   : > { %8909 = vmatpush1.bf16.msra.mxu1 %v8908_v50 }
 0x595   : > { %5320 = vmatmul.mubr.f32.vlgmr.msra.gmra.mrb[2].mxu0 %v9068_v51 }
 0x596   : > { %6101 = vmatmul.mubr.f32.vlgmr.msra.gmra.mrb[2].mxu1 %v9068_v51 }
 0x668   : > { %v5321_v63 = vpop.f32.mrb[2].mxu0 }
 0x669   : > { %v8914_v0 = vadd.f32 %v5321_v63, %v2962_v58  ;;  %v6102_v1 = vpop.f32.mrb[2].mxu1  ;;  %v5323_v2 = vpop.f32.mrb[3].mxu0 }
 0x66a   : > { %v8916_v56 = vadd.f32 %v6102_v1, %v2970_v60  ;;  %v8915_v3 = vadd.f32 %v5323_v2, %v2966_v61  ;;  %v6104_v4 = vpop.f32.mrb[3].mxu1 }
 0x66b   : > { %6111 = vst [vmem:[%s11217_s29 + $0x20] sm:$0xff] %v8914_v0  ;;  %v8917_v5 = vadd.f32 %v6104_v4, %v2974_v62 }
 0x66c   : > { %6113 = vst [vmem:[%s11217_s29 + $0x30] sm:$0xff] %v8916_v56  ;;  %6112 = vst [vmem:[%s11217_s29 + $0x28] sm:$0xff] %v8915_v3 }
 0x66d   : > { %6114 = vst [vmem:[%s11217_s29 + $0x38] sm:$0xff] %v8917_v5 }
 0x66e PF: > { %p16_p8 = scmp.ge.s32.totalorder %s9216_s17, 14   ;;  %s12204_s12 = smov %s9160_s13 }
 0x66f   : > { %s12205_s13 = smov %s9164_s14  ;;  %s12206_s14 = smov %s9226_s20 }
 0x670   : > { %s12207_s15 = smov %s9216_s17  ;;  %18 = sbr.rel (!%p16_p8) target bundleno = 5 (0x5), region = 85 }
 0x677   :  { %6137 = vsyncpa [#allocation3], 1 }
 0x678   :  { %6139 = vsyncpa [#allocation3 + $0x1], 1 }
 0x679   :  { %6140 = vsyncpa [#allocation5], 1 }
 0x67a   :  { %6142 = vsyncpa [#allocation5 + $0x1], 1 }

</bundles_post_ra>
